<compile_context>
chip_gen: v7x
topology: tpu7x:2x2x1
jax: 0.10.0
libtpu: 0.0.40
codegen_flags: <defaults>
</compile_context>

<pallas_src>
import functools
import math

import jax
import jax.numpy as jnp
from jax.experimental import pallas as pl
from jax.experimental.pallas import tpu as pltpu

# ---------------- fixed module hyper-params (hard-coded in the PyTorch code) --
TRANS_EMB = 64
N_HEADS = 16
TRANSFORMER_DIM = TRANS_EMB * N_HEADS          # 1024
HEAD_DIM = TRANSFORMER_DIM // N_HEADS          # 64
N_SEQ = 3                                      # (t, y, x) tokens
N_BLOCKS = 4


# ---------------- erf-in-kernel probe ------------------------------------------
def _erf_in_kernel():
    """Check whether jax.lax.erf lowers inside a Mosaic kernel on this build."""
    def k(x_ref, o_ref):
        o_ref[...] = jax.lax.erf(x_ref[...])
    try:
        r = pl.pallas_call(
            k, out_shape=jax.ShapeDtypeStruct((8, 128), jnp.float32)
        )(jnp.zeros((8, 128), jnp.float32))
        jax.block_until_ready(r)
        return True
    except Exception:
        return False


# ---------------- the single fused kernel --------------------------------------
def _fused_kernel(x_ref, y_ref, t_ref, cm_ref,
                  wx1, bx1, wx2, bx2, wy1, by1, wy2, by2,
                  tw1, tw2, tb2,
                  wti, bti, wyi, byi, wxi, bxi,
                  pos_ref, hs_ref, he_ref,
                  wq_ref, bq_ref, wk_ref, bk_ref, wv_ref, bv_ref,
                  woaf_ref, boaf_ref, ga_ref, bna_ref,
                  wf1_ref, bf1_ref, wf2_ref, bf2_ref, gb_ref, bnb_ref,
                  wfin_ref, bfin_ref,
                  out_ref,
                  h_sc, q_sc, k_sc, v_sc,
                  *, batch, gelu_exact):
    i = pl.program_id(0)
    B = batch
    S = N_SEQ
    C = TRANS_EMB

    def lin(v, w_ref, b_ref):
        return jnp.dot(v, w_ref[...], preferred_element_type=jnp.float32) + b_ref[...]

    # ---- step-0 prologue: fused embedding stage writes tokens into h_sc -------
    @pl.when(i == 0)
    def _():
        def leaky(v):                              # PyTorch default slope 0.01
            return jnp.where(v >= 0.0, v, 0.01 * v)
        x_e = lin(leaky(lin(x_ref[...], wx1, bx1)), wx2, bx2)     # (B, embed)
        y_e = lin(leaky(lin(y_ref[...], wy1, by1)), wy2, by2)     # (B, embed)
        t_e = lin(jnp.sin(t_ref[...] * tw1[...]), tw2, tb2)       # TimeSiren
        x_e = x_e * (-(1.0 - cm_ref[...]))          # x_e * -(1 - context_mask)
        # seq-first token layout: rows [0:B]=t, [B:2B]=y, [2B:3B]=x
        h_sc[0:B, :] = lin(t_e, wti, bti) + pos_ref[0:1, :]
        h_sc[B:2 * B, :] = lin(y_e, wyi, byi) + pos_ref[1:2, :]
        h_sc[2 * B:3 * B, :] = lin(x_e, wxi, bxi) + pos_ref[2:3, :]

    x2 = h_sc[...]                                  # (S*B, C) carried activations
    x2_bf = x2.astype(jnp.bfloat16)

    # folded input_to_qkv1 + MHA in-projections, staged in VMEM scratch
    scale = 1.0 / math.sqrt(HEAD_DIM)
    q_sc[...] = lin(x2_bf, wq_ref, bq_ref) * scale  # (S*B, E)
    k_sc[...] = lin(x2_bf, wk_ref, bk_ref)
    v_sc[...] = lin(x2_bf, wv_ref, bv_ref)

    hs = hs_ref[...]                                # (E, H) head-sum matrix
    he = he_ref[...]                                # (H, E) head-expand matrix

    # per-query-position attention; head dots batched over key positions
    attn_parts = []
    for s in range(S):
        q_s = q_sc[s * B:(s + 1) * B, :]            # (B, E)
        qk = jnp.concatenate(
            [q_s * k_sc[sp * B:(sp + 1) * B, :] for sp in range(S)], axis=0)
        sc = jnp.dot(qk, hs, preferred_element_type=jnp.float32)   # (S*B, H)
        scs = [sc[sp * B:(sp + 1) * B, :] for sp in range(S)]
        m = functools.reduce(jnp.maximum, scs)
        ex = [jnp.exp(v - m) for v in scs]
        inv = 1.0 / functools.reduce(jnp.add, ex)
        p = jnp.concatenate([e * inv for e in ex], axis=0)          # (S*B, H)
        pexp = jnp.dot(p, he, preferred_element_type=jnp.float32)   # (S*B, E)
        o_s = None
        for sp in range(S):
            term = pexp[sp * B:(sp + 1) * B, :] * v_sc[sp * B:(sp + 1) * B, :]
            o_s = term if o_s is None else o_s + term               # (B, E)
        # folded out_proj @ attn_to_fcn applied per sequence position
        attn_parts.append(lin(o_s.astype(jnp.bfloat16), woaf_ref, boaf_ref))
    attn_af = jnp.concatenate(attn_parts, axis=0)                   # (S*B, C)

    # BatchNorm1d, training-mode batch stats over all S*B rows per channel
    def batchnorm(v, g_ref, b_ref):
        mu = jnp.mean(v, axis=0, keepdims=True)
        var = jnp.mean((v - mu) ** 2, axis=0, keepdims=True)
        return (v - mu) * jax.lax.rsqrt(var + 1e-5) * g_ref[...] + b_ref[...]

    attn_b = batchnorm(attn_af / 1.414 + x2 / 1.414, ga_ref, bna_ref)

    f = lin(attn_b.astype(jnp.bfloat16), wf1_ref, bf1_ref)
    if gelu_exact:
        f = 0.5 * f * (1.0 + jax.lax.erf(f * (1.0 / math.sqrt(2.0))))
    else:
        # TODO(synk): tanh-approx GELU only if in-kernel erf lowering is unavailable.
        c0 = math.sqrt(2.0 / math.pi)
        f = 0.5 * f * (1.0 + jnp.tanh(c0 * (f + 0.044715 * f ** 3)))
    f = lin(f.astype(jnp.bfloat16), wf2_ref, bf2_ref)

    h_new = batchnorm(f / 1.414 + attn_b / 1.414, gb_ref, bnb_ref)
    h_sc[...] = h_new

    # final linear on the (B, S*C) flatten; only on the last grid step
    @pl.when(i == pl.num_programs(0) - 1)
    def _():
        wfin = wfin_ref[...]                        # (S*C, out_dim)
        acc = bfin_ref[...]
        for s in range(S):
            acc = acc + jnp.dot(h_new[s * B:(s + 1) * B, :],
                                wfin[s * C:(s + 1) * C, :],
                                preferred_element_type=jnp.float32)
        out_ref[...] = acc


def model_forward(prep, y, x, t, context_mask, gelu_exact=True):
    B = x.shape[0]
    out_dim = prep["wfin"].shape[1]
    SB = N_SEQ * B
    cm = context_mask.reshape(B, 1).astype(jnp.float32)
    t2 = t.reshape(B, 1).astype(jnp.float32)

    const_args = [
        x.astype(jnp.float32), y.astype(jnp.float32), t2, cm,
        prep["wx1"], prep["bx1"], prep["wx2"], prep["bx2"],
        prep["wy1"], prep["by1"], prep["wy2"], prep["by2"],
        prep["tw1"], prep["tw2"], prep["tb2"],
        prep["wti"], prep["bti"], prep["wyi"], prep["byi"], prep["wxi"], prep["bxi"],
        prep["pos"], prep["head_sum"], prep["head_expand"],
    ]
    stacked_args = [
        prep["wq_s"], prep["bq_s"], prep["wk_s"], prep["bk_s"],
        prep["wv_s"], prep["bv_s"],
        prep["woaf_s"], prep["boaf_s"], prep["ga_s"], prep["bna_s"],
        prep["wf1_s"], prep["bf1_s"], prep["wf2_s"], prep["bf2_s"],
        prep["gb_s"], prep["bnb_s"],
    ]
    tail_args = [prep["wfin"], prep["bfin"]]

    def const_spec(arr):                        # whole array, resident once
        n = arr.ndim
        return pl.BlockSpec(arr.shape, lambda i: (0,) * n)

    def stacked_spec(arr):                      # per-block weight streaming
        return pl.BlockSpec((None,) + arr.shape[1:], lambda i: (i, 0, 0))

    in_specs = ([const_spec(a) for a in const_args]
                + [stacked_spec(a) for a in stacked_args]
                + [const_spec(a) for a in tail_args])

    kernel = functools.partial(_fused_kernel, batch=B, gelu_exact=gelu_exact)

    return pl.pallas_call(
        kernel,
        out_shape=jax.ShapeDtypeStruct((B, out_dim), jnp.float32),
        grid_spec=pltpu.PrefetchScalarGridSpec(
            num_scalar_prefetch=0,
            grid=(N_BLOCKS,),
            in_specs=in_specs,
            out_specs=pl.BlockSpec((B, out_dim), lambda i: (0, 0)),
            scratch_shapes=[
                pltpu.VMEM((SB, TRANS_EMB), jnp.float32),       # carried tokens
                pltpu.VMEM((SB, TRANSFORMER_DIM), jnp.float32),  # q staging
                pltpu.VMEM((SB, TRANSFORMER_DIM), jnp.float32),  # k staging
                pltpu.VMEM((SB, TRANSFORMER_DIM), jnp.float32),  # v staging
            ]),
        compiler_params=pltpu.CompilerParams(
            dimension_semantics=("arbitrary",),   # blocks carry state -> serial
            vmem_limit_bytes=32 * 1024 * 1024,
        ),
    )(*const_args, *stacked_args, *tail_args)


# ---------------- deterministic parameter init (PyTorch-shaped) ----------------
def init_linear(key, fan_in, fan_out):
    k1, k2 = jax.random.split(key)
    bound = 1.0 / math.sqrt(fan_in)
    w_t = jax.random.uniform(k1, (fan_in, fan_out), jnp.float32, -bound, bound)
    b = jax.random.uniform(k2, (1, fan_out), jnp.float32, -bound, bound)
    return w_t, b


def init_block(key):
    ks = jax.random.split(key, 8)
    p = {}
    p["qkv"] = init_linear(ks[0], TRANS_EMB, TRANSFORMER_DIM * 3)
    p["wq"], p["bq"] = init_linear(ks[1], TRANSFORMER_DIM, TRANSFORMER_DIM)
    p["wk"], p["bk"] = init_linear(ks[2], TRANSFORMER_DIM, TRANSFORMER_DIM)
    p["wv"], p["bv"] = init_linear(ks[3], TRANSFORMER_DIM, TRANSFORMER_DIM)
    p["out_proj"] = init_linear(ks[4], TRANSFORMER_DIM, TRANSFORMER_DIM)
    p["attn_to_fcn"] = init_linear(ks[5], TRANSFORMER_DIM, TRANS_EMB)
    p["fcn1"] = init_linear(ks[6], TRANS_EMB, TRANS_EMB * 4)
    p["fcn2"] = init_linear(ks[7], TRANS_EMB * 4, TRANS_EMB)
    p["bn1a_g"] = jnp.ones((1, TRANS_EMB), jnp.float32)
    p["bn1a_b"] = jnp.zeros((1, TRANS_EMB), jnp.float32)
    p["bn1b_g"] = jnp.ones((1, TRANS_EMB), jnp.float32)
    p["bn1b_b"] = jnp.zeros((1, TRANS_EMB), jnp.float32)
    return p


def init_params(key, x_dim, y_dim, embed_dim, output_dim):
    ks = jax.random.split(key, 13)
    p = {}
    p["x_embed_1"] = init_linear(ks[0], x_dim, embed_dim)
    p["x_embed_2"] = init_linear(ks[1], embed_dim, embed_dim)
    p["y_embed_1"] = init_linear(ks[2], y_dim, embed_dim)
    p["y_embed_2"] = init_linear(ks[3], embed_dim, embed_dim)
    p["t_w1"] = jax.random.uniform(ks[4], (1, embed_dim), jnp.float32, -1.0, 1.0)
    p["t_lin2"] = init_linear(ks[5], embed_dim, embed_dim)
    p["t_to_input"] = init_linear(ks[6], embed_dim, TRANS_EMB)
    p["y_to_input"] = init_linear(ks[7], embed_dim, TRANS_EMB)
    p["x_to_input"] = init_linear(ks[8], embed_dim, TRANS_EMB)
    p["pos_w1"] = jax.random.uniform(ks[9], (1, TRANS_EMB), jnp.float32, -1.0, 1.0)
    p["pos_lin2"] = init_linear(ks[10], TRANS_EMB, TRANS_EMB)
    p["blocks"] = [init_block(k) for k in jax.random.split(ks[11], N_BLOCKS)]
    p["final"] = init_linear(ks[12], TRANS_EMB * 3, output_dim)
    return p


# ---------------- parameter prep: folding / stacking / bf16 / precompute -------
def prepare_params(params):
    prep = {}
    prep["wx1"], prep["bx1"] = params["x_embed_1"]
    prep["wx2"], prep["bx2"] = params["x_embed_2"]
    prep["wy1"], prep["by1"] = params["y_embed_1"]
    prep["wy2"], prep["by2"] = params["y_embed_2"]
    prep["tw1"] = params["t_w1"]
    prep["tw2"], prep["tb2"] = params["t_lin2"]
    prep["wti"], prep["bti"] = params["t_to_input"]
    prep["wyi"], prep["byi"] = params["y_to_input"]
    prep["wxi"], prep["bxi"] = params["x_to_input"]

    # positional TimeSiren outputs are data-independent -> one (3, 64) table
    pw2, pb2 = params["pos_lin2"]
    pos_rows = [jnp.sin(k * params["pos_w1"]) @ pw2 + pb2 for k in (1.0, 2.0, 3.0)]
    prep["pos"] = jnp.concatenate(pos_rows, axis=0)

    # head bookkeeping matrices for reshape-free multi-head attention
    lane_head = jnp.arange(TRANSFORMER_DIM) // HEAD_DIM
    head_sum = (lane_head[:, None] == jnp.arange(N_HEADS)[None, :]).astype(jnp.float32)
    prep["head_sum"] = head_sum                     # (E, H)
    prep["head_expand"] = head_sum.T                # (H, E)

    # fold input_to_qkv1 into the MHA in-projections and out_proj into
    # attn_to_fcn (exact algebra); stack per-block weights, big ones in bf16
    E = TRANSFORMER_DIM
    folded = []
    for blk in params["blocks"]:
        wqkv, bqkv = blk["qkv"]
        fb = {}
        for nm, sl, w, b in (("q", slice(0, E), blk["wq"], blk["bq"]),
                             ("k", slice(E, 2 * E), blk["wk"], blk["bk"]),
                             ("v", slice(2 * E, 3 * E), blk["wv"], blk["bv"])):
            fb["w" + nm] = (wqkv[:, sl] @ w).astype(jnp.bfloat16)
            fb["b" + nm] = bqkv[:, sl] @ w + b
        wo, bo = blk["out_proj"]
        waf, baf = blk["attn_to_fcn"]
        fb["woaf"] = (wo @ waf).astype(jnp.bfloat16)   # (E, C): out_proj folded away
        fb["boaf"] = bo @ waf + baf
        fb["wf1"] = blk["fcn1"][0].astype(jnp.bfloat16)
        fb["bf1"] = blk["fcn1"][1]
        fb["wf2"] = blk["fcn2"][0].astype(jnp.bfloat16)
        fb["bf2"] = blk["fcn2"][1]
        fb["ga"], fb["bna"] = blk["bn1a_g"], blk["bn1a_b"]
        fb["gb"], fb["bnb"] = blk["bn1b_g"], blk["bn1b_b"]
        folded.append(fb)
    for key in ("wq", "bq", "wk", "bk", "wv", "bv", "woaf", "boaf",
                "ga", "bna", "wf1", "bf1", "wf2", "bf2", "gb", "bnb"):
        prep[key + "_s"] = jnp.stack([fb[key] for fb in folded], axis=0)

    prep["wfin"], prep["bfin"] = params["final"]
    return prep


# ---------------- pure-JAX f32 reference of the original (unfused) math ---------
def _gelu(v, exact):
    if exact:
        return 0.5 * v * (1.0 + jax.lax.erf(v / math.sqrt(2.0)))
    c0 = math.sqrt(2.0 / math.pi)
    return 0.5 * v * (1.0 + jnp.tanh(c0 * (v + 0.044715 * v ** 3)))


def reference_forward(params, y, x, t, context_mask, gelu_exact=True):
    B = x.shape[0]

    def lin(v, wb, act=None):
        w, b = wb
        o = v @ w + b
        if act == "leaky":
            o = jnp.where(o >= 0, o, 0.01 * o)
        return o

    x_e = lin(lin(x, params["x_embed_1"], "leaky"), params["x_embed_2"])
    y_e = lin(lin(y, params["y_embed_1"], "leaky"), params["y_embed_2"])
    t_e = jnp.sin(t @ params["t_w1"]) @ params["t_lin2"][0] + params["t_lin2"][1]
    cm = jnp.broadcast_to(context_mask[:, None], x_e.shape)
    x_e = x_e * (-1.0 * (1.0 - cm))

    def pos(v):
        return jnp.sin(v @ params["pos_w1"]) @ params["pos_lin2"][0] + params["pos_lin2"][1]

    ones = jnp.ones((B, 1), jnp.float32)
    t_in = lin(t_e, params["t_to_input"]) + pos(ones * 1.0)
    y_in = lin(y_e, params["y_to_input"]) + pos(ones * 2.0)
    x_in = lin(x_e, params["x_to_input"]) + pos(ones * 3.0)

    h = jnp.stack([t_in, y_in, x_in], axis=0)                # (3, B, 64) seq-first
    S, _, C = h.shape
    E, H, DH = TRANSFORMER_DIM, N_HEADS, HEAD_DIM

    def bn(v, g, b):
        mu = jnp.mean(v, axis=0, keepdims=True)
        var = jnp.mean((v - mu) ** 2, axis=0, keepdims=True)
        return (v - mu) * jax.lax.rsqrt(var + 1e-5) * g + b

    for blk in params["blocks"]:
        x2 = h.reshape(S * B, C)
        qkv = lin(x2, blk["qkv"])
        q, kk, v = qkv[:, :E], qkv[:, E:2 * E], qkv[:, 2 * E:]
        qp = q @ blk["wq"] + blk["bq"]
        kp = kk @ blk["wk"] + blk["bk"]
        vp = v @ blk["wv"] + blk["bv"]

        def heads(z):
            return z.reshape(S, B, H, DH).transpose(1, 2, 0, 3)   # (B,H,S,DH)

        qh, kh, vh = heads(qp) / math.sqrt(DH), heads(kp), heads(vp)
        s_ = jnp.einsum("bhqd,bhkd->bhqk", qh, kh)
        pr = jax.nn.softmax(s_, axis=-1)
        oh = jnp.einsum("bhqk,bhkd->bhqd", pr, vh)
        o = oh.transpose(2, 0, 1, 3).reshape(S * B, E)

        attn_a = lin(o, blk["out_proj"])
        attn_af = lin(attn_a, blk["attn_to_fcn"])
        attn_b = bn(attn_af / 1.414 + x2 / 1.414, blk["bn1a_g"], blk["bn1a_b"])
        f = _gelu(lin(attn_b, blk["fcn1"]), gelu_exact)
        f = lin(f, blk["fcn2"])
        h = bn(f / 1.414 + attn_b / 1.414, blk["bn1b_g"], blk["bn1b_b"]).reshape(S, B, C)

    flat = h.transpose(1, 0, 2).reshape(B, S * C)
    return lin(flat, params["final"])


# ---------------- main ----------------------------------------------------------
if __name__ == "__main__":
    B, X_DIM, Y_DIM, EMBED_DIM = 8, 16, 4, 32   # n_hidden unused on transformer path
    key = jax.random.PRNGKey(0)
    kp, ky, kx, kt, km = jax.random.split(key, 5)

    params = init_params(kp, X_DIM, Y_DIM, EMBED_DIM, Y_DIM)
    prep = prepare_params(params)

    y = jax.random.normal(ky, (B, Y_DIM), jnp.float32)
    x = jax.random.normal(kx, (B, X_DIM), jnp.float32)
    t = jax.random.uniform(kt, (B, 1), jnp.float32)
    context_mask = (jax.random.uniform(km, (B,)) > 0.5).astype(jnp.float32)

    gelu_exact = _erf_in_kernel()

    fwd = jax.jit(functools.partial(model_forward, gelu_exact=gelu_exact))
    out = fwd(prep, y, x, t, context_mask)
    out = jax.block_until_ready(out)

    assert out.shape == (B, Y_DIM), out.shape
    assert bool(jnp.all(jnp.isfinite(out)))

    # validate fused/folded/bf16-weight kernel against the unfused f32 reference.
    # bf16 weight + activation storage changes rounding slightly -> 3e-2 tolerance.
    ref = jax.block_until_ready(
        reference_forward(params, y, x, t, context_mask, gelu_exact=gelu_exact))
    max_diff = float(jnp.max(jnp.abs(out - ref)))
    assert bool(jnp.allclose(out, ref, atol=3e-2, rtol=3e-2)), max_diff

    print("KERNEL_OK")
</pallas_src>

<mosaic_0001>
module attributes {stable_mosaic.version = 11 : i64} {
  func.func @k(%arg0: memref<8x128xf32, #tpu.memory_space<vmem>>, %arg1: memref<8x128xf32, #tpu.memory_space<vmem>>) attributes {dimension_semantics = [], scalar_prefetch = 0 : i64, scratch_operands = 0 : i64, tpu.core_type = #tpu.core_type<tc>} {
    %c0 = arith.constant 0 : index
    %c0_0 = arith.constant 0 : index
    %0 = vector.load %arg0[%c0, %c0_0] : memref<8x128xf32, #tpu.memory_space<vmem>>, vector<8x128xf32>
    %1 = math.erf %0 : vector<8x128xf32>
    %c0_1 = arith.constant 0 : index
    %c0_2 = arith.constant 0 : index
    %2 = vector.load %arg1[%c0_1, %c0_2] : memref<8x128xf32, #tpu.memory_space<vmem>>, vector<8x128xf32>
    tpu.vector_store %arg1[%c0_1, %c0_2], %1 {strides = array<i32>} : memref<8x128xf32, #tpu.memory_space<vmem>>, vector<8x128xf32>,
    return
  }
}

module attributes {stable_mosaic.version = 11 : i64} {
  func.func @_fused_kernel(%arg0: i32, %arg1: memref<8x16xf32, #tpu.memory_space<vmem>>, %arg2: memref<8x4xf32, #tpu.memory_space<vmem>>, %arg3: memref<8x1xf32, #tpu.memory_space<vmem>>, %arg4: memref<8x1xf32, #tpu.memory_space<vmem>>, %arg5: memref<16x32xf32, #tpu.memory_space<vmem>>, %arg6: memref<1x32xf32, #tpu.memory_space<vmem>>, %arg7: memref<32x32xf32, #tpu.memory_space<vmem>>, %arg8: memref<1x32xf32, #tpu.memory_space<vmem>>, %arg9: memref<4x32xf32, #tpu.memory_space<vmem>>, %arg10: memref<1x32xf32, #tpu.memory_space<vmem>>, %arg11: memref<32x32xf32, #tpu.memory_space<vmem>>, %arg12: memref<1x32xf32, #tpu.memory_space<vmem>>, %arg13: memref<1x32xf32, #tpu.memory_space<vmem>>, %arg14: memref<32x32xf32, #tpu.memory_space<vmem>>, %arg15: memref<1x32xf32, #tpu.memory_space<vmem>>, %arg16: memref<32x64xf32, #tpu.memory_space<vmem>>, %arg17: memref<1x64xf32, #tpu.memory_space<vmem>>, %arg18: memref<32x64xf32, #tpu.memory_space<vmem>>, %arg19: memref<1x64xf32, #tpu.memory_space<vmem>>, %arg20: memref<32x64xf32, #tpu.memory_space<vmem>>, %arg21: memref<1x64xf32, #tpu.memory_space<vmem>>, %arg22: memref<3x64xf32, #tpu.memory_space<vmem>>, %arg23: memref<1024x16xf32, #tpu.memory_space<vmem>>, %arg24: memref<16x1024xf32, #tpu.memory_space<vmem>>, %arg25: memref<1x64x1024xbf16, #tpu.memory_space<vmem>>, %arg26: memref<1x1x1024xf32, #tpu.memory_space<vmem>>, %arg27: memref<1x64x1024xbf16, #tpu.memory_space<vmem>>, %arg28: memref<1x1x1024xf32, #tpu.memory_space<vmem>>, %arg29: memref<1x64x1024xbf16, #tpu.memory_space<vmem>>, %arg30: memref<1x1x1024xf32, #tpu.memory_space<vmem>>, %arg31: memref<1x1024x64xbf16, #tpu.memory_space<vmem>>, %arg32: memref<1x1x64xf32, #tpu.memory_space<vmem>>, %arg33: memref<1x1x64xf32, #tpu.memory_space<vmem>>, %arg34: memref<1x1x64xf32, #tpu.memory_space<vmem>>, %arg35: memref<1x64x256xbf16, #tpu.memory_space<vmem>>, %arg36: memref<1x1x256xf32, #tpu.memory_space<vmem>>, %arg37: memref<1x256x64xbf16, #tpu.memory_space<vmem>>, %arg38: memref<1x1x64xf32, #tpu.memory_space<vmem>>, %arg39: memref<1x1x64xf32, #tpu.memory_space<vmem>>, %arg40: memref<1x1x64xf32, #tpu.memory_space<vmem>>, %arg41: memref<192x4xf32, #tpu.memory_space<vmem>>, %arg42: memref<1x4xf32, #tpu.memory_space<vmem>>, %arg43: memref<8x4xf32, #tpu.memory_space<vmem>>, %arg44: memref<24x64xf32, #tpu.memory_space<vmem>>, %arg45: memref<24x1024xf32, #tpu.memory_space<vmem>>, %arg46: memref<24x1024xf32, #tpu.memory_space<vmem>>, %arg47: memref<24x1024xf32, #tpu.memory_space<vmem>>) attributes {dimension_semantics = [#tpu.dimension_semantics<arbitrary>], iteration_bounds = array<i64: 4>, scalar_prefetch = 0 : i64, scratch_operands = 4 : i64, tpu.core_type = #tpu.core_type<tc>, window_params = [{pipeline_mode = #tpu.pipeline_mode<synchronous>, transform_indices = @transform_0, window_bounds = array<i64: 8, 16>}, {pipeline_mode = #tpu.pipeline_mode<synchronous>, transform_indices = @transform_1, window_bounds = array<i64: 8, 4>}, {pipeline_mode = #tpu.pipeline_mode<synchronous>, transform_indices = @transform_2, window_bounds = array<i64: 8, 1>}, {pipeline_mode = #tpu.pipeline_mode<synchronous>, transform_indices = @transform_3, window_bounds = array<i64: 8, 1>}, {pipeline_mode = #tpu.pipeline_mode<synchronous>, transform_indices = @transform_4, window_bounds = array<i64: 16, 32>}, {pipeline_mode = #tpu.pipeline_mode<synchronous>, transform_indices = @transform_5, window_bounds = array<i64: 1, 32>}, {pipeline_mode = #tpu.pipeline_mode<synchronous>, transform_indices = @transform_6, window_bounds = array<i64: 32, 32>}, {pipeline_mode = #tpu.pipeline_mode<synchronous>, transform_indices = @transform_7, window_bounds = array<i64: 1, 32>}, {pipeline_mode = #tpu.pipeline_mode<synchronous>, transform_indices = @transform_8, window_bounds = array<i64: 4, 32>}, {pipeline_mode = #tpu.pipeline_mode<synchronous>, transform_indices = @transform_9, window_bounds = array<i64: 1, 32>}, {pipeline_mode = #tpu.pipeline_mode<synchronous>, transform_indices = @transform_10, window_bounds = array<i64: 32, 32>}, {pipeline_mode = #tpu.pipeline_mode<synchronous>, transform_indices = @transform_11, window_bounds = array<i64: 1, 32>}, {pipeline_mode = #tpu.pipeline_mode<synchronous>, transform_indices = @transform_12, window_bounds = array<i64: 1, 32>}, {pipeline_mode = #tpu.pipeline_mode<synchronous>, transform_indices = @transform_13, window_bounds = array<i64: 32, 32>}, {pipeline_mode = #tpu.pipeline_mode<synchronous>, transform_indices = @transform_14, window_bounds = array<i64: 1, 32>}, {pipeline_mode = #tpu.pipeline_mode<synchronous>, transform_indices = @transform_15, window_bounds = array<i64: 32, 64>}, {pipeline_mode = #tpu.pipeline_mode<synchronous>, transform_indices = @transform_16, window_bounds = array<i64: 1, 64>}, {pipeline_mode = #tpu.pipeline_mode<synchronous>, transform_indices = @transform_17, window_bounds = array<i64: 32, 64>}, {pipeline_mode = #tpu.pipeline_mode<synchronous>, transform_indices = @transform_18, window_bounds = array<i64: 1, 64>}, {pipeline_mode = #tpu.pipeline_mode<synchronous>, transform_indices = @transform_19, window_bounds = array<i64: 32, 64>}, {pipeline_mode = #tpu.pipeline_mode<synchronous>, transform_indices = @transform_20, window_bounds = array<i64: 1, 64>}, {pipeline_mode = #tpu.pipeline_mode<synchronous>, transform_indices = @transform_21, window_bounds = array<i64: 3, 64>}, {pipeline_mode = #tpu.pipeline_mode<synchronous>, transform_indices = @transform_22, window_bounds = array<i64: 1024, 16>}, {pipeline_mode = #tpu.pipeline_mode<synchronous>, transform_indices = @transform_23, window_bounds = array<i64: 16, 1024>}, {transform_indices = @transform_24, window_bounds = array<i64: 1, 64, 1024>}, {transform_indices = @transform_25, window_bounds = array<i64: 1, 1, 1024>}, {transform_indices = @transform_26, window_bounds = array<i64: 1, 64, 1024>}, {transform_indices = @transform_27, window_bounds = array<i64: 1, 1, 1024>}, {transform_indices = @transform_28, window_bounds = array<i64: 1, 64, 1024>}, {transform_indices = @transform_29, window_bounds = array<i64: 1, 1, 1024>}, {transform_indices = @transform_30, window_bounds = array<i64: 1, 1024, 64>}, {transform_indices = @transform_31, window_bounds = array<i64: 1, 1, 64>}, {transform_indices = @transform_32, window_bounds = array<i64: 1, 1, 64>}, {transform_indices = @transform_33, window_bounds = array<i64: 1, 1, 64>}, {transform_indices = @transform_34, window_bounds = array<i64: 1, 64, 256>}, {transform_indices = @transform_35, window_bounds = array<i64: 1, 1, 256>}, {transform_indices = @transform_36, window_bounds = array<i64: 1, 256, 64>}, {transform_indices = @transform_37, window_bounds = array<i64: 1, 1, 64>}, {transform_indices = @transform_38, window_bounds = array<i64: 1, 1, 64>}, {transform_indices = @transform_39, window_bounds = array<i64: 1, 1, 64>}, {pipeline_mode = #tpu.pipeline_mode<synchronous>, transform_indices = @transform_40, window_bounds = array<i64: 192, 4>}, {pipeline_mode = #tpu.pipeline_mode<synchronous>, transform_indices = @transform_41, window_bounds = array<i64: 1, 4>}, {pipeline_mode = #tpu.pipeline_mode<synchronous>, transform_indices = @transform_42, window_bounds = array<i64: 8, 4>}]} {
    %c0_i32 = arith.constant 0 : i32
    %0 = arith.cmpi eq, %arg0, %c0_i32 : i32
    %1 = arith.extui %0 : i1 to i32
    %c0_i32_0 = arith.constant 0 : i32
    %2 = arith.cmpi ne, %1, %c0_i32_0 : i32
    scf.if %2 {
      %c0_150 = arith.constant 0 : index
      %c0_151 = arith.constant 0 : index
      %273 = vector.load %arg1[%c0_150, %c0_151] : memref<8x16xf32, #tpu.memory_space<vmem>>, vector<8x16xf32>
      %c0_152 = arith.constant 0 : index
      %c0_153 = arith.constant 0 : index
      %274 = vector.load %arg5[%c0_152, %c0_153] : memref<16x32xf32, #tpu.memory_space<vmem>>, vector<16x32xf32>
      %cst_154 = arith.constant dense<0.000000e+00> : vector<8x32xf32>
      %275 = tpu.matmul %273, %274, %cst_154 {dimension_numbers = #tpu.dot_dimension_numbers<[1], [0], [0], [1], [0, 0, 1, 1], [], []>} : vector<8x16xf32>, vector<16x32xf32>, vector<8x32xf32> -> vector<8x32xf32>
      %c0_155 = arith.constant 0 : index
      %c0_156 = arith.constant 0 : index
      %276 = vector.load %arg6[%c0_155, %c0_156] : memref<1x32xf32, #tpu.memory_space<vmem>>, vector<1x32xf32>
      %277 = vector.broadcast %276 : vector<1x32xf32> to vector<8x32xf32>
      %278 = arith.addf %275, %277 : vector<8x32xf32>
      %cst_157 = arith.constant 0.000000e+00 : f32
      %279 = vector.broadcast %cst_157 : f32 to vector<8x32xf32>
      %280 = arith.cmpf oge, %278, %279 : vector<8x32xf32>
      %cst_158 = arith.constant 0.00999999977 : f32
      %281 = vector.broadcast %cst_158 : f32 to vector<8x32xf32>
      %282 = arith.mulf %281, %278 : vector<8x32xf32>
      %283 = arith.select %280, %278, %282 : vector<8x32xi1>, vector<8x32xf32>
      %c0_159 = arith.constant 0 : index
      %c0_160 = arith.constant 0 : index
      %284 = vector.load %arg7[%c0_159, %c0_160] : memref<32x32xf32, #tpu.memory_space<vmem>>, vector<32x32xf32>
      %cst_161 = arith.constant dense<0.000000e+00> : vector<8x32xf32>
      %285 = tpu.matmul %283, %284, %cst_161 {dimension_numbers = #tpu.dot_dimension_numbers<[1], [0], [0], [1], [0, 0, 1, 1], [], []>} : vector<8x32xf32>, vector<32x32xf32>, vector<8x32xf32> -> vector<8x32xf32>
      %c0_162 = arith.constant 0 : index
      %c0_163 = arith.constant 0 : index
      %286 = vector.load %arg8[%c0_162, %c0_163] : memref<1x32xf32, #tpu.memory_space<vmem>>, vector<1x32xf32>
      %287 = vector.broadcast %286 : vector<1x32xf32> to vector<8x32xf32>
      %288 = arith.addf %285, %287 : vector<8x32xf32>
      %c0_164 = arith.constant 0 : index
      %c0_165 = arith.constant 0 : index
      %289 = vector.load %arg2[%c0_164, %c0_165] : memref<8x4xf32, #tpu.memory_space<vmem>>, vector<8x4xf32>
      %c0_166 = arith.constant 0 : index
      %c0_167 = arith.constant 0 : index
      %290 = vector.load %arg9[%c0_166, %c0_167] : memref<4x32xf32, #tpu.memory_space<vmem>>, vector<4x32xf32>
      %cst_168 = arith.constant dense<0.000000e+00> : vector<8x32xf32>
      %291 = tpu.matmul %289, %290, %cst_168 {dimension_numbers = #tpu.dot_dimension_numbers<[1], [0], [0], [1], [0, 0, 1, 1], [], []>} : vector<8x4xf32>, vector<4x32xf32>, vector<8x32xf32> -> vector<8x32xf32>
      %c0_169 = arith.constant 0 : index
      %c0_170 = arith.constant 0 : index
      %292 = vector.load %arg10[%c0_169, %c0_170] : memref<1x32xf32, #tpu.memory_space<vmem>>, vector<1x32xf32>
      %293 = vector.broadcast %292 : vector<1x32xf32> to vector<8x32xf32>
      %294 = arith.addf %291, %293 : vector<8x32xf32>
      %cst_171 = arith.constant 0.000000e+00 : f32
      %295 = vector.broadcast %cst_171 : f32 to vector<8x32xf32>
      %296 = arith.cmpf oge, %294, %295 : vector<8x32xf32>
      %cst_172 = arith.constant 0.00999999977 : f32
      %297 = vector.broadcast %cst_172 : f32 to vector<8x32xf32>
      %298 = arith.mulf %297, %294 : vector<8x32xf32>
      %299 = arith.select %296, %294, %298 : vector<8x32xi1>, vector<8x32xf32>
      %c0_173 = arith.constant 0 : index
      %c0_174 = arith.constant 0 : index
      %300 = vector.load %arg11[%c0_173, %c0_174] : memref<32x32xf32, #tpu.memory_space<vmem>>, vector<32x32xf32>
      %cst_175 = arith.constant dense<0.000000e+00> : vector<8x32xf32>
      %301 = tpu.matmul %299, %300, %cst_175 {dimension_numbers = #tpu.dot_dimension_numbers<[1], [0], [0], [1], [0, 0, 1, 1], [], []>} : vector<8x32xf32>, vector<32x32xf32>, vector<8x32xf32> -> vector<8x32xf32>
      %c0_176 = arith.constant 0 : index
      %c0_177 = arith.constant 0 : index
      %302 = vector.load %arg12[%c0_176, %c0_177] : memref<1x32xf32, #tpu.memory_space<vmem>>, vector<1x32xf32>
      %303 = vector.broadcast %302 : vector<1x32xf32> to vector<8x32xf32>
      %304 = arith.addf %301, %303 : vector<8x32xf32>
      %c0_178 = arith.constant 0 : index
      %c0_179 = arith.constant 0 : index
      %305 = vector.load %arg3[%c0_178, %c0_179] : memref<8x1xf32, #tpu.memory_space<vmem>>, vector<8x1xf32>
      %c0_180 = arith.constant 0 : index
      %c0_181 = arith.constant 0 : index
      %306 = vector.load %arg13[%c0_180, %c0_181] : memref<1x32xf32, #tpu.memory_space<vmem>>, vector<1x32xf32>
      %307 = vector.broadcast %305 : vector<8x1xf32> to vector<8x32xf32>
      %308 = vector.broadcast %306 : vector<1x32xf32> to vector<8x32xf32>
      %309 = arith.mulf %307, %308 : vector<8x32xf32>
      %310 = math.sin %309 : vector<8x32xf32>
      %c0_182 = arith.constant 0 : index
      %c0_183 = arith.constant 0 : index
      %311 = vector.load %arg14[%c0_182, %c0_183] : memref<32x32xf32, #tpu.memory_space<vmem>>, vector<32x32xf32>
      %cst_184 = arith.constant dense<0.000000e+00> : vector<8x32xf32>
      %312 = tpu.matmul %310, %311, %cst_184 {dimension_numbers = #tpu.dot_dimension_numbers<[1], [0], [0], [1], [0, 0, 1, 1], [], []>} : vector<8x32xf32>, vector<32x32xf32>, vector<8x32xf32> -> vector<8x32xf32>
      %c0_185 = arith.constant 0 : index
      %c0_186 = arith.constant 0 : index
      %313 = vector.load %arg15[%c0_185, %c0_186] : memref<1x32xf32, #tpu.memory_space<vmem>>, vector<1x32xf32>
      %314 = vector.broadcast %313 : vector<1x32xf32> to vector<8x32xf32>
      %315 = arith.addf %312, %314 : vector<8x32xf32>
      %c0_187 = arith.constant 0 : index
      %c0_188 = arith.constant 0 : index
      %316 = vector.load %arg4[%c0_187, %c0_188] : memref<8x1xf32, #tpu.memory_space<vmem>>, vector<8x1xf32>
      %cst_189 = arith.constant 1.000000e+00 : f32
      %317 = vector.broadcast %cst_189 : f32 to vector<8x1xf32>
      %318 = arith.subf %317, %316 : vector<8x1xf32>
      %cst_190 = arith.constant 0.000000e+00 : f32
      %319 = vector.broadcast %cst_190 : f32 to vector<8x1xf32>
      %320 = arith.subf %319, %318 : vector<8x1xf32>
      %321 = vector.broadcast %320 : vector<8x1xf32> to vector<8x32xf32>
      %322 = arith.mulf %288, %321 : vector<8x32xf32>
      %c0_191 = arith.constant 0 : index
      %c0_192 = arith.constant 0 : index
      %323 = vector.load %arg16[%c0_191, %c0_192] : memref<32x64xf32, #tpu.memory_space<vmem>>, vector<32x64xf32>
      %cst_193 = arith.constant dense<0.000000e+00> : vector<8x64xf32>
      %324 = tpu.matmul %315, %323, %cst_193 {dimension_numbers = #tpu.dot_dimension_numbers<[1], [0], [0], [1], [0, 0, 1, 1], [], []>} : vector<8x32xf32>, vector<32x64xf32>, vector<8x64xf32> -> vector<8x64xf32>
      %c0_194 = arith.constant 0 : index
      %c0_195 = arith.constant 0 : index
      %325 = vector.load %arg17[%c0_194, %c0_195] : memref<1x64xf32, #tpu.memory_space<vmem>>, vector<1x64xf32>
      %326 = vector.broadcast %325 : vector<1x64xf32> to vector<8x64xf32>
      %327 = arith.addf %324, %326 : vector<8x64xf32>
      %c0_196 = arith.constant 0 : index
      %c0_197 = arith.constant 0 : index
      %328 = vector.load %arg22[%c0_196, %c0_197] : memref<3x64xf32, #tpu.memory_space<vmem>>, vector<1x64xf32>
      %329 = vector.broadcast %328 : vector<1x64xf32> to vector<8x64xf32>
      %330 = arith.addf %327, %329 : vector<8x64xf32>
      %c0_198 = arith.constant 0 : index
      %c0_199 = arith.constant 0 : index
      %331 = vector.load %arg44[%c0_198, %c0_199] : memref<24x64xf32, #tpu.memory_space<vmem>>, vector<8x64xf32>
      tpu.vector_store %arg44[%c0_198, %c0_199], %330 {strides = array<i32>} : memref<24x64xf32, #tpu.memory_space<vmem>>, vector<8x64xf32>,
      %c0_200 = arith.constant 0 : index
      %c0_201 = arith.constant 0 : index
      %332 = vector.load %arg18[%c0_200, %c0_201] : memref<32x64xf32, #tpu.memory_space<vmem>>, vector<32x64xf32>
      %cst_202 = arith.constant dense<0.000000e+00> : vector<8x64xf32>
      %333 = tpu.matmul %304, %332, %cst_202 {dimension_numbers = #tpu.dot_dimension_numbers<[1], [0], [0], [1], [0, 0, 1, 1], [], []>} : vector<8x32xf32>, vector<32x64xf32>, vector<8x64xf32> -> vector<8x64xf32>
      %c0_203 = arith.constant 0 : index
      %c0_204 = arith.constant 0 : index
      %334 = vector.load %arg19[%c0_203, %c0_204] : memref<1x64xf32, #tpu.memory_space<vmem>>, vector<1x64xf32>
      %335 = vector.broadcast %334 : vector<1x64xf32> to vector<8x64xf32>
      %336 = arith.addf %333, %335 : vector<8x64xf32>
      %c1 = arith.constant 1 : index
      %c0_205 = arith.constant 0 : index
      %337 = vector.load %arg22[%c1, %c0_205] : memref<3x64xf32, #tpu.memory_space<vmem>>, vector<1x64xf32>
      %338 = vector.broadcast %337 : vector<1x64xf32> to vector<8x64xf32>
      %339 = arith.addf %336, %338 : vector<8x64xf32>
      %c8_206 = arith.constant 8 : index
      %c0_207 = arith.constant 0 : index
      %340 = vector.load %arg44[%c8_206, %c0_207] : memref<24x64xf32, #tpu.memory_space<vmem>>, vector<8x64xf32>
      tpu.vector_store %arg44[%c8_206, %c0_207], %339 {strides = array<i32>} : memref<24x64xf32, #tpu.memory_space<vmem>>, vector<8x64xf32>,
      %c0_208 = arith.constant 0 : index
      %c0_209 = arith.constant 0 : index
      %341 = vector.load %arg20[%c0_208, %c0_209] : memref<32x64xf32, #tpu.memory_space<vmem>>, vector<32x64xf32>
      %cst_210 = arith.constant dense<0.000000e+00> : vector<8x64xf32>
      %342 = tpu.matmul %322, %341, %cst_210 {dimension_numbers = #tpu.dot_dimension_numbers<[1], [0], [0], [1], [0, 0, 1, 1], [], []>} : vector<8x32xf32>, vector<32x64xf32>, vector<8x64xf32> -> vector<8x64xf32>
      %c0_211 = arith.constant 0 : index
      %c0_212 = arith.constant 0 : index
      %343 = vector.load %arg21[%c0_211, %c0_212] : memref<1x64xf32, #tpu.memory_space<vmem>>, vector<1x64xf32>
      %344 = vector.broadcast %343 : vector<1x64xf32> to vector<8x64xf32>
      %345 = arith.addf %342, %344 : vector<8x64xf32>
      %c2 = arith.constant 2 : index
      %c0_213 = arith.constant 0 : index
      %346 = vector.load %arg22[%c2, %c0_213] : memref<3x64xf32, #tpu.memory_space<vmem>>, vector<1x64xf32>
      %347 = vector.broadcast %346 : vector<1x64xf32> to vector<8x64xf32>
      %348 = arith.addf %345, %347 : vector<8x64xf32>
      %c16_214 = arith.constant 16 : index
      %c0_215 = arith.constant 0 : index
      %349 = vector.load %arg44[%c16_214, %c0_215] : memref<24x64xf32, #tpu.memory_space<vmem>>, vector<8x64xf32>
      tpu.vector_store %arg44[%c16_214, %c0_215], %348 {strides = array<i32>} : memref<24x64xf32, #tpu.memory_space<vmem>>, vector<8x64xf32>,
    } else {
    }
    %c0 = arith.constant 0 : index
    %c0_1 = arith.constant 0 : index
    %3 = vector.load %arg44[%c0, %c0_1] : memref<24x64xf32, #tpu.memory_space<vmem>>, vector<24x64xf32>
    %4 = arith.truncf %3 : vector<24x64xf32> to vector<24x64xbf16>
    %c0_2 = arith.constant 0 : index
    %c0_3 = arith.constant 0 : index
    %c0_4 = arith.constant 0 : index
    %5 = vector.load %arg25[%c0_2, %c0_3, %c0_4] : memref<1x64x1024xbf16, #tpu.memory_space<vmem>>, vector<1x64x1024xbf16>
    %6 = vector.shape_cast %5 : vector<1x64x1024xbf16> to vector<64x1024xbf16>
    %cst = arith.constant dense<0.000000e+00> : vector<24x1024xf32>
    %7 = tpu.matmul %4, %6, %cst {dimension_numbers = #tpu.dot_dimension_numbers<[1], [0], [0], [1], [0, 0, 1, 1], [], []>} : vector<24x64xbf16>, vector<64x1024xbf16>, vector<24x1024xf32> -> vector<24x1024xf32>
    %c0_5 = arith.constant 0 : index
    %c0_6 = arith.constant 0 : index
    %c0_7 = arith.constant 0 : index
    %8 = vector.load %arg26[%c0_5, %c0_6, %c0_7] : memref<1x1x1024xf32, #tpu.memory_space<vmem>>, vector<1x1x1024xf32>
    %9 = vector.shape_cast %8 : vector<1x1x1024xf32> to vector<1x1024xf32>
    %10 = vector.broadcast %9 : vector<1x1024xf32> to vector<24x1024xf32>
    %11 = arith.addf %7, %10 : vector<24x1024xf32>
    %cst_8 = arith.constant 1.250000e-01 : f32
    %12 = vector.broadcast %cst_8 : f32 to vector<24x1024xf32>
    %13 = arith.mulf %11, %12 : vector<24x1024xf32>
    %c0_9 = arith.constant 0 : index
    %c0_10 = arith.constant 0 : index
    %14 = vector.load %arg45[%c0_9, %c0_10] : memref<24x1024xf32, #tpu.memory_space<vmem>>, vector<24x1024xf32>
    tpu.vector_store %arg45[%c0_9, %c0_10], %13 {strides = array<i32>} : memref<24x1024xf32, #tpu.memory_space<vmem>>, vector<24x1024xf32>,
    %c0_11 = arith.constant 0 : index
    %c0_12 = arith.constant 0 : index
    %c0_13 = arith.constant 0 : index
    %15 = vector.load %arg27[%c0_11, %c0_12, %c0_13] : memref<1x64x1024xbf16, #tpu.memory_space<vmem>>, vector<1x64x1024xbf16>
    %16 = vector.shape_cast %15 : vector<1x64x1024xbf16> to vector<64x1024xbf16>
    %cst_14 = arith.constant dense<0.000000e+00> : vector<24x1024xf32>
    %17 = tpu.matmul %4, %16, %cst_14 {dimension_numbers = #tpu.dot_dimension_numbers<[1], [0], [0], [1], [0, 0, 1, 1], [], []>} : vector<24x64xbf16>, vector<64x1024xbf16>, vector<24x1024xf32> -> vector<24x1024xf32>
    %c0_15 = arith.constant 0 : index
    %c0_16 = arith.constant 0 : index
    %c0_17 = arith.constant 0 : index
    %18 = vector.load %arg28[%c0_15, %c0_16, %c0_17] : memref<1x1x1024xf32, #tpu.memory_space<vmem>>, vector<1x1x1024xf32>
    %19 = vector.shape_cast %18 : vector<1x1x1024xf32> to vector<1x1024xf32>
    %20 = vector.broadcast %19 : vector<1x1024xf32> to vector<24x1024xf32>
    %21 = arith.addf %17, %20 : vector<24x1024xf32>
    %c0_18 = arith.constant 0 : index
    %c0_19 = arith.constant 0 : index
    %22 = vector.load %arg46[%c0_18, %c0_19] : memref<24x1024xf32, #tpu.memory_space<vmem>>, vector<24x1024xf32>
    tpu.vector_store %arg46[%c0_18, %c0_19], %21 {strides = array<i32>} : memref<24x1024xf32, #tpu.memory_space<vmem>>, vector<24x1024xf32>,
    %c0_20 = arith.constant 0 : index
    %c0_21 = arith.constant 0 : index
    %c0_22 = arith.constant 0 : index
    %23 = vector.load %arg29[%c0_20, %c0_21, %c0_22] : memref<1x64x1024xbf16, #tpu.memory_space<vmem>>, vector<1x64x1024xbf16>
    %24 = vector.shape_cast %23 : vector<1x64x1024xbf16> to vector<64x1024xbf16>
    %cst_23 = arith.constant dense<0.000000e+00> : vector<24x1024xf32>
    %25 = tpu.matmul %4, %24, %cst_23 {dimension_numbers = #tpu.dot_dimension_numbers<[1], [0], [0], [1], [0, 0, 1, 1], [], []>} : vector<24x64xbf16>, vector<64x1024xbf16>, vector<24x1024xf32> -> vector<24x1024xf32>
    %c0_24 = arith.constant 0 : index
    %c0_25 = arith.constant 0 : index
    %c0_26 = arith.constant 0 : index
    %26 = vector.load %arg30[%c0_24, %c0_25, %c0_26] : memref<1x1x1024xf32, #tpu.memory_space<vmem>>, vector<1x1x1024xf32>
    %27 = vector.shape_cast %26 : vector<1x1x1024xf32> to vector<1x1024xf32>
    %28 = vector.broadcast %27 : vector<1x1024xf32> to vector<24x1024xf32>
    %29 = arith.addf %25, %28 : vector<24x1024xf32>
    %c0_27 = arith.constant 0 : index
    %c0_28 = arith.constant 0 : index
    %30 = vector.load %arg47[%c0_27, %c0_28] : memref<24x1024xf32, #tpu.memory_space<vmem>>, vector<24x1024xf32>
    tpu.vector_store %arg47[%c0_27, %c0_28], %29 {strides = array<i32>} : memref<24x1024xf32, #tpu.memory_space<vmem>>, vector<24x1024xf32>,
    %c0_29 = arith.constant 0 : index
    %c0_30 = arith.constant 0 : index
    %31 = vector.load %arg23[%c0_29, %c0_30] : memref<1024x16xf32, #tpu.memory_space<vmem>>, vector<1024x16xf32>
    %c0_31 = arith.constant 0 : index
    %c0_32 = arith.constant 0 : index
    %32 = vector.load %arg24[%c0_31, %c0_32] : memref<16x1024xf32, #tpu.memory_space<vmem>>, vector<16x1024xf32>
    %c0_33 = arith.constant 0 : index
    %c0_34 = arith.constant 0 : index
    %33 = vector.load %arg45[%c0_33, %c0_34] : memref<24x1024xf32, #tpu.memory_space<vmem>>, vector<8x1024xf32>
    %c0_35 = arith.constant 0 : index
    %c0_36 = arith.constant 0 : index
    %34 = vector.load %arg46[%c0_35, %c0_36] : memref<24x1024xf32, #tpu.memory_space<vmem>>, vector<8x1024xf32>
    %35 = arith.mulf %33, %34 : vector<8x1024xf32>
    %c8 = arith.constant 8 : index
    %c0_37 = arith.constant 0 : index
    %36 = vector.load %arg46[%c8, %c0_37] : memref<24x1024xf32, #tpu.memory_space<vmem>>, vector<8x1024xf32>
    %37 = arith.mulf %33, %36 : vector<8x1024xf32>
    %c16 = arith.constant 16 : index
    %c0_38 = arith.constant 0 : index
    %38 = vector.load %arg46[%c16, %c0_38] : memref<24x1024xf32, #tpu.memory_space<vmem>>, vector<8x1024xf32>
    %39 = arith.mulf %33, %38 : vector<8x1024xf32>
    %40 = tpu.concatenate %35, %37, %39 in 0 : vector<8x1024xf32>, vector<8x1024xf32>, vector<8x1024xf32> -> vector<24x1024xf32>
    %cst_39 = arith.constant dense<0.000000e+00> : vector<24x16xf32>
    %41 = tpu.matmul %40, %31, %cst_39 {dimension_numbers = #tpu.dot_dimension_numbers<[1], [0], [0], [1], [0, 0, 1, 1], [], []>} : vector<24x1024xf32>, vector<1024x16xf32>, vector<24x16xf32> -> vector<24x16xf32>
    %42 = vector.extract_strided_slice %41 {offsets = [0, 0], sizes = [8, 16], strides = [1, 1]} : vector<24x16xf32> to vector<8x16xf32>
    %43 = vector.extract_strided_slice %41 {offsets = [8, 0], sizes = [8, 16], strides = [1, 1]} : vector<24x16xf32> to vector<8x16xf32>
    %44 = vector.extract_strided_slice %41 {offsets = [16, 0], sizes = [8, 16], strides = [1, 1]} : vector<24x16xf32> to vector<8x16xf32>
    %45 = arith.maximumf %42, %43 : vector<8x16xf32>
    %46 = arith.maximumf %45, %44 : vector<8x16xf32>
    %47 = arith.subf %42, %46 : vector<8x16xf32>
    %48 = math.exp %47 : vector<8x16xf32>
    %49 = arith.subf %43, %46 : vector<8x16xf32>
    %50 = math.exp %49 : vector<8x16xf32>
    %51 = arith.subf %44, %46 : vector<8x16xf32>
    %52 = math.exp %51 : vector<8x16xf32>
    %53 = arith.addf %48, %50 : vector<8x16xf32>
    %54 = arith.addf %53, %52 : vector<8x16xf32>
    %cst_40 = arith.constant 1.000000e+00 : f32
    %55 = vector.broadcast %cst_40 : f32 to vector<8x16xf32>
    %56 = arith.divf %55, %54 : vector<8x16xf32>
    %57 = arith.mulf %48, %56 : vector<8x16xf32>
    %58 = arith.mulf %50, %56 : vector<8x16xf32>
    %59 = arith.mulf %52, %56 : vector<8x16xf32>
    %60 = tpu.concatenate %57, %58, %59 in 0 : vector<8x16xf32>, vector<8x16xf32>, vector<8x16xf32> -> vector<24x16xf32>
    %cst_41 = arith.constant dense<0.000000e+00> : vector<24x1024xf32>
    %61 = tpu.matmul %60, %32, %cst_41 {dimension_numbers = #tpu.dot_dimension_numbers<[1], [0], [0], [1], [0, 0, 1, 1], [], []>} : vector<24x16xf32>, vector<16x1024xf32>, vector<24x1024xf32> -> vector<24x1024xf32>
    %62 = vector.extract_strided_slice %61 {offsets = [0, 0], sizes = [8, 1024], strides = [1, 1]} : vector<24x1024xf32> to vector<8x1024xf32>
    %c0_42 = arith.constant 0 : index
    %c0_43 = arith.constant 0 : index
    %63 = vector.load %arg47[%c0_42, %c0_43] : memref<24x1024xf32, #tpu.memory_space<vmem>>, vector<8x1024xf32>
    %64 = arith.mulf %62, %63 : vector<8x1024xf32>
    %65 = vector.extract_strided_slice %61 {offsets = [8, 0], sizes = [8, 1024], strides = [1, 1]} : vector<24x1024xf32> to vector<8x1024xf32>
    %c8_44 = arith.constant 8 : index
    %c0_45 = arith.constant 0 : index
    %66 = vector.load %arg47[%c8_44, %c0_45] : memref<24x1024xf32, #tpu.memory_space<vmem>>, vector<8x1024xf32>
    %67 = arith.mulf %65, %66 : vector<8x1024xf32>
    %68 = arith.addf %64, %67 : vector<8x1024xf32>
    %69 = vector.extract_strided_slice %61 {offsets = [16, 0], sizes = [8, 1024], strides = [1, 1]} : vector<24x1024xf32> to vector<8x1024xf32>
    %c16_46 = arith.constant 16 : index
    %c0_47 = arith.constant 0 : index
    %70 = vector.load %arg47[%c16_46, %c0_47] : memref<24x1024xf32, #tpu.memory_space<vmem>>, vector<8x1024xf32>
    %71 = arith.mulf %69, %70 : vector<8x1024xf32>
    %72 = arith.addf %68, %71 : vector<8x1024xf32>
    %73 = arith.truncf %72 : vector<8x1024xf32> to vector<8x1024xbf16>
    %c0_48 = arith.constant 0 : index
    %c0_49 = arith.constant 0 : index
    %c0_50 = arith.constant 0 : index
    %74 = vector.load %arg31[%c0_48, %c0_49, %c0_50] : memref<1x1024x64xbf16, #tpu.memory_space<vmem>>, vector<1x1024x64xbf16>
    %75 = vector.shape_cast %74 : vector<1x1024x64xbf16> to vector<1024x64xbf16>
    %cst_51 = arith.constant dense<0.000000e+00> : vector<8x64xf32>
    %76 = tpu.matmul %73, %75, %cst_51 {dimension_numbers = #tpu.dot_dimension_numbers<[1], [0], [0], [1], [0, 0, 1, 1], [], []>} : vector<8x1024xbf16>, vector<1024x64xbf16>, vector<8x64xf32> -> vector<8x64xf32>
    %c0_52 = arith.constant 0 : index
    %c0_53 = arith.constant 0 : index
    %c0_54 = arith.constant 0 : index
    %77 = vector.load %arg32[%c0_52, %c0_53, %c0_54] : memref<1x1x64xf32, #tpu.memory_space<vmem>>, vector<1x1x64xf32>
    %78 = vector.shape_cast %77 : vector<1x1x64xf32> to vector<1x64xf32>
    %79 = vector.broadcast %78 : vector<1x64xf32> to vector<8x64xf32>
    %80 = arith.addf %76, %79 : vector<8x64xf32>
    %c8_55 = arith.constant 8 : index
    %c0_56 = arith.constant 0 : index
    %81 = vector.load %arg45[%c8_55, %c0_56] : memref<24x1024xf32, #tpu.memory_space<vmem>>, vector<8x1024xf32>
    %c0_57 = arith.constant 0 : index
    %c0_58 = arith.constant 0 : index
    %82 = vector.load %arg46[%c0_57, %c0_58] : memref<24x1024xf32, #tpu.memory_space<vmem>>, vector<8x1024xf32>
    %83 = arith.mulf %81, %82 : vector<8x1024xf32>
    %c8_59 = arith.constant 8 : index
    %c0_60 = arith.constant 0 : index
    %84 = vector.load %arg46[%c8_59, %c0_60] : memref<24x1024xf32, #tpu.memory_space<vmem>>, vector<8x1024xf32>
    %85 = arith.mulf %81, %84 : vector<8x1024xf32>
    %c16_61 = arith.constant 16 : index
    %c0_62 = arith.constant 0 : index
    %86 = vector.load %arg46[%c16_61, %c0_62] : memref<24x1024xf32, #tpu.memory_space<vmem>>, vector<8x1024xf32>
    %87 = arith.mulf %81, %86 : vector<8x1024xf32>
    %88 = tpu.concatenate %83, %85, %87 in 0 : vector<8x1024xf32>, vector<8x1024xf32>, vector<8x1024xf32> -> vector<24x1024xf32>
    %cst_63 = arith.constant dense<0.000000e+00> : vector<24x16xf32>
    %89 = tpu.matmul %88, %31, %cst_63 {dimension_numbers = #tpu.dot_dimension_numbers<[1], [0], [0], [1], [0, 0, 1, 1], [], []>} : vector<24x1024xf32>, vector<1024x16xf32>, vector<24x16xf32> -> vector<24x16xf32>
    %90 = vector.extract_strided_slice %89 {offsets = [0, 0], sizes = [8, 16], strides = [1, 1]} : vector<24x16xf32> to vector<8x16xf32>
    %91 = vector.extract_strided_slice %89 {offsets = [8, 0], sizes = [8, 16], strides = [1, 1]} : vector<24x16xf32> to vector<8x16xf32>
    %92 = vector.extract_strided_slice %89 {offsets = [16, 0], sizes = [8, 16], strides = [1, 1]} : vector<24x16xf32> to vector<8x16xf32>
    %93 = arith.maximumf %90, %91 : vector<8x16xf32>
    %94 = arith.maximumf %93, %92 : vector<8x16xf32>
    %95 = arith.subf %90, %94 : vector<8x16xf32>
    %96 = math.exp %95 : vector<8x16xf32>
    %97 = arith.subf %91, %94 : vector<8x16xf32>
    %98 = math.exp %97 : vector<8x16xf32>
    %99 = arith.subf %92, %94 : vector<8x16xf32>
    %100 = math.exp %99 : vector<8x16xf32>
    %101 = arith.addf %96, %98 : vector<8x16xf32>
    %102 = arith.addf %101, %100 : vector<8x16xf32>
    %cst_64 = arith.constant 1.000000e+00 : f32
    %103 = vector.broadcast %cst_64 : f32 to vector<8x16xf32>
    %104 = arith.divf %103, %102 : vector<8x16xf32>
    %105 = arith.mulf %96, %104 : vector<8x16xf32>
    %106 = arith.mulf %98, %104 : vector<8x16xf32>
    %107 = arith.mulf %100, %104 : vector<8x16xf32>
    %108 = tpu.concatenate %105, %106, %107 in 0 : vector<8x16xf32>, vector<8x16xf32>, vector<8x16xf32> -> vector<24x16xf32>
    %cst_65 = arith.constant dense<0.000000e+00> : vector<24x1024xf32>
    %109 = tpu.matmul %108, %32, %cst_65 {dimension_numbers = #tpu.dot_dimension_numbers<[1], [0], [0], [1], [0, 0, 1, 1], [], []>} : vector<24x16xf32>, vector<16x1024xf32>, vector<24x1024xf32> -> vector<24x1024xf32>
    %110 = vector.extract_strided_slice %109 {offsets = [0, 0], sizes = [8, 1024], strides = [1, 1]} : vector<24x1024xf32> to vector<8x1024xf32>
    %c0_66 = arith.constant 0 : index
    %c0_67 = arith.constant 0 : index
    %111 = vector.load %arg47[%c0_66, %c0_67] : memref<24x1024xf32, #tpu.memory_space<vmem>>, vector<8x1024xf32>
    %112 = arith.mulf %110, %111 : vector<8x1024xf32>
    %113 = vector.extract_strided_slice %109 {offsets = [8, 0], sizes = [8, 1024], strides = [1, 1]} : vector<24x1024xf32> to vector<8x1024xf32>
    %c8_68 = arith.constant 8 : index
    %c0_69 = arith.constant 0 : index
    %114 = vector.load %arg47[%c8_68, %c0_69] : memref<24x1024xf32, #tpu.memory_space<vmem>>, vector<8x1024xf32>
    %115 = arith.mulf %113, %114 : vector<8x1024xf32>
    %116 = arith.addf %112, %115 : vector<8x1024xf32>
    %117 = vector.extract_strided_slice %109 {offsets = [16, 0], sizes = [8, 1024], strides = [1, 1]} : vector<24x1024xf32> to vector<8x1024xf32>
    %c16_70 = arith.constant 16 : index
    %c0_71 = arith.constant 0 : index
    %118 = vector.load %arg47[%c16_70, %c0_71] : memref<24x1024xf32, #tpu.memory_space<vmem>>, vector<8x1024xf32>
    %119 = arith.mulf %117, %118 : vector<8x1024xf32>
    %120 = arith.addf %116, %119 : vector<8x1024xf32>
    %121 = arith.truncf %120 : vector<8x1024xf32> to vector<8x1024xbf16>
    %c0_72 = arith.constant 0 : index
    %c0_73 = arith.constant 0 : index
    %c0_74 = arith.constant 0 : index
    %122 = vector.load %arg31[%c0_72, %c0_73, %c0_74] : memref<1x1024x64xbf16, #tpu.memory_space<vmem>>, vector<1x1024x64xbf16>
    %123 = vector.shape_cast %122 : vector<1x1024x64xbf16> to vector<1024x64xbf16>
    %cst_75 = arith.constant dense<0.000000e+00> : vector<8x64xf32>
    %124 = tpu.matmul %121, %123, %cst_75 {dimension_numbers = #tpu.dot_dimension_numbers<[1], [0], [0], [1], [0, 0, 1, 1], [], []>} : vector<8x1024xbf16>, vector<1024x64xbf16>, vector<8x64xf32> -> vector<8x64xf32>
    %c0_76 = arith.constant 0 : index
    %c0_77 = arith.constant 0 : index
    %c0_78 = arith.constant 0 : index
    %125 = vector.load %arg32[%c0_76, %c0_77, %c0_78] : memref<1x1x64xf32, #tpu.memory_space<vmem>>, vector<1x1x64xf32>
    %126 = vector.shape_cast %125 : vector<1x1x64xf32> to vector<1x64xf32>
    %127 = vector.broadcast %126 : vector<1x64xf32> to vector<8x64xf32>
    %128 = arith.addf %124, %127 : vector<8x64xf32>
    %c16_79 = arith.constant 16 : index
    %c0_80 = arith.constant 0 : index
    %129 = vector.load %arg45[%c16_79, %c0_80] : memref<24x1024xf32, #tpu.memory_space<vmem>>, vector<8x1024xf32>
    %c0_81 = arith.constant 0 : index
    %c0_82 = arith.constant 0 : index
    %130 = vector.load %arg46[%c0_81, %c0_82] : memref<24x1024xf32, #tpu.memory_space<vmem>>, vector<8x1024xf32>
    %131 = arith.mulf %129, %130 : vector<8x1024xf32>
    %c8_83 = arith.constant 8 : index
    %c0_84 = arith.constant 0 : index
    %132 = vector.load %arg46[%c8_83, %c0_84] : memref<24x1024xf32, #tpu.memory_space<vmem>>, vector<8x1024xf32>
    %133 = arith.mulf %129, %132 : vector<8x1024xf32>
    %c16_85 = arith.constant 16 : index
    %c0_86 = arith.constant 0 : index
    %134 = vector.load %arg46[%c16_85, %c0_86] : memref<24x1024xf32, #tpu.memory_space<vmem>>, vector<8x1024xf32>
    %135 = arith.mulf %129, %134 : vector<8x1024xf32>
    %136 = tpu.concatenate %131, %133, %135 in 0 : vector<8x1024xf32>, vector<8x1024xf32>, vector<8x1024xf32> -> vector<24x1024xf32>
    %cst_87 = arith.constant dense<0.000000e+00> : vector<24x16xf32>
    %137 = tpu.matmul %136, %31, %cst_87 {dimension_numbers = #tpu.dot_dimension_numbers<[1], [0], [0], [1], [0, 0, 1, 1], [], []>} : vector<24x1024xf32>, vector<1024x16xf32>, vector<24x16xf32> -> vector<24x16xf32>
    %138 = vector.extract_strided_slice %137 {offsets = [0, 0], sizes = [8, 16], strides = [1, 1]} : vector<24x16xf32> to vector<8x16xf32>
    %139 = vector.extract_strided_slice %137 {offsets = [8, 0], sizes = [8, 16], strides = [1, 1]} : vector<24x16xf32> to vector<8x16xf32>
    %140 = vector.extract_strided_slice %137 {offsets = [16, 0], sizes = [8, 16], strides = [1, 1]} : vector<24x16xf32> to vector<8x16xf32>
    %141 = arith.maximumf %138, %139 : vector<8x16xf32>
    %142 = arith.maximumf %141, %140 : vector<8x16xf32>
    %143 = arith.subf %138, %142 : vector<8x16xf32>
    %144 = math.exp %143 : vector<8x16xf32>
    %145 = arith.subf %139, %142 : vector<8x16xf32>
    %146 = math.exp %145 : vector<8x16xf32>
    %147 = arith.subf %140, %142 : vector<8x16xf32>
    %148 = math.exp %147 : vector<8x16xf32>
    %149 = arith.addf %144, %146 : vector<8x16xf32>
    %150 = arith.addf %149, %148 : vector<8x16xf32>
    %cst_88 = arith.constant 1.000000e+00 : f32
    %151 = vector.broadcast %cst_88 : f32 to vector<8x16xf32>
    %152 = arith.divf %151, %150 : vector<8x16xf32>
    %153 = arith.mulf %144, %152 : vector<8x16xf32>
    %154 = arith.mulf %146, %152 : vector<8x16xf32>
    %155 = arith.mulf %148, %152 : vector<8x16xf32>
    %156 = tpu.concatenate %153, %154, %155 in 0 : vector<8x16xf32>, vector<8x16xf32>, vector<8x16xf32> -> vector<24x16xf32>
    %cst_89 = arith.constant dense<0.000000e+00> : vector<24x1024xf32>
    %157 = tpu.matmul %156, %32, %cst_89 {dimension_numbers = #tpu.dot_dimension_numbers<[1], [0], [0], [1], [0, 0, 1, 1], [], []>} : vector<24x16xf32>, vector<16x1024xf32>, vector<24x1024xf32> -> vector<24x1024xf32>
    %158 = vector.extract_strided_slice %157 {offsets = [0, 0], sizes = [8, 1024], strides = [1, 1]} : vector<24x1024xf32> to vector<8x1024xf32>
    %c0_90 = arith.constant 0 : index
    %c0_91 = arith.constant 0 : index
    %159 = vector.load %arg47[%c0_90, %c0_91] : memref<24x1024xf32, #tpu.memory_space<vmem>>, vector<8x1024xf32>
    %160 = arith.mulf %158, %159 : vector<8x1024xf32>
    %161 = vector.extract_strided_slice %157 {offsets = [8, 0], sizes = [8, 1024], strides = [1, 1]} : vector<24x1024xf32> to vector<8x1024xf32>
    %c8_92 = arith.constant 8 : index
    %c0_93 = arith.constant 0 : index
    %162 = vector.load %arg47[%c8_92, %c0_93] : memref<24x1024xf32, #tpu.memory_space<vmem>>, vector<8x1024xf32>
    %163 = arith.mulf %161, %162 : vector<8x1024xf32>
    %164 = arith.addf %160, %163 : vector<8x1024xf32>
    %165 = vector.extract_strided_slice %157 {offsets = [16, 0], sizes = [8, 1024], strides = [1, 1]} : vector<24x1024xf32> to vector<8x1024xf32>
    %c16_94 = arith.constant 16 : index
    %c0_95 = arith.constant 0 : index
    %166 = vector.load %arg47[%c16_94, %c0_95] : memref<24x1024xf32, #tpu.memory_space<vmem>>, vector<8x1024xf32>
    %167 = arith.mulf %165, %166 : vector<8x1024xf32>
    %168 = arith.addf %164, %167 : vector<8x1024xf32>
    %169 = arith.truncf %168 : vector<8x1024xf32> to vector<8x1024xbf16>
    %c0_96 = arith.constant 0 : index
    %c0_97 = arith.constant 0 : index
    %c0_98 = arith.constant 0 : index
    %170 = vector.load %arg31[%c0_96, %c0_97, %c0_98] : memref<1x1024x64xbf16, #tpu.memory_space<vmem>>, vector<1x1024x64xbf16>
    %171 = vector.shape_cast %170 : vector<1x1024x64xbf16> to vector<1024x64xbf16>
    %cst_99 = arith.constant dense<0.000000e+00> : vector<8x64xf32>
    %172 = tpu.matmul %169, %171, %cst_99 {dimension_numbers = #tpu.dot_dimension_numbers<[1], [0], [0], [1], [0, 0, 1, 1], [], []>} : vector<8x1024xbf16>, vector<1024x64xbf16>, vector<8x64xf32> -> vector<8x64xf32>
    %c0_100 = arith.constant 0 : index
    %c0_101 = arith.constant 0 : index
    %c0_102 = arith.constant 0 : index
    %173 = vector.load %arg32[%c0_100, %c0_101, %c0_102] : memref<1x1x64xf32, #tpu.memory_space<vmem>>, vector<1x1x64xf32>
    %174 = vector.shape_cast %173 : vector<1x1x64xf32> to vector<1x64xf32>
    %175 = vector.broadcast %174 : vector<1x64xf32> to vector<8x64xf32>
    %176 = arith.addf %172, %175 : vector<8x64xf32>
    %177 = tpu.concatenate %80, %128, %176 in 0 : vector<8x64xf32>, vector<8x64xf32>, vector<8x64xf32> -> vector<24x64xf32>
    %cst_103 = arith.constant 1.414000e+00 : f32
    %178 = vector.broadcast %cst_103 : f32 to vector<24x64xf32>
    %179 = arith.divf %177, %178 : vector<24x64xf32>
    %cst_104 = arith.constant 1.414000e+00 : f32
    %180 = vector.broadcast %cst_104 : f32 to vector<24x64xf32>
    %181 = arith.divf %3, %180 : vector<24x64xf32>
    %182 = arith.addf %179, %181 : vector<24x64xf32>
    %cst_105 = arith.constant dense<0.000000e+00> : vector<64xf32>
    %183 = vector.multi_reduction <add>, %182, %cst_105 [0] : vector<24x64xf32> to vector<64xf32>
    %184 = vector.shape_cast %183 : vector<64xf32> to vector<1x64xf32>
    %cst_106 = arith.constant 2.400000e+01 : f32
    %185 = vector.broadcast %cst_106 : f32 to vector<1x64xf32>
    %186 = arith.divf %184, %185 : vector<1x64xf32>
    %187 = vector.broadcast %186 : vector<1x64xf32> to vector<24x64xf32>
    %188 = arith.subf %182, %187 : vector<24x64xf32>
    %189 = arith.mulf %188, %188 : vector<24x64xf32>
    %cst_107 = arith.constant dense<0.000000e+00> : vector<64xf32>
    %190 = vector.multi_reduction <add>, %189, %cst_107 [0] : vector<24x64xf32> to vector<64xf32>
    %191 = vector.shape_cast %190 : vector<64xf32> to vector<1x64xf32>
    %cst_108 = arith.constant 2.400000e+01 : f32
    %192 = vector.broadcast %cst_108 : f32 to vector<1x64xf32>
    %193 = arith.divf %191, %192 : vector<1x64xf32>
    %194 = vector.broadcast %186 : vector<1x64xf32> to vector<24x64xf32>
    %195 = arith.subf %182, %194 : vector<24x64xf32>
    %cst_109 = arith.constant 9.99999974E-6 : f32
    %196 = vector.broadcast %cst_109 : f32 to vector<1x64xf32>
    %197 = arith.addf %193, %196 : vector<1x64xf32>
    %198 = math.rsqrt %197 : vector<1x64xf32>
    %199 = vector.broadcast %198 : vector<1x64xf32> to vector<24x64xf32>
    %200 = arith.mulf %195, %199 : vector<24x64xf32>
    %c0_110 = arith.constant 0 : index
    %c0_111 = arith.constant 0 : index
    %c0_112 = arith.constant 0 : index
    %201 = vector.load %arg33[%c0_110, %c0_111, %c0_112] : memref<1x1x64xf32, #tpu.memory_space<vmem>>, vector<1x1x64xf32>
    %202 = vector.shape_cast %201 : vector<1x1x64xf32> to vector<1x64xf32>
    %203 = vector.broadcast %202 : vector<1x64xf32> to vector<24x64xf32>
    %204 = arith.mulf %200, %203 : vector<24x64xf32>
    %c0_113 = arith.constant 0 : index
    %c0_114 = arith.constant 0 : index
    %c0_115 = arith.constant 0 : index
    %205 = vector.load %arg34[%c0_113, %c0_114, %c0_115] : memref<1x1x64xf32, #tpu.memory_space<vmem>>, vector<1x1x64xf32>
    %206 = vector.shape_cast %205 : vector<1x1x64xf32> to vector<1x64xf32>
    %207 = vector.broadcast %206 : vector<1x64xf32> to vector<24x64xf32>
    %208 = arith.addf %204, %207 : vector<24x64xf32>
    %209 = arith.truncf %208 : vector<24x64xf32> to vector<24x64xbf16>
    %c0_116 = arith.constant 0 : index
    %c0_117 = arith.constant 0 : index
    %c0_118 = arith.constant 0 : index
    %210 = vector.load %arg35[%c0_116, %c0_117, %c0_118] : memref<1x64x256xbf16, #tpu.memory_space<vmem>>, vector<1x64x256xbf16>
    %211 = vector.shape_cast %210 : vector<1x64x256xbf16> to vector<64x256xbf16>
    %cst_119 = arith.constant dense<0.000000e+00> : vector<24x256xf32>
    %212 = tpu.matmul %209, %211, %cst_119 {dimension_numbers = #tpu.dot_dimension_numbers<[1], [0], [0], [1], [0, 0, 1, 1], [], []>} : vector<24x64xbf16>, vector<64x256xbf16>, vector<24x256xf32> -> vector<24x256xf32>
    %c0_120 = arith.constant 0 : index
    %c0_121 = arith.constant 0 : index
    %c0_122 = arith.constant 0 : index
    %213 = vector.load %arg36[%c0_120, %c0_121, %c0_122] : memref<1x1x256xf32, #tpu.memory_space<vmem>>, vector<1x1x256xf32>
    %214 = vector.shape_cast %213 : vector<1x1x256xf32> to vector<1x256xf32>
    %215 = vector.broadcast %214 : vector<1x256xf32> to vector<24x256xf32>
    %216 = arith.addf %212, %215 : vector<24x256xf32>
    %cst_123 = arith.constant 5.000000e-01 : f32
    %217 = vector.broadcast %cst_123 : f32 to vector<24x256xf32>
    %218 = arith.mulf %217, %216 : vector<24x256xf32>
    %219 = arith.mulf %216, %216 : vector<24x256xf32>
    %220 = arith.mulf %216, %219 : vector<24x256xf32>
    %cst_124 = arith.constant 4.471500e-02 : f32
    %221 = vector.broadcast %cst_124 : f32 to vector<24x256xf32>
    %222 = arith.mulf %221, %220 : vector<24x256xf32>
    %223 = arith.addf %216, %222 : vector<24x256xf32>
    %cst_125 = arith.constant 0.797884583 : f32
    %224 = vector.broadcast %cst_125 : f32 to vector<24x256xf32>
    %225 = arith.mulf %224, %223 : vector<24x256xf32>
    %226 = math.tanh %225 : vector<24x256xf32>
    %cst_126 = arith.constant 1.000000e+00 : f32
    %227 = vector.broadcast %cst_126 : f32 to vector<24x256xf32>
    %228 = arith.addf %227, %226 : vector<24x256xf32>
    %229 = arith.mulf %218, %228 : vector<24x256xf32>
    %230 = arith.truncf %229 : vector<24x256xf32> to vector<24x256xbf16>
    %c0_127 = arith.constant 0 : index
    %c0_128 = arith.constant 0 : index
    %c0_129 = arith.constant 0 : index
    %231 = vector.load %arg37[%c0_127, %c0_128, %c0_129] : memref<1x256x64xbf16, #tpu.memory_space<vmem>>, vector<1x256x64xbf16>
    %232 = vector.shape_cast %231 : vector<1x256x64xbf16> to vector<256x64xbf16>
    %cst_130 = arith.constant dense<0.000000e+00> : vector<24x64xf32>
    %233 = tpu.matmul %230, %232, %cst_130 {dimension_numbers = #tpu.dot_dimension_numbers<[1], [0], [0], [1], [0, 0, 1, 1], [], []>} : vector<24x256xbf16>, vector<256x64xbf16>, vector<24x64xf32> -> vector<24x64xf32>
    %c0_131 = arith.constant 0 : index
    %c0_132 = arith.constant 0 : index
    %c0_133 = arith.constant 0 : index
    %234 = vector.load %arg38[%c0_131, %c0_132, %c0_133] : memref<1x1x64xf32, #tpu.memory_space<vmem>>, vector<1x1x64xf32>
    %235 = vector.shape_cast %234 : vector<1x1x64xf32> to vector<1x64xf32>
    %236 = vector.broadcast %235 : vector<1x64xf32> to vector<24x64xf32>
    %237 = arith.addf %233, %236 : vector<24x64xf32>
    %cst_134 = arith.constant 1.414000e+00 : f32
    %238 = vector.broadcast %cst_134 : f32 to vector<24x64xf32>
    %239 = arith.divf %237, %238 : vector<24x64xf32>
    %cst_135 = arith.constant 1.414000e+00 : f32
    %240 = vector.broadcast %cst_135 : f32 to vector<24x64xf32>
    %241 = arith.divf %208, %240 : vector<24x64xf32>
    %242 = arith.addf %239, %241 : vector<24x64xf32>
    %cst_136 = arith.constant dense<0.000000e+00> : vector<64xf32>
    %243 = vector.multi_reduction <add>, %242, %cst_136 [0] : vector<24x64xf32> to vector<64xf32>
    %244 = vector.shape_cast %243 : vector<64xf32> to vector<1x64xf32>
    %cst_137 = arith.constant 2.400000e+01 : f32
    %245 = vector.broadcast %cst_137 : f32 to vector<1x64xf32>
    %246 = arith.divf %244, %245 : vector<1x64xf32>
    %247 = vector.broadcast %246 : vector<1x64xf32> to vector<24x64xf32>
    %248 = arith.subf %242, %247 : vector<24x64xf32>
    %249 = arith.mulf %248, %248 : vector<24x64xf32>
    %cst_138 = arith.constant dense<0.000000e+00> : vector<64xf32>
    %250 = vector.multi_reduction <add>, %249, %cst_138 [0] : vector<24x64xf32> to vector<64xf32>
    %251 = vector.shape_cast %250 : vector<64xf32> to vector<1x64xf32>
    %cst_139 = arith.constant 2.400000e+01 : f32
    %252 = vector.broadcast %cst_139 : f32 to vector<1x64xf32>
    %253 = arith.divf %251, %252 : vector<1x64xf32>
    %254 = vector.broadcast %246 : vector<1x64xf32> to vector<24x64xf32>
    %255 = arith.subf %242, %254 : vector<24x64xf32>
    %cst_140 = arith.constant 9.99999974E-6 : f32
    %256 = vector.broadcast %cst_140 : f32 to vector<1x64xf32>
    %257 = arith.addf %253, %256 : vector<1x64xf32>
    %258 = math.rsqrt %257 : vector<1x64xf32>
    %259 = vector.broadcast %258 : vector<1x64xf32> to vector<24x64xf32>
    %260 = arith.mulf %255, %259 : vector<24x64xf32>
    %c0_141 = arith.constant 0 : index
    %c0_142 = arith.constant 0 : index
    %c0_143 = arith.constant 0 : index
    %261 = vector.load %arg39[%c0_141, %c0_142, %c0_143] : memref<1x1x64xf32, #tpu.memory_space<vmem>>, vector<1x1x64xf32>
    %262 = vector.shape_cast %261 : vector<1x1x64xf32> to vector<1x64xf32>
    %263 = vector.broadcast %262 : vector<1x64xf32> to vector<24x64xf32>
    %264 = arith.mulf %260, %263 : vector<24x64xf32>
    %c0_144 = arith.constant 0 : index
    %c0_145 = arith.constant 0 : index
    %c0_146 = arith.constant 0 : index
    %265 = vector.load %arg40[%c0_144, %c0_145, %c0_146] : memref<1x1x64xf32, #tpu.memory_space<vmem>>, vector<1x1x64xf32>
    %266 = vector.shape_cast %265 : vector<1x1x64xf32> to vector<1x64xf32>
    %267 = vector.broadcast %266 : vector<1x64xf32> to vector<24x64xf32>
    %268 = arith.addf %264, %267 : vector<24x64xf32>
    %c0_147 = arith.constant 0 : index
    %c0_148 = arith.constant 0 : index
    %269 = vector.load %arg44[%c0_147, %c0_148] : memref<24x64xf32, #tpu.memory_space<vmem>>, vector<24x64xf32>
    tpu.vector_store %arg44[%c0_147, %c0_148], %268 {strides = array<i32>} : memref<24x64xf32, #tpu.memory_space<vmem>>, vector<24x64xf32>,
    %c3_i32 = arith.constant 3 : i32
    %270 = arith.cmpi eq, %arg0, %c3_i32 : i32
    %271 = arith.extui %270 : i1 to i32
    %c0_i32_149 = arith.constant 0 : i32
    %272 = arith.cmpi ne, %271, %c0_i32_149 : i32
    scf.if %272 {
      %c0_150 = arith.constant 0 : index
      %c0_151 = arith.constant 0 : index
      %273 = vector.load %arg41[%c0_150, %c0_151] : memref<192x4xf32, #tpu.memory_space<vmem>>, vector<192x4xf32>
      %c0_152 = arith.constant 0 : index
      %c0_153 = arith.constant 0 : index
      %274 = vector.load %arg42[%c0_152, %c0_153] : memref<1x4xf32, #tpu.memory_space<vmem>>, vector<1x4xf32>
      %275 = vector.extract_strided_slice %268 {offsets = [0, 0], sizes = [8, 64], strides = [1, 1]} : vector<24x64xf32> to vector<8x64xf32>
      %276 = vector.extract_strided_slice %273 {offsets = [0, 0], sizes = [64, 4], strides = [1, 1]} : vector<192x4xf32> to vector<64x4xf32>
      %cst_154 = arith.constant dense<0.000000e+00> : vector<8x4xf32>
      %277 = tpu.matmul %275, %276, %cst_154 {dimension_numbers = #tpu.dot_dimension_numbers<[1], [0], [0], [1], [0, 0, 1, 1], [], []>} : vector<8x64xf32>, vector<64x4xf32>, vector<8x4xf32> -> vector<8x4xf32>
      %278 = vector.broadcast %274 : vector<1x4xf32> to vector<8x4xf32>
      %279 = arith.addf %278, %277 : vector<8x4xf32>
      %280 = vector.extract_strided_slice %268 {offsets = [8, 0], sizes = [8, 64], strides = [1, 1]} : vector<24x64xf32> to vector<8x64xf32>
      %281 = vector.extract_strided_slice %273 {offsets = [64, 0], sizes = [64, 4], strides = [1, 1]} : vector<192x4xf32> to vector<64x4xf32>
      %cst_155 = arith.constant dense<0.000000e+00> : vector<8x4xf32>
      %282 = tpu.matmul %280, %281, %cst_155 {dimension_numbers = #tpu.dot_dimension_numbers<[1], [0], [0], [1], [0, 0, 1, 1], [], []>} : vector<8x64xf32>, vector<64x4xf32>, vector<8x4xf32> -> vector<8x4xf32>
      %283 = arith.addf %279, %282 : vector<8x4xf32>
      %284 = vector.extract_strided_slice %268 {offsets = [16, 0], sizes = [8, 64], strides = [1, 1]} : vector<24x64xf32> to vector<8x64xf32>
      %285 = vector.extract_strided_slice %273 {offsets = [128, 0], sizes = [64, 4], strides = [1, 1]} : vector<192x4xf32> to vector<64x4xf32>
      %cst_156 = arith.constant dense<0.000000e+00> : vector<8x4xf32>
      %286 = tpu.matmul %284, %285, %cst_156 {dimension_numbers = #tpu.dot_dimension_numbers<[1], [0], [0], [1], [0, 0, 1, 1], [], []>} : vector<8x64xf32>, vector<64x4xf32>, vector<8x4xf32> -> vector<8x4xf32>
      %287 = arith.addf %283, %286 : vector<8x4xf32>
      %c0_157 = arith.constant 0 : index
      %c0_158 = arith.constant 0 : index
      %288 = vector.load %arg43[%c0_157, %c0_158] : memref<8x4xf32, #tpu.memory_space<vmem>>, vector<8x4xf32>
      tpu.vector_store %arg43[%c0_157, %c0_158], %287 {strides = array<i32>} : memref<8x4xf32, #tpu.memory_space<vmem>>, vector<8x4xf32>,
    } else {
    }
    return
  }
  func.func @transform_0(%arg0: i32) -> (i32, i32) {
    %c0_i32 = arith.constant 0 : i32
    %c0_i32_0 = arith.constant 0 : i32
    %c0_i32_1 = arith.constant 0 : i32
    return %c0_i32, %c0_i32_0 : i32, i32
  }
  func.func @transform_1(%arg0: i32) -> (i32, i32) {
    %c0_i32 = arith.constant 0 : i32
    %c0_i32_0 = arith.constant 0 : i32
    %c0_i32_1 = arith.constant 0 : i32
    return %c0_i32, %c0_i32_0 : i32, i32
  }
  func.func @transform_2(%arg0: i32) -> (i32, i32) {
    %c0_i32 = arith.constant 0 : i32
    %c0_i32_0 = arith.constant 0 : i32
    %c0_i32_1 = arith.constant 0 : i32
    return %c0_i32, %c0_i32_0 : i32, i32
  }
  func.func @transform_3(%arg0: i32) -> (i32, i32) {
    %c0_i32 = arith.constant 0 : i32
    %c0_i32_0 = arith.constant 0 : i32
    %c0_i32_1 = arith.constant 0 : i32
    return %c0_i32, %c0_i32_0 : i32, i32
  }
  func.func @transform_4(%arg0: i32) -> (i32, i32) {
    %c0_i32 = arith.constant 0 : i32
    %c0_i32_0 = arith.constant 0 : i32
    %c0_i32_1 = arith.constant 0 : i32
    return %c0_i32, %c0_i32_0 : i32, i32
  }
  func.func @transform_5(%arg0: i32) -> (i32, i32) {
    %c0_i32 = arith.constant 0 : i32
    %c0_i32_0 = arith.constant 0 : i32
    %c0_i32_1 = arith.constant 0 : i32
    return %c0_i32, %c0_i32_0 : i32, i32
  }
  func.func @transform_6(%arg0: i32) -> (i32, i32) {
    %c0_i32 = arith.constant 0 : i32
    %c0_i32_0 = arith.constant 0 : i32
    %c0_i32_1 = arith.constant 0 : i32
    return %c0_i32, %c0_i32_0 : i32, i32
  }
  func.func @transform_7(%arg0: i32) -> (i32, i32) {
    %c0_i32 = arith.constant 0 : i32
    %c0_i32_0 = arith.constant 0 : i32
    %c0_i32_1 = arith.constant 0 : i32
    return %c0_i32, %c0_i32_0 : i32, i32
  }
  func.func @transform_8(%arg0: i32) -> (i32, i32) {
    %c0_i32 = arith.constant 0 : i32
    %c0_i32_0 = arith.constant 0 : i32
    %c0_i32_1 = arith.constant 0 : i32
    return %c0_i32, %c0_i32_0 : i32, i32
  }
  func.func @transform_9(%arg0: i32) -> (i32, i32) {
    %c0_i32 = arith.constant 0 : i32
    %c0_i32_0 = arith.constant 0 : i32
    %c0_i32_1 = arith.constant 0 : i32
    return %c0_i32, %c0_i32_0 : i32, i32
  }
  func.func @transform_10(%arg0: i32) -> (i32, i32) {
    %c0_i32 = arith.constant 0 : i32
    %c0_i32_0 = arith.constant 0 : i32
    %c0_i32_1 = arith.constant 0 : i32
    return %c0_i32, %c0_i32_0 : i32, i32
  }
  func.func @transform_11(%arg0: i32) -> (i32, i32) {
    %c0_i32 = arith.constant 0 : i32
    %c0_i32_0 = arith.constant 0 : i32
    %c0_i32_1 = arith.constant 0 : i32
    return %c0_i32, %c0_i32_0 : i32, i32
  }
  func.func @transform_12(%arg0: i32) -> (i32, i32) {
    %c0_i32 = arith.constant 0 : i32
    %c0_i32_0 = arith.constant 0 : i32
    %c0_i32_1 = arith.constant 0 : i32
    return %c0_i32, %c0_i32_0 : i32, i32
  }
  func.func @transform_13(%arg0: i32) -> (i32, i32) {
    %c0_i32 = arith.constant 0 : i32
    %c0_i32_0 = arith.constant 0 : i32
    %c0_i32_1 = arith.constant 0 : i32
    return %c0_i32, %c0_i32_0 : i32, i32
  }
  func.func @transform_14(%arg0: i32) -> (i32, i32) {
    %c0_i32 = arith.constant 0 : i32
    %c0_i32_0 = arith.constant 0 : i32
    %c0_i32_1 = arith.constant 0 : i32
    return %c0_i32, %c0_i32_0 : i32, i32
  }
  func.func @transform_15(%arg0: i32) -> (i32, i32) {
    %c0_i32 = arith.constant 0 : i32
    %c0_i32_0 = arith.constant 0 : i32
    %c0_i32_1 = arith.constant 0 : i32
    return %c0_i32, %c0_i32_0 : i32, i32
  }
  func.func @transform_16(%arg0: i32) -> (i32, i32) {
    %c0_i32 = arith.constant 0 : i32
    %c0_i32_0 = arith.constant 0 : i32
    %c0_i32_1 = arith.constant 0 : i32
    return %c0_i32, %c0_i32_0 : i32, i32
  }
  func.func @transform_17(%arg0: i32) -> (i32, i32) {
    %c0_i32 = arith.constant 0 : i32
    %c0_i32_0 = arith.constant 0 : i32
    %c0_i32_1 = arith.constant 0 : i32
    return %c0_i32, %c0_i32_0 : i32, i32
  }
  func.func @transform_18(%arg0: i32) -> (i32, i32) {
    %c0_i32 = arith.constant 0 : i32
    %c0_i32_0 = arith.constant 0 : i32
    %c0_i32_1 = arith.constant 0 : i32
    return %c0_i32, %c0_i32_0 : i32, i32
  }
  func.func @transform_19(%arg0: i32) -> (i32, i32) {
    %c0_i32 = arith.constant 0 : i32
    %c0_i32_0 = arith.constant 0 : i32
    %c0_i32_1 = arith.constant 0 : i32
    return %c0_i32, %c0_i32_0 : i32, i32
  }
  func.func @transform_20(%arg0: i32) -> (i32, i32) {
    %c0_i32 = arith.constant 0 : i32
    %c0_i32_0 = arith.constant 0 : i32
    %c0_i32_1 = arith.constant 0 : i32
    return %c0_i32, %c0_i32_0 : i32, i32
  }
  func.func @transform_21(%arg0: i32) -> (i32, i32) {
    %c0_i32 = arith.constant 0 : i32
    %c0_i32_0 = arith.constant 0 : i32
    %c0_i32_1 = arith.constant 0 : i32
    return %c0_i32, %c0_i32_0 : i32, i32
  }
  func.func @transform_22(%arg0: i32) -> (i32, i32) {
    %c0_i32 = arith.constant 0 : i32
    %c0_i32_0 = arith.constant 0 : i32
    %c0_i32_1 = arith.constant 0 : i32
    return %c0_i32, %c0_i32_0 : i32, i32
  }
  func.func @transform_23(%arg0: i32) -> (i32, i32) {
    %c0_i32 = arith.constant 0 : i32
    %c0_i32_0 = arith.constant 0 : i32
    %c0_i32_1 = arith.constant 0 : i32
    return %c0_i32, %c0_i32_0 : i32, i32
  }
  func.func @transform_24(%arg0: i32) -> (i32, i32, i32) {
    %c0_i32 = arith.constant 0 : i32
    %c0_i32_0 = arith.constant 0 : i32
    %c0_i32_1 = arith.constant 0 : i32
    return %arg0, %c0_i32, %c0_i32_0 : i32, i32, i32
  }
  func.func @transform_25(%arg0: i32) -> (i32, i32, i32) {
    %c0_i32 = arith.constant 0 : i32
    %c0_i32_0 = arith.constant 0 : i32
    %c0_i32_1 = arith.constant 0 : i32
    return %arg0, %c0_i32, %c0_i32_0 : i32, i32, i32
  }
  func.func @transform_26(%arg0: i32) -> (i32, i32, i32) {
    %c0_i32 = arith.constant 0 : i32
    %c0_i32_0 = arith.constant 0 : i32
    %c0_i32_1 = arith.constant 0 : i32
    return %arg0, %c0_i32, %c0_i32_0 : i32, i32, i32
  }
  func.func @transform_27(%arg0: i32) -> (i32, i32, i32) {
    %c0_i32 = arith.constant 0 : i32
    %c0_i32_0 = arith.constant 0 : i32
    %c0_i32_1 = arith.constant 0 : i32
    return %arg0, %c0_i32, %c0_i32_0 : i32, i32, i32
  }
  func.func @transform_28(%arg0: i32) -> (i32, i32, i32) {
    %c0_i32 = arith.constant 0 : i32
    %c0_i32_0 = arith.constant 0 : i32
    %c0_i32_1 = arith.constant 0 : i32
    return %arg0, %c0_i32, %c0_i32_0 : i32, i32, i32
  }
  func.func @transform_29(%arg0: i32) -> (i32, i32, i32) {
    %c0_i32 = arith.constant 0 : i32
    %c0_i32_0 = arith.constant 0 : i32
    %c0_i32_1 = arith.constant 0 : i32
    return %arg0, %c0_i32, %c0_i32_0 : i32, i32, i32
  }
  func.func @transform_30(%arg0: i32) -> (i32, i32, i32) {
    %c0_i32 = arith.constant 0 : i32
    %c0_i32_0 = arith.constant 0 : i32
    %c0_i32_1 = arith.constant 0 : i32
    return %arg0, %c0_i32, %c0_i32_0 : i32, i32, i32
  }
  func.func @transform_31(%arg0: i32) -> (i32, i32, i32) {
    %c0_i32 = arith.constant 0 : i32
    %c0_i32_0 = arith.constant 0 : i32
    %c0_i32_1 = arith.constant 0 : i32
    return %arg0, %c0_i32, %c0_i32_0 : i32, i32, i32
  }
  func.func @transform_32(%arg0: i32) -> (i32, i32, i32) {
    %c0_i32 = arith.constant 0 : i32
    %c0_i32_0 = arith.constant 0 : i32
    %c0_i32_1 = arith.constant 0 : i32
    return %arg0, %c0_i32, %c0_i32_0 : i32, i32, i32
  }
  func.func @transform_33(%arg0: i32) -> (i32, i32, i32) {
    %c0_i32 = arith.constant 0 : i32
    %c0_i32_0 = arith.constant 0 : i32
    %c0_i32_1 = arith.constant 0 : i32
    return %arg0, %c0_i32, %c0_i32_0 : i32, i32, i32
  }
  func.func @transform_34(%arg0: i32) -> (i32, i32, i32) {
    %c0_i32 = arith.constant 0 : i32
    %c0_i32_0 = arith.constant 0 : i32
    %c0_i32_1 = arith.constant 0 : i32
    return %arg0, %c0_i32, %c0_i32_0 : i32, i32, i32
  }
  func.func @transform_35(%arg0: i32) -> (i32, i32, i32) {
    %c0_i32 = arith.constant 0 : i32
    %c0_i32_0 = arith.constant 0 : i32
    %c0_i32_1 = arith.constant 0 : i32
    return %arg0, %c0_i32, %c0_i32_0 : i32, i32, i32
  }
  func.func @transform_36(%arg0: i32) -> (i32, i32, i32) {
    %c0_i32 = arith.constant 0 : i32
    %c0_i32_0 = arith.constant 0 : i32
    %c0_i32_1 = arith.constant 0 : i32
    return %arg0, %c0_i32, %c0_i32_0 : i32, i32, i32
  }
  func.func @transform_37(%arg0: i32) -> (i32, i32, i32) {
    %c0_i32 = arith.constant 0 : i32
    %c0_i32_0 = arith.constant 0 : i32
    %c0_i32_1 = arith.constant 0 : i32
    return %arg0, %c0_i32, %c0_i32_0 : i32, i32, i32
  }
  func.func @transform_38(%arg0: i32) -> (i32, i32, i32) {
    %c0_i32 = arith.constant 0 : i32
    %c0_i32_0 = arith.constant 0 : i32
    %c0_i32_1 = arith.constant 0 : i32
    return %arg0, %c0_i32, %c0_i32_0 : i32, i32, i32
  }
  func.func @transform_39(%arg0: i32) -> (i32, i32, i32) {
    %c0_i32 = arith.constant 0 : i32
    %c0_i32_0 = arith.constant 0 : i32
    %c0_i32_1 = arith.constant 0 : i32
    return %arg0, %c0_i32, %c0_i32_0 : i32, i32, i32
  }
  func.func @transform_40(%arg0: i32) -> (i32, i32) {
    %c0_i32 = arith.constant 0 : i32
    %c0_i32_0 = arith.constant 0 : i32
    %c0_i32_1 = arith.constant 0 : i32
    return %c0_i32, %c0_i32_0 : i32, i32
  }
  func.func @transform_41(%arg0: i32) -> (i32, i32) {
    %c0_i32 = arith.constant 0 : i32
    %c0_i32_0 = arith.constant 0 : i32
    %c0_i32_1 = arith.constant 0 : i32
    return %c0_i32, %c0_i32_0 : i32, i32
  }
  func.func @transform_42(%arg0: i32) -> (i32, i32) {
    %c0_i32 = arith.constant 0 : i32
    %c0_i32_0 = arith.constant 0 : i32
    %c0_i32_1 = arith.constant 0 : i32
    return %c0_i32, %c0_i32_0 : i32, i32
  }
}

</mosaic_0001>

<bundles_post_ra>
// kernel: tpu_custom_call.1
= control target key start
LH: loop header
LB: loop body
LE: loop exit
PB: predicated region body
PF: predicated region fallthrough
CT: control target
= control target key end

     0   :  { %6 = vsyncpa [#allocation3], 0  ;;  %s127_s0 = inlined_call_operand.hbm [shape: f32[8,128], index: 0, kind: input, shape index: {}]   ;;  %s128_s1 = inlined_call_operand.hbm [shape: f32[8,128], index: 1, kind: output, shape index: {}]  }
   0x1   :  { %7 = vsyncpa [#allocation4], 0  ;;  %s91_s6 = smov [#allocation2]   ;;  %s43_s10 = scalar_lea.hbm %s127_s0, 128 }
   0x2   :  { %s14_s7 = sshll.u32 %s91_s6, 4  ;;  %p44_p0 = scmp.ne.s32.totalorder %s127_s0, %s43_s10  ;;  %s15_s7 = int_to_ptr.vmem [resolvable:$true] %s14_s7 }
   0x3   :  { %p47_p1 = scmp.lt.u32.totalorder %s43_s10, %s127_s0 }
   0x5   :  { %p49_p2 = pnand %p47_p1, %p44_p0 }
   0x7   :  { %52 = shalt.err (!%p49_p2)
}
   0x8   :  { %s53_s15 = scalar_lea.vmem %s15_s7, 128  ;;  %p58_p4 = scmp.lt.s32.totalorder %s15_s7, %s15_s7 }
   0x9   :  { %p54_p3 = scmp.ne.s32.totalorder %s15_s7, %s53_s15  ;;  %p59_p5 = scmp.lt.s32.totalorder %s53_s15, %s53_s15 }
   0xb   :  { %p60_p6 = por %p59_p5, %p58_p4 }
   0xd   :  { %p61_p7 = pnand %p60_p6, %p54_p3 }
   0xf   :  { %64 = shalt.err (!%p61_p7)
}
  0x10   :  { %17 = dma.hbm_to_vmem [thread:$0]  %s127_s0, 128, %s15_s7, [#allocation3]  }
  0x11   :  { %87 = dma.done.wait [#allocation3], 128  }
  0x12   :  { %88 = vsyncadd [#allocation3], 4294967168  ;;  %v21_v0 = vld [vmem:[#allocation2] sm:$0xff]  ;;  %s92_s18 = smov [#allocation5]  }
  0x13   :  { %41 = verf.f32 %v21_v0  ;;  %s30_s19 = sshll.u32 %s92_s18, 4  ;;  %s31_s19 = int_to_ptr.vmem [resolvable:$true] %s30_s19 }
  0x14   :  { %s65_s20 = scalar_lea.vmem %s31_s19, 128  ;;  %p70_p9 = scmp.lt.s32.totalorder %s31_s19, %s31_s19 }
  0x15   :  { %p66_p8 = scmp.ne.s32.totalorder %s31_s19, %s65_s20  ;;  %p71_p10 = scmp.lt.s32.totalorder %s65_s20, %s65_s20 }
  0x17   :  { %p72_p11 = por %p71_p10, %p70_p9 }
  0x19   :  { %p73_p12 = pnand %p72_p11, %p66_p8 }
  0x1d   :  { %v42_v1 = vpop.eup %41 }
  0x1e   :  { %23 = vst [vmem:[#allocation5] sm:$0xff] %v42_v1 }
  0x1f   :  { %76 = shalt.err (!%p73_p12)
}
  0x20   :  { %s77_s0 = scalar_lea.hbm %s128_s1, 128 }
  0x21   :  { %p78_p13 = scmp.ne.s32.totalorder %s128_s1, %s77_s0  ;;  %p81_p0 = scmp.lt.u32.totalorder %s77_s0, %s128_s1 }
  0x23   :  { %p83_p1 = pnand %p81_p0, %p78_p13 }
  0x25   :  { %86 = shalt.err (!%p83_p1)
}
  0x26   :  { %33 = dma.vmem_to_hbm [thread:$0]  %s31_s19, 128, %s128_s1, [#allocation4]  }
  0x27   :  { %89 = dma.done.wait [#allocation4], 128  }
  0x28   :  { %90 = vsyncadd [#allocation4], 4294967168 }
  0x29   :  { %37 = vsyncpa [#allocation3], 1 }
  0x2a   :  { %38 = vsyncpa [#allocation4], 1 }

// kernel: model_forward.1
= control target key start
LH: loop header
LB: loop body
LE: loop exit
PB: predicated region body
PF: predicated region fallthrough
CT: control target
= control target key end

     0   :  { %s10302_s6 = smov 1   ;;  %s10303_s10 = smov 2   ;;  %s12734_s0 = inlined_call_operand.smem [shape: u32[43], index: -1, kind: input, shape index: {}] }
   0x1   :  { %s10367_s5 = sld [smem:[%s12734_s0]]   ;;  %s10304_s14 = smov 3  }
   0x2   :  { %s10372_s9 = sld [smem:[%s12734_s0 + %s10302_s6]]   ;;  %s10305_s18 = smov 4  }
   0x3   :  { %s10377_s13 = sld [smem:[%s12734_s0 + %s10303_s10]]   ;;  %s10306_s22 = smov 5  }
   0x4   :  { %s10382_s17 = sld [smem:[%s12734_s0 + %s10304_s14]]   ;;  %s10307_s26 = smov 6  }
   0x5   :  { %s10387_s21 = sld [smem:[%s12734_s0 + %s10305_s18]]   ;;  %s10308_s30 = smov 7  }
   0x6   :  { %s10392_s25 = sld [smem:[%s12734_s0 + %s10306_s22]]   ;;  %s10309_s4 = smov 8  }
   0x7   :  { %12959 = sst [smem:[#allocation6_spill]] %s10367_s5  ;;  %s10310_s10 = smov 9  }
   0x8   :  { %12960 = sst [smem:[#allocation7_spill]] %s10372_s9  ;;  %s10311_s15 = smov 10  }
   0x9   :  { %12961 = sst [smem:[#allocation8_spill]] %s10377_s13  ;;  %s10312_s20 = smov 11  }
   0xa   :  { %12962 = sst [smem:[#allocation9_spill]] %s10382_s17  ;;  %s10314_s1 = smov 13  }
   0xb   :  { %12963 = sst [smem:[#allocation10_spill]] %s10387_s21  ;;  %s10315_s7 = smov 14  }
   0xc   :  { %12964 = sst [smem:[#allocation11_spill]] %s10392_s25  ;;  %s10317_s22 = smov 16  }
   0xd   :  { %s10397_s29 = sld [smem:[%s12734_s0 + %s10307_s26]]   ;;  %s10313_s26 = smov 12  }
   0xe   :  { %s10402_s3 = sld [smem:[%s12734_s0 + %s10308_s30]]   ;;  %s10318_s28 = smov 17  }
   0xf   :  { %s10407_s8 = sld [smem:[%s12734_s0 + %s10309_s4]]  }
  0x10   :  { %s10412_s14 = sld [smem:[%s12734_s0 + %s10310_s10]]  }
  0x11   :  { %s10417_s19 = sld [smem:[%s12734_s0 + %s10311_s15]]   ;;  %s10316_s15 = smov 15  }
  0x12   :  { %s10422_s24 = sld [smem:[%s12734_s0 + %s10312_s20]]  }
  0x13   :  { %12965 = sst [smem:[#allocation12_spill]] %s10397_s29 }
  0x14   :  { %12966 = sst [smem:[#allocation13_spill]] %s10402_s3 }
  0x15   :  { %12967 = sst [smem:[#allocation14_spill]] %s10407_s8 }
  0x16   :  { %12968 = sst [smem:[#allocation15_spill]] %s10412_s14 }
  0x17   :  { %12969 = sst [smem:[#allocation16_spill]] %s10417_s19 }
  0x18   :  { %12970 = sst [smem:[#allocation17_spill]] %s10422_s24 }
  0x19   :  { %s10427_s30 = sld [smem:[%s12734_s0 + %s10313_s26]]  }
  0x1a   :  { %s10432_s6 = sld [smem:[%s12734_s0 + %s10314_s1]]  }
  0x1b   :  { %s10437_s12 = sld [smem:[%s12734_s0 + %s10315_s7]]   ;;  %s10319_s7 = smov 18  }
  0x1c   :  { %s10442_s20 = sld [smem:[%s12734_s0 + %s10316_s15]]   ;;  %s10320_s15 = smov 19  }
  0x1d   :  { %s10447_s27 = sld [smem:[%s12734_s0 + %s10317_s22]]   ;;  %s10321_s22 = smov 20  }
  0x1e   :  { %s10452_s4 = sld [smem:[%s12734_s0 + %s10318_s28]]   ;;  %s10322_s28 = smov 21  }
  0x1f   :  { %12971 = sst [smem:[#allocation18_spill]] %s10427_s30 }
  0x20   :  { %12972 = sst [smem:[#allocation19_spill]] %s10432_s6 }
  0x21   :  { %12973 = sst [smem:[#allocation20_spill]] %s10437_s12 }
  0x22   :  { %12974 = sst [smem:[#allocation21_spill]] %s10442_s20 }
  0x23   :  { %12975 = sst [smem:[#allocation22_spill]] %s10447_s27 }
  0x24   :  { %12976 = sst [smem:[#allocation23_spill]] %s10452_s4 }
  0x25   :  { %s10457_s3 = sld [smem:[%s12734_s0 + %s10319_s7]]   ;;  %s10323_s7 = smov 22  }
  0x26   :  { %s10462_s12 = sld [smem:[%s12734_s0 + %s10320_s15]]   ;;  %s10324_s15 = smov 23  }
  0x27   :  { %s10467_s27 = sld [smem:[%s12734_s0 + %s10321_s22]]   ;;  %s10325_s22 = smov 24  }
  0x28   :  { %s10472_s24 = sld [smem:[%s12734_s0 + %s10322_s28]]   ;;  %s10326_s28 = smov 25  }
  0x2b   :  { %12977 = sst [smem:[#allocation24_spill]] %s10457_s3 }
  0x2c   :  { %12978 = sst [smem:[#allocation25_spill]] %s10462_s12 }
  0x2d   :  { %12979 = sst [smem:[#allocation26_spill]] %s10467_s27 }
  0x2e   :  { %12980 = sst [smem:[#allocation27_spill]] %s10472_s24 }
  0x2f   :  { %s10477_s3 = sld [smem:[%s12734_s0 + %s10323_s7]]   ;;  %s10327_s7 = smov 26  }
  0x30   :  { %s10482_s12 = sld [smem:[%s12734_s0 + %s10324_s15]]   ;;  %s10328_s15 = smov 27  }
  0x31   :  { %s10487_s27 = sld [smem:[%s12734_s0 + %s10325_s22]]   ;;  %s10329_s22 = smov 28  }
  0x32   :  { %s10492_s24 = sld [smem:[%s12734_s0 + %s10326_s28]]   ;;  %s10330_s28 = smov 29  }
  0x33   :  { %s10507_s4 = sld [smem:[%s12734_s0 + %s10329_s22]]   ;;  %s10333_s22 = smov 32  }
  0x34   :  { %s10512_s20 = sld [smem:[%s12734_s0 + %s10330_s28]]   ;;  %s10334_s28 = smov 33  }
  0x35   :  { %12981 = sst [smem:[#allocation28_spill]] %s10477_s3 }
  0x36   :  { %12982 = sst [smem:[#allocation29_spill]] %s10482_s12 }
  0x37   :  { %12983 = sst [smem:[#allocation30_spill]] %s10487_s27 }
  0x38   :  { %12984 = sst [smem:[#allocation31_spill]] %s10492_s24 }
  0x39   :  { %s10497_s3 = sld [smem:[%s12734_s0 + %s10327_s7]]   ;;  %s10331_s7 = smov 30  }
  0x3a   :  { %s10502_s12 = sld [smem:[%s12734_s0 + %s10328_s15]]   ;;  %s10332_s15 = smov 31  }
  0x3b   :  { %12987 = sst [smem:[#allocation34_spill]] %s10507_s4 }
  0x3c   :  { %s10517_s6 = sld [smem:[%s12734_s0 + %s10331_s7]]   ;;  %s10335_s7 = smov 34  }
  0x3d   :  { %s10522_s25 = sld [smem:[%s12734_s0 + %s10332_s15]]   ;;  %s10336_s15 = smov 35  }
  0x3e   :  { %s10527_s14 = sld [smem:[%s12734_s0 + %s10333_s22]]   ;;  %s10337_s22 = smov 36  }
  0x3f   :  { %12985 = sst [smem:[#allocation32_spill]] %s10497_s3 }
  0x40   :  { %12986 = sst [smem:[#allocation33_spill]] %s10502_s12 }
  0x41   :  { %s10532_s30 = sld [smem:[%s12734_s0 + %s10334_s28]]   ;;  %s10338_s28 = smov 37  }
  0x42   :  { %s10537_s19 = sld [smem:[%s12734_s0 + %s10335_s7]]   ;;  %s10339_s7 = smov 38  }
  0x43   :  { %s10542_s29 = sld [smem:[%s12734_s0 + %s10336_s15]]   ;;  %s10340_s15 = smov 39  }
  0x44   :  { %s10547_s5 = sld [smem:[%s12734_s0 + %s10337_s22]]   ;;  %s10341_s22 = smov 40  }
  0x45   :  { %s10552_s17 = sld [smem:[%s12734_s0 + %s10338_s28]]   ;;  %s10342_s28 = smov 41  }
  0x46   :  { %s10557_s9 = sld [smem:[%s12734_s0 + %s10339_s7]]   ;;  %s10343_s7 = smov 42  }
  0x47   :  { %s10562_s8 = sld [smem:[%s12734_s0 + %s10340_s15]]   ;;  %s10579_s15 = smov 0  }
  0x48   :  { %s10567_s21 = sld [smem:[%s12734_s0 + %s10341_s22]]  }
  0x49   :  { %s10572_s13 = sld [smem:[%s12734_s0 + %s10342_s28]]  }
  0x4c   :  { %12988 = sst [smem:[#allocation35_spill]] %s10557_s9 }
  0x4d   :  { %s10577_s9 = sld [smem:[%s12734_s0 + %s10343_s7]]  }
  0x4e   :  { %12989 = sst [smem:[#allocation36_spill]] %s10567_s21 }
  0x4f   :  { %12990 = sst [smem:[#allocation37_spill]] %s10572_s13 }
  0x53   :  { %12991 = sst [smem:[#allocation38_spill]] %s10577_s9 }
  0x54 LB: > { %12992 = sst [smem:[#allocation39_spill]] %s10300_s15  ;;  %s10585_s16 = sadd.s32 4294967295, %s10300_s15   ;;  %s10300_s15 = sphi %s10579_s15, %s95_s15  }
  0x55   : > { %p8218_p0 = scmp.ge.s32.totalorder %s10300_s15, 1  ;;  %p1284_p1 = scmp.lt.s32.totalorder %s10300_s15, 5 }
  0x57   : > { %p1285_p2 = pnand %p8218_p0, %p1284_p1 }
  0x59   : > { %1288 = sbr.rel (%p1285_p2) target bundleno = 3843 (0xf03), region = 188 }
  0x60   : > { %s12993_s27 = sld [smem:[#allocation30_spill]]  ;;  %s12995_s3 = sld [smem:[#allocation32_spill]] }
  0x61   : > { %s12997_s4 = sld [smem:[#allocation34_spill]]  ;;  %p1440_p3 = scmp.lt.s32.totalorder %s10585_s16, 3 }
  0x62   : > { %p8235_p4 = scmp.ne.s32.totalorder %s10585_s16, 0 }
  0x63   : > { %s10591_s0 = scalar_select %p1440_p3, %s10585_s16, 3 }
  0x64   : > { %s13000_s10 = sld [smem:[#allocation8_spill]] (!%p8235_p4)  ;;  %s13003_s13 = sld [smem:[#allocation7_spill]] (!%p8235_p4)  ;;  %v10344_v3 = vmov (!%p8235_p4), 0   ;;  %v10345_v4 = vmov (!%p8235_p4), 0.0|0.0   ;;  %vm1694_vm0 = vcmask (!%p8235_p4), 1043456   ;;  %vm10346_vm1 = vmmov (!%p8235_p4), 0  }
  0x65   : > { %s8520_s18 = sshll.u32 %s10591_s0, 8  ;;  %s10595_s22 = sshll.u32 %s10591_s0, 3  ;;  %10089 = vset.pattern.permute.xlu0 (!%p8235_p4), %v10344_v3  ;;  %9507 = vmatprep.subr.bf16.mxu1 (!%p8235_p4), %v10345_v4  ;;  %v10347_v7 = vmov (!%p8235_p4), 0.0   ;;  %vm1690_vm2 = vcmask (!%p8235_p4), 31744   ;;  %vm1519_vm3 = vcmask (!%p8235_p4), 130048   ;;  %vm1607_vm13 = vcmask (!%p8235_p4), 261120  }
  0x66   : > { %s10598_s23 = scalar_lea.vmem %s12993_s27, %s8520_s18  ;;  %s10603_s28 = scalar_lea.vmem %s12995_s3, %s8520_s18  ;;  %9376 = vmatprep.mubr.msk.f32.mxu1 (!%p8235_p4), %vm10346_vm1, %v10347_v7  ;;  %9390 = vmatprep.subr.mxu0 (!%p8235_p4), %v10347_v7  ;;  %v10348_v39 = vmov (!%p8235_p4), 683565275   ;;  %v10349_v41 = vmov (!%p8235_p4), 2475754826   ;;  %v10350_v43 = vmov (!%p8235_p4), 2131351028  }
  0x67   : > { %12998 = sst [smem:[#allocation40_spill]] %s10603_s28  ;;  %s10608_s7 = scalar_lea.vmem %s12997_s4, %s8520_s18  ;;  %9392 = vmatprep.mubr.msk.f32.mxu0 (!%p8235_p4), %vm10346_vm1, %v10347_v7  ;;  %v10351_v45 = vmov (!%p8235_p4), 2102212464   ;;  %v10352_v47 = vmov (!%p8235_p4), 920167782  }
  0x68   : > { %s8523_s11 = sshll.u32 %s10591_s0, 9  ;;  %s10615_s15 = scalar_lea.vmem %s10522_s25, %s10591_s0  ;;  %v10353_v54 = vmov (!%p8235_p4), 1326507024  }
  0x69   : > { %s10618_s9 = scalar_lea.vmem %s10517_s6, %s8523_s11  ;;  %s8524_s26 = sshll.u32 %s10591_s0, 6 }
  0x6a   : > { %s10626_s21 = scalar_lea.vmem %s10537_s19, %s8524_s26  ;;  %s8232_s3 = sshll.u32 %s10591_s0, 1  ;;  %v1855_v0 = vld [vmem:[%s13000_s10] sm:$0xff] (!%p8235_p4) }
  0x6b   : > { %s10630_s24 = scalar_lea.vmem %s10542_s29, %s8232_s3  ;;  %s8525_s28 = sshll.u32 %s10591_s0, 7  ;;  %1859 = vperm.xlu0 (!%p8235_p4), %10089, %v1855_v0   ;;  %v1681_v8 = vld [vmem:[%s13003_s13] sm:$0xff] (!%p8235_p4) }
  0x6c   : > { %s10634_s2 = scalar_lea.vmem %s10547_s5, %s8525_s28  ;;  %1508 = sbr.rel (%p8235_p4) target bundleno = 785 (0x311), region = 192 }
  0x6d   : > { %s13001_s11 = sld [smem:[#allocation10_spill]] (!%p8235_p4)  ;;  %s13002_s27 = sld [smem:[#allocation14_spill]] (!%p8235_p4) }
  0x6e   : > { %s13004_s26 = sld [smem:[#allocation9_spill]] (!%p8235_p4)  ;;  %s13005_s3 = sld [smem:[#allocation6_spill]] (!%p8235_p4) }
  0x6f   : > { %s13006_s28 = sld [smem:[#allocation12_spill]] (!%p8235_p4)  ;;  %s13007_s13 = sld [smem:[#allocation16_spill]] (!%p8235_p4) }
  0x70   : > { %s13009_s1 = sld [smem:[#allocation15_spill]] (!%p8235_p4)  ;;  %s13010_s10 = sld [smem:[#allocation11_spill]] (!%p8235_p4) }
  0x71   : > { %s13016_s4 = sld [smem:[#allocation20_spill]] (!%p8235_p4)  ;;  %s13017_s18 = sld [smem:[#allocation13_spill]] (!%p8235_p4) }
  0x72   : > { %s13018_s12 = sld [smem:[#allocation24_spill]] (!%p8235_p4) }
  0x73   : > { %v1510_v1 = vld [vmem:[%s13001_s11] sm:$0xff]  ;;  %v1511_v2 = vld [vmem:[%s13001_s11 + $0x8] sm:$0xff] }
  0x74   : > { %v9508_v5 = vpack.c.bf16 %v1511_v2, %v1510_v1  ;;  %v1682_v6 = vld [vmem:[%s13002_s27] sm:$0xf]  ;;  %s13008_s27 = sld [smem:[#allocation18_spill]] }
  0x75   : > { %v2057_v9 = vld [vmem:[%s13004_s26] sm:$0xff]  ;;  %9391 = vmatpush3.msk.msra.mxu0 %vm1694_vm0, %v1682_v6  ;;  %v1597_v14 = vld [vmem:[%s13006_s28 + $0x8] sm:$0xff]  ;;  %v1598_v16 = vld [vmem:[%s13006_s28 + $0x10] sm:$0xff]  ;;  %s13011_s26 = sld [smem:[#allocation19_spill]] }
  0x76   : > { %9509 = vmatpush3.bf16.msra.mxu1 %v9508_v5  ;;  %v1509_v10 = vld [vmem:[%s13005_s3] sm:$0xff]  ;;  %v2058_v11 = vsub.f32 1.0, %v2057_v9  ;;  %9393 = vmatmul.mubr.msk.f32.vlgmr.msra.gmra.mrb[0].mxu0 %vm1690_vm2, %v1681_v8  ;;  %v1599_v17 = vld [vmem:[%s13006_s28 + $0x18] sm:$0xff]  ;;  %v1772_v20 = vld [vmem:[%s13007_s13 + $0x8] sm:$0xff]  ;;  %s13012_s3 = sld [smem:[#allocation21_spill]] }
  0x77   : > { %9510 = vmatprep.subr.bf16.mxu1 %v10345_v4  ;;  %9516 = vmatprep.subr.bf16.mxu0 %v10345_v4  ;;  %v1596_v13 = vld [vmem:[%s13006_s28] sm:$0xff]  ;;  %v9514_v18 = vpack.c.bf16 %v1599_v17, %v1598_v16  ;;  %v1773_v22 = vld [vmem:[%s13007_s13 + $0x10] sm:$0xff]  ;;  %v1774_v23 = vld [vmem:[%s13007_s13 + $0x18] sm:$0xff] }
  0x78   : > { %v2059_v12 = vsub.f32 0.0, %v2058_v11  ;;  %9403 = vmatprep.mubr.msk.f32.mxu0 %vm10346_vm1, %v10347_v7  ;;  %v9511_v15 = vpack.c.bf16 %v1597_v14, %v1596_v13  ;;  %v1771_v19 = vld [vmem:[%s13007_s13] sm:$0xff]  ;;  %v9520_v24 = vpack.c.bf16 %v1774_v23, %v1773_v22 }
  0x79   : > { %9377 = vmatmul.mubr.msk.f32.vlgmr.msra.gmra.mrb[0].mxu1 %vm1519_vm3, %v1509_v10  ;;  %v9517_v21 = vpack.c.bf16 %v1772_v20, %v1771_v19 }
  0x7a   : > { %2062 = vperm.xlu0 %10089, %v2059_v12   ;;  %9387 = vmatprep.mubr.msk.f32.mxu1 %vm10346_vm1, %v10347_v7  ;;  %v8245_v25 = vld [vmem:[%s13008_s27] ss:$0 sm:$0xff]  ;;  %s13013_s27 = sld [smem:[#allocation23_spill]] }
  0x7b   : > { %9512 = vmatpush3.bf16.msra.mxu1 %v9511_v15  ;;  %9518 = vmatpush3.bf16.msra.mxu0 %v9517_v21 }
  0x7c   : > { %9513 = vmatprep.subr.bf16.mxu1 %v10345_v4  ;;  %9519 = vmatprep.subr.bf16.mxu0 %v10345_v4 }
  0x7f   : > { %9515 = vmatpush3.bf16.msra.mxu1 %v9514_v18  ;;  %9521 = vmatpush3.bf16.msra.mxu0 %v9520_v24 }
  0x80   : > { %9522 = vmatprep.subr.bf16.mxu1 %v10345_v4  ;;  %9528 = vmatprep.subr.bf16.mxu0 %v10345_v4 }
  0xea   : > { %v1860_v26 = vpop.permute.xlu0 %1859 }
  0xeb   : > { %v10675_v27 = vmul.f32 %v8245_v25, %v1860_v26 }
  0xed   : > { %v1872_v28 = vand.u32 2139095040, %v10675_v27  ;;  %v1869_v30 = vand.u32 2147483647, %v10675_v27  ;;  %vm1871_vm11 = vcmp.lt.s32.totalorder %v10675_v27, 0 }
  0xef   : > { %v1873_v29 = vshrl.u32 %v1872_v28, 23  ;;  %v1876_v33 = vand.u32 8388607, %v1869_v30  ;;  %vm1870_vm12 = vcmp.le.f32.partialorder %v1869_v30, 0.7853982 }
  0xf1   : > { %v8246_v31 = vadd.s32 4294967169, %v1873_v29  ;;  %v1877_v36 = vor.u32 8388608, %v1876_v33 }
  0xf3   : > { %v1879_v32 = vadd.s32 1, %v8246_v31  ;;  %v1917_v56 = vshll.u32 %v1877_v36, 8 }
  0xf5   : > { %vm1880_vm4 = vcmp.gt.s32.totalorder %v1879_v32, 0 }
  0xf6   : > { %v1881_v34 = vsel %vm1880_vm4, %v1879_v32, 0  ;;  %vm1961_vm4 = vweird.f32 %v10675_v27 }
  0xf7   : > { %v1883_v35 = vand.u32 31, %v1881_v34  ;;  %v1882_v37 = vshrl.u32 %v1881_v34, 5 }
  0xf9   : > { %v1884_v38 = vsub.s32 32, %v1883_v35  ;;  %v1886_v40 = vshll.u32 %v10348_v39, %v1883_v35  ;;  %v1889_v42 = vshll.u32 %v10349_v41, %v1883_v35  ;;  %v1892_v44 = vshll.u32 %v10350_v43, %v1883_v35 }
  0xfa   : > { %v1895_v46 = vshll.u32 %v10351_v45, %v1883_v35  ;;  %v1898_v48 = vshll.u32 %v10352_v47, %v1883_v35  ;;  %vm1901_vm5 = vcmp.lt.s32.totalorder %v1882_v37, 1  ;;  %vm1904_vm6 = vcmp.lt.s32.totalorder %v1882_v37, 4 }
  0xfb   : > { %v1885_v49 = vshrl.u32 %v10348_v39, %v1884_v38  ;;  %v1887_v50 = vshrl.u32 %v10349_v41, %v1884_v38  ;;  %v1890_v51 = vshrl.u32 %v10350_v43, %v1884_v38  ;;  %v1893_v52 = vshrl.u32 %v10351_v45, %v1884_v38 }
  0xfc   : > { %v1896_v53 = vshrl.u32 %v10352_v47, %v1884_v38  ;;  %v1899_v55 = vshrl.u32 %v10353_v54, %v1884_v38  ;;  %vm1902_vm7 = vcmp.lt.s32.totalorder %v1882_v37, 2  ;;  %vm1903_vm8 = vcmp.lt.s32.totalorder %v1882_v37, 3  ;;  %v1974_v54 = vld [vmem:[%s13011_s26 + $0x8] sm:$0xff] }
  0xfd   : > { %v1888_v57 = vor.u32 %v1887_v50, %v1886_v40  ;;  %v1891_v58 = vor.u32 %v1890_v51, %v1889_v42  ;;  %v1894_v59 = vor.u32 %v1893_v52, %v1892_v44  ;;  %v8236_v50 = vld [vmem:[%s13010_s10] ss:$0 sm:$0xff]  ;;  %s13015_s10 = sld [smem:[#allocation25_spill]] }
  0xfe   : > { %v1897_v60 = vor.u32 %v1896_v53, %v1895_v46  ;;  %v1900_v61 = vor.u32 %v1899_v55, %v1898_v48  ;;  %v1973_v53 = vld [vmem:[%s13011_s26] sm:$0xff] }
  0xff   : > { %v1905_v62 = vsel %vm1901_vm5, %v1885_v49, %v1888_v57  ;;  %v1906_v63 = vsel %vm1904_vm6, %v1894_v59, 2102212464  ;;  %v1909_v0 = vsel %vm1901_vm5, %v1888_v57, %v1891_v58  ;;  %v1913_v1 = vsel %vm1901_vm5, %v1891_v58, %v1894_v59  ;;  %v8240_v49 = vld [vmem:[%s13009_s1] ss:$0 sm:$0xff]  ;;  %s13014_s1 = sld [smem:[#allocation17_spill]] }
 0x100   : > { %v1907_v2 = vsel %vm1903_vm8, %v1891_v58, %v1906_v63  ;;  %v1910_v3 = vsel %vm1904_vm6, %v1897_v60, 920167782  ;;  %v1914_v5 = vsel %vm1904_vm6, %v1900_v61, 1326507024  ;;  %v9523_v61 = vpack.c.bf16 %v1974_v54, %v1973_v53 }
 0x101   : > { %v1911_v6 = vsel %vm1903_vm8, %v1894_v59, %v1910_v3  ;;  %v1915_v8 = vsel %vm1903_vm8, %v1897_v60, %v1914_v5  ;;  %v1908_v9 = vsel %vm1902_vm7, %v1905_v62, %v1907_v2  ;;  %v1975_v3 = vld [vmem:[%s13011_s26 + $0x10] sm:$0xff]  ;;  %v1976_v5 = vld [vmem:[%s13011_s26 + $0x18] sm:$0xff]  ;;  %vm2156_vm5 = vcmask 523264  }
 0x102   : > { %v1912_v10 = vsel %vm1902_vm7, %v1909_v0, %v1911_v6  ;;  %v1916_v11 = vsel %vm1902_vm7, %v1913_v1, %v1915_v8  ;;  %v1924_v16 = vmul.u32 %v1917_v56, %v1908_v9  ;;  %v9526_v9 = vpack.c.bf16 %v1976_v5, %v1975_v3 }
 0x103   : > { %v10681_v12 = vmul.u32.u64.low %v1917_v56, %v1916_v11  ;;  %v10682_v13 = vmul.u32.u64.high %v1917_v56, %v1916_v11, %v10681_v12  ;;  %v10684_v14 = vmul.u32.u64.low %v1917_v56, %v1912_v10  ;;  %v10685_v15 = vmul.u32.u64.high %v1917_v56, %v1912_v10, %v10684_v14 }
 0x105   : > { %vm1926_vm9 = vc.u32 %v10682_v13, %v10684_v14  ;;  %v1927_v17 = vadd.s32 1, %v10685_v15  ;;  %v1925_v31 = vadd.s32 %v10684_v14, %v10682_v13  ;;  %v2066_v14 = vld [vmem:[%s13012_s3] sm:$0xff] }
 0x107   : > { %v1928_v18 = vsel %vm1926_vm9, %v1927_v17, %v10685_v15  ;;  %v2067_v15 = vld [vmem:[%s13012_s3 + $0x8] sm:$0xff]  ;;  %v2068_v17 = vld [vmem:[%s13012_s3 + $0x10] sm:$0xff] }
 0x108   : > { %v1929_v19 = vadd.s32 %v1928_v18, %v1924_v16  ;;  %v9529_v16 = vpack.c.bf16 %v2067_v15, %v2066_v14  ;;  %v2069_v18 = vld [vmem:[%s13012_s3 + $0x18] sm:$0xff]  ;;  %s13019_s3 = sld [smem:[#allocation27_spill]] }
 0x10a   : > { %v1930_v20 = vadd.s32 536870912, %v1929_v19 }
 0x10c   : > { %v1931_v21 = vshrl.u32 %v1930_v20, 30  ;;  %v2159_v20 = vld [vmem:[%s13013_s27 + $0x8] sm:$0xff] }
 0x10e   : > { %v1932_v22 = vshll.u32 %v1931_v21, 30  ;;  %v1955_v46 = vsub.s32 4, %v1931_v21  ;;  %v8254_v54 = vld [vmem:[%s13019_s3] ss:$0 sm:$0xff] }
 0x110   : > { %v1933_v23 = vsub.s32 %v1929_v19, %v1932_v22  ;;  %v1956_v47 = vsel %vm1871_vm11, %v1955_v46, %v1931_v21  ;;  %v9532_v19 = vpack.c.bf16 %v2069_v18, %v2068_v17  ;;  %v2160_v22 = vld [vmem:[%s13013_s27 + $0x10] sm:$0xff] }
 0x111   : > { %v1958_v48 = vsel %vm1870_vm12, 0, %v1956_v47  ;;  %v8255_v47 = vld [vmem:[%s13018_s12] ss:$0 sm:$0xff] }
 0x112   : > { %v1935_v24 = vsub.s32 0, %v1933_v23  ;;  %v1962_v51 = vadd.s32 3, %v1958_v48 }
 0x114   : > { %v8247_v25 = vmin.u32 %v1935_v24, %v1933_v23  ;;  %v1963_v63 = vand.u32 3, %v1962_v51 }
 0x116   : > { %v1937_v26 = vclz %v8247_v25  ;;  %vm1965_vm0 = vcmp.eq.s32.totalorder %v1963_v63, 0  ;;  %vm1968_vm2 = vcmp.eq.s32.totalorder %v1963_v63, 2  ;;  %vm1964_vm3 = vcmp.lt.s32.totalorder %v1963_v63, 2  ;;  %v8243_v25 = vld [vmem:[%s13014_s1] ss:$0 sm:$0xff]  ;;  %s13020_s1 = sld [smem:[#allocation22_spill]] }
 0x118   : > { %v8248_v28 = vadd.s32 4294967294, %v1937_v26 }
 0x11a   : > { %vm8249_vm10 = vcmp.lt.s32.totalorder %v8248_v28, 0 }
 0x11b   : > { %v1940_v29 = vsel %vm8249_vm10, 0, %v8248_v28 }
 0x11c   : > { %v1941_v32 = vsub.s32 32, %v1940_v29  ;;  %v1945_v33 = vsub.s32 4294967266, %v1940_v29  ;;  %v1942_v36 = vshll.u32 %v1933_v23, %v1940_v29  ;;  %v2161_v23 = vld [vmem:[%s13013_s27 + $0x18] sm:$0xff] }
 0x11d   : > { %v9538_v24 = vpack.c.bf16 %v2161_v23, %v2160_v22 }
 0x11e   : > { %v1943_v34 = vshrl.u32 %v1925_v31, %v1941_v32  ;;  %v1946_v35 = vadd.s32 127, %v1945_v33  ;;  %v2249_v33 = vld [vmem:[%s13015_s10] sm:$0xff] }
 0x120   : > { %v1947_v37 = vshll.u32 %v1946_v35, 23  ;;  %v1944_v38 = vor.u32 %v1943_v34, %v1942_v36  ;;  %v2250_v34 = vld [vmem:[%s13015_s10 + $0x8] sm:$0xff]  ;;  %v8250_v35 = vld [vmem:[%s13016_s4] ss:$0 sm:$0xff]  ;;  %s13021_s4 = sld [smem:[#allocation26_spill]] }
 0x122   : > { %v1948_v39 = vor.u32 4788187, %v1947_v37  ;;  %v1951_v41 = vcvt.s32.f32 %v1944_v38  ;;  %v9541_v37 = vpack.c.bf16 %v2250_v34, %v2249_v33 }
 0x124   : > { %v1949_v40 = vand.u32 2147483647, %v1948_v39 }
 0x126   : > { %v1952_v42 = vmul.f32 %v1951_v41, %v1949_v40  ;;  %v2251_v40 = vld [vmem:[%s13015_s10 + $0x10] sm:$0xff]  ;;  %v2252_v41 = vld [vmem:[%s13015_s10 + $0x18] sm:$0xff] }
 0x128   : > { %v1953_v43 = vxor.u32 2147483648, %v1952_v42 }
 0x12a   : > { %v1954_v44 = vsel %vm1871_vm11, %v1953_v43, %v1952_v42  ;;  %v8238_v42 = vld [vmem:[%s13017_s18] ss:$0 sm:$0xff]  ;;  %v9544_v43 = vpack.c.bf16 %v2252_v41, %v2251_v40 }
 0x12b   : > { %v1957_v45 = vsel %vm1870_vm12, %v10675_v27, %v1954_v44  ;;  %v2158_v27 = vld [vmem:[%s13013_s27] sm:$0xff] }
 0x12c   : > { %10090 = vcosq.f32 %v1957_v45  ;;  %v9535_v21 = vpack.c.bf16 %v2159_v20, %v2158_v27 }
 0x12d   : > { %10092 = vsinq.f32 %v1957_v45  ;;  %v2063_v45 = vpop.permute.xlu0 %2062 }
 0x136   : > { %v10091_v52 = vpop.eup %10090 }
 0x137   : > { %v10093_v56 = vpop.eup %10092  ;;  %v1969_v2 = vxor.u32 2147483648, %v10091_v52 }
 0x138   : > { %v1966_v1 = vxor.u32 2147483648, %v10093_v56 }
 0x139   : > { %v1970_v11 = vsel %vm1968_vm2, %v1969_v2, %v10093_v56 }
 0x13a   : > { %v1967_v10 = vsel %vm1965_vm0, %v10091_v52, %v1966_v1 }
 0x13b   : > { %v1971_v12 = vsel %vm1964_vm3, %v1967_v10, %v1970_v11 }
 0x13c   : > { %v1972_v13 = vsel %vm1961_vm4, nan, %v1971_v12 }
 0x149   : > { %v1764_v55 = vpop.f32.mrb[0].mxu0 }
 0x14a   : > { %v1765_v58 = vadd.f32 %v8240_v49, %v1764_v55  ;;  %v9394_v30 = vpop.f32.mrb[1].mxu0  ;;  %v8257_v49 = vld [vmem:[%s13019_s3 + $0x1] ss:$0 sm:$0xff] }
 0x14b   : > { %v8260_v30 = vld [vmem:[%s13019_s3 + $0x2] ss:$0 sm:$0xff] }
 0x14c   : > { %v1589_v57 = vpop.f32.mrb[0].mxu1  ;;  %vm1768_vm14 = vcmp.ge.f32.partialorder %v1765_v58, 0.0  ;;  %v1769_v62 = vmul.f32 0.01, %v1765_v58 }
 0x14d   : > { %v1590_v59 = vadd.f32 %v8236_v50, %v1589_v57  ;;  %v9378_v60 = vpop.f32.mrb[1].mxu1  ;;  %v8258_v57 = vld [vmem:[%s13021_s4] ss:$0 sm:$0xff] }
 0x14e   : > { %v1770_v6 = vsel %vm1768_vm14, %v1765_v58, %v1769_v62 }
 0x14f   : > { %vm1593_vm15 = vcmp.ge.f32.partialorder %v1590_v59, 0.0  ;;  %v1594_v0 = vmul.f32 0.01, %v1590_v59  ;;  %9404 = vmatmul.mubr.msk.f32.vlgmr.msra.gmra.mrb[2].mxu0 %vm1607_vm13, %v1770_v6 }
 0x150   : > { %9425 = vmatprep.mubr.msk.f32.mxu0 %vm10346_vm1, %v10347_v7  ;;  %9530 = vmatpush3.bf16.msra.mxu0 %v9529_v16 }
 0x151   : > { %v1595_v8 = vsel %vm1593_vm15, %v1590_v59, %v1594_v0  ;;  %9531 = vmatprep.subr.bf16.mxu0 %v10345_v4 }
 0x152   : > { %9388 = vmatmul.mubr.msk.f32.vlgmr.msra.gmra.mrb[2].mxu1 %vm1607_vm13, %v1595_v8 }
 0x153   : > { %9524 = vmatpush3.bf16.msra.mxu1 %v9523_v61  ;;  %9414 = vmatprep.mubr.msk.f32.mxu1 %vm10346_vm1, %v10347_v7 }
 0x154   : > { %9525 = vmatprep.subr.bf16.mxu1 %v10345_v4  ;;  %9533 = vmatpush3.bf16.msra.mxu0 %v9532_v19 }
 0x155   : > { %9540 = vmatprep.subr.bf16.mxu0 %v10345_v4 }
 0x157   : > { %9527 = vmatpush3.bf16.msra.mxu1 %v9526_v9 }
 0x158   : > { %9534 = vmatprep.subr.bf16.mxu1 %v10345_v4 }
 0x15a   : > { %9415 = vmatmul.mubr.msk.f32.vlgmr.msra.gmra.mrb[4].mxu1 %vm1607_vm13, %v1972_v13 }
 0x15b   : > { %9436 = vmatprep.mubr.msk.f32.mxu1 %vm10346_vm1, %v10347_v7  ;;  %9536 = vmatpush3.bf16.msra.mxu1 %v9535_v21 }
 0x15c   : > { %9537 = vmatprep.subr.bf16.mxu1 %v10345_v4 }
 0x15f   : > { %9539 = vmatpush3.bf16.msra.mxu1 %v9538_v24 }
 0x222   : > { %v1851_v26 = vpop.f32.mrb[2].mxu0 }
 0x223   : > { %v1852_v29 = vadd.f32 %v8243_v25, %v1851_v26  ;;  %v9405_v31 = vpop.f32.mrb[3].mxu0 }
 0x225   : > { %v1677_v28 = vpop.f32.mrb[2].mxu1  ;;  %9437 = vmatmul.mubr.msk.f32.vlgmr.msra.gmra.mrb[6].mxu1 %vm1607_vm13, %v1852_v29 }
 0x226   : > { %v9389_v32 = vpop.f32.mrb[3].mxu1  ;;  %v1678_v44 = vadd.f32 %v8238_v42, %v1677_v28 }
 0x228   : > { %v2065_v46 = vmul.f32 %v2063_v45, %v1678_v44 }
 0x22d   : > { %v2053_v36 = vpop.f32.mrb[4].mxu1 }
 0x22e   : > { %v2054_v38 = vadd.f32 %v8250_v35, %v2053_v36  ;;  %v9416_v39 = vpop.f32.mrb[5].mxu1 }
 0x230   : > { %9426 = vmatmul.mubr.msk.f32.vlgmr.msra.gmra.mrb[4].mxu0 %vm1607_vm13, %v2054_v38 }
 0x231   : > { %9542 = vmatpush3.bf16.msra.mxu0 %v9541_v37  ;;  %9447 = vmatprep.mubr.msk.f32.mxu0 %vm10346_vm1, %v10347_v7  ;;  %v8252_v7 = vld [vmem:[%s13020_s1] ss:$0 sm:$0xff] }
 0x232   : > { %9543 = vmatprep.subr.bf16.mxu0 %v10345_v4 }
 0x235   : > { %9545 = vmatpush3.bf16.msra.mxu0 %v9544_v43 }
 0x238   : > { %9448 = vmatmul.mubr.msk.f32.vlgmr.msra.gmra.mrb[6].mxu0 %vm1607_vm13, %v2065_v46 }
 0x2f8   : > { %v2238_v48 = vpop.f32.mrb[6].mxu1 }
 0x2f9   : > { %v2239_v50 = vadd.f32 %v8255_v47, %v2238_v48  ;;  %v9438_v51 = vpop.f32.mrb[7].mxu1 }
 0x2fb   : > { %v2247_v52 = vadd.f32 %v8257_v49, %v2239_v50 }
 0x2fd   : > { %2248 = vst.msk [vmem:[#allocation2 + $0x8] sm:$0xff] %vm2156_vm5, %v2247_v52 }
 0x303   : > { %v2146_v53 = vpop.f32.mrb[4].mxu0 }
 0x304   : > { %v2147_v55 = vadd.f32 %v8252_v7, %v2146_v53  ;;  %v9427_v4 = vpop.f32.mrb[5].mxu0 }
 0x306   : > { %v2155_v56 = vadd.f32 %v8254_v54, %v2147_v55 }
 0x308   : > { %2157 = vst.msk [vmem:[#allocation2] sm:$0xff] %vm2156_vm5, %v2155_v56 }
 0x30b   : > { %v2329_v58 = vpop.f32.mrb[6].mxu0 }
 0x30c   : > { %v2330_v59 = vadd.f32 %v8258_v57, %v2329_v58  ;;  %v9449_v60 = vpop.f32.mrb[7].mxu0 }
 0x30e   : > { %v2338_v61 = vadd.f32 %v8260_v30, %v2330_v59 }
 0x310   : > { %2339 = vst.msk [vmem:[#allocation2 + $0x10] sm:$0xff] %vm2156_vm5, %v2338_v61 }
 0x311 PF: > { %v2345_v62 = vld [vmem:[%s10598_s23] sm:$0xff]  ;;  %v2346_v0 = vld [vmem:[%s10598_s23 + $0x8] sm:$0xff]  ;;  %v12749_v8 = vmov 0   ;;  %v2347_v32 = vld [vmem:[%s10598_s23 + $0x10] sm:$0xff]  ;;  %vm2579_vm1 = vcmask 523264   ;;  %s13022_s12 = sld [smem:[#allocation40_spill]] }
 0x312   : > { %v2349_v63 = vld [vmem:[%s10598_s23 + $0x20] sm:$0xff]  ;;  %v2350_v2 = vld [vmem:[%s10598_s23 + $0x28] sm:$0xff]  ;;  %2618 = vmatprep.mubr.bf16.mxu0 %v12749_v8  ;;  %2669 = vmatprep.mubr.bf16.mxu1 %v12749_v8  ;;  %v2351_v33 = vld [vmem:[%s10598_s23 + $0x30] sm:$0xff]  ;;  %s13064_s1 = sld [smem:[#allocation33_spill]]  ;;  %vm4300_vm6 = vcmask 130048   ;;  %p8513_p5 = scmp.ne.s32.totalorder %s10585_s16, 3 }
 0x313   : > { %v8262_v1 = vcombine.high %v2345_v62, %v2349_v63  ;;  %v8261_v3 = vcombine.low %v2345_v62, %v2349_v63  ;;  %v2353_v5 = vld [vmem:[%s10598_s23 + $0x40] sm:$0xff]  ;;  %v8264_v9 = vcombine.high %v2346_v0, %v2350_v2  ;;  %v8263_v10 = vcombine.low %v2346_v0, %v2350_v2  ;;  %v2354_v12 = vld [vmem:[%s10598_s23 + $0x48] sm:$0xff]  ;;  %v2348_v34 = vld [vmem:[%s10598_s23 + $0x18] sm:$0xff]  ;;  %s13491_s16 = sld [smem:[#allocation37_spill]] (!%p8513_p5) }
 0x314   : > { %v2357_v6 = vld [vmem:[%s10598_s23 + $0x60] sm:$0xff]  ;;  %v2358_v13 = vld [vmem:[%s10598_s23 + $0x68] sm:$0xff]  ;;  %v2352_v35 = vld [vmem:[%s10598_s23 + $0x38] sm:$0xff]  ;;  %v8266_v40 = vcombine.high %v2347_v32, %v2351_v33  ;;  %v8265_v47 = vcombine.low %v2347_v32, %v2351_v33  ;;  %vm10357_vm7 = vmmov (!%p8513_p5), 0   ;;  %vm7981_vm8 = vcmask (!%p8513_p5), 31744  }
 0x315   : > { %v8270_v11 = vcombine.high %v2353_v5, %v2357_v6  ;;  %v2361_v14 = vld [vmem:[%s10598_s23 + $0x80] sm:$0xff]  ;;  %2586 = vmatprep.subr.bf16.mxu0 %v8262_v1  ;;  %v8272_v15 = vcombine.high %v2354_v12, %v2358_v13  ;;  %v2362_v17 = vld [vmem:[%s10598_s23 + $0x88] sm:$0xff]  ;;  %2637 = vmatprep.subr.bf16.mxu1 %v8264_v9  ;;  %v8269_v19 = vcombine.low %v2353_v5, %v2357_v6  ;;  %v2355_v42 = vld [vmem:[%s10598_s23 + $0x50] sm:$0xff] }
 0x316   : > { %v2365_v16 = vld [vmem:[%s10598_s23 + $0xa0] sm:$0xff]  ;;  %v2366_v18 = vld [vmem:[%s10598_s23 + $0xa8] sm:$0xff]  ;;  %2587 = vmatpush1.bf16.msra.mxu0 %v8261_v3  ;;  %2638 = vmatpush1.bf16.msra.mxu1 %v8263_v10  ;;  %v8271_v27 = vcombine.low %v2354_v12, %v2358_v13  ;;  %v8268_v41 = vcombine.high %v2348_v34, %v2352_v35  ;;  %v2359_v43 = vld [vmem:[%s10598_s23 + $0x70] sm:$0xff]  ;;  %v8267_v48 = vcombine.low %v2348_v34, %v2352_v35 }
 0x317   : > { %2588 = vmatprep.subr.bf16.mxu0 %v8270_v11  ;;  %v8278_v20 = vcombine.high %v2361_v14, %v2365_v16  ;;  %2639 = vmatprep.subr.bf16.mxu1 %v8272_v15  ;;  %v8280_v21 = vcombine.high %v2362_v17, %v2366_v18  ;;  %v2369_v22 = vld [vmem:[%s10598_s23 + $0xc0] sm:$0xff]  ;;  %v2370_v24 = vld [vmem:[%s10598_s23 + $0xc8] sm:$0xff]  ;;  %v8277_v26 = vcombine.low %v2361_v14, %v2365_v16  ;;  %v2356_v45 = vld [vmem:[%s10598_s23 + $0x58] sm:$0xff] }
 0x318   : > { %v2373_v23 = vld [vmem:[%s10598_s23 + $0xe0] sm:$0xff]  ;;  %v2374_v25 = vld [vmem:[%s10598_s23 + $0xe8] sm:$0xff]  ;;  %v8279_v28 = vcombine.low %v2362_v17, %v2366_v18  ;;  %v2360_v46 = vld [vmem:[%s10598_s23 + $0x78] sm:$0xff]  ;;  %v8274_v49 = vcombine.high %v2355_v42, %v2359_v43  ;;  %v8273_v54 = vcombine.low %v2355_v42, %v2359_v43  ;;  %s13069_s4 = scalar_lea.vmem %s13064_s1, %s10595_s22 }
 0x319   : > { %v8286_v29 = vcombine.high %v2369_v22, %v2373_v23  ;;  %v8288_v31 = vcombine.high %v2370_v24, %v2374_v25  ;;  %v8285_v36 = vcombine.low %v2369_v22, %v2373_v23  ;;  %v2340_v37 = vld [vmem:[#allocation2] sm:$0xff]  ;;  %v2341_v38 = vld [vmem:[#allocation2 + $0x8] sm:$0xff]  ;;  %v8287_v39 = vcombine.low %v2370_v24, %v2374_v25  ;;  %v2363_v51 = vld [vmem:[%s10598_s23 + $0x90] sm:$0xff] }
 0x31a   : > { %2589 = vmatpush1.bf16.msra.mxu0 %v8269_v19  ;;  %2640 = vmatpush1.bf16.msra.mxu1 %v8271_v27  ;;  %v10767_v44 = vpack.c.bf16 %v2341_v38, %v2340_v37  ;;  %v8276_v50 = vcombine.high %v2356_v45, %v2360_v46  ;;  %v2367_v52 = vld [vmem:[%s10598_s23 + $0xb0] sm:$0xff]  ;;  %v2364_v7 = vld [vmem:[%s10598_s23 + $0x98] sm:$0xff]  ;;  %v8275_v4 = vcombine.low %v2356_v45, %v2360_v46  ;;  %v2838_v2 = vld [vmem:[%s13022_s12] sm:$0xff] }
 0x31b   : > { %2590 = vmatprep.subr.bf16.mxu0 %v8278_v20  ;;  %2641 = vmatprep.subr.bf16.mxu1 %v8280_v21  ;;  %v2368_v53 = vld [vmem:[%s10598_s23 + $0xb8] sm:$0xff]  ;;  %v2342_v55 = vld [vmem:[#allocation2 + $0x10] sm:$0xff]  ;;  %v8282_v56 = vcombine.high %v2363_v51, %v2367_v52  ;;  %v8281_v62 = vcombine.low %v2363_v51, %v2367_v52  ;;  %v2842_v3 = vld [vmem:[%s13022_s12 + $0x20] sm:$0xff] }
 0x31c   : > { %v8284_v57 = vcombine.high %v2364_v7, %v2368_v53  ;;  %v2371_v58 = vld [vmem:[%s10598_s23 + $0xd0] sm:$0xff]  ;;  %v10783_v59 = vpack.c.bf16 %v2342_v55, %v2342_v55  ;;  %v2372_v60 = vld [vmem:[%s10598_s23 + $0xd8] sm:$0xff]  ;;  %v8283_v63 = vcombine.low %v2364_v7, %v2368_v53  ;;  %v2839_v5 = vld [vmem:[%s13022_s12 + $0x8] sm:$0xff]  ;;  %v8302_v11 = vcombine.high %v2838_v2, %v2842_v3 }
 0x31d   : > { %v2375_v30 = vld [vmem:[%s10598_s23 + $0xf0] sm:$0xff]  ;;  %v2376_v61 = vld [vmem:[%s10598_s23 + $0xf8] sm:$0xff]  ;;  %v2843_v6 = vld [vmem:[%s13022_s12 + $0x28] sm:$0xff]  ;;  %v8301_v17 = vcombine.low %v2838_v2, %v2842_v3  ;;  %s13023_s23 = sld [smem:[#allocation28_spill]] }
 0x31e   : > { %2591 = vmatpush1.bf16.msra.mxu0 %v8277_v26  ;;  %2642 = vmatpush1.bf16.msra.mxu1 %v8279_v28  ;;  %v8290_v0 = vcombine.high %v2371_v58, %v2375_v30  ;;  %v8292_v1 = vcombine.high %v2372_v60, %v2376_v61  ;;  %v8289_v9 = vcombine.low %v2371_v58, %v2375_v30  ;;  %v2846_v13 = vld [vmem:[%s13022_s12 + $0x40] sm:$0xff]  ;;  %v2847_v15 = vld [vmem:[%s13022_s12 + $0x48] sm:$0xff]  ;;  %v2840_v35 = vld [vmem:[%s13022_s12 + $0x10] sm:$0xff] }
 0x31f   : > { %2592 = vmatprep.subr.bf16.mxu0 %v8286_v29  ;;  %2643 = vmatprep.subr.bf16.mxu1 %v8288_v31  ;;  %v8291_v10 = vcombine.low %v2372_v60, %v2376_v61  ;;  %v8304_v12 = vcombine.high %v2839_v5, %v2843_v6  ;;  %v2850_v14 = vld [vmem:[%s13022_s12 + $0x60] sm:$0xff]  ;;  %v2851_v16 = vld [vmem:[%s13022_s12 + $0x68] sm:$0xff]  ;;  %v8303_v27 = vcombine.low %v2839_v5, %v2843_v6  ;;  %v2848_v43 = vld [vmem:[%s13022_s12 + $0x50] sm:$0xff] }
 0x320   : > { %v2854_v18 = vld [vmem:[%s13022_s12 + $0x80] sm:$0xff]  ;;  %v8310_v20 = vcombine.high %v2846_v13, %v2850_v14  ;;  %v2855_v21 = vld [vmem:[%s13022_s12 + $0x88] sm:$0xff]  ;;  %v8312_v23 = vcombine.high %v2847_v15, %v2851_v16  ;;  %v8309_v24 = vcombine.low %v2846_v13, %v2850_v14  ;;  %v8311_v28 = vcombine.low %v2847_v15, %v2851_v16  ;;  %v2852_v45 = vld [vmem:[%s13022_s12 + $0x70] sm:$0xff] }
 0x321   : > { %v2858_v19 = vld [vmem:[%s13022_s12 + $0xa0] sm:$0xff]  ;;  %v2859_v22 = vld [vmem:[%s13022_s12 + $0xa8] sm:$0xff]  ;;  %v2856_v52 = vld [vmem:[%s13022_s12 + $0x90] sm:$0xff] }
 0x322   : > { %2593 = vmatpush1.bf16.msra.mxu0 %v8285_v36  ;;  %2644 = vmatpush1.bf16.msra.mxu1 %v8287_v39  ;;  %v2862_v25 = vld [vmem:[%s13022_s12 + $0xc0] sm:$0xff]  ;;  %v8318_v29 = vcombine.high %v2854_v18, %v2858_v19  ;;  %v2863_v31 = vld [vmem:[%s13022_s12 + $0xc8] sm:$0xff]  ;;  %v8320_v33 = vcombine.high %v2855_v21, %v2859_v22  ;;  %v8317_v34 = vcombine.low %v2854_v18, %v2858_v19  ;;  %v2844_v36 = vld [vmem:[%s13022_s12 + $0x30] sm:$0xff] }
 0x323   : > { %2688 = vmatprep.subr.bf16.mxu0 %v8266_v40  ;;  %2739 = vmatprep.subr.bf16.mxu1 %v8268_v41  ;;  %v2866_v26 = vld [vmem:[%s13022_s12 + $0xe0] sm:$0xff]  ;;  %v2867_v32 = vld [vmem:[%s13022_s12 + $0xe8] sm:$0xff]  ;;  %v8319_v37 = vcombine.low %v2855_v21, %v2859_v22  ;;  %v2841_v39 = vld [vmem:[%s13022_s12 + $0x18] sm:$0xff]  ;;  %v8305_v51 = vcombine.low %v2840_v35, %v2844_v36 }
 0x324   : > { %v8326_v38 = vcombine.high %v2862_v25, %v2866_v26  ;;  %v2845_v40 = vld [vmem:[%s13022_s12 + $0x38] sm:$0xff]  ;;  %v8328_v41 = vcombine.high %v2863_v31, %v2867_v32  ;;  %v8325_v42 = vcombine.low %v2862_v25, %v2866_v26  ;;  %v8327_v46 = vcombine.low %v2863_v31, %v2867_v32  ;;  %v2860_v7 = vld [vmem:[%s13022_s12 + $0xb0] sm:$0xff]  ;;  %v3300_v2 = vld [vmem:[%s10608_s7] sm:$0xff] }
 0x325   : > { %8293 = vmatmul.mubr.msk.bf16.vlgmr.msra.gmra.mrb[0].mxu0 %vm2579_vm1, %v10767_v44  ;;  %8295 = vmatmul.mubr.msk.bf16.vlgmr.msra.gmra.mrb[0].mxu1 %vm2579_vm1, %v10767_v44  ;;  %v8307_v53 = vcombine.low %v2841_v39, %v2845_v40  ;;  %v2857_v55 = vld [vmem:[%s13022_s12 + $0x98] sm:$0xff]  ;;  %v2864_v58 = vld [vmem:[%s13022_s12 + $0xd0] sm:$0xff]  ;;  %v8322_v61 = vcombine.high %v2856_v52, %v2860_v7  ;;  %v3304_v3 = vld [vmem:[%s10608_s7 + $0x20] sm:$0xff] }
 0x326   : > { %2689 = vmatpush1.bf16.msra.mxu0 %v8265_v47  ;;  %2740 = vmatpush1.bf16.msra.mxu1 %v8267_v48  ;;  %v8306_v47 = vcombine.high %v2840_v35, %v2844_v36  ;;  %v2849_v48 = vld [vmem:[%s13022_s12 + $0x58] sm:$0xff]  ;;  %v2868_v30 = vld [vmem:[%s13022_s12 + $0xf0] sm:$0xff]  ;;  %v8342_v14 = vcombine.high %v3300_v2, %v3304_v3  ;;  %v3308_v15 = vld [vmem:[%s10608_s7 + $0x40] sm:$0xff] }
 0x327   : > { %2690 = vmatprep.subr.bf16.mxu0 %v8274_v49  ;;  %2741 = vmatprep.subr.bf16.mxu1 %v8276_v50  ;;  %v2853_v49 = vld [vmem:[%s13022_s12 + $0x78] sm:$0xff]  ;;  %v8308_v50 = vcombine.high %v2841_v39, %v2845_v40  ;;  %v8330_v6 = vcombine.high %v2864_v58, %v2868_v30  ;;  %v3312_v16 = vld [vmem:[%s10608_s7 + $0x60] sm:$0xff]  ;;  %v3309_v18 = vld [vmem:[%s10608_s7 + $0x48] sm:$0xff] }
 0x328   : > { %2628 = vmatprep.mubr.bf16.mxu0 %v12749_v8  ;;  %2679 = vmatprep.mubr.bf16.mxu1 %v12749_v8  ;;  %v8315_v60 = vcombine.low %v2849_v48, %v2853_v49  ;;  %v3313_v19 = vld [vmem:[%s10608_s7 + $0x68] sm:$0xff]  ;;  %v3320_v21 = vld [vmem:[%s10608_s7 + $0xa0] sm:$0xff]  ;;  %v3306_v39 = vld [vmem:[%s10608_s7 + $0x30] sm:$0xff] }
 0x329   : > { %v3321_v25 = vld [vmem:[%s10608_s7 + $0xa8] sm:$0xff]  ;;  %v8352_v26 = vcombine.high %v3309_v18, %v3313_v19  ;;  %v3328_v31 = vld [vmem:[%s10608_s7 + $0xe0] sm:$0xff]  ;;  %v8351_v32 = vcombine.low %v3309_v18, %v3313_v19 }
 0x32a   : > { %2691 = vmatpush1.bf16.msra.mxu0 %v8273_v54  ;;  %2742 = vmatpush1.bf16.msra.mxu1 %v8275_v4  ;;  %v8314_v54 = vcombine.high %v2848_v43, %v2852_v45  ;;  %v2861_v4 = vld [vmem:[%s13022_s12 + $0xb8] sm:$0xff]  ;;  %v3329_v35 = vld [vmem:[%s10608_s7 + $0xe8] sm:$0xff]  ;;  %v3762_v18 = vld [vmem:[%s13023_s23] sm:$0xff] }
 0x32b   : > { %2692 = vmatprep.subr.bf16.mxu0 %v8282_v56  ;;  %2743 = vmatprep.subr.bf16.mxu1 %v8284_v57  ;;  %v8316_v56 = vcombine.high %v2849_v48, %v2853_v49  ;;  %v8313_v57 = vcombine.low %v2848_v43, %v2852_v45  ;;  %v8323_v5 = vcombine.low %v2857_v55, %v2861_v4  ;;  %v3307_v43 = vld [vmem:[%s10608_s7 + $0x38] sm:$0xff]  ;;  %v3314_v48 = vld [vmem:[%s10608_s7 + $0x70] sm:$0xff]  ;;  %v3763_v19 = vld [vmem:[%s13023_s23 + $0x8] sm:$0xff] }
 0x32d   : > { %8294 = vmatmul.mubr.msk.bf16.gmra.mrb[4].mxu0 %vm2579_vm1, %v10783_v59  ;;  %8296 = vmatmul.mubr.msk.bf16.gmra.mrb[4].mxu1 %vm2579_vm1, %v10783_v59 }
 0x32e   : > { %2693 = vmatpush1.bf16.msra.mxu0 %v8281_v62  ;;  %2744 = vmatpush1.bf16.msra.mxu1 %v8283_v63  ;;  %v2865_v62 = vld [vmem:[%s13022_s12 + $0xd8] sm:$0xff] }
 0x32f   : > { %2694 = vmatprep.subr.bf16.mxu0 %v8290_v0  ;;  %2745 = vmatprep.subr.bf16.mxu1 %v8292_v1  ;;  %v2869_v63 = vld [vmem:[%s13022_s12 + $0xf8] sm:$0xff]  ;;  %v8324_v0 = vcombine.high %v2857_v55, %v2861_v4  ;;  %v8321_v1 = vcombine.low %v2856_v52, %v2860_v7  ;;  %v3322_v55 = vld [vmem:[%s10608_s7 + $0xb0] sm:$0xff]  ;;  %s13178_s12 = sld [smem:[#allocation29_spill]] }
 0x330   : > { %2720 = vmatprep.mubr.bf16.mxu0 %v12749_v8  ;;  %2771 = vmatprep.mubr.bf16.mxu1 %v12749_v8  ;;  %v8331_v13 = vcombine.low %v2865_v62, %v2869_v63  ;;  %v3315_v52 = vld [vmem:[%s10608_s7 + $0x78] sm:$0xff] }
 0x332   : > { %2695 = vmatpush1.bf16.msra.mxu0 %v8289_v9  ;;  %2746 = vmatpush1.bf16.msra.mxu1 %v8291_v10  ;;  %v3301_v9 = vld [vmem:[%s10608_s7 + $0x8] sm:$0xff] }
 0x333   : > { %3072 = vmatprep.subr.bf16.mxu0 %v8302_v11  ;;  %3123 = vmatprep.subr.bf16.mxu1 %v8304_v12  ;;  %v3305_v10 = vld [vmem:[%s10608_s7 + $0x28] sm:$0xff]  ;;  %v8332_v11 = vcombine.high %v2865_v62, %v2869_v63  ;;  %v8329_v12 = vcombine.low %v2864_v58, %v2868_v30  ;;  %v3323_v58 = vld [vmem:[%s10608_s7 + $0xb8] sm:$0xff] }
 0x334   : > { %v8343_v22 = vcombine.low %v3301_v9, %v3305_v10 }
 0x335   : > { %8297 = vmatmul.mubr.msk.bf16.vlgmr.msra.gmra.mrb[8].mxu0 %vm2579_vm1, %v10767_v44  ;;  %8299 = vmatmul.mubr.msk.bf16.vlgmr.msra.gmra.mrb[8].mxu1 %vm2579_vm1, %v10767_v44 }
 0x336   : > { %3073 = vmatpush1.bf16.msra.mxu0 %v8301_v17  ;;  %3124 = vmatpush1.bf16.msra.mxu1 %v8303_v27  ;;  %v8344_v17 = vcombine.high %v3301_v9, %v3305_v10  ;;  %v8341_v27 = vcombine.low %v3300_v2, %v3304_v3  ;;  %v3326_v2 = vld [vmem:[%s10608_s7 + $0xd0] sm:$0xff]  ;;  %v3327_v9 = vld [vmem:[%s10608_s7 + $0xd8] sm:$0xff] }
 0x337   : > { %3074 = vmatprep.subr.bf16.mxu0 %v8310_v20  ;;  %3125 = vmatprep.subr.bf16.mxu1 %v8312_v23  ;;  %v3316_v20 = vld [vmem:[%s10608_s7 + $0x80] sm:$0xff]  ;;  %v8350_v23 = vcombine.high %v3308_v15, %v3312_v16  ;;  %v3330_v3 = vld [vmem:[%s10608_s7 + $0xf0] sm:$0xff]  ;;  %v3331_v10 = vld [vmem:[%s10608_s7 + $0xf8] sm:$0xff] }
 0x338   : > { %2730 = vmatprep.mubr.bf16.mxu0 %v12749_v8  ;;  %2781 = vmatprep.mubr.bf16.mxu1 %v12749_v8 }
 0x33a   : > { %3075 = vmatpush1.bf16.msra.mxu0 %v8309_v24  ;;  %3126 = vmatpush1.bf16.msra.mxu1 %v8311_v28  ;;  %v3317_v24 = vld [vmem:[%s10608_s7 + $0x88] sm:$0xff]  ;;  %v8349_v28 = vcombine.low %v3308_v15, %v3312_v16  ;;  %v3810_v15 = vld [vmem:[%s13023_s23 + $0x180] sm:$0xff] }
 0x33b   : > { %3076 = vmatprep.subr.bf16.mxu0 %v8318_v29  ;;  %3127 = vmatprep.subr.bf16.mxu1 %v8320_v33  ;;  %v3324_v29 = vld [vmem:[%s10608_s7 + $0xc0] sm:$0xff]  ;;  %v8358_v33 = vcombine.high %v3316_v20, %v3320_v21  ;;  %v8360_v36 = vcombine.high %v3317_v24, %v3321_v25  ;;  %v8359_v40 = vcombine.low %v3317_v24, %v3321_v25  ;;  %v3780_v24 = vld [vmem:[%s13023_s23 + $0x90] sm:$0xff]  ;;  %v3781_v25 = vld [vmem:[%s13023_s23 + $0x98] sm:$0xff] }
 0x33d   : > { %8298 = vmatmul.mubr.msk.bf16.gmra.mrb[12].mxu0 %vm2579_vm1, %v10783_v59  ;;  %8300 = vmatmul.mubr.msk.bf16.gmra.mrb[12].mxu1 %vm2579_vm1, %v10783_v59 }
 0x33e   : > { %3077 = vmatpush1.bf16.msra.mxu0 %v8317_v34  ;;  %3128 = vmatpush1.bf16.msra.mxu1 %v8319_v37  ;;  %v3325_v34 = vld [vmem:[%s10608_s7 + $0xc8] sm:$0xff]  ;;  %v8357_v37 = vcombine.low %v3316_v20, %v3320_v21  ;;  %v10917_v20 = vpack.c.bf16 %v3763_v19, %v3762_v18  ;;  %v3794_v21 = vld [vmem:[%s13023_s23 + $0x100] sm:$0xff] }
 0x33f   : > { %3078 = vmatprep.subr.bf16.mxu0 %v8326_v38  ;;  %3129 = vmatprep.subr.bf16.mxu1 %v8328_v41  ;;  %v3302_v38 = vld [vmem:[%s10608_s7 + $0x10] sm:$0xff]  ;;  %v8366_v41 = vcombine.high %v3324_v29, %v3328_v31  ;;  %v8368_v45 = vcombine.high %v3325_v34, %v3329_v35  ;;  %v8367_v49 = vcombine.low %v3325_v34, %v3329_v35  ;;  %v3797_v35 = vld [vmem:[%s13023_s23 + $0x118] sm:$0xff] }
 0x340   : > { %3104 = vmatprep.mubr.bf16.mxu0 %v12749_v8  ;;  %3155 = vmatprep.mubr.bf16.mxu1 %v12749_v8  ;;  %13026 = vst [vmem:[#allocation43_spill] sm:$0xff] %v10917_v20  ;;  %v3796_v34 = vld [vmem:[%s13023_s23 + $0x110] sm:$0xff] }
 0x342   : > { %3079 = vmatpush1.bf16.msra.mxu0 %v8325_v42  ;;  %3130 = vmatpush1.bf16.msra.mxu1 %v8327_v46  ;;  %v3303_v42 = vld [vmem:[%s10608_s7 + $0x18] sm:$0xff]  ;;  %v8365_v46 = vcombine.low %v3324_v29, %v3328_v31  ;;  %v3764_v31 = vld [vmem:[%s13023_s23 + $0x10] sm:$0xff] }
 0x343   : > { %3174 = vmatprep.subr.bf16.mxu0 %v8306_v47  ;;  %3225 = vmatprep.subr.bf16.mxu1 %v8308_v50  ;;  %v3310_v47 = vld [vmem:[%s10608_s7 + $0x50] sm:$0xff]  ;;  %v8346_v50 = vcombine.high %v3302_v38, %v3306_v39  ;;  %v8348_v7 = vcombine.high %v3303_v42, %v3307_v43  ;;  %v8347_v4 = vcombine.low %v3303_v42, %v3307_v43  ;;  %v3813_v29 = vld [vmem:[%s13023_s23 + $0x198] sm:$0xff]  ;;  %v3766_v42 = vld [vmem:[%s13023_s23 + $0x20] sm:$0xff] }
 0x344   : > { %v3767_v43 = vld [vmem:[%s13023_s23 + $0x28] sm:$0xff] }
 0x345   : > { %8333 = vmatmul.mubr.msk.bf16.vlgmr.msra.gmra.mrb[16].mxu0 %vm2579_vm1, %v10767_v44  ;;  %8335 = vmatmul.mubr.msk.bf16.vlgmr.msra.gmra.mrb[16].mxu1 %vm2579_vm1, %v10767_v44 }
 0x346   : > { %3175 = vmatpush1.bf16.msra.mxu0 %v8305_v51  ;;  %3226 = vmatpush1.bf16.msra.mxu1 %v8307_v53  ;;  %v3311_v51 = vld [vmem:[%s10608_s7 + $0x58] sm:$0xff]  ;;  %v8345_v53 = vcombine.low %v3302_v38, %v3306_v39  ;;  %v3783_v38 = vld [vmem:[%s13023_s23 + $0xa8] sm:$0xff]  ;;  %v3814_v39 = vld [vmem:[%s13023_s23 + $0x1a0] sm:$0xff] }
 0x347   : > { %3176 = vmatprep.subr.bf16.mxu0 %v8314_v54  ;;  %3227 = vmatprep.subr.bf16.mxu1 %v8316_v56  ;;  %v3318_v54 = vld [vmem:[%s10608_s7 + $0x90] sm:$0xff]  ;;  %v8354_v56 = vcombine.high %v3310_v47, %v3314_v48  ;;  %v8356_v30 = vcombine.high %v3311_v51, %v3315_v52 }
 0x348   : > { %3114 = vmatprep.mubr.bf16.mxu0 %v12749_v8  ;;  %3165 = vmatprep.mubr.bf16.mxu1 %v12749_v8  ;;  %v8362_v62 = vcombine.high %v3318_v54, %v3322_v55 }
 0x34a   : > { %3177 = vmatpush1.bf16.msra.mxu0 %v8313_v57  ;;  %3228 = vmatpush1.bf16.msra.mxu1 %v8315_v60  ;;  %v3319_v57 = vld [vmem:[%s10608_s7 + $0x98] sm:$0xff]  ;;  %v8353_v60 = vcombine.low %v3310_v47, %v3314_v48  ;;  %v3798_v47 = vld [vmem:[%s13023_s23 + $0x120] sm:$0xff]  ;;  %v3799_v48 = vld [vmem:[%s13023_s23 + $0x128] sm:$0xff]  ;;  %s13056_s7 = sld [smem:[#allocation31_spill]] }
 0x34b   : > { %3178 = vmatprep.subr.bf16.mxu0 %v8322_v61  ;;  %3229 = vmatprep.subr.bf16.mxu1 %v8324_v0  ;;  %v8355_v61 = vcombine.low %v3311_v51, %v3315_v52  ;;  %v8364_v63 = vcombine.high %v3319_v57, %v3323_v58  ;;  %v8361_v0 = vcombine.low %v3318_v54, %v3322_v55  ;;  %v3785_v51 = vld [vmem:[%s13023_s23 + $0xb8] sm:$0xff]  ;;  %v3816_v52 = vld [vmem:[%s13023_s23 + $0x1b0] sm:$0xff] }
 0x34c   : > { %v3768_v54 = vld [vmem:[%s13023_s23 + $0x30] sm:$0xff]  ;;  %v3769_v55 = vld [vmem:[%s13023_s23 + $0x38] sm:$0xff] }
 0x34d   : > { %8334 = vmatmul.mubr.msk.bf16.gmra.mrb[20].mxu0 %vm2579_vm1, %v10783_v59  ;;  %8336 = vmatmul.mubr.msk.bf16.gmra.mrb[20].mxu1 %vm2579_vm1, %v10783_v59 }
 0x34e   : > { %3179 = vmatpush1.bf16.msra.mxu0 %v8321_v1  ;;  %3230 = vmatpush1.bf16.msra.mxu1 %v8323_v5  ;;  %v8363_v1 = vcombine.low %v3319_v57, %v3323_v58  ;;  %v8370_v5 = vcombine.high %v3326_v2, %v3330_v3  ;;  %v3801_v57 = vld [vmem:[%s13023_s23 + $0x138] sm:$0xff] }
 0x34f   : > { %3180 = vmatprep.subr.bf16.mxu0 %v8330_v6  ;;  %3231 = vmatprep.subr.bf16.mxu1 %v8332_v11  ;;  %v8369_v6 = vcombine.low %v3326_v2, %v3330_v3  ;;  %v8372_v11 = vcombine.high %v3327_v9, %v3331_v10 }
 0x350   : > { %3206 = vmatprep.mubr.bf16.mxu0 %v12749_v8  ;;  %3257 = vmatprep.mubr.bf16.mxu1 %v12749_v8  ;;  %s13062_s18 = scalar_lea.vmem %s13056_s7, %s10595_s22  ;;  %s13219_s7 = scalar_lea.vmem %s10512_s20, %s10595_s22 }
 0x352   : > { %3181 = vmatpush1.bf16.msra.mxu0 %v8329_v12  ;;  %3232 = vmatpush1.bf16.msra.mxu1 %v8331_v13  ;;  %v8371_v12 = vcombine.low %v3327_v9, %v3331_v10  ;;  %v3778_v13 = vld [vmem:[%s13023_s23 + $0x80] sm:$0xff]  ;;  %v3788_v10 = vld [vmem:[%s13023_s23 + $0xd0] sm:$0xff] }
 0x353   : > { %3534 = vmatprep.subr.bf16.mxu0 %v8342_v14  ;;  %3585 = vmatprep.subr.bf16.mxu1 %v8344_v17  ;;  %v3779_v14 = vld [vmem:[%s13023_s23 + $0x88] sm:$0xff] }
 0x354   : > { %v10910_v16 = vpack.c.bf16 %v3779_v14, %v3778_v13  ;;  %v3811_v17 = vld [vmem:[%s13023_s23 + $0x188] sm:$0xff]  ;;  %v3821_v14 = vld [vmem:[%s13023_s23 + $0x1d8] sm:$0xff] }
 0x355   : > { %8337 = vmatmul.mubr.msk.bf16.vlgmr.msra.gmra.mrb[24].mxu0 %vm2579_vm1, %v10767_v44  ;;  %8339 = vmatmul.mubr.msk.bf16.vlgmr.msra.gmra.mrb[24].mxu1 %vm2579_vm1, %v10767_v44 }
 0x356   : > { %3216 = vmatprep.mubr.bf16.mxu0 %v12749_v8  ;;  %3267 = vmatprep.mubr.bf16.mxu1 %v12749_v8  ;;  %13024 = vst [vmem:[#allocation41_spill] sm:$0xff] %v10910_v16 }
 0x357   : > { %3535 = vmatpush1.bf16.msra.mxu0 %v8341_v27  ;;  %3586 = vmatpush1.bf16.msra.mxu1 %v8343_v22  ;;  %v10915_v27 = vpack.c.bf16 %v3811_v17, %v3810_v15  ;;  %v3795_v22 = vld [vmem:[%s13023_s23 + $0x108] sm:$0xff]  ;;  %v3772_v15 = vld [vmem:[%s13023_s23 + $0x50] sm:$0xff]  ;;  %v3773_v17 = vld [vmem:[%s13023_s23 + $0x58] sm:$0xff] }
 0x358   : > { %3536 = vmatprep.subr.bf16.mxu0 %v8350_v23  ;;  %3587 = vmatprep.subr.bf16.mxu1 %v8352_v26  ;;  %v10925_v23 = vpack.c.bf16 %v3795_v22, %v3794_v21  ;;  %v3812_v26 = vld [vmem:[%s13023_s23 + $0x190] sm:$0xff]  ;;  %v11025_v19 = vpack.c.bf16 %v3773_v17, %v3772_v15  ;;  %v3805_v22 = vld [vmem:[%s13023_s23 + $0x158] sm:$0xff]  ;;  %v2377_v15 = vld [vmem:[%s13062_s18] sm:$0xff]  ;;  %s13492_s18 = sld [smem:[#allocation38_spill]] (!%p8513_p5) }
 0x359   : > { %13025 = vst [vmem:[#allocation42_spill] sm:$0xff] %v10915_v27  ;;  %v3804_v21 = vld [vmem:[%s13023_s23 + $0x150] sm:$0xff] }
 0x35a   : > { %13027 = vst [vmem:[#allocation44_spill] sm:$0xff] %v10925_v23  ;;  %13046 = vst [vmem:[#allocation63_spill] sm:$0xff] %v11025_v19 }
 0x35b   : > { %3537 = vmatpush1.bf16.msra.mxu0 %v8349_v28  ;;  %3588 = vmatpush1.bf16.msra.mxu1 %v8351_v32  ;;  %v10933_v28 = vpack.c.bf16 %v3781_v25, %v3780_v24  ;;  %v10939_v32 = vpack.c.bf16 %v3813_v29, %v3812_v26  ;;  %v11030_v24 = vpack.c.bf16 %v3805_v22, %v3804_v21  ;;  %v3790_v25 = vld [vmem:[%s13023_s23 + $0xe0] sm:$0xff]  ;;  %v3791_v26 = vld [vmem:[%s13023_s23 + $0xe8] sm:$0xff] }
 0x35c   : > { %3538 = vmatprep.subr.bf16.mxu0 %v8358_v33  ;;  %3589 = vmatprep.subr.bf16.mxu1 %v8360_v36  ;;  %v10946_v36 = vpack.c.bf16 %v3797_v35, %v3796_v34  ;;  %v3822_v29 = vld [vmem:[%s13023_s23 + $0x1e0] sm:$0xff]  ;;  %v3775_v35 = vld [vmem:[%s13023_s23 + $0x68] sm:$0xff] }
 0x35d   : > { %8338 = vmatmul.mubr.msk.bf16.gmra.mrb[28].mxu0 %vm2579_vm1, %v10783_v59  ;;  %8340 = vmatmul.mubr.msk.bf16.gmra.mrb[28].mxu1 %vm2579_vm1, %v10783_v59  ;;  %13028 = vst [vmem:[#allocation45_spill] sm:$0xff] %v10933_v28  ;;  %13029 = vst [vmem:[#allocation46_spill] sm:$0xff] %v10939_v32  ;;  %v3774_v34 = vld [vmem:[%s13023_s23 + $0x60] sm:$0xff] }
 0x35e   : > { %3566 = vmatprep.mubr.bf16.mxu0 %v12749_v8  ;;  %3617 = vmatprep.mubr.bf16.mxu1 %v12749_v8  ;;  %13031 = vst [vmem:[#allocation48_spill] sm:$0xff] %v10946_v36  ;;  %13047 = vst [vmem:[#allocation64_spill] sm:$0xff] %v11030_v24 }
 0x35f   : > { %3539 = vmatpush1.bf16.msra.mxu0 %v8357_v37  ;;  %3590 = vmatpush1.bf16.msra.mxu1 %v8359_v40  ;;  %v3782_v37 = vld [vmem:[%s13023_s23 + $0xa0] sm:$0xff] }
 0x360   : > { %3540 = vmatprep.subr.bf16.mxu0 %v8366_v41  ;;  %3591 = vmatprep.subr.bf16.mxu1 %v8368_v45  ;;  %v10954_v40 = vpack.c.bf16 %v3783_v38, %v3782_v37  ;;  %v3815_v41 = vld [vmem:[%s13023_s23 + $0x1a8] sm:$0xff]  ;;  %v11045_v38 = vpack.c.bf16 %v3775_v35, %v3774_v34 }
 0x361   : > { %v10961_v45 = vpack.c.bf16 %v3815_v41, %v3814_v39  ;;  %v3806_v39 = vld [vmem:[%s13023_s23 + $0x160] sm:$0xff]  ;;  %v3807_v41 = vld [vmem:[%s13023_s23 + $0x168] sm:$0xff] }
 0x362   : > { %13032 = vst [vmem:[#allocation49_spill] sm:$0xff] %v10954_v40  ;;  %13050 = vst [vmem:[#allocation67_spill] sm:$0xff] %v11045_v38 }
 0x363   : > { %3541 = vmatpush1.bf16.msra.mxu0 %v8365_v46  ;;  %3592 = vmatpush1.bf16.msra.mxu1 %v8367_v49  ;;  %13033 = vst [vmem:[#allocation50_spill] sm:$0xff] %v10961_v45  ;;  %v10963_v46 = vpack.c.bf16 %v3767_v43, %v3766_v42  ;;  %v10968_v49 = vpack.c.bf16 %v3799_v48, %v3798_v47  ;;  %v3792_v43 = vld [vmem:[%s13023_s23 + $0xf0] sm:$0xff]  ;;  %v3793_v47 = vld [vmem:[%s13023_s23 + $0xf8] sm:$0xff] }
 0x364   : > { %3636 = vmatprep.subr.bf16.mxu0 %v8346_v50  ;;  %3687 = vmatprep.subr.bf16.mxu1 %v8348_v7  ;;  %v3784_v50 = vld [vmem:[%s13023_s23 + $0xb0] sm:$0xff]  ;;  %v11050_v42 = vpack.c.bf16 %v3807_v41, %v3806_v39 }
 0x365   : > { %13034 = vst [vmem:[#allocation51_spill] sm:$0xff] %v10963_v46  ;;  %13035 = vst [vmem:[#allocation52_spill] sm:$0xff] %v10968_v49  ;;  %v10978_v7 = vpack.c.bf16 %v3785_v51, %v3784_v50  ;;  %v3824_v48 = vld [vmem:[%s13023_s23 + $0x1f0] sm:$0xff]  ;;  %v11058_v50 = vpack.c.bf16 %v3793_v47, %v3792_v43  ;;  %v3825_v51 = vld [vmem:[%s13023_s23 + $0x1f8] sm:$0xff] }
 0x366   : > { %8373 = vmatmul.mubr.msk.bf16.vlgmr.msra.gmra.mrb[32].mxu0 %vm2579_vm1, %v10767_v44  ;;  %8375 = vmatmul.mubr.msk.bf16.vlgmr.msra.gmra.mrb[32].mxu1 %vm2579_vm1, %v10767_v44  ;;  %13051 = vst [vmem:[#allocation68_spill] sm:$0xff] %v11050_v42 }
 0x367   : > { %3637 = vmatpush1.bf16.msra.mxu0 %v8345_v53  ;;  %3688 = vmatpush1.bf16.msra.mxu1 %v8347_v4  ;;  %13036 = vst [vmem:[#allocation53_spill] sm:$0xff] %v10978_v7  ;;  %v3817_v53 = vld [vmem:[%s13023_s23 + $0x1b8] sm:$0xff]  ;;  %v10985_v4 = vpack.c.bf16 %v3769_v55, %v3768_v54  ;;  %13052 = vst [vmem:[#allocation69_spill] sm:$0xff] %v11058_v50  ;;  %v11063_v54 = vpack.c.bf16 %v3825_v51, %v3824_v48 }
 0x368   : > { %3638 = vmatprep.subr.bf16.mxu0 %v8354_v56  ;;  %3689 = vmatprep.subr.bf16.mxu1 %v8356_v30  ;;  %v3800_v56 = vld [vmem:[%s13023_s23 + $0x130] sm:$0xff]  ;;  %v3786_v30 = vld [vmem:[%s13023_s23 + $0xc0] sm:$0xff] }
 0x369   : > { %3576 = vmatprep.mubr.bf16.mxu0 %v12749_v8  ;;  %3627 = vmatprep.mubr.bf16.mxu1 %v12749_v8  ;;  %13038 = vst [vmem:[#allocation55_spill] sm:$0xff] %v10985_v4  ;;  %v10990_v58 = vpack.c.bf16 %v3801_v57, %v3800_v56  ;;  %13053 = vst [vmem:[#allocation70_spill] sm:$0xff] %v11063_v54  ;;  %v3808_v56 = vld [vmem:[%s13023_s23 + $0x170] sm:$0xff]  ;;  %v3809_v57 = vld [vmem:[%s13023_s23 + $0x178] sm:$0xff] }
 0x36b   : > { %3639 = vmatpush1.bf16.msra.mxu0 %v8353_v60  ;;  %3690 = vmatpush1.bf16.msra.mxu1 %v8355_v61  ;;  %13039 = vst [vmem:[#allocation56_spill] sm:$0xff] %v10990_v58  ;;  %v3787_v60 = vld [vmem:[%s13023_s23 + $0xc8] sm:$0xff]  ;;  %v3818_v61 = vld [vmem:[%s13023_s23 + $0x1c0] sm:$0xff] }
 0x36c   : > { %3640 = vmatprep.subr.bf16.mxu0 %v8362_v62  ;;  %3691 = vmatprep.subr.bf16.mxu1 %v8364_v63  ;;  %v10998_v62 = vpack.c.bf16 %v3787_v60, %v3786_v30  ;;  %v3819_v63 = vld [vmem:[%s13023_s23 + $0x1c8] sm:$0xff]  ;;  %v11070_v30 = vpack.c.bf16 %v3809_v57, %v3808_v56  ;;  %v3842_v60 = vld [vmem:[%s13023_s23 + $0x280] sm:$0xff] }
 0x36d   : > { %v11003_v2 = vpack.c.bf16 %v3819_v63, %v3818_v61  ;;  %v3843_v61 = vld [vmem:[%s13023_s23 + $0x288] sm:$0xff]  ;;  %v3874_v63 = vld [vmem:[%s13023_s23 + $0x380] sm:$0xff] }
 0x36e   : > { %8374 = vmatmul.mubr.msk.bf16.gmra.mrb[36].mxu0 %vm2579_vm1, %v10783_v59  ;;  %8376 = vmatmul.mubr.msk.bf16.gmra.mrb[36].mxu1 %vm2579_vm1, %v10783_v59  ;;  %13040 = vst [vmem:[#allocation57_spill] sm:$0xff] %v10998_v62  ;;  %13055 = vst [vmem:[#allocation72_spill] sm:$0xff] %v11070_v30 }
 0x36f   : > { %3641 = vmatpush1.bf16.msra.mxu0 %v8361_v0  ;;  %3692 = vmatpush1.bf16.msra.mxu1 %v8363_v1  ;;  %v3770_v0 = vld [vmem:[%s13023_s23 + $0x40] sm:$0xff]  ;;  %v3771_v1 = vld [vmem:[%s13023_s23 + $0x48] sm:$0xff]  ;;  %13041 = vst [vmem:[#allocation58_spill] sm:$0xff] %v11003_v2 }
 0x370   : > { %3668 = vmatprep.mubr.bf16.mxu0 %v12749_v8  ;;  %3719 = vmatprep.mubr.bf16.mxu1 %v12749_v8  ;;  %v11005_v3 = vpack.c.bf16 %v3771_v1, %v3770_v0  ;;  %v11078_v0 = vpack.c.bf16 %v3843_v61, %v3842_v60  ;;  %v3875_v1 = vld [vmem:[%s13023_s23 + $0x388] sm:$0xff] }
 0x371   : > { %3642 = vmatprep.subr.bf16.mxu0 %v8370_v5  ;;  %3693 = vmatprep.subr.bf16.mxu1 %v8372_v11  ;;  %v3802_v5 = vld [vmem:[%s13023_s23 + $0x140] sm:$0xff]  ;;  %v3789_v11 = vld [vmem:[%s13023_s23 + $0xd8] sm:$0xff] }
 0x372   : > { %13042 = vst [vmem:[#allocation59_spill] sm:$0xff] %v11005_v3  ;;  %v11018_v13 = vpack.c.bf16 %v3789_v11, %v3788_v10  ;;  %13057 = vst [vmem:[#allocation73_spill] sm:$0xff] %v11078_v0 }
 0x373   : > { %3643 = vmatpush1.bf16.msra.mxu0 %v8369_v6  ;;  %3694 = vmatpush1.bf16.msra.mxu1 %v8371_v12  ;;  %v3803_v6 = vld [vmem:[%s13023_s23 + $0x148] sm:$0xff]  ;;  %v3820_v12 = vld [vmem:[%s13023_s23 + $0x1d0] sm:$0xff] }
 0x374   : > { %9547 = vmatprep.subr.bf16.mxu0 %v10910_v16  ;;  %9579 = vmatprep.subr.bf16.mxu1 %v10915_v27  ;;  %v11010_v9 = vpack.c.bf16 %v3803_v6, %v3802_v5  ;;  %13044 = vst [vmem:[#allocation61_spill] sm:$0xff] %v11018_v13  ;;  %v11023_v18 = vpack.c.bf16 %v3821_v14, %v3820_v12  ;;  %v2379_v6 = vlaneseq  ;;  %v3849_v16 = vld [vmem:[%s13023_s23 + $0x2b8] sm:$0xff] }
 0x375   : > { %v11081_v5 = vpack.c.bf16 %v3875_v1, %v3874_v63 }
 0x376   : > { %8377 = vmatmul.mubr.msk.bf16.vlgmr.msra.gmra.mrb[40].mxu0 %vm2579_vm1, %v10767_v44  ;;  %8379 = vmatmul.mubr.msk.bf16.vlgmr.msra.gmra.mrb[40].mxu1 %vm2579_vm1, %v10767_v44  ;;  %v3765_v44 = vld [vmem:[%s13023_s23 + $0x18] sm:$0xff]  ;;  %13043 = vst [vmem:[#allocation60_spill] sm:$0xff] %v11010_v9  ;;  %13045 = vst [vmem:[#allocation62_spill] sm:$0xff] %v11023_v18  ;;  %v2380_v10 = vshrl.u32 %v2379_v6, 7 }
 0x377   : > { %3678 = vmatprep.mubr.bf16.mxu0 %v12749_v8  ;;  %9549 = vmatpush3.bf16.msra.mxu0 %v10917_v20  ;;  %v10941_v33 = vpack.c.bf16 %v3765_v44, %v3764_v31  ;;  %v11038_v31 = vpack.c.bf16 %v3791_v26, %v3790_v25  ;;  %v3823_v44 = vld [vmem:[%s13023_s23 + $0x1e8] sm:$0xff]  ;;  %13058 = vst [vmem:[#allocation74_spill] sm:$0xff] %v11081_v5  ;;  %v3848_v20 = vld [vmem:[%s13023_s23 + $0x2b0] sm:$0xff] }
 0x378   : > { %9581 = vmatpush3.bf16.msra.mxu1 %v10925_v23  ;;  %3729 = vmatprep.mubr.bf16.mxu1 %v12749_v8  ;;  %v11043_v37 = vpack.c.bf16 %v3823_v44, %v3822_v29  ;;  %v11085_v11 = vsub.s32 2, %v2380_v10  ;;  %v11087_v12 = vsub.s32 0, %v2380_v10  ;;  %v11089_v14 = vsub.s32 3, %v2380_v10  ;;  %v3862_v23 = vld [vmem:[%s13023_s23 + $0x320] sm:$0xff] }
 0x379   : > { %13030 = vst [vmem:[#allocation47_spill] sm:$0xff] %v10941_v33  ;;  %9551 = vmatprep.subr.bf16.mxu0 %v10933_v28  ;;  %9583 = vmatprep.subr.bf16.mxu1 %v10939_v32  ;;  %13048 = vst [vmem:[#allocation65_spill] sm:$0xff] %v11038_v31  ;;  %v11094_v17 = vsub.s32 1, %v2380_v10  ;;  %v11140_v8 = vsub.s32 6, %v2380_v10  ;;  %v3831_v32 = vld [vmem:[%s13023_s23 + $0x228] sm:$0xff] }
 0x37a   : > { %13049 = vst [vmem:[#allocation66_spill] sm:$0xff] %v11043_v37  ;;  %13059 = vst [vmem:[#allocation75_spill] sm:$0xff] %v11085_v11  ;;  %v11099_v22 = vrot.slane %v2377_v15, %v11085_v11  ;;  %v11102_v25 = vrot.slane %v2377_v15, %v11087_v12  ;;  %v11109_v44 = vrot.slane %v2377_v15, %v11089_v14 }
 0x37b   : > { %9553 = vmatpush3.bf16.msra.mxu0 %v10941_v33  ;;  %13060 = vst [vmem:[#allocation76_spill] sm:$0xff] %v11087_v12  ;;  %13061 = vst [vmem:[#allocation77_spill] sm:$0xff] %v11089_v14  ;;  %v11112_v34 = vrot.slane %v2377_v15, %v11094_v17 }
 0x37c   : > { %9585 = vmatpush3.bf16.msra.mxu1 %v10946_v36  ;;  %9555 = vmatprep.subr.bf16.mxu0 %v10954_v40  ;;  %13063 = vst [vmem:[#allocation78_spill] sm:$0xff] %v11094_v17  ;;  %13065 = vst [vmem:[#allocation79_spill] sm:$0xff] %v11140_v8 }
 0x37d   : > { %9587 = vmatprep.subr.bf16.mxu1 %v10961_v45 }
 0x37e   : > { %8378 = vmatmul.mubr.msk.bf16.gmra.mrb[44].mxu0 %vm2579_vm1, %v10783_v59  ;;  %8380 = vmatmul.mubr.msk.bf16.gmra.mrb[44].mxu1 %vm2579_vm1, %v10783_v59  ;;  %v10983_v59 = vpack.c.bf16 %v3817_v53, %v3816_v52  ;;  %v3776_v52 = vld [vmem:[%s13023_s23 + $0x70] sm:$0xff]  ;;  %v3777_v53 = vld [vmem:[%s13023_s23 + $0x78] sm:$0xff] }
 0x37f   : > { %9557 = vmatpush3.bf16.msra.mxu0 %v10963_v46  ;;  %v11065_v55 = vpack.c.bf16 %v3777_v53, %v3776_v52 }
 0x380   : > { %9589 = vmatpush3.bf16.msra.mxu1 %v10968_v49  ;;  %13037 = vst [vmem:[#allocation54_spill] sm:$0xff] %v10983_v59  ;;  %9559 = vmatprep.subr.bf16.mxu0 %v10978_v7  ;;  %v3879_v49 = vld [vmem:[%s13023_s23 + $0x3a8] sm:$0xff] }
 0x381   : > { %9591 = vmatprep.subr.bf16.mxu1 %v10983_v59  ;;  %13054 = vst [vmem:[#allocation71_spill] sm:$0xff] %v11065_v55  ;;  %v3878_v59 = vld [vmem:[%s13023_s23 + $0x3a0] sm:$0xff]  ;;  %v3863_v7 = vld [vmem:[%s13023_s23 + $0x328] sm:$0xff] }
 0x383   : > { %9561 = vmatpush3.bf16.msra.mxu0 %v10985_v4 }
 0x384   : > { %9593 = vmatpush3.bf16.msra.mxu1 %v10990_v58  ;;  %9563 = vmatprep.subr.bf16.mxu0 %v10998_v62 }
 0x385   : > { %9595 = vmatprep.subr.bf16.mxu1 %v11003_v2 }
 0x387   : > { %9565 = vmatpush3.bf16.msra.mxu0 %v11005_v3 }
 0x388   : > { %9597 = vmatpush3.bf16.msra.mxu1 %v11010_v9  ;;  %9567 = vmatprep.subr.bf16.mxu0 %v11018_v13  ;;  %v3861_v9 = vld [vmem:[%s13023_s23 + $0x318] sm:$0xff]  ;;  %v3830_v13 = vld [vmem:[%s13023_s23 + $0x220] sm:$0xff] }
 0x389   : > { %9599 = vmatprep.subr.bf16.mxu1 %v11023_v18  ;;  %v3860_v18 = vld [vmem:[%s13023_s23 + $0x310] sm:$0xff] }
 0x38b   : > { %9569 = vmatpush3.bf16.msra.mxu0 %v11025_v19  ;;  %v3847_v19 = vld [vmem:[%s13023_s23 + $0x2a8] sm:$0xff] }
 0x38c   : > { %9601 = vmatpush3.bf16.msra.mxu1 %v11030_v24  ;;  %9571 = vmatprep.subr.bf16.mxu0 %v11038_v31  ;;  %v3877_v24 = vld [vmem:[%s13023_s23 + $0x398] sm:$0xff]  ;;  %v3846_v31 = vld [vmem:[%s13023_s23 + $0x2a0] sm:$0xff] }
 0x38d   : > { %9603 = vmatprep.subr.bf16.mxu1 %v11043_v37  ;;  %v11162_v37 = vrot.slane %v2377_v15, %v11140_v8 }
 0x38f   : > { %9573 = vmatpush3.bf16.msra.mxu0 %v11045_v38 }
 0x390   : > { %9605 = vmatpush3.bf16.msra.mxu1 %v11050_v42  ;;  %9575 = vmatprep.subr.bf16.mxu0 %v11058_v50 }
 0x391   : > { %9607 = vmatprep.subr.bf16.mxu1 %v11063_v54  ;;  %v3845_v54 = vld [vmem:[%s13023_s23 + $0x298] sm:$0xff] }
 0x393   : > { %9577 = vmatpush3.bf16.msra.mxu0 %v11065_v55  ;;  %v3829_v55 = vld [vmem:[%s13023_s23 + $0x218] sm:$0xff] }
 0x394   : > { %9609 = vmatpush3.bf16.msra.mxu1 %v11070_v30  ;;  %9611 = vmatprep.subr.bf16.mxu0 %v11078_v0  ;;  %v3844_v30 = vld [vmem:[%s13023_s23 + $0x290] sm:$0xff] }
 0x395   : > { %9643 = vmatprep.subr.bf16.mxu1 %v11081_v5  ;;  %v11146_v5 = vsub.s32 5, %v2380_v10  ;;  %v3828_v0 = vld [vmem:[%s13023_s23 + $0x210] sm:$0xff] }
 0x397   : > { %13068 = vst [vmem:[#allocation82_spill] sm:$0xff] %v11146_v5  ;;  %v11186_v3 = vrot.slane %v2377_v15, %v11146_v5 }
 0x3f8   : > { %v11096_v21 = vpop.f32.mrb[0].mxu0  ;;  %v11104_v26 = vpop.f32.mrb[0].mxu1 }
 0x3f9   : > { %v11106_v29 = vpop.f32.mrb[1].mxu0  ;;  %v11114_v35 = vpop.f32.mrb[1].mxu1 }
 0x3fa   : > { %v2624_v39 = vpop.f32.mrb[2].mxu0  ;;  %v2675_v43 = vpop.f32.mrb[2].mxu1 }
 0x3fb   : > { %v11117_v41 = vadd.f32 %v2624_v39, %v11102_v25  ;;  %v2626_v47 = vpop.f32.mrb[3].mxu0  ;;  %v11120_v48 = vadd.f32 %v2675_v43, %v11099_v22  ;;  %v2677_v52 = vpop.f32.mrb[3].mxu1 }
 0x3fc   : > { %v11123_v51 = vadd.f32 %v2626_v47, %v11112_v34  ;;  %v11126_v53 = vadd.f32 %v2677_v52, %v11109_v44 }
 0x400   : > { %v2630_v56 = vpop.f32.mrb[4].mxu0  ;;  %v2681_v60 = vpop.f32.mrb[4].mxu1 }
 0x401   : > { %v11129_v57 = vadd.f32 %v2630_v56, %v11102_v25  ;;  %v2632_v61 = vpop.f32.mrb[5].mxu0  ;;  %v11132_v63 = vadd.f32 %v2681_v60, %v11099_v22  ;;  %v2683_v6 = vpop.f32.mrb[5].mxu1  ;;  %v11142_v60 = vsub.s32 4, %v2380_v10 }
 0x402   : > { %v11135_v1 = vadd.f32 %v2632_v61, %v11112_v34  ;;  %v2634_v39 = vpop.f32.mrb[6].mxu0  ;;  %v11138_v43 = vadd.f32 %v2683_v6, %v11109_v44  ;;  %v2685_v47 = vpop.f32.mrb[6].mxu1  ;;  %v11144_v61 = vsub.s32 7, %v2380_v10  ;;  %v11151_v6 = vld [vmem:[%s13069_s4] sm:$0xff]  ;;  %v3876_v10 = vld [vmem:[%s13023_s23 + $0x390] sm:$0xff] }
 0x403   : > { %v2635_v52 = vpop.f32.mrb[7].mxu0  ;;  %v2686_v56 = vpop.f32.mrb[7].mxu1  ;;  %13066 = vst [vmem:[#allocation80_spill] sm:$0xff] %v11142_v60  ;;  %v3826_v39 = vld [vmem:[%s13023_s23 + $0x200] sm:$0xff]  ;;  %v3827_v47 = vld [vmem:[%s13023_s23 + $0x208] sm:$0xff]  ;;  %v11171_v50 = vrot.slane %v2377_v15, %v11142_v60  ;;  %v11192_v62 = vrot.slane %v11151_v6, %v11087_v12  ;;  %v11196_v4 = vrot.slane %v11151_v6, %v11085_v11  ;;  %v11206_v40 = vrot.slane %v11151_v6, %v11094_v17  ;;  %v3880_v11 = vld [vmem:[%s13023_s23 + $0x3b0] sm:$0xff] }
 0x404   : > { %13067 = vst [vmem:[#allocation81_spill] sm:$0xff] %v11144_v61  ;;  %v3858_v52 = vld [vmem:[%s13023_s23 + $0x300] sm:$0xff]  ;;  %v3859_v56 = vld [vmem:[%s13023_s23 + $0x308] sm:$0xff]  ;;  %v11178_v58 = vrot.slane %v2377_v15, %v11144_v61  ;;  %v11210_v33 = vrot.slane %v11151_v6, %v11089_v14  ;;  %v11212_v28 = vpack.c.bf16 %v3827_v47, %v3826_v39  ;;  %v3832_v12 = vld [vmem:[%s13023_s23 + $0x230] sm:$0xff]  ;;  %v11228_v39 = vpack.c.bf16 %v3845_v54, %v3844_v30 }
 0x405   : > { %13071 = vst [vmem:[#allocation84_spill] sm:$0xff] %v11196_v4  ;;  %13073 = vst [vmem:[#allocation86_spill] sm:$0xff] %v11206_v40  ;;  %v11226_v14 = vpack.c.bf16 %v3859_v56, %v3858_v52  ;;  %v3864_v47 = vld [vmem:[%s13023_s23 + $0x330] sm:$0xff]  ;;  %v3851_v52 = vld [vmem:[%s13023_s23 + $0x2c8] sm:$0xff]  ;;  %v11245_v56 = vpack.c.bf16 %v3847_v19, %v3846_v31  ;;  %v11263_v19 = vrot.slane %v11151_v6, %v11140_v8 }
 0x406   : > { %13074 = vst [vmem:[#allocation87_spill] sm:$0xff] %v11210_v33  ;;  %13075 = vst [vmem:[#allocation88_spill] sm:$0xff] %v11212_v28  ;;  %v3865_v28 = vld [vmem:[%s13023_s23 + $0x338] sm:$0xff]  ;;  %v3850_v33 = vld [vmem:[%s13023_s23 + $0x2c0] sm:$0xff] }
 0x407   : > { %13078 = vst [vmem:[#allocation91_spill] sm:$0xff] %v11226_v14  ;;  %13079 = vst [vmem:[#allocation92_spill] sm:$0xff] %v11228_v39  ;;  %v3882_v54 = vld [vmem:[%s13023_s23 + $0x3c0] sm:$0xff]  ;;  %v3883_v30 = vld [vmem:[%s13023_s23 + $0x3c8] sm:$0xff] }
 0x408   : > { %v11159_v42 = vpop.f32.mrb[8].mxu0  ;;  %v11173_v38 = vpop.f32.mrb[8].mxu1  ;;  %13084 = vst [vmem:[#allocation97_spill] sm:$0xff] %v11245_v56  ;;  %13089 = vst [vmem:[#allocation102_spill] sm:$0xff] %v11263_v19  ;;  %v3836_v31 = vld [vmem:[%s13023_s23 + $0x250] sm:$0xff]  ;;  %v11280_v19 = vpack.c.bf16 %v3849_v16, %v3848_v20 }
 0x409   : > { %v11175_v2 = vpop.f32.mrb[9].mxu0  ;;  %v11188_v45 = vpop.f32.mrb[9].mxu1 }
 0x40a   : > { %13070 = vst [vmem:[#allocation83_spill] sm:$0xff] %v11188_v45  ;;  %v2726_v36 = vpop.f32.mrb[10].mxu0  ;;  %v2777_v46 = vpop.f32.mrb[10].mxu1  ;;  %13092 = vst [vmem:[#allocation105_spill] sm:$0xff] %v11280_v19 }
 0x40b   : > { %v11202_v15 = vadd.f32 %v2726_v36, %v11171_v50  ;;  %v2728_v27 = vpop.f32.mrb[11].mxu0  ;;  %v3881_v36 = vld [vmem:[%s13023_s23 + $0x3b8] sm:$0xff]  ;;  %v11221_v4 = vadd.f32 %v2777_v46, %v11162_v37  ;;  %v2779_v40 = vpop.f32.mrb[11].mxu1  ;;  %v11236_v46 = vpack.c.bf16 %v3877_v24, %v3876_v10  ;;  %v11251_v24 = vpack.c.bf16 %v3863_v7, %v3862_v23 }
 0x40c   : > { %v11224_v17 = vadd.f32 %v2728_v27, %v11186_v3  ;;  %v11234_v45 = vadd.f32 %v2779_v40, %v11178_v58  ;;  %v11240_v27 = vpack.c.bf16 %v3861_v9, %v3860_v18  ;;  %v11249_v40 = vpack.c.bf16 %v3831_v32, %v3830_v13  ;;  %v3834_v9 = vld [vmem:[%s13023_s23 + $0x240] sm:$0xff]  ;;  %v3835_v18 = vld [vmem:[%s13023_s23 + $0x248] sm:$0xff]  ;;  %v3853_v7 = vld [vmem:[%s13023_s23 + $0x2d8] sm:$0xff] }
 0x40d   : > { %13072 = vst [vmem:[#allocation85_spill] sm:$0xff] %v11202_v15  ;;  %v3833_v15 = vld [vmem:[%s13023_s23 + $0x238] sm:$0xff]  ;;  %13076 = vst [vmem:[#allocation89_spill] sm:$0xff] %v11221_v4  ;;  %v11238_v4 = vpack.c.bf16 %v3829_v55, %v3828_v0  ;;  %v3866_v55 = vld [vmem:[%s13023_s23 + $0x340] sm:$0xff]  ;;  %v11259_v10 = vrot.slane %v11151_v6, %v11142_v60  ;;  %v11267_v32 = vrot.slane %v11151_v6, %v11146_v5 }
 0x40e   : > { %13077 = vst [vmem:[#allocation90_spill] sm:$0xff] %v11224_v17  ;;  %13080 = vst [vmem:[#allocation93_spill] sm:$0xff] %v11234_v45  ;;  %v11247_v17 = vpack.c.bf16 %v3879_v49, %v3878_v59  ;;  %v3867_v0 = vld [vmem:[%s13023_s23 + $0x348] sm:$0xff]  ;;  %v11271_v23 = vrot.slane %v11151_v6, %v11144_v61  ;;  %v3852_v49 = vld [vmem:[%s13023_s23 + $0x2d0] sm:$0xff]  ;;  %v11282_v5 = vpack.c.bf16 %v3881_v36, %v3880_v11 }
 0x40f   : > { %13081 = vst [vmem:[#allocation94_spill] sm:$0xff] %v11236_v46  ;;  %13082 = vst [vmem:[#allocation95_spill] sm:$0xff] %v11238_v4  ;;  %v3884_v59 = vld [vmem:[%s13023_s23 + $0x3d0] sm:$0xff]  ;;  %v3885_v13 = vld [vmem:[%s13023_s23 + $0x3d8] sm:$0xff]  ;;  %v11286_v45 = vpack.c.bf16 %v3865_v28, %v3864_v47  ;;  %v11296_v11 = vpack.c.bf16 %v3851_v52, %v3850_v33  ;;  %v2672_v47 = vadd.f32 %v11104_v26, %v11099_v22 }
 0x410   : > { %13083 = vst [vmem:[#allocation96_spill] sm:$0xff] %v11240_v27  ;;  %13085 = vst [vmem:[#allocation98_spill] sm:$0xff] %v11247_v17  ;;  %v3837_v60 = vld [vmem:[%s13023_s23 + $0x258] sm:$0xff]  ;;  %v2732_v8 = vpop.f32.mrb[12].mxu0  ;;  %v3854_v61 = vld [vmem:[%s13023_s23 + $0x2e0] sm:$0xff]  ;;  %v2783_v16 = vpop.f32.mrb[12].mxu1 }
 0x411   : > { %13086 = vst [vmem:[#allocation99_spill] sm:$0xff] %v11249_v40  ;;  %13087 = vst [vmem:[#allocation100_spill] sm:$0xff] %v11251_v24  ;;  %v3868_v24 = vld [vmem:[%s13023_s23 + $0x350] sm:$0xff]  ;;  %v3869_v6 = vld [vmem:[%s13023_s23 + $0x358] sm:$0xff]  ;;  %v11294_v40 = vadd.f32 %v2732_v8, %v11171_v50  ;;  %v2734_v20 = vpop.f32.mrb[13].mxu0  ;;  %v11308_v8 = vadd.f32 %v2783_v16, %v11162_v37  ;;  %v2785_v33 = vpop.f32.mrb[13].mxu1 }
 0x412   : > { %13088 = vst [vmem:[#allocation101_spill] sm:$0xff] %v11259_v10  ;;  %13090 = vst [vmem:[#allocation103_spill] sm:$0xff] %v11267_v32  ;;  %v11284_v32 = vpack.c.bf16 %v3833_v15, %v3832_v12  ;;  %v2621_v10 = vadd.f32 %v11096_v21, %v11102_v25  ;;  %v11298_v12 = vpack.c.bf16 %v3883_v30, %v3882_v54  ;;  %v3886_v28 = vld [vmem:[%s13023_s23 + $0x3e0] sm:$0xff]  ;;  %v3887_v15 = vld [vmem:[%s13023_s23 + $0x3e8] sm:$0xff]  ;;  %v2736_v52 = vpop.f32.mrb[14].mxu0  ;;  %v2787_v26 = vpop.f32.mrb[14].mxu1 }
 0x413   : > { %13091 = vst [vmem:[#allocation104_spill] sm:$0xff] %v11271_v23  ;;  %13093 = vst [vmem:[#allocation106_spill] sm:$0xff] %v11282_v5  ;;  %v3855_v23 = vld [vmem:[%s13023_s23 + $0x2e8] sm:$0xff]  ;;  %v3838_v36 = vld [vmem:[%s13023_s23 + $0x260] sm:$0xff]  ;;  %v2623_v21 = vadd.f32 %v11106_v29, %v11112_v34  ;;  %v11311_v25 = vadd.f32 %v2734_v20, %v11186_v3  ;;  %v11319_v22 = vadd.f32 %v2785_v33, %v11178_v58 }
 0x414   : > { %13094 = vst [vmem:[#allocation107_spill] sm:$0xff] %v11284_v32  ;;  %13095 = vst [vmem:[#allocation108_spill] sm:$0xff] %v11286_v45  ;;  %v3839_v54 = vld [vmem:[%s13023_s23 + $0x268] sm:$0xff]  ;;  %v3870_v30 = vld [vmem:[%s13023_s23 + $0x360] sm:$0xff]  ;;  %v2737_v45 = vpop.f32.mrb[15].mxu0  ;;  %v11321_v29 = vpack.c.bf16 %v3835_v18, %v3834_v9  ;;  %v11323_v34 = vpack.c.bf16 %v3867_v0, %v3866_v55  ;;  %v11327_v32 = vpack.c.bf16 %v3853_v7, %v3852_v49  ;;  %v11343_v18 = vmul.f32 0.125, %v2621_v10 }
 0x415   : > { %13096 = vst [vmem:[#allocation109_spill] sm:$0xff] %v11296_v11  ;;  %13097 = vst [vmem:[#allocation110_spill] sm:$0xff] %v11298_v12  ;;  %v3871_v12 = vld [vmem:[%s13023_s23 + $0x368] sm:$0xff]  ;;  %v2674_v11 = vadd.f32 %v11114_v35, %v11109_v44  ;;  %v3856_v16 = vld [vmem:[%s13023_s23 + $0x2f0] sm:$0xff]  ;;  %v11329_v52 = vpack.c.bf16 %v3885_v13, %v3884_v59  ;;  %v11331_v5 = vpack.c.bf16 %v3837_v60, %v3836_v31  ;;  %v11345_v55 = vmul.f32 0.125, %v2672_v47 }
 0x416   : > { %13098 = vst [vmem:[#allocation111_spill] sm:$0xff] %v11311_v25  ;;  %13099 = vst [vmem:[#allocation112_spill] sm:$0xff] %v11321_v29  ;;  %v3857_v20 = vld [vmem:[%s13023_s23 + $0x2f8] sm:$0xff]  ;;  %v2788_v25 = vpop.f32.mrb[15].mxu1  ;;  %v11333_v19 = vpack.c.bf16 %v3869_v6, %v3868_v24  ;;  %v11335_v44 = vpack.c.bf16 %v3855_v23, %v3854_v61  ;;  %v11337_v35 = vpack.c.bf16 %v3887_v15, %v3886_v28  ;;  %v11347_v0 = vmul.f32 0.125, %v2623_v21  ;;  %v13110_v6 = vld [vmem:[#allocation83_spill] sm:$0xff] }
 0x417   : > { %13100 = vst [vmem:[#allocation113_spill] sm:$0xff] %v11323_v34  ;;  %13101 = vst [vmem:[#allocation114_spill] sm:$0xff] %v11327_v32  ;;  %v11339_v45 = vpack.c.bf16 %v3839_v54, %v3838_v36  ;;  %v11341_v9 = vpack.c.bf16 %v3871_v12, %v3870_v30  ;;  %v11349_v49 = vpack.c.bf16 %v3857_v20, %v3856_v16  ;;  %v11351_v60 = vmul.f32 0.125, %v2674_v11  ;;  %v13111_v11 = vld [vmem:[#allocation84_spill] sm:$0xff] }
 0x418   : > { %13102 = vst [vmem:[#allocation115_spill] sm:$0xff] %v11329_v52  ;;  %13103 = vst [vmem:[#allocation116_spill] sm:$0xff] %v11331_v5  ;;  %v11354_v24 = vmul.f32 0.125, %v11117_v41  ;;  %v11357_v61 = vmul.f32 0.125, %v11120_v48  ;;  %v11360_v23 = vmul.f32 0.125, %v11123_v51  ;;  %v11363_v10 = vmul.f32 0.125, %v11126_v53 }
 0x419   : > { %13104 = vst [vmem:[#allocation117_spill] sm:$0xff] %v11333_v19  ;;  %13105 = vst [vmem:[#allocation118_spill] sm:$0xff] %v11335_v44  ;;  %v11366_v7 = vmul.f32 0.125, %v11129_v57  ;;  %v11369_v59 = vmul.f32 0.125, %v11132_v63  ;;  %v11372_v13 = vmul.f32 0.125, %v11135_v1  ;;  %v3106_v41 = vpop.f32.mrb[16].mxu0  ;;  %v11379_v48 = vadd.f32 %v11159_v42, %v11171_v50 }
 0x41a   : > { %13106 = vst [vmem:[#allocation119_spill] sm:$0xff] %v11337_v35  ;;  %13107 = vst [vmem:[#allocation120_spill] sm:$0xff] %v11339_v45  ;;  %v11375_v31 = vmul.f32 0.125, %v11138_v43  ;;  %v11383_v51 = vadd.f32 %v11173_v38, %v11162_v37  ;;  %v3107_v53 = vadd.f32 %v3106_v41, %v11192_v62  ;;  %v3157_v57 = vpop.f32.mrb[16].mxu1  ;;  %v3108_v63 = vpop.f32.mrb[17].mxu0  ;;  %v11388_v1 = vadd.f32 %v11175_v2, %v11186_v3  ;;  %v13112_v42 = vld [vmem:[#allocation86_spill] sm:$0xff] }
 0x41b   : > { %13108 = vst [vmem:[#allocation121_spill] sm:$0xff] %v11341_v9  ;;  %13109 = vst [vmem:[#allocation122_spill] sm:$0xff] %v11349_v49  ;;  %v11392_v43 = vadd.f32 %v13110_v6, %v11178_v58  ;;  %v3158_v12 = vadd.f32 %v3157_v57, %v13111_v11  ;;  %v3109_v50 = vadd.f32 %v3108_v63, %v13112_v42  ;;  %v3159_v28 = vpop.f32.mrb[17].mxu1  ;;  %v3110_v15 = vpop.f32.mrb[18].mxu0  ;;  %v13115_v2 = vld [vmem:[#allocation87_spill] sm:$0xff] }
 0x41c   : > { %v3922_v37 = vmul.f32 %v3107_v53, %v11343_v18  ;;  %v11398_v38 = vmul.f32 %v3107_v53, %v11354_v24  ;;  %v11401_v36 = vmul.f32 %v3107_v53, %v11366_v7  ;;  %v3160_v3 = vadd.f32 %v3159_v28, %v13115_v2  ;;  %v3161_v47 = vpop.f32.mrb[18].mxu1  ;;  %v3112_v21 = vpop.f32.mrb[19].mxu0 }
 0x41d   : > { %v3924_v58 = vmul.f32 %v3158_v12, %v11345_v55  ;;  %v11406_v25 = vmul.f32 %v3158_v12, %v11357_v61  ;;  %v11409_v33 = vmul.f32 %v3158_v12, %v11369_v59  ;;  %v3111_v54 = vadd.f32 %v3110_v15, %v11192_v62  ;;  %v3163_v30 = vpop.f32.mrb[19].mxu1 }
 0x41e   : > { %13113 = vst [vmem:[#allocation83_spill] sm:$0xff] %v11398_v38  ;;  %13114 = vst [vmem:[#allocation84_spill] sm:$0xff] %v11401_v36  ;;  %v3162_v26 = vadd.f32 %v3161_v47, %v13111_v11  ;;  %v3113_v16 = vadd.f32 %v3112_v21, %v13112_v42  ;;  %v3164_v20 = vadd.f32 %v3163_v30, %v13115_v2  ;;  %v13122_v36 = vld [vmem:[#allocation88_spill] sm:$0xff] }
 0x41f   : > { %13116 = vst [vmem:[#allocation86_spill] sm:$0xff] %v11406_v25  ;;  %13117 = vst [vmem:[#allocation87_spill] sm:$0xff] %v11409_v33  ;;  %v3923_v41 = vmul.f32 %v3109_v50, %v11347_v0  ;;  %v3925_v53 = vmul.f32 %v3160_v3, %v11351_v60  ;;  %v3938_v57 = vmul.f32 %v3111_v54, %v11343_v18 }
 0x420   : > { %v11419_v63 = vmul.f32 %v3109_v50, %v11360_v23  ;;  %v11422_v6 = vmul.f32 %v3160_v3, %v11363_v10  ;;  %v3939_v12 = vmul.f32 %v3113_v16, %v11347_v0  ;;  %v3941_v28 = vmul.f32 %v3164_v20, %v11351_v60  ;;  %v3116_v21 = vpop.f32.mrb[20].mxu0  ;;  %v3167_v38 = vpop.f32.mrb[20].mxu1 }
 0x421   : > { %4026 = vmatprep.mubr.f32.mxu0 %v3923_v41  ;;  %v3940_v15 = vmul.f32 %v3162_v26, %v11345_v55  ;;  %v11428_v47 = vmul.f32 %v3113_v16, %v11360_v23  ;;  %4106 = vmatprep.mubr.f32.mxu1 %v3925_v53  ;;  %v11431_v30 = vmul.f32 %v3111_v54, %v11354_v24 }
 0x422   : > { %13118 = vst [vmem:[#allocation123_spill] sm:$0xff] %v11422_v6  ;;  %4027 = vmatmul.mubr.f32.vlgmr.msra.gmra.mrb[48].mxu0 %v3922_v37  ;;  %v11434_v33 = vmul.f32 %v3164_v20, %v11363_v10  ;;  %v11437_v41 = vmul.f32 %v3162_v26, %v11357_v61  ;;  %4107 = vmatmul.mubr.f32.vlgmr.msra.gmra.mrb[48].mxu1 %v3924_v58  ;;  %v3118_v6 = vpop.f32.mrb[21].mxu0  ;;  %v3169_v58 = vpop.f32.mrb[21].mxu1 }
 0x423   : > { %13119 = vst [vmem:[#allocation124_spill] sm:$0xff] %v11431_v30  ;;  %9613 = vmatpush3.bf16.msra.mxu0 %v13122_v36  ;;  %v3117_v25 = vadd.f32 %v3116_v21, %v11192_v62  ;;  %v11442_v53 = vmul.f32 %v3109_v50, %v11372_v13  ;;  %v11445_v37 = vmul.f32 %v3160_v3, %v11375_v31  ;;  %v3120_v30 = vpop.f32.mrb[22].mxu0  ;;  %v3171_v50 = vpop.f32.mrb[22].mxu1 }
 0x424   : > { %13120 = vst [vmem:[#allocation125_spill] sm:$0xff] %v11434_v33  ;;  %13121 = vst [vmem:[#allocation126_spill] sm:$0xff] %v11437_v41  ;;  %9645 = vmatpush3.bf16.msra.mxu1 %v11226_v14  ;;  %v3168_v33 = vadd.f32 %v3167_v38, %v13111_v11  ;;  %4031 = vmatprep.mubr.f32.mxu0 %v3939_v12  ;;  %v3119_v41 = vadd.f32 %v3118_v6, %v13112_v42  ;;  %v3121_v3 = vpop.f32.mrb[23].mxu0  ;;  %v3172_v42 = vpop.f32.mrb[23].mxu1  ;;  %v13142_v50 = vld [vmem:[#allocation102_spill] sm:$0xff] }
 0x425   : > { %13123 = vst [vmem:[#allocation127_spill] sm:$0xff] %v11442_v53  ;;  %13124 = vst [vmem:[#allocation128_spill] sm:$0xff] %v11445_v37  ;;  %v11451_v36 = vmul.f32 %v3113_v16, %v11372_v13  ;;  %4111 = vmatprep.mubr.f32.mxu1 %v3941_v28  ;;  %v3170_v62 = vadd.f32 %v3169_v58, %v13115_v2  ;;  %9615 = vmatprep.subr.bf16.mxu0 %v11228_v39  ;;  %v13139_v28 = vld [vmem:[#allocation101_spill] sm:$0xff]  ;;  %v13153_v53 = vld [vmem:[#allocation108_spill] sm:$0xff] }
 0x426   : > { %v3954_v21 = vmul.f32 %v3117_v25, %v11343_v18  ;;  %v11457_v37 = vmul.f32 %v3117_v25, %v11354_v24  ;;  %9647 = vmatprep.subr.bf16.mxu1 %v11236_v46  ;;  %4032 = vmatmul.mubr.f32.gmra.mrb[50].mxu0 %v3938_v57  ;;  %v3955_v11 = vmul.f32 %v3119_v41, %v11347_v0  ;;  %v11474_v57 = vmul.f32 0.125, %v11379_v48  ;;  %v13140_v58 = vld [vmem:[#allocation93_spill] sm:$0xff] }
 0x427   : > { %13125 = vst [vmem:[#allocation129_spill] sm:$0xff] %v11451_v36  ;;  %v3956_v38 = vmul.f32 %v3168_v33, %v11345_v55  ;;  %v11463_v16 = vmul.f32 %v3119_v41, %v11360_v23  ;;  %4112 = vmatmul.mubr.f32.gmra.mrb[50].mxu1 %v3940_v15  ;;  %9617 = vmatpush3.bf16.msra.mxu0 %v11238_v4  ;;  %v11487_v23 = vmul.f32 0.125, %v11383_v51  ;;  %v13134_v51 = vld [vmem:[#allocation85_spill] sm:$0xff] }
 0x428   : > { %v3957_v2 = vmul.f32 %v3170_v62, %v11351_v60  ;;  %v11468_v18 = vmul.f32 %v3170_v62, %v11363_v10  ;;  %v11471_v24 = vmul.f32 %v3168_v33, %v11357_v61  ;;  %9649 = vmatpush3.bf16.msra.mxu1 %v11240_v27  ;;  %4036 = vmatprep.mubr.f32.mxu0 %v3955_v11  ;;  %v3259_v30 = vpop.f32.mrb[24].mxu1 }
 0x429   : > { %v11478_v55 = vmul.f32 %v3164_v20, %v11375_v31  ;;  %v11481_v0 = vmul.f32 %v3111_v54, %v11366_v7  ;;  %v11484_v60 = vmul.f32 %v3162_v26, %v11369_v59  ;;  %9619 = vmatprep.subr.bf16.mxu0 %v11245_v56  ;;  %v11491_v61 = vmul.f32 %v3119_v41, %v11372_v13  ;;  %v3208_v13 = vpop.f32.mrb[24].mxu0  ;;  %v3261_v11 = vpop.f32.mrb[25].mxu1 }
 0x42a   : > { %13126 = vst [vmem:[#allocation130_spill] sm:$0xff] %v11468_v18  ;;  %13127 = vst [vmem:[#allocation131_spill] sm:$0xff] %v11471_v24  ;;  %4116 = vmatprep.mubr.f32.mxu1 %v3957_v2  ;;  %v11494_v10 = vmul.f32 %v3170_v62, %v11375_v31  ;;  %v11497_v48 = vmul.f32 %v3117_v25, %v11366_v7  ;;  %v11500_v54 = vmul.f32 0.125, %v11388_v1  ;;  %v11503_v26 = vmul.f32 0.125, %v11392_v43  ;;  %v13136_v31 = vld [vmem:[#allocation89_spill] sm:$0xff]  ;;  %v13137_v7 = vld [vmem:[#allocation90_spill] sm:$0xff] }
 0x42b   : > { %13128 = vst [vmem:[#allocation132_spill] sm:$0xff] %v11478_v55  ;;  %13129 = vst [vmem:[#allocation133_spill] sm:$0xff] %v11481_v0  ;;  %v11506_v20 = vmul.f32 0.125, %v13134_v51  ;;  %9651 = vmatprep.subr.bf16.mxu1 %v11247_v17  ;;  %4037 = vmatmul.mubr.f32.gmra.mrb[52].mxu0 %v3954_v21  ;;  %v11510_v6 = vmul.f32 %v3168_v33, %v11369_v59  ;;  %v11513_v12 = vmul.f32 0.125, %v13136_v31  ;;  %v11516_v25 = vmul.f32 0.125, %v13137_v7  ;;  %v13138_v43 = vld [vmem:[#allocation99_spill] sm:$0xff] }
 0x42c   : > { %13130 = vst [vmem:[#allocation134_spill] sm:$0xff] %v11484_v60  ;;  %13131 = vst [vmem:[#allocation135_spill] sm:$0xff] %v11491_v61  ;;  %v11519_v1 = vmul.f32 0.125, %v11294_v40  ;;  %4117 = vmatmul.mubr.f32.gmra.mrb[52].mxu1 %v3956_v38  ;;  %9621 = vmatpush3.bf16.msra.mxu0 %v13138_v43  ;;  %v3209_v15 = vadd.f32 %v3208_v13, %v13139_v28  ;;  %v3210_v41 = vpop.f32.mrb[25].mxu0  ;;  %v11524_v62 = vmul.f32 0.125, %v13140_v58  ;;  %v11527_v59 = vmul.f32 0.125, %v11308_v8 }
 0x42d   : > { %13132 = vst [vmem:[#allocation136_spill] sm:$0xff] %v11494_v10  ;;  %13133 = vst [vmem:[#allocation137_spill] sm:$0xff] %v11497_v48  ;;  %v13141_v33 = vld [vmem:[#allocation100_spill] sm:$0xff]  ;;  %v3260_v3 = vadd.f32 %v3259_v30, %v13142_v50  ;;  %v13143_v21 = vld [vmem:[#allocation103_spill] sm:$0xff]  ;;  %v3212_v42 = vpop.f32.mrb[26].mxu0  ;;  %v3263_v7 = vpop.f32.mrb[26].mxu1 }
 0x42e   : > { %13135 = vst [vmem:[#allocation85_spill] sm:$0xff] %v11510_v6  ;;  %9653 = vmatpush3.bf16.msra.mxu1 %v13141_v33  ;;  %v3211_v40 = vadd.f32 %v3210_v41, %v13143_v21  ;;  %v13144_v38 = vld [vmem:[#allocation105_spill] sm:$0xff]  ;;  %v11534_v2 = vmul.f32 %v3209_v15, %v11474_v57  ;;  %v11537_v51 = vmul.f32 %v3209_v15, %v11506_v20  ;;  %v13147_v8 = vld [vmem:[#allocation104_spill] sm:$0xff]  ;;  %v13148_v58 = vld [vmem:[#allocation106_spill] sm:$0xff]  ;;  %v3214_v30 = vpop.f32.mrb[27].mxu0  ;;  %v3265_v61 = vpop.f32.mrb[27].mxu1 }
 0x42f   : > { %9623 = vmatprep.subr.bf16.mxu0 %v13144_v38  ;;  %v11540_v13 = vmul.f32 %v3209_v15, %v11519_v1  ;;  %v3262_v31 = vadd.f32 %v3261_v11, %v13147_v8  ;;  %9655 = vmatprep.subr.bf16.mxu1 %v13148_v58  ;;  %v11545_v41 = vmul.f32 %v3260_v3, %v11487_v23  ;;  %v13151_v60 = vld [vmem:[#allocation107_spill] sm:$0xff] }
 0x430   : > { %13145 = vst [vmem:[#allocation89_spill] sm:$0xff] %v11537_v51  ;;  %v11548_v6 = vmul.f32 %v3260_v3, %v11513_v12  ;;  %v11551_v48 = vmul.f32 %v3260_v3, %v11527_v59  ;;  %v3213_v10 = vadd.f32 %v3212_v42, %v13139_v28  ;;  %v3264_v15 = vadd.f32 %v3263_v7, %v13142_v50  ;;  %v13152_v55 = vld [vmem:[#allocation111_spill] sm:$0xff]  ;;  %v3269_v24 = vpop.f32.mrb[28].mxu1 }
 0x431   : > { %13146 = vst [vmem:[#allocation90_spill] sm:$0xff] %v11540_v13  ;;  %v3215_v11 = vadd.f32 %v3214_v30, %v13143_v21  ;;  %v3266_v13 = vadd.f32 %v3265_v61, %v13147_v8  ;;  %9625 = vmatpush3.bf16.msra.mxu0 %v13151_v60  ;;  %v3927_v0 = vmul.f32 %v3211_v40, %v11500_v54  ;;  %v2811_v36 = vmul.f32 0.125, %v13152_v55  ;;  %v13155_v30 = vld [vmem:[#allocation110_spill] sm:$0xff] }
 0x432   : > { %13149 = vst [vmem:[#allocation101_spill] sm:$0xff] %v11548_v6  ;;  %13150 = vst [vmem:[#allocation93_spill] sm:$0xff] %v11551_v48  ;;  %9657 = vmatpush3.bf16.msra.mxu1 %v13153_v53  ;;  %v13154_v6 = vld [vmem:[#allocation109_spill] sm:$0xff]  ;;  %v3929_v3 = vmul.f32 %v3262_v31, %v11503_v26  ;;  %v11564_v42 = vmul.f32 %v3213_v10, %v11474_v57  ;;  %v11567_v7 = vmul.f32 %v3211_v40, %v11516_v25  ;;  %v3218_v53 = vpop.f32.mrb[28].mxu0 }
 0x433   : > { %9627 = vmatprep.subr.bf16.mxu0 %v13154_v6  ;;  %v2813_v61 = vmul.f32 0.125, %v11319_v22  ;;  %4186 = vmatprep.mubr.f32.mxu0 %v3927_v0  ;;  %v11572_v48 = vmul.f32 %v3215_v11, %v11500_v54  ;;  %v11575_v55 = vmul.f32 %v3266_v13, %v11503_v26  ;;  %v11578_v51 = vmul.f32 %v3264_v15, %v11487_v23  ;;  %v3220_v17 = vpop.f32.mrb[29].mxu0 }
 0x434   : > { %9659 = vmatprep.subr.bf16.mxu1 %v13155_v30  ;;  %4266 = vmatprep.mubr.f32.mxu1 %v3929_v3  ;;  %v11581_v58 = vmul.f32 %v3262_v31, %v11524_v62  ;;  %v11584_v33 = vmul.f32 %v3215_v11, %v11516_v25  ;;  %v11587_v22 = vmul.f32 %v3213_v10, %v11506_v20 }
 0x435   : > { %v11590_v0 = vmul.f32 %v3266_v13, %v11524_v62  ;;  %9629 = vmatpush3.bf16.msra.mxu0 %v11321_v29  ;;  %v3219_v30 = vadd.f32 %v3218_v53, %v13139_v28  ;;  %v11595_v3 = vmul.f32 %v3264_v15, %v11513_v12  ;;  %v11597_v27 = vmul.f32 %v3211_v40, %v2811_v36  ;;  %v3222_v53 = vpop.f32.mrb[30].mxu0 }
 0x436   : > { %13156 = vst [vmem:[#allocation102_spill] sm:$0xff] %v11581_v58  ;;  %13157 = vst [vmem:[#allocation103_spill] sm:$0xff] %v11584_v33  ;;  %v11599_v58 = vmul.f32 %v3262_v31, %v2813_v61  ;;  %9661 = vmatpush3.bf16.msra.mxu1 %v11323_v34  ;;  %v3271_v33 = vpop.f32.mrb[29].mxu1  ;;  %9631 = vmatprep.subr.bf16.mxu0 %v11327_v32  ;;  %v11605_v28 = vmul.f32 %v3215_v11, %v2811_v36  ;;  %v3223_v40 = vpop.f32.mrb[31].mxu0 }
 0x437   : > { %13158 = vst [vmem:[#allocation104_spill] sm:$0xff] %v11587_v22  ;;  %13159 = vst [vmem:[#allocation111_spill] sm:$0xff] %v11590_v0  ;;  %v3270_v22 = vadd.f32 %v3269_v24, %v13142_v50  ;;  %v3221_v0 = vadd.f32 %v3220_v17, %v13143_v21  ;;  %9663 = vmatprep.subr.bf16.mxu1 %v11329_v52  ;;  %v3273_v31 = vpop.f32.mrb[30].mxu1  ;;  %v11613_v24 = vmul.f32 %v3266_v13, %v2813_v61  ;;  %v3888_v17 = vld [vmem:[%s13023_s23 + $0x3f0] sm:$0xff]  ;;  %v3889_v50 = vld [vmem:[%s13023_s23 + $0x3f8] sm:$0xff] }
 0x438   : > { %13160 = vst [vmem:[#allocation138_spill] sm:$0xff] %v11595_v3  ;;  %13161 = vst [vmem:[#allocation139_spill] sm:$0xff] %v11597_v27  ;;  %v3272_v3 = vadd.f32 %v3271_v33, %v13147_v8  ;;  %v11611_v27 = vmul.f32 %v3219_v30, %v11506_v20  ;;  %v3274_v21 = vpop.f32.mrb[31].mxu1  ;;  %v11631_v53 = vmul.f32 %v3213_v10, %v11519_v1 }
 0x439   : > { %13162 = vst [vmem:[#allocation140_spill] sm:$0xff] %v11599_v58  ;;  %13163 = vst [vmem:[#allocation141_spill] sm:$0xff] %v11605_v28  ;;  %v3958_v58 = vmul.f32 %v3219_v30, %v11474_v57  ;;  %v3959_v11 = vmul.f32 %v3221_v0, %v11500_v54  ;;  %v3960_v33 = vmul.f32 %v3270_v22, %v11487_v23  ;;  %9633 = vmatpush3.bf16.msra.mxu0 %v11331_v5  ;;  %v3840_v54 = vld [vmem:[%s13023_s23 + $0x270] sm:$0xff]  ;;  %v3893_v28 = vld [vmem:[%s13178_s12 + $0x18] sm:$0xff] }
 0x43a   : > { %13164 = vst [vmem:[#allocation142_spill] sm:$0xff] %v11611_v27  ;;  %13165 = vst [vmem:[#allocation143_spill] sm:$0xff] %v11613_v24  ;;  %v11620_v8 = vmul.f32 %v3221_v0, %v11516_v25  ;;  %v11623_v57 = vmul.f32 %v3270_v22, %v11513_v12  ;;  %v3961_v20 = vmul.f32 %v3272_v3, %v11503_v26  ;;  %9665 = vmatpush3.bf16.msra.mxu1 %v11333_v19  ;;  %v3841_v12 = vld [vmem:[%s13023_s23 + $0x278] sm:$0xff]  ;;  %v3899_v24 = vld [vmem:[%s13178_s12 + $0x48] sm:$0xff] }
 0x43b   : > { %v11628_v13 = vmul.f32 %v3272_v3, %v11524_v62  ;;  %13169 = vst [vmem:[#allocation147_spill] sm:$0xff] %v11631_v53  ;;  %v11634_v23 = vmul.f32 %v3264_v15, %v11527_v59  ;;  %9635 = vmatprep.subr.bf16.mxu0 %v11335_v44  ;;  %v11640_v25 = vmul.f32 %v3221_v0, %v2811_v36  ;;  %v3872_v62 = vld [vmem:[%s13023_s23 + $0x370] sm:$0xff]  ;;  %v3873_v15 = vld [vmem:[%s13023_s23 + $0x378] sm:$0xff]  ;;  %v11658_v36 = vpop.f32.mrb[32].mxu0  ;;  %v3891_v53 = vld [vmem:[%s13178_s12 + $0x8] sm:$0xff] }
 0x43c   : > { %13166 = vst [vmem:[#allocation144_spill] sm:$0xff] %v11620_v8  ;;  %13167 = vst [vmem:[#allocation145_spill] sm:$0xff] %v11623_v57  ;;  %v11642_v40 = vmul.f32 %v3272_v3, %v2813_v61  ;;  %v11645_v26 = vmul.f32 %v3219_v30, %v11519_v1  ;;  %9667 = vmatprep.subr.bf16.mxu1 %v11337_v35  ;;  %v11648_v10 = vpack.c.bf16 %v3889_v50, %v3888_v17  ;;  %v11664_v61 = vpop.f32.mrb[33].mxu0  ;;  %v11666_v30 = vpop.f32.mrb[32].mxu1  ;;  %v3898_v27 = vld [vmem:[%s13178_s12 + $0x40] sm:$0xff] }
 0x43d   : > { %13168 = vst [vmem:[#allocation146_spill] sm:$0xff] %v11628_v13  ;;  %13170 = vst [vmem:[#allocation148_spill] sm:$0xff] %v11634_v23  ;;  %v11653_v31 = vmul.f32 %v3270_v22, %v11527_v59  ;;  %9637 = vmatpush3.bf16.msra.mxu0 %v11339_v45  ;;  %v11656_v21 = vpack.c.bf16 %v3841_v12, %v3840_v54  ;;  %v11662_v1 = vpack.c.bf16 %v3873_v15, %v3872_v62  ;;  %v11669_v59 = vpop.f32.mrb[34].mxu0  ;;  %v11671_v22 = vpop.f32.mrb[33].mxu1  ;;  %v3890_v13 = vld [vmem:[%s13178_s12] sm:$0xff] }
 0x43e   : > { %13171 = vst [vmem:[#allocation149_spill] sm:$0xff] %v11640_v25  ;;  %13172 = vst [vmem:[#allocation150_spill] sm:$0xff] %v11642_v40  ;;  %9669 = vmatpush3.bf16.msra.mxu1 %v11341_v9  ;;  %9639 = vmatprep.subr.bf16.mxu0 %v11349_v49  ;;  %v11673_v0 = vpop.f32.mrb[35].mxu0  ;;  %v11675_v3 = vpop.f32.mrb[34].mxu1  ;;  %v11722_v57 = vpack.c.bf16 %v3899_v24, %v3891_v53  ;;  %v11727_v8 = vpack.c.bf16 %v3898_v27, %v3890_v13  ;;  %v3905_v24 = vld [vmem:[%s13178_s12 + $0x78] sm:$0xff]  ;;  %v12869_v53 = vmov 0.0  }
 0x43f   : > { %13173 = vst [vmem:[#allocation151_spill] sm:$0xff] %v11645_v26  ;;  %13174 = vst [vmem:[#allocation152_spill] sm:$0xff] %v11648_v10  ;;  %9671 = vmatprep.subr.bf16.mxu1 %v11648_v10  ;;  %v11678_v17 = vpop.f32.mrb[35].mxu1  ;;  %v3892_v10 = vld [vmem:[%s13178_s12 + $0x10] sm:$0xff] }
 0x440   : > { %13175 = vst [vmem:[#allocation153_spill] sm:$0xff] %v11653_v31  ;;  %13176 = vst [vmem:[#allocation154_spill] sm:$0xff] %v11656_v21 }
 0x441   : > { %13177 = vst [vmem:[#allocation155_spill] sm:$0xff] %v11662_v1  ;;  %9641 = vmatpush3.bf16.msra.mxu0 %v11656_v21  ;;  %v11684_v50 = vpop.f32.mrb[36].mxu0  ;;  %v11689_v12 = vpop.f32.mrb[36].mxu1  ;;  %13179 = vst [vmem:[#allocation156_spill] sm:$0xff] %v11722_v57 }
 0x442   : > { %9673 = vmatpush3.bf16.msra.mxu1 %v11662_v1  ;;  %v11687_v54 = vpop.f32.mrb[37].mxu0  ;;  %v11691_v15 = vpop.f32.mrb[37].mxu1  ;;  %v3901_v1 = vld [vmem:[%s13178_s12 + $0x58] sm:$0xff]  ;;  %13180 = vst [vmem:[#allocation157_spill] sm:$0xff] %v11727_v8  ;;  %9675 = vmatprep.subr.bf16.mxu0 %v11722_v57 }
 0x443   : > { %v3582_v62 = vpop.f32.mrb[38].mxu0  ;;  %v3633_v26 = vpop.f32.mrb[38].mxu1 }
 0x444   : > { %4187 = vmatmul.mubr.f32.vlgmr.msra.gmra.mrb[54].mxu0 %v11534_v2  ;;  %v3583_v31 = vpop.f32.mrb[39].mxu0  ;;  %v3634_v2 = vpop.f32.mrb[39].mxu1 }
 0x445   : > { %4267 = vmatmul.mubr.f32.vlgmr.msra.gmra.mrb[54].mxu1 %v11545_v41  ;;  %4191 = vmatprep.mubr.f32.mxu0 %v11572_v48 }
 0x446   : > { %4271 = vmatprep.mubr.f32.mxu1 %v11575_v55  ;;  %9677 = vmatpush1.bf16.msra.mxu0 %v11727_v8 }
 0x448   : > { %4192 = vmatmul.mubr.f32.gmra.mrb[56].mxu0 %v11564_v42 }
 0x449   : > { %4272 = vmatmul.mubr.f32.gmra.mrb[56].mxu1 %v11578_v51  ;;  %4196 = vmatprep.mubr.f32.mxu0 %v3959_v11  ;;  %v11695_v48 = vpop.f32.mrb[40].mxu0  ;;  %v11701_v62 = vpop.f32.mrb[40].mxu1 }
 0x44a   : > { %4276 = vmatprep.mubr.f32.mxu1 %v3961_v20  ;;  %v11697_v41 = vpop.f32.mrb[41].mxu0  ;;  %v11705_v51 = vpop.f32.mrb[41].mxu1 }
 0x44b   : > { %v11699_v55 = vpop.f32.mrb[42].mxu0  ;;  %v11707_v11 = vpop.f32.mrb[42].mxu1 }
 0x44c   : > { %4197 = vmatmul.mubr.f32.gmra.mrb[58].mxu0 %v3958_v58  ;;  %v11703_v42 = vpop.f32.mrb[43].mxu0  ;;  %v11709_v58 = vpop.f32.mrb[43].mxu1 }
 0x44d   : > { %4277 = vmatmul.mubr.f32.gmra.mrb[58].mxu1 %v3960_v33  ;;  %4374 = vmatprep.mubr.f32.mxu0 %v12869_v53 }
 0x44e   : > { %4469 = vmatprep.mubr.f32.mxu1 %v12869_v53 }
 0x451   : > { %v11711_v33 = vpop.f32.mrb[44].mxu0  ;;  %v11715_v31 = vpop.f32.mrb[44].mxu1 }
 0x452   : > { %v11713_v20 = vpop.f32.mrb[45].mxu0  ;;  %v11717_v40 = vpop.f32.mrb[45].mxu1 }
 0x453   : > { %v3684_v26 = vpop.f32.mrb[46].mxu0  ;;  %v3735_v25 = vpop.f32.mrb[46].mxu1 }
 0x454   : > { %v3685_v2 = vpop.f32.mrb[47].mxu0  ;;  %v3736_v23 = vpop.f32.mrb[47].mxu1  ;;  %v11729_v26 = vpack.c.bf16 %v3901_v1, %v3893_v28 }
 0x455   : > { %v3900_v2 = vld [vmem:[%s13178_s12 + $0x50] sm:$0xff]  ;;  %v3897_v23 = vld [vmem:[%s13178_s12 + $0x38] sm:$0xff] }
 0x456   : > { %13181 = vst [vmem:[#allocation158_spill] sm:$0xff] %v11729_v26  ;;  %v11734_v25 = vpack.c.bf16 %v3900_v2, %v3892_v10  ;;  %10014 = vmatprep.subr.bf16.mxu1 %v11729_v26  ;;  %v11742_v27 = vpack.c.bf16 %v3905_v24, %v3897_v23  ;;  %9679 = vmatprep.subr.bf16.mxu0 %v11729_v26 }
 0x458   : > { %13182 = vst [vmem:[#allocation159_spill] sm:$0xff] %v11734_v25  ;;  %10015 = vmatpush1.bf16.msra.mxu1 %v11734_v25  ;;  %13183 = vst [vmem:[#allocation160_spill] sm:$0xff] %v11742_v27 }
 0x459   : > { %9687 = vmatprep.subr.bf16.mxu1 %v11742_v27 }
 0x4f5   : > { %v8593_v28 = vpop.f32.mrb[48].mxu0  ;;  %v8634_v13 = vpop.f32.mrb[48].mxu1 }
 0x4f6   : > { %v8594_v10 = vpop.f32.mrb[49].mxu0  ;;  %v8635_v2 = vpop.f32.mrb[49].mxu1 }
 0x4f7   : > { %v8595_v1 = vadd.f32 %v8594_v10, %v8593_v28  ;;  %v8636_v9 = vadd.f32 %v8635_v2, %v8634_v13 }
 0x4f9   : > { %v8596_v8 = vpop.f32.mrb[50].mxu0  ;;  %v4109_v35 = vadd.f32 %v8636_v9, %v8595_v1 }
 0x4fa   : > { %v8637_v19 = vpop.f32.mrb[50].mxu1  ;;  %v8597_v57 = vpop.f32.mrb[51].mxu0 }
 0x4fb   : > { %v8598_v21 = vadd.f32 %v8597_v57, %v8596_v8  ;;  %v8638_v52 = vpop.f32.mrb[51].mxu1 }
 0x4fc   : > { %v8639_v23 = vadd.f32 %v8638_v52, %v8637_v19 }
 0x4fe   : > { %v8599_v24 = vpop.f32.mrb[52].mxu0  ;;  %v4114_v34 = vadd.f32 %v8639_v23, %v8598_v21 }
 0x4ff   : > { %v8640_v53 = vpop.f32.mrb[52].mxu1  ;;  %v8600_v49 = vpop.f32.mrb[53].mxu0 }
 0x500   : > { %v8601_v26 = vadd.f32 %v8600_v49, %v8599_v24  ;;  %v8641_v45 = vpop.f32.mrb[53].mxu1 }
 0x501   : > { %v8642_v27 = vadd.f32 %v8641_v45, %v8640_v53 }
 0x503   : > { %v4119_v44 = vadd.f32 %v8642_v27, %v8601_v26 }
 0x517   : > { %v8675_v5 = vpop.f32.mrb[54].mxu0 }
 0x518   : > { %v8716_v32 = vpop.f32.mrb[54].mxu1  ;;  %v8676_v28 = vpop.f32.mrb[55].mxu0 }
 0x519   : > { %v8677_v10 = vadd.f32 %v8676_v28, %v8675_v5  ;;  %v8717_v13 = vpop.f32.mrb[55].mxu1 }
 0x51a   : > { %v8718_v2 = vadd.f32 %v8717_v13, %v8716_v32 }
 0x51b   : > { %v4189_v9 = vadd.f32 %v8677_v10, %v4109_v35  ;;  %v8678_v1 = vpop.f32.mrb[56].mxu0 }
 0x51c   : > { %v8719_v29 = vpop.f32.mrb[56].mxu1  ;;  %v8679_v8 = vpop.f32.mrb[57].mxu0 }
 0x51d   : > { %v4269_v57 = vadd.f32 %v8718_v2, %v4189_v9  ;;  %v8680_v19 = vadd.f32 %v8679_v8, %v8678_v1  ;;  %v8720_v52 = vpop.f32.mrb[57].mxu1 }
 0x51e   : > { %v8721_v21 = vadd.f32 %v8720_v52, %v8719_v29  ;;  %v3903_v52 = vld [vmem:[%s13178_s12 + $0x68] sm:$0xff] }
 0x51f   : > { %v4194_v23 = vadd.f32 %v8680_v19, %v4114_v34  ;;  %v8681_v18 = vpop.f32.mrb[58].mxu0  ;;  %v3895_v19 = vld [vmem:[%s13178_s12 + $0x28] sm:$0xff] }
 0x520   : > { %v8722_v49 = vpop.f32.mrb[58].mxu1  ;;  %v8682_v24 = vpop.f32.mrb[59].mxu0 }
 0x521   : > { %v4274_v45 = vadd.f32 %v8721_v21, %v4194_v23  ;;  %v8683_v26 = vadd.f32 %v8682_v24, %v8681_v18  ;;  %v8723_v53 = vpop.f32.mrb[59].mxu1 }
 0x522   : > { %v8724_v27 = vadd.f32 %v8723_v53, %v8722_v49  ;;  %v11756_v53 = vld [vmem:[%s10618_s9 + $0xc0] sm:$0xff]  }
 0x523   : > { %v4282_v6 = vmax.f32 %v4269_v57, %v4274_v45  ;;  %v4199_v5 = vadd.f32 %v8683_v26, %v4119_v44  ;;  %v11753_v26 = vpack.c.bf16 %v3903_v52, %v3895_v19  ;;  %13185 = vst [vmem:[#allocation162_spill] sm:$0xff] %v11756_v53  ;;  %v11841_v19 = vld [vmem:[%s10618_s9 + $0xd0] sm:$0xff]  }
 0x524   : > { %13199 = vst [vmem:[#allocation175_spill] sm:$0xff] %v11841_v19  ;;  %v11845_v52 = vld [vmem:[%s10618_s9 + $0x90] sm:$0xff]  }
 0x525   : > { %v4279_v28 = vadd.f32 %v8724_v27, %v4199_v5  ;;  %13184 = vst [vmem:[#allocation161_spill] sm:$0xff] %v11753_v26  ;;  %v13186_v27 = vmov 0.0   ;;  %v11765_v5 = vld [vmem:[%s10618_s9 + $0x80] sm:$0xff]   ;;  %13200 = vst [vmem:[#allocation176_spill] sm:$0xff] %v11845_v52 }
 0x526   : > { %13187 = vst [vmem:[#allocation163_spill] sm:$0xff] %v11765_v5 }
 0x527   : > { %v4283_v32 = vmax.f32 %v4282_v6, %v4279_v28  ;;  %v3896_v6 = vld [vmem:[%s13178_s12 + $0x30] sm:$0xff] }
 0x529   : > { %v4284_v35 = vsub.f32 %v4269_v57, %v4283_v32  ;;  %v4287_v10 = vsub.f32 %v4274_v45, %v4283_v32  ;;  %v4290_v13 = vsub.f32 %v4279_v28, %v4283_v32  ;;  %v3904_v57 = vld [vmem:[%s13178_s12 + $0x70] sm:$0xff]  ;;  %v11770_v28 = vld [vmem:[%s10618_s9 + $0xc8] sm:$0xff]   ;;  %v3894_v32 = vld [vmem:[%s13178_s12 + $0x20] sm:$0xff] }
 0x52a   : > { %v11751_v23 = vpack.c.bf16 %v3904_v57, %v3896_v6  ;;  %13188 = vst [vmem:[#allocation164_spill] sm:$0xff] %v11770_v28  ;;  %v11834_v6 = vld [vmem:[%s10618_s9 + $0x60] sm:$0xff]  }
 0x52b   : > { %v4285_v29 = vmul.f32 1.442695, %v4284_v35  ;;  %v4288_v34 = vmul.f32 1.442695, %v4287_v10  ;;  %v4291_v2 = vmul.f32 1.442695, %v4290_v13 }
 0x52c   : > { %v3902_v35 = vld [vmem:[%s13178_s12 + $0x60] sm:$0xff]  ;;  %v11780_v10 = vld [vmem:[%s10618_s9 + $0x88] sm:$0xff]   ;;  %13197 = vst [vmem:[#allocation173_spill] sm:$0xff] %v11834_v6 }
 0x52d   : > { %10186 = vpow2.f32 %v4285_v29  ;;  %13189 = vst [vmem:[#allocation165_spill] sm:$0xff] %v11780_v10  ;;  %v11787_v13 = vpack.c.bf16 %v3902_v35, %v3894_v32  ;;  %v11790_v29 = vld [vmem:[%s10618_s9 + $0x40] sm:$0xff]   ;;  %v11865_v32 = vld [vmem:[%s10618_s9 + $0x70] sm:$0xff]  }
 0x52e   : > { %10188 = vpow2.f32 %v4288_v34  ;;  %v11801_v34 = vld [vmem:[%s10618_s9] sm:$0xff]   ;;  %13205 = vst [vmem:[#allocation181_spill] sm:$0xff] %v11865_v32  ;;  %v11869_v35 = vld [vmem:[%s10618_s9 + $0x30] sm:$0xff]  }
 0x52f   : > { %10190 = vpow2.f32 %v4291_v2  ;;  %13190 = vst [vmem:[#allocation166_spill] sm:$0xff] %v11801_v34  ;;  %v11804_v2 = vld [vmem:[%s10618_s9 + $0x48] sm:$0xff]   ;;  %v11837_v57 = vld [vmem:[%s10618_s9 + $0x20] sm:$0xff]   ;;  %13206 = vst [vmem:[#allocation182_spill] sm:$0xff] %v11869_v35 }
 0x530   : > { %13191 = vst [vmem:[#allocation167_spill] sm:$0xff] %v11804_v2  ;;  %13198 = vst [vmem:[#allocation174_spill] sm:$0xff] %v11837_v57 }
 0x537   : > { %v10187_v18 = vpop.eup %10186 }
 0x538   : > { %v10189_v9 = vpop.eup %10188 }
 0x539   : > { %v4293_v1 = vadd.f32 %v10189_v9, %v10187_v18  ;;  %v10191_v44 = vpop.eup %10190 }
 0x53b   : > { %v4294_v8 = vadd.f32 %v10191_v44, %v4293_v1  ;;  %v11820_v1 = vld [vmem:[%s10618_s9 + $0x10] sm:$0xff]  }
 0x53c   : > { %13194 = vst [vmem:[#allocation170_spill] sm:$0xff] %v11820_v1 }
 0x53d   : > { %10192 = vrcp.f32 %v4294_v8  ;;  %v11829_v8 = vld [vmem:[%s10618_s9 + $0x18] sm:$0xff]  }
 0x53e   : > { %13196 = vst [vmem:[#allocation172_spill] sm:$0xff] %v11829_v8 }
 0x547   : > { %v10193_v21 = vpop.eup %10192 }
 0x548   : > { %v4299_v49 = vmul.f32 %v10193_v21, %v10191_v44  ;;  %v4297_v24 = vmul.f32 %v10193_v21, %v10187_v18  ;;  %v4298_v45 = vmul.f32 %v10193_v21, %v10189_v9  ;;  %v11810_v18 = vld [vmem:[%s10618_s9 + $0x8] sm:$0xff]   ;;  %v11814_v9 = vld [vmem:[%s10618_s9 + $0x50] sm:$0xff]   ;;  %v11824_v44 = vld [vmem:[%s10618_s9 + $0x58] sm:$0xff]  }
 0x549   : > { %13192 = vst [vmem:[#allocation168_spill] sm:$0xff] %v11810_v18  ;;  %13193 = vst [vmem:[#allocation169_spill] sm:$0xff] %v11814_v9  ;;  %v11849_v21 = vld [vmem:[%s10618_s9 + $0x68] sm:$0xff]  }
 0x54a   : > { %8381 = vmatmul.mubr.msk.f32.vlgmr.msra.gmra.mrb[60].mxu0 %vm4300_vm6, %v4297_v24  ;;  %8386 = vmatmul.mubr.msk.f32.vlgmr.msra.gmra.mrb[60].mxu1 %vm4300_vm6, %v4299_v49  ;;  %13195 = vst [vmem:[#allocation171_spill] sm:$0xff] %v11824_v44  ;;  %13201 = vst [vmem:[#allocation177_spill] sm:$0xff] %v11849_v21 }
 0x54b   : > { %9681 = vmatpush1.bf16.msra.mxu0 %v11734_v25  ;;  %9689 = vmatpush1.bf16.msra.mxu1 %v11751_v23 }
 0x54c   : > { %4380 = vmatprep.mubr.f32.mxu0 %v13186_v27  ;;  %4623 = vmatprep.mubr.f32.mxu1 %v13186_v27 }
 0x54d   : > { %9683 = vmatprep.subr.bf16.mxu0 %v11753_v26  ;;  %8747 = vmatprep.subr.bf16.mxu1 %v11756_v53 }
 0x54e   : > { %8382 = vmatmul.mubr.msk.f32.gmra.mrb[62].mxu0 %vm4300_vm6, %v4298_v45  ;;  %8390 = vmatmul.mubr.msk.f32.vlgmr.msra.gmra.mrb[62].mxu1 %vm4300_vm6, %v4297_v24 }
 0x54f   : > { %4386 = vmatprep.mubr.f32.mxu0 %v13186_v27  ;;  %4629 = vmatprep.mubr.f32.mxu1 %v13186_v27 }
 0x550   : > { %8748 = vmatpush3.bf16.msra.mxu1 %v11765_v5 }
 0x551   : > { %8749 = vmatprep.subr.bf16.mxu1 %v11770_v28 }
 0x552   : > { %8383 = vmatmul.mubr.msk.f32.gmra.mrb[64].mxu0 %vm4300_vm6, %v4299_v49  ;;  %8391 = vmatmul.mubr.msk.f32.gmra.mrb[64].mxu1 %vm4300_vm6, %v4298_v45 }
 0x553   : > { %4457 = vmatprep.mubr.f32.mxu0 %v13186_v27  ;;  %4635 = vmatprep.mubr.f32.mxu1 %v13186_v27 }
 0x554   : > { %8750 = vmatpush3.bf16.msra.mxu1 %v11780_v10 }
 0x555   : > { %8751 = vmatprep.subr.bf16.mxu1 %v11841_v19 }
 0x556   : > { %8384 = vmatmul.mubr.msk.f32.vlgmr.msra.gmra.mrb[66].mxu0 %vm4300_vm6, %v4297_v24  ;;  %8392 = vmatmul.mubr.msk.f32.gmra.mrb[66].mxu1 %vm4300_vm6, %v4299_v49 }
 0x557   : > { %4463 = vmatprep.mubr.f32.mxu0 %v13186_v27  ;;  %9685 = vmatpush1.bf16.msra.mxu0 %v11787_v13 }
 0x558   : > { %8725 = vmatprep.subr.bf16.mxu0 %v11790_v29  ;;  %8752 = vmatpush3.bf16.msra.mxu1 %v11845_v52 }
 0x55a   : > { %8385 = vmatmul.mubr.msk.f32.gmra.mrb[68].mxu0 %vm4300_vm6, %v4298_v45 }
 0x55b   : > { %4540 = vmatprep.mubr.f32.mxu0 %v13186_v27 }
 0x55e   : > { %8387 = vmatmul.mubr.msk.f32.vlgmr.msra.gmra.mrb[70].mxu0 %vm4300_vm6, %v4297_v24  ;;  %v11857_v24 = vld [vmem:[%s10618_s9 + $0xd8] sm:$0xff]  }
 0x55f   : > { %4546 = vmatprep.mubr.f32.mxu0 %v13186_v27  ;;  %8726 = vmatpush3.bf16.msra.mxu0 %v11801_v34  ;;  %13203 = vst [vmem:[#allocation179_spill] sm:$0xff] %v11857_v24 }
 0x560   : > { %8727 = vmatprep.subr.bf16.mxu0 %v11804_v2  ;;  %8753 = vmatprep.subr.bf16.mxu1 %v11857_v24 }
 0x562   : > { %8388 = vmatmul.mubr.msk.f32.gmra.mrb[72].mxu0 %vm4300_vm6, %v4298_v45  ;;  %v11861_v45 = vld [vmem:[%s10618_s9 + $0x98] sm:$0xff]  }
 0x563   : > { %4552 = vmatprep.mubr.f32.mxu0 %v13186_v27  ;;  %8728 = vmatpush3.bf16.msra.mxu0 %v11810_v18  ;;  %13204 = vst [vmem:[#allocation180_spill] sm:$0xff] %v11861_v45 }
 0x564   : > { %8729 = vmatprep.subr.bf16.mxu0 %v11814_v9  ;;  %8754 = vmatpush3.bf16.msra.mxu1 %v11861_v45  ;;  %v11913_v45 = vld [vmem:[%s10618_s9 + $0xb8] sm:$0xff]  }
 0x565   : > { %13217 = vst [vmem:[#allocation193_spill] sm:$0xff] %v11913_v45  ;;  %v13225_v9 = vld [vmem:[#allocation81_spill] sm:$0xff] }
 0x566   : > { %8389 = vmatmul.mubr.msk.f32.gmra.mrb[74].mxu0 %vm4300_vm6, %v4299_v49  ;;  %v11853_v49 = vld [vmem:[%s10618_s9 + $0x28] sm:$0xff]  }
 0x567   : > { %8730 = vmatpush3.bf16.msra.mxu0 %v11820_v1  ;;  %13202 = vst [vmem:[#allocation178_spill] sm:$0xff] %v11853_v49  ;;  %v13222_v1 = vld [vmem:[#allocation79_spill] sm:$0xff] }
 0x568   : > { %8731 = vmatprep.subr.bf16.mxu0 %v11824_v44 }
 0x56b   : > { %8732 = vmatpush3.bf16.msra.mxu0 %v11829_v8  ;;  %v13221_v8 = vld [vmem:[#allocation78_spill] sm:$0xff] }
 0x56c   : > { %8733 = vmatprep.subr.bf16.mxu0 %v11834_v6  ;;  %v11885_v6 = vld [vmem:[%s10618_s9 + $0x38] sm:$0xff]  }
 0x56d   : > { %13210 = vst [vmem:[#allocation186_spill] sm:$0xff] %v11885_v6 }
 0x56f   : > { %8734 = vmatpush3.bf16.msra.mxu0 %v11837_v57  ;;  %v11881_v57 = vld [vmem:[%s10618_s9 + $0x78] sm:$0xff]  }
 0x570   : > { %8735 = vmatprep.subr.bf16.mxu0 %v11849_v21  ;;  %v11873_v21 = vld [vmem:[%s10618_s9 + $0xe0] sm:$0xff]   ;;  %13209 = vst [vmem:[#allocation185_spill] sm:$0xff] %v11881_v57 }
 0x571   : > { %13207 = vst [vmem:[#allocation183_spill] sm:$0xff] %v11873_v21  ;;  %8755 = vmatprep.subr.bf16.mxu1 %v11873_v21  ;;  %v11897_v21 = vld [vmem:[%s10618_s9 + $0x140] sm:$0xff]  }
 0x572   : > { %13213 = vst [vmem:[#allocation189_spill] sm:$0xff] %v11897_v21 }
 0x573   : > { %8736 = vmatpush3.bf16.msra.mxu0 %v11853_v49  ;;  %v11877_v49 = vld [vmem:[%s10618_s9 + $0xa0] sm:$0xff]  }
 0x574   : > { %8737 = vmatprep.subr.bf16.mxu0 %v11865_v32  ;;  %13208 = vst [vmem:[#allocation184_spill] sm:$0xff] %v11877_v49  ;;  %8756 = vmatpush3.bf16.msra.mxu1 %v11877_v49  ;;  %v11889_v32 = vld [vmem:[%s10618_s9 + $0xe8] sm:$0xff]   ;;  %v11902_v49 = vld [vmem:[%s10618_s9 + $0xf0] sm:$0xff]  }
 0x575   : > { %13211 = vst [vmem:[#allocation187_spill] sm:$0xff] %v11889_v32  ;;  %8757 = vmatprep.subr.bf16.mxu1 %v11889_v32  ;;  %13214 = vst [vmem:[#allocation190_spill] sm:$0xff] %v11902_v49  ;;  %v11918_v32 = vld [vmem:[%s10618_s9 + $0x1c0] sm:$0xff]  }
 0x576   : > { %13218 = vst [vmem:[#allocation194_spill] sm:$0xff] %v11918_v32 }
 0x577   : > { %8738 = vmatpush3.bf16.msra.mxu0 %v11869_v35  ;;  %v11893_v35 = vld [vmem:[%s10618_s9 + $0xa8] sm:$0xff]  }
 0x578   : > { %8739 = vmatprep.subr.bf16.mxu0 %v11881_v57  ;;  %13212 = vst [vmem:[#allocation188_spill] sm:$0xff] %v11893_v35  ;;  %8758 = vmatpush3.bf16.msra.mxu1 %v11893_v35  ;;  %v11905_v57 = vld [vmem:[%s10618_s9 + $0xb0] sm:$0xff]  }
 0x579   : > { %13215 = vst [vmem:[#allocation191_spill] sm:$0xff] %v11905_v57  ;;  %8759 = vmatprep.subr.bf16.mxu1 %v11902_v49  ;;  %v13220_v35 = vld [vmem:[#allocation76_spill] sm:$0xff] }
 0x57b   : > { %8740 = vmatpush3.bf16.msra.mxu0 %v11885_v6  ;;  %v11910_v6 = vld [vmem:[%s10618_s9 + $0xf8] sm:$0xff]  }
 0x57c   : > { %8769 = vmatprep.subr.bf16.mxu0 %v11897_v21  ;;  %8760 = vmatpush3.bf16.msra.mxu1 %v11905_v57  ;;  %13216 = vst [vmem:[#allocation192_spill] sm:$0xff] %v11910_v6  ;;  %v11924_v21 = vld [vmem:[%s13219_s7] sm:$0xff] }
 0x57d   : > { %8761 = vmatprep.subr.bf16.mxu1 %v11910_v6  ;;  %v3337_v49 = vrot.slane %v11924_v21, %v13220_v35  ;;  %v3341_v57 = vrot.slane %v11924_v21, %v13221_v8  ;;  %v3361_v19 = vrot.slane %v11924_v21, %v13222_v1  ;;  %v3365_v10 = vrot.slane %v11924_v21, %v13225_v9 }
 0x57f   : > { %v11943_v35 = vadd.f32 %v11664_v61, %v3341_v57  ;;  %v11946_v8 = vadd.f32 %v11673_v0, %v3341_v57  ;;  %v11955_v61 = vadd.f32 %v11684_v50, %v3337_v49  ;;  %v11958_v0 = vadd.f32 %v11701_v62, %v3361_v19 }
 0x580   : > { %8762 = vmatpush3.bf16.msra.mxu1 %v11913_v45  ;;  %v11935_v45 = vadd.f32 %v11658_v36, %v3337_v49  ;;  %v11961_v9 = vadd.f32 %v11707_v11, %v3361_v19 }
 0x581   : > { %8791 = vmatprep.subr.bf16.mxu1 %v11918_v32  ;;  %v11938_v32 = vadd.f32 %v11669_v59, %v3337_v49  ;;  %13223 = vst [vmem:[#allocation79_spill] sm:$0xff] %v11943_v35  ;;  %13224 = vst [vmem:[#allocation195_spill] sm:$0xff] %v11946_v8 }
 0x582   : > { %13226 = vst [vmem:[#allocation81_spill] sm:$0xff] %v11955_v61  ;;  %13227 = vst [vmem:[#allocation196_spill] sm:$0xff] %v11958_v0 }
 0x583   : > { %13228 = vst [vmem:[#allocation197_spill] sm:$0xff] %v11961_v9 }
 0x61d   : > { %v4376_v24 = vpop.f32.mrb[60].mxu0  ;;  %v11930_v44 = vpop.f32.mrb[60].mxu1 }
 0x61e   : > { %v4378_v52 = vpop.f32.mrb[61].mxu0  ;;  %v11932_v6 = vpop.f32.mrb[61].mxu1  ;;  %v4650_v36 = vmul.f32 %v4376_v24, %v11935_v45  ;;  %v11964_v24 = vadd.f32 %v11687_v54, %v3341_v57 }
 0x61f   : > { %v4651_v34 = vmul.f32 %v4378_v52, %v11943_v35  ;;  %v11970_v52 = vadd.f32 %v11709_v58, %v3365_v10 }
 0x620   : > { %13229 = vst [vmem:[#allocation198_spill] sm:$0xff] %v11964_v24 }
 0x621   : > { %v4382_v18 = vpop.f32.mrb[62].mxu0  ;;  %v4625_v28 = vpop.f32.mrb[62].mxu1  ;;  %13231 = vst [vmem:[#allocation200_spill] sm:$0xff] %v11970_v52 }
 0x622   : > { %v4666_v2 = vmul.f32 %v4382_v18, %v11938_v32  ;;  %v4384_v59 = vpop.f32.mrb[63].mxu0  ;;  %v4627_v5 = vpop.f32.mrb[63].mxu1  ;;  %v11967_v18 = vadd.f32 %v11705_v51, %v3365_v10  ;;  %v4656_v49 = vmul.f32 %v4625_v28, %v11958_v0 }
 0x623   : > { %v4667_v1 = vmul.f32 %v4384_v59, %v11946_v8 }
 0x624   : > { %v4674_v53 = vadd.f32 %v4666_v2, %v4650_v36  ;;  %13230 = vst [vmem:[#allocation199_spill] sm:$0xff] %v11967_v18  ;;  %v4657_v54 = vmul.f32 %v4627_v5, %v11967_v18  ;;  %v13232_v36 = vld [vmem:[#allocation75_spill] sm:$0xff] }
 0x625   : > { %v4675_v59 = vadd.f32 %v4667_v1, %v4651_v34  ;;  %v4388_v8 = vpop.f32.mrb[64].mxu0  ;;  %v4631_v50 = vpop.f32.mrb[64].mxu1  ;;  %v3345_v58 = vrot.slane %v11924_v21, %v13232_v36  ;;  %v11981_v34 = vadd.f32 %v11715_v31, %v3361_v19 }
 0x626   : > { %v4690_v62 = vmul.f32 %v4388_v8, %v11955_v61  ;;  %v4672_v11 = vmul.f32 %v4631_v50, %v11961_v9  ;;  %v4390_v35 = vpop.f32.mrb[65].mxu0  ;;  %v4633_v2 = vpop.f32.mrb[65].mxu1  ;;  %v13233_v8 = vld [vmem:[#allocation77_spill] sm:$0xff]  ;;  %v11986_v9 = vadd.f32 %v11717_v40, %v3365_v10 }
 0x627   : > { %v4691_v57 = vmul.f32 %v4390_v35, %v11964_v24  ;;  %v4673_v51 = vmul.f32 %v4633_v2, %v11970_v52  ;;  %v3349_v50 = vrot.slane %v11924_v21, %v13233_v8  ;;  %v11994_v19 = vadd.f32 %v11666_v30, %v3345_v58 }
 0x628   : > { %v4698_v28 = vadd.f32 %v4690_v62, %v4674_v53  ;;  %v4680_v1 = vadd.f32 %v4672_v11, %v4656_v49  ;;  %v11991_v53 = vld [vmem:[%s10618_s9 + $0x100] sm:$0xff]   ;;  %v11997_v49 = vadd.f32 %v11675_v3, %v3345_v58  ;;  %v12011_v30 = vadd.f32 %v11689_v12, %v3345_v58  ;;  %v13235_v12 = vld [vmem:[#allocation80_spill] sm:$0xff] }
 0x629   : > { %v4699_v5 = vadd.f32 %v4691_v57, %v4675_v59  ;;  %v4681_v35 = vadd.f32 %v4673_v51, %v4657_v54  ;;  %v4459_v18 = vpop.f32.mrb[66].mxu0  ;;  %v4637_v2 = vpop.f32.mrb[66].mxu1  ;;  %v12002_v59 = vld [vmem:[%s10618_s9 + $0x148] sm:$0xff]   ;;  %v12005_v62 = vadd.f32 %v11671_v22, %v3349_v50  ;;  %v12008_v11 = vadd.f32 %v11678_v17, %v3349_v50 }
 0x62a   : > { %v4696_v52 = vmul.f32 %v4637_v2, %v11981_v34  ;;  %v4461_v0 = vpop.f32.mrb[67].mxu0  ;;  %v4639_v36 = vpop.f32.mrb[67].mxu1  ;;  %v4706_v40 = vpack.c.bf16 %v4698_v28, %v4698_v28  ;;  %13234 = vst [vmem:[#allocation75_spill] sm:$0xff] %v12011_v30  ;;  %v4652_v3 = vmul.f32 %v4459_v18, %v11994_v19  ;;  %v12016_v28 = vadd.f32 %v11691_v15, %v3349_v50  ;;  %v12030_v15 = vld [vmem:[%s10618_s9 + $0x150] sm:$0xff]  }
 0x62b   : > { %v4707_v24 = vpack.c.bf16 %v4699_v5, %v4699_v5  ;;  %v4697_v31 = vmul.f32 %v4639_v36, %v11986_v9  ;;  %v4653_v22 = vmul.f32 %v4461_v0, %v12005_v62  ;;  %v3353_v58 = vrot.slane %v11924_v21, %v13235_v12  ;;  %v13236_v0 = vld [vmem:[#allocation82_spill] sm:$0xff] }
 0x62c   : > { %v11999_v10 = vadd.f32 %v4696_v52, %v4680_v1  ;;  %v4692_v18 = vmul.f32 %v11930_v44, %v12011_v30  ;;  %v3357_v8 = vrot.slane %v11924_v21, %v13236_v0  ;;  %v4693_v50 = vmul.f32 %v11932_v6, %v12016_v28  ;;  %v12038_v44 = vld [vmem:[%s10618_s9 + $0x110] sm:$0xff]   ;;  %v12048_v6 = vld [vmem:[%s10618_s9 + $0x158] sm:$0xff]  }
 0x62d   : > { %v4705_v54 = vadd.f32 %v4697_v31, %v4681_v35  ;;  %v4465_v57 = vpop.f32.mrb[68].mxu0  ;;  %5265 = vmatprep.mubr.bf16.mxu0 %v4707_v24  ;;  %v12022_v24 = vld [vmem:[%s10618_s9 + $0x108] sm:$0xff]   ;;  %v12068_v0 = vld [vmem:[%s10618_s9 + $0x118] sm:$0xff]  }
 0x62e   : > { %v4668_v52 = vmul.f32 %v4465_v57, %v11997_v49  ;;  %v4467_v51 = vpop.f32.mrb[69].mxu0  ;;  %5266 = vmatmul.mubr.bf16.vlgmr.msra.gmra.mrb[76].mxu0 %v4706_v40  ;;  %v12041_v40 = vadd.f32 %v11695_v48, %v3353_v58  ;;  %v12044_v57 = vadd.f32 %v11699_v55, %v3353_v58  ;;  %v12051_v21 = vadd.f32 %v11697_v41, %v3357_v8 }
 0x62f   : > { %v4669_v17 = vmul.f32 %v4467_v51, %v12008_v11  ;;  %8770 = vmatpush3.bf16.msra.mxu0 %v11991_v53 }
 0x630   : > { %v4676_v1 = vadd.f32 %v4668_v52, %v4652_v3  ;;  %8771 = vmatprep.subr.bf16.mxu0 %v12002_v59  ;;  %v12054_v3 = vadd.f32 %v11703_v42, %v3357_v8 }
 0x631   : > { %v4677_v5 = vadd.f32 %v4669_v17, %v4653_v22  ;;  %v4542_v35 = vpop.f32.mrb[70].mxu0  ;;  %v12057_v22 = vld [vmem:[%s10618_s9 + $0x180] sm:$0xff]  }
 0x632   : > { %v4700_v2 = vadd.f32 %v4692_v18, %v4676_v1  ;;  %v4544_v36 = vpop.f32.mrb[71].mxu0  ;;  %v4654_v55 = vmul.f32 %v4542_v35, %v12041_v40  ;;  %v12062_v18 = vld [vmem:[%s10618_s9 + $0x1c8] sm:$0xff]   ;;  %v4713_v1 = vpack.c.bf16 %v4705_v54, %v4705_v54  ;;  %v12075_v54 = vld [vmem:[%s10618_s9 + $0x160] sm:$0xff]   ;;  %v12078_v35 = vadd.f32 %v11713_v20, %v3357_v8 }
 0x633   : > { %8772 = vmatpush3.bf16.msra.mxu0 %v12022_v24  ;;  %v4701_v31 = vadd.f32 %v4693_v50, %v4677_v5  ;;  %v4655_v41 = vmul.f32 %v4544_v36, %v12051_v21  ;;  %v12071_v50 = vadd.f32 %v11711_v33, %v3353_v58  ;;  %v12082_v33 = vld [vmem:[%s10618_s9 + $0x188] sm:$0xff]   ;;  %v12092_v8 = vld [vmem:[%s10618_s9 + $0x120] sm:$0xff]  }
 0x634   : > { %8773 = vmatprep.subr.bf16.mxu0 %v12030_v15  ;;  %v4708_v48 = vpack.c.bf16 %v4700_v2, %v4700_v2 }
 0x635   : > { %v4548_v52 = vpop.f32.mrb[72].mxu0  ;;  %v4709_v51 = vpack.c.bf16 %v4701_v31, %v4701_v31 }
 0x636   : > { %v4670_v17 = vmul.f32 %v4548_v52, %v12044_v57  ;;  %v4550_v12 = vpop.f32.mrb[73].mxu0  ;;  %v12087_v52 = vld [vmem:[%s10618_s9 + $0x1d0] sm:$0xff]  }
 0x637   : > { %v4671_v42 = vmul.f32 %v4550_v12, %v12054_v3  ;;  %8774 = vmatpush3.bf16.msra.mxu0 %v12038_v44  ;;  %5305 = vmatprep.mubr.bf16.mxu1 %v4709_v51  ;;  %v12104_v12 = vld [vmem:[%s10618_s9 + $0x1d8] sm:$0xff]  }
 0x638   : > { %v4678_v5 = vadd.f32 %v4670_v17, %v4654_v55  ;;  %5306 = vmatmul.mubr.bf16.vlgmr.msra.gmra.mrb[68].mxu1 %v4708_v48  ;;  %8775 = vmatprep.subr.bf16.mxu0 %v12048_v6  ;;  %v12096_v48 = vld [vmem:[%s10618_s9 + $0x168] sm:$0xff]   ;;  %v12100_v17 = vld [vmem:[%s10618_s9 + $0x190] sm:$0xff]  }
 0x639   : > { %v4679_v2 = vadd.f32 %v4671_v42, %v4655_v41  ;;  %8792 = vmatpush3.bf16.msra.mxu1 %v12057_v22  ;;  %v4554_v36 = vpop.f32.mrb[74].mxu0  ;;  %5385 = vmatprep.mubr.bf16.mxu1 %v4713_v1  ;;  %13237 = vst [vmem:[#allocation77_spill] sm:$0xff] %v12096_v48  ;;  %v12108_v41 = vld [vmem:[%s10618_s9 + $0x128] sm:$0xff]   ;;  %v12112_v42 = vld [vmem:[%s10618_s9 + $0x170] sm:$0xff]  }
 0x63a   : > { %v4694_v58 = vmul.f32 %v4554_v36, %v12071_v50  ;;  %v4556_v31 = vpop.f32.mrb[75].mxu0  ;;  %8793 = vmatprep.subr.bf16.mxu1 %v12062_v18  ;;  %13238 = vst [vmem:[#allocation80_spill] sm:$0xff] %v12108_v41  ;;  %13239 = vst [vmem:[#allocation82_spill] sm:$0xff] %v12112_v42  ;;  %v12124_v36 = vld [vmem:[%s10618_s9 + $0x130] sm:$0xff]  }
 0x63b   : > { %v4695_v20 = vmul.f32 %v4556_v31, %v12078_v35  ;;  %8776 = vmatpush3.bf16.msra.mxu0 %v12068_v0  ;;  %13240 = vst [vmem:[#allocation201_spill] sm:$0xff] %v12124_v36  ;;  %v12132_v31 = vld [vmem:[%s10618_s9 + $0x1a0] sm:$0xff]  }
 0x63c   : > { %v4702_v51 = vadd.f32 %v4694_v58, %v4678_v5  ;;  %8777 = vmatprep.subr.bf16.mxu0 %v12075_v54  ;;  %v12116_v5 = vld [vmem:[%s10618_s9 + $0x198] sm:$0xff]   ;;  %13242 = vst [vmem:[#allocation203_spill] sm:$0xff] %v12132_v31 }
 0x63d   : > { %v4703_v55 = vadd.f32 %v4695_v20, %v4679_v2  ;;  %8794 = vmatpush3.bf16.msra.mxu1 %v12082_v33  ;;  %v12120_v2 = vld [vmem:[%s10618_s9 + $0x1e0] sm:$0xff]   ;;  %v12128_v58 = vld [vmem:[%s10618_s9 + $0x178] sm:$0xff]   ;;  %v12136_v20 = vld [vmem:[%s10618_s9 + $0x1e8] sm:$0xff]  }
 0x63e   : > { %8795 = vmatprep.subr.bf16.mxu1 %v12087_v52  ;;  %13241 = vst [vmem:[#allocation202_spill] sm:$0xff] %v12128_v58  ;;  %13243 = vst [vmem:[#allocation204_spill] sm:$0xff] %v12136_v20 }
 0x63f   : > { %v4711_v1 = vpack.c.bf16 %v4703_v55, %v4703_v55  ;;  %8778 = vmatpush3.bf16.msra.mxu0 %v12092_v8  ;;  %v12140_v55 = vld [vmem:[%s10618_s9 + $0x138] sm:$0xff]  }
 0x640   : > { %8779 = vmatprep.subr.bf16.mxu0 %v12096_v48  ;;  %13244 = vst [vmem:[#allocation205_spill] sm:$0xff] %v12140_v55  ;;  %v13246_v48 = vld [vmem:[#allocation41_spill] sm:$0xff] }
 0x641   : > { %8796 = vmatpush3.bf16.msra.mxu1 %v12100_v17  ;;  %5345 = vmatprep.mubr.bf16.mxu0 %v4711_v1  ;;  %v12145_v1 = vld [vmem:[%s10618_s9 + $0x1a8] sm:$0xff]  }
 0x642   : > { %8797 = vmatprep.subr.bf16.mxu1 %v12104_v12 }
 0x643   : > { %8780 = vmatpush3.bf16.msra.mxu0 %v12108_v41  ;;  %v4710_v41 = vpack.c.bf16 %v4702_v51, %v4702_v51  ;;  %v12166_v51 = vld [vmem:[%s10618_s9 + $0x1b8] sm:$0xff]  }
 0x644   : > { %8781 = vmatprep.subr.bf16.mxu0 %v12112_v42  ;;  %v12149_v42 = vld [vmem:[%s10618_s9 + $0x1f0] sm:$0xff]   ;;  %13251 = vst [vmem:[#allocation209_spill] sm:$0xff] %v12166_v51 }
 0x645   : > { %8798 = vmatpush3.bf16.msra.mxu1 %v12116_v5  ;;  %13245 = vst [vmem:[#allocation206_spill] sm:$0xff] %v12149_v42 }
 0x646   : > { %8799 = vmatprep.subr.bf16.mxu1 %v12120_v2 }
 0x647   : > { %8782 = vmatpush3.bf16.msra.mxu0 %v12124_v36  ;;  %v12155_v36 = vld [vmem:[%s10618_s9 + $0x1b0] sm:$0xff]  }
 0x648   : > { %8783 = vmatprep.subr.bf16.mxu0 %v12128_v58  ;;  %13247 = vst [vmem:[#allocation207_spill] sm:$0xff] %v12155_v36  ;;  %v12159_v58 = vld [vmem:[%s10618_s9 + $0x1f8] sm:$0xff]  }
 0x649   : > { %8800 = vmatpush3.bf16.msra.mxu1 %v12132_v31  ;;  %13248 = vst [vmem:[#allocation208_spill] sm:$0xff] %v12159_v58  ;;  %v13249_v31 = vld [vmem:[#allocation43_spill] sm:$0xff] }
 0x64a   : > { %8801 = vmatprep.subr.bf16.mxu1 %v12136_v20  ;;  %v13250_v20 = vld [vmem:[#allocation45_spill] sm:$0xff] }
 0x64b   : > { %8784 = vmatpush3.bf16.msra.mxu0 %v12140_v55  ;;  %v13253_v55 = vld [vmem:[#allocation49_spill] sm:$0xff] }
 0x64c   : > { %9691 = vmatprep.subr.bf16.mxu0 %v13246_v48  ;;  %v13252_v48 = vld [vmem:[#allocation47_spill] sm:$0xff] }
 0x64d   : > { %8802 = vmatpush3.bf16.msra.mxu1 %v12145_v1 }
 0x64e   : > { %5346 = vmatmul.mubr.bf16.vlgmr.msra.gmra.mrb[80].mxu0 %v4710_v41  ;;  %8803 = vmatprep.subr.bf16.mxu1 %v12149_v42  ;;  %v4712_v41 = vpack.c.bf16 %v11999_v10, %v11999_v10  ;;  %v13258_v42 = vld [vmem:[#allocation123_spill] sm:$0xff]  ;;  %v13263_v10 = vld [vmem:[#allocation50_spill] sm:$0xff] }
 0x64f   : > { %9693 = vmatpush3.bf16.msra.mxu0 %v13249_v31  ;;  %5489 = vmatprep.mubr.f32.mxu0 %v11419_v63  ;;  %v13254_v31 = vld [vmem:[#allocation42_spill] sm:$0xff]  ;;  %v13255_v63 = vld [vmem:[#allocation51_spill] sm:$0xff] }
 0x650   : > { %9695 = vmatprep.subr.bf16.mxu0 %v13250_v20  ;;  %v13256_v20 = vld [vmem:[#allocation53_spill] sm:$0xff] }
 0x651   : > { %8804 = vmatpush3.bf16.msra.mxu1 %v12155_v36  ;;  %v13257_v36 = vld [vmem:[#allocation44_spill] sm:$0xff] }
 0x652   : > { %8805 = vmatprep.subr.bf16.mxu1 %v12159_v58  ;;  %v13259_v58 = vld [vmem:[#allocation46_spill] sm:$0xff] }
 0x653   : > { %9697 = vmatpush3.bf16.msra.mxu0 %v13252_v48  ;;  %v13260_v48 = vld [vmem:[#allocation55_spill] sm:$0xff] }
 0x654   : > { %9699 = vmatprep.subr.bf16.mxu0 %v13253_v55  ;;  %v13261_v55 = vld [vmem:[#allocation57_spill] sm:$0xff] }
 0x655   : > { %8806 = vmatpush3.bf16.msra.mxu1 %v12166_v51  ;;  %v13262_v51 = vld [vmem:[#allocation48_spill] sm:$0xff] }
 0x656   : > { %9723 = vmatprep.subr.bf16.mxu1 %v13254_v31  ;;  %v13264_v31 = vld [vmem:[#allocation59_spill] sm:$0xff] }
 0x657   : > { %9701 = vmatpush3.bf16.msra.mxu0 %v13255_v63  ;;  %v13265_v63 = vld [vmem:[#allocation61_spill] sm:$0xff] }
 0x658   : > { %5386 = vmatmul.mubr.bf16.vlgmr.msra.gmra.mrb[72].mxu1 %v4712_v41  ;;  %9703 = vmatprep.subr.bf16.mxu0 %v13256_v20  ;;  %v13266_v41 = vld [vmem:[#allocation52_spill] sm:$0xff]  ;;  %v13267_v20 = vld [vmem:[#allocation54_spill] sm:$0xff] }
 0x659   : > { %9725 = vmatpush3.bf16.msra.mxu1 %v13257_v36  ;;  %5569 = vmatprep.mubr.f32.mxu1 %v13258_v42  ;;  %v13268_v36 = vld [vmem:[#allocation63_spill] sm:$0xff]  ;;  %v13269_v42 = vld [vmem:[#allocation65_spill] sm:$0xff] }
 0x65a   : > { %9727 = vmatprep.subr.bf16.mxu1 %v13259_v58  ;;  %v13270_v58 = vld [vmem:[#allocation56_spill] sm:$0xff] }
 0x65b   : > { %9705 = vmatpush3.bf16.msra.mxu0 %v13260_v48  ;;  %v13271_v48 = vld [vmem:[#allocation58_spill] sm:$0xff] }
 0x65c   : > { %9707 = vmatprep.subr.bf16.mxu0 %v13261_v55  ;;  %v13272_v55 = vld [vmem:[#allocation67_spill] sm:$0xff] }
 0x65d   : > { %9729 = vmatpush3.bf16.msra.mxu1 %v13262_v51  ;;  %v13273_v51 = vld [vmem:[#allocation69_spill] sm:$0xff] }
 0x65e   : > { %9731 = vmatprep.subr.bf16.mxu1 %v13263_v10  ;;  %v13274_v10 = vld [vmem:[#allocation60_spill] sm:$0xff] }
 0x65f   : > { %9709 = vmatpush3.bf16.msra.mxu0 %v13264_v31  ;;  %v13275_v31 = vld [vmem:[#allocation62_spill] sm:$0xff] }
 0x660   : > { %9711 = vmatprep.subr.bf16.mxu0 %v13265_v63  ;;  %v13276_v63 = vld [vmem:[#allocation71_spill] sm:$0xff] }
 0x661   : > { %9733 = vmatpush3.bf16.msra.mxu1 %v13266_v41  ;;  %v13277_v41 = vld [vmem:[#allocation73_spill] sm:$0xff] }
 0x662   : > { %9735 = vmatprep.subr.bf16.mxu1 %v13267_v20  ;;  %v13278_v20 = vld [vmem:[#allocation64_spill] sm:$0xff] }
 0x663   : > { %9713 = vmatpush3.bf16.msra.mxu0 %v13268_v36  ;;  %v13279_v36 = vld [vmem:[#allocation83_spill] sm:$0xff] }
 0x664   : > { %9715 = vmatprep.subr.bf16.mxu0 %v13269_v42  ;;  %v13280_v42 = vld [vmem:[#allocation66_spill] sm:$0xff] }
 0x665   : > { %9737 = vmatpush3.bf16.msra.mxu1 %v13270_v58 }
 0x666   : > { %9739 = vmatprep.subr.bf16.mxu1 %v13271_v48  ;;  %v13281_v48 = vld [vmem:[#allocation88_spill] sm:$0xff] }
 0x667   : > { %9717 = vmatpush3.bf16.msra.mxu0 %v13272_v55  ;;  %v13283_v55 = vld [vmem:[#allocation124_spill] sm:$0xff] }
 0x668   : > { %9719 = vmatprep.subr.bf16.mxu0 %v13273_v51  ;;  %v13282_v51 = vld [vmem:[#allocation68_spill] sm:$0xff] }
 0x669   : > { %9741 = vmatpush3.bf16.msra.mxu1 %v13274_v10 }
 0x66a   : > { %9743 = vmatprep.subr.bf16.mxu1 %v13275_v31  ;;  %v13284_v31 = vld [vmem:[#allocation70_spill] sm:$0xff] }
 0x66b   : > { %9721 = vmatpush3.bf16.msra.mxu0 %v13276_v63 }
 0x66c   : > { %9755 = vmatprep.subr.bf16.mxu0 %v13277_v41 }
 0x66d   : > { %9745 = vmatpush3.bf16.msra.mxu1 %v13278_v20 }
 0x66e   : > { %5490 = vmatmul.mubr.f32.vlgmr.msra.gmra.mrb[84].mxu0 %v13279_v36  ;;  %9747 = vmatprep.subr.bf16.mxu1 %v13280_v42  ;;  %v13285_v36 = vld [vmem:[#allocation72_spill] sm:$0xff] }
 0x66f   : > { %5494 = vmatprep.mubr.f32.mxu0 %v11428_v47  ;;  %9757 = vmatpush3.bf16.msra.mxu0 %v13281_v48  ;;  %v13286_v47 = vld [vmem:[#allocation74_spill] sm:$0xff] }
 0x670   : > { %9759 = vmatprep.subr.bf16.mxu0 %v11228_v39  ;;  %v13287_v39 = vld [vmem:[#allocation86_spill] sm:$0xff] }
 0x671   : > { %9749 = vmatpush3.bf16.msra.mxu1 %v13282_v51 }
 0x672   : > { %5495 = vmatmul.mubr.f32.gmra.mrb[86].mxu0 %v13283_v55  ;;  %9751 = vmatprep.subr.bf16.mxu1 %v13284_v31  ;;  %v13288_v55 = vld [vmem:[#allocation125_spill] sm:$0xff] }
 0x673   : > { %5499 = vmatprep.mubr.f32.mxu0 %v11463_v16  ;;  %9761 = vmatpush3.bf16.msra.mxu0 %v11238_v4  ;;  %v13289_v16 = vld [vmem:[#allocation126_spill] sm:$0xff]  ;;  %v13297_v4 = vld [vmem:[#allocation100_spill] sm:$0xff] }
 0x674   : > { %9763 = vmatprep.subr.bf16.mxu0 %v11245_v56  ;;  %v13291_v56 = vld [vmem:[#allocation130_spill] sm:$0xff] }
 0x675   : > { %9753 = vmatpush3.bf16.msra.mxu1 %v13285_v36 }
 0x676   : > { %5500 = vmatmul.mubr.f32.gmra.mrb[88].mxu0 %v11457_v37  ;;  %9787 = vmatprep.subr.bf16.mxu1 %v13286_v47  ;;  %v13290_v37 = vld [vmem:[#allocation109_spill] sm:$0xff] }
 0x677   : > { %9765 = vmatpush3.bf16.msra.mxu0 %v13138_v43  ;;  %5649 = vmatprep.mubr.f32.mxu0 %v11567_v7  ;;  %v13292_v43 = vld [vmem:[#allocation96_spill] sm:$0xff]  ;;  %v13293_v7 = vld [vmem:[#allocation98_spill] sm:$0xff] }
 0x678   : > { %5570 = vmatmul.mubr.f32.vlgmr.msra.gmra.mrb[76].mxu1 %v13287_v39  ;;  %9767 = vmatprep.subr.bf16.mxu0 %v13144_v38  ;;  %v13294_v39 = vld [vmem:[#allocation112_spill] sm:$0xff]  ;;  %v13295_v38 = vld [vmem:[#allocation131_spill] sm:$0xff] }
 0x679   : > { %5574 = vmatprep.mubr.f32.mxu1 %v13288_v55  ;;  %9789 = vmatpush3.bf16.msra.mxu1 %v11226_v14  ;;  %v13296_v55 = vld [vmem:[#allocation114_spill] sm:$0xff] }
 0x67a   : > { %9791 = vmatprep.subr.bf16.mxu1 %v11236_v46  ;;  %v13298_v46 = vld [vmem:[#allocation102_spill] sm:$0xff] }
 0x67b   : > { %9769 = vmatpush3.bf16.msra.mxu0 %v13151_v60  ;;  %v13299_v60 = vld [vmem:[#allocation106_spill] sm:$0xff] }
 0x67c   : > { %5575 = vmatmul.mubr.f32.gmra.mrb[78].mxu1 %v13289_v16  ;;  %9771 = vmatprep.subr.bf16.mxu0 %v13290_v37  ;;  %v13300_v16 = vld [vmem:[#allocation116_spill] sm:$0xff]  ;;  %v13301_v37 = vld [vmem:[#allocation118_spill] sm:$0xff] }
 0x67d   : > { %5579 = vmatprep.mubr.f32.mxu1 %v13291_v56  ;;  %9793 = vmatpush3.bf16.msra.mxu1 %v13292_v43  ;;  %v13302_v56 = vld [vmem:[#allocation108_spill] sm:$0xff]  ;;  %v13303_v43 = vld [vmem:[#allocation110_spill] sm:$0xff] }
 0x67e   : > { %9795 = vmatprep.subr.bf16.mxu1 %v13293_v7  ;;  %v13304_v7 = vld [vmem:[#allocation120_spill] sm:$0xff] }
 0x67f   : > { %9773 = vmatpush3.bf16.msra.mxu0 %v13294_v39  ;;  %v13305_v39 = vld [vmem:[#allocation122_spill] sm:$0xff] }
 0x680   : > { %5580 = vmatmul.mubr.f32.gmra.mrb[80].mxu1 %v13295_v38  ;;  %9775 = vmatprep.subr.bf16.mxu0 %v13296_v55  ;;  %v13306_v38 = vld [vmem:[#allocation113_spill] sm:$0xff]  ;;  %v13307_v55 = vld [vmem:[#allocation115_spill] sm:$0xff] }
 0x681   : > { %9797 = vmatpush3.bf16.msra.mxu1 %v13297_v4  ;;  %5729 = vmatprep.mubr.f32.mxu1 %v13298_v46  ;;  %v13308_v4 = vld [vmem:[#allocation154_spill] sm:$0xff]  ;;  %v13309_v46 = vld [vmem:[#allocation156_spill] sm:$0xff] }
 0x682   : > { %9799 = vmatprep.subr.bf16.mxu1 %v13299_v60  ;;  %v13310_v60 = vld [vmem:[#allocation117_spill] sm:$0xff] }
 0x683   : > { %9777 = vmatpush3.bf16.msra.mxu0 %v13300_v16  ;;  %v13311_v16 = vld [vmem:[#allocation89_spill] sm:$0xff] }
 0x684   : > { %9779 = vmatprep.subr.bf16.mxu0 %v13301_v37  ;;  %v13312_v37 = vld [vmem:[#allocation119_spill] sm:$0xff] }
 0x685   : > { %9801 = vmatpush3.bf16.msra.mxu1 %v13302_v56  ;;  %v13313_v56 = vld [vmem:[#allocation103_spill] sm:$0xff] }
 0x686   : > { %9803 = vmatprep.subr.bf16.mxu1 %v13303_v43  ;;  %v13314_v43 = vld [vmem:[#allocation157_spill] sm:$0xff] }
 0x687   : > { %9781 = vmatpush3.bf16.msra.mxu0 %v13304_v7  ;;  %v13316_v7 = vld [vmem:[#allocation104_spill] sm:$0xff] }
 0x688   : > { %9783 = vmatprep.subr.bf16.mxu0 %v13305_v39  ;;  %v13315_v39 = vld [vmem:[#allocation121_spill] sm:$0xff] }
 0x689   : > { %9805 = vmatpush3.bf16.msra.mxu1 %v13306_v38 }
 0x68a   : > { %9807 = vmatprep.subr.bf16.mxu1 %v13307_v55  ;;  %v13317_v55 = vld [vmem:[#allocation152_spill] sm:$0xff] }
 0x68b   : > { %9785 = vmatpush3.bf16.msra.mxu0 %v13308_v4  ;;  %v13318_v4 = vld [vmem:[#allocation144_spill] sm:$0xff] }
 0x68c   : > { %9819 = vmatprep.subr.bf16.mxu0 %v13309_v46  ;;  %v13319_v46 = vld [vmem:[#allocation155_spill] sm:$0xff] }
 0x68d   : > { %9809 = vmatpush3.bf16.msra.mxu1 %v13310_v60  ;;  %v13320_v60 = vld [vmem:[#allocation142_spill] sm:$0xff] }
 0x68e   : > { %5650 = vmatmul.mubr.f32.vlgmr.msra.gmra.mrb[90].mxu0 %v13311_v16  ;;  %9811 = vmatprep.subr.bf16.mxu1 %v13312_v37  ;;  %v13321_v16 = vld [vmem:[#allocation158_spill] sm:$0xff] }
 0x68f   : > { %5654 = vmatprep.mubr.f32.mxu0 %v13313_v56  ;;  %9821 = vmatpush1.bf16.msra.mxu0 %v13314_v43  ;;  %v13322_v56 = vld [vmem:[#allocation101_spill] sm:$0xff]  ;;  %v13325_v43 = vld [vmem:[#allocation138_spill] sm:$0xff] }
 0x690   : > { %9827 = vmatprep.subr.bf16.mxu0 %v11753_v26  ;;  %v13323_v26 = vld [vmem:[#allocation111_spill] sm:$0xff] }
 0x691   : > { %9813 = vmatpush3.bf16.msra.mxu1 %v13315_v39 }
 0x692   : > { %5655 = vmatmul.mubr.f32.gmra.mrb[92].mxu0 %v13316_v7  ;;  %9815 = vmatprep.subr.bf16.mxu1 %v13317_v55  ;;  %v13324_v7 = vld [vmem:[#allocation160_spill] sm:$0xff] }
 0x693   : > { %5659 = vmatprep.mubr.f32.mxu0 %v13318_v4  ;;  %v13326_v4 = vld [vmem:[#allocation146_spill] sm:$0xff] }
 0x695   : > { %9817 = vmatpush3.bf16.msra.mxu1 %v13319_v46  ;;  %v13327_v46 = vld [vmem:[#allocation145_spill] sm:$0xff] }
 0x696   : > { %5660 = vmatmul.mubr.f32.gmra.mrb[94].mxu0 %v13320_v60  ;;  %9823 = vmatprep.subr.bf16.mxu1 %v13321_v16 }
 0x697   : > { %5836 = vmatprep.mubr.f32.mxu0 %v13186_v27 }
 0x698   : > { %5730 = vmatmul.mubr.f32.vlgmr.msra.gmra.mrb[82].mxu1 %v13322_v56  ;;  %v12265_v56 = vld [vmem:[%s10615_s15] ss:$0 sm:$0xff] }
 0x699   : > { %5734 = vmatprep.mubr.f32.mxu1 %v13323_v26  ;;  %9825 = vmatpush1.bf16.msra.mxu1 %v11734_v25  ;;  %13328 = vst [vmem:[#allocation123_spill] sm:$0xff] %v12265_v56 }
 0x69a   : > { %9831 = vmatprep.subr.bf16.mxu1 %v13324_v7 }
 0x69c   : > { %5735 = vmatmul.mubr.f32.gmra.mrb[84].mxu1 %v13325_v43 }
 0x69d   : > { %5739 = vmatprep.mubr.f32.mxu1 %v13326_v4 }
 0x6a0   : > { %5740 = vmatmul.mubr.f32.gmra.mrb[86].mxu1 %v13327_v46 }
 0x6a1   : > { %5919 = vmatprep.mubr.f32.mxu1 %v13186_v27 }
 0x701   : > { %v8741_v60 = vpop.f32.mrb[76].mxu0 }
 0x702   : > { %v8742_v16 = vpop.f32.mrb[77].mxu0 }
 0x703   : > { %v8743_v55 = vadd.f32 %v8742_v16, %v8741_v60  ;;  %v8744_v39 = vpop.f32.mrb[78].mxu0 }
 0x704   : > { %v8745_v37 = vpop.f32.mrb[79].mxu0 }
 0x705   : > { %v5268_v25 = vadd.f32 %v8743_v55, %v12265_v56 }
 0x70b   : > { %v8763_v26 = vpop.f32.mrb[68].mxu1 }
 0x70c   : > { %v8764_v38 = vpop.f32.mrb[69].mxu1 }
 0x70d   : > { %v8765_v7 = vadd.f32 %v8764_v38, %v8763_v26  ;;  %v8766_v14 = vpop.f32.mrb[70].mxu1 }
 0x70e   : > { %v8767_v43 = vpop.f32.mrb[71].mxu1 }
 0x70f   : > { %v5308_v48 = vadd.f32 %v8765_v7, %v5268_v25 }
 0x721   : > { %v8785_v4 = vpop.f32.mrb[80].mxu0 }
 0x722   : > { %v8786_v47 = vpop.f32.mrb[81].mxu0 }
 0x723   : > { %v8787_v46 = vadd.f32 %v8786_v47, %v8785_v4  ;;  %v8788_v41 = vpop.f32.mrb[82].mxu0 }
 0x724   : > { %v8789_v36 = vpop.f32.mrb[83].mxu0 }
 0x725   : > { %v5348_v63 = vadd.f32 %v8787_v46, %v5308_v48 }
 0x72b   : > { %v8807_v31 = vpop.f32.mrb[72].mxu1 }
 0x72c   : > { %v8808_v16 = vpop.f32.mrb[73].mxu1 }
 0x72d   : > { %v8809_v39 = vadd.f32 %v8808_v16, %v8807_v31  ;;  %v8810_v37 = vpop.f32.mrb[74].mxu1 }
 0x72e   : > { %v8811_v60 = vpop.f32.mrb[75].mxu1 }
 0x72f   : > { %v12268_v51 = vadd.f32 %v8809_v39, %v5348_v63 }
 0x731   : > { %13329 = vst [vmem:[#allocation83_spill] sm:$0xff] %v12268_v51 }
 0x741   : > { %v8845_v42 = vpop.f32.mrb[84].mxu0 }
 0x742   : > { %v8846_v20 = vpop.f32.mrb[85].mxu0 }
 0x743   : > { %v8847_v55 = vadd.f32 %v8846_v20, %v8845_v42 }
 0x745   : > { %v8848_v38 = vpop.f32.mrb[86].mxu0 }
 0x746   : > { %v8849_v14 = vpop.f32.mrb[87].mxu0 }
 0x747   : > { %v8850_v26 = vadd.f32 %v8849_v14, %v8848_v38 }
 0x749   : > { %v8851_v25 = vpop.f32.mrb[88].mxu0 }
 0x74a   : > { %v8852_v7 = vpop.f32.mrb[89].mxu0 }
 0x74b   : > { %v8853_v43 = vadd.f32 %v8852_v7, %v8851_v25  ;;  %v8886_v47 = vpop.f32.mrb[76].mxu1 }
 0x74c   : > { %v8887_v41 = vpop.f32.mrb[77].mxu1 }
 0x74d   : > { %v8888_v36 = vadd.f32 %v8887_v41, %v8886_v47 }
 0x74f   : > { %v5572_v48 = vadd.f32 %v8888_v36, %v8847_v55  ;;  %v8889_v4 = vpop.f32.mrb[78].mxu1 }
 0x750   : > { %v8890_v46 = vpop.f32.mrb[79].mxu1 }
 0x751   : > { %v8891_v31 = vadd.f32 %v8890_v46, %v8889_v4 }
 0x753   : > { %v5577_v16 = vadd.f32 %v8891_v31, %v8850_v26  ;;  %v8892_v37 = vpop.f32.mrb[80].mxu1 }
 0x754   : > { %v8893_v63 = vpop.f32.mrb[81].mxu1 }
 0x755   : > { %v8894_v39 = vadd.f32 %v8893_v63, %v8892_v37 }
 0x757   : > { %v5582_v60 = vadd.f32 %v8894_v39, %v8853_v43 }
 0x761   : > { %v8927_v51 = vpop.f32.mrb[90].mxu0 }
 0x762   : > { %v8928_v20 = vpop.f32.mrb[91].mxu0 }
 0x763   : > { %v8929_v42 = vadd.f32 %v8928_v20, %v8927_v51 }
 0x765   : > { %v5652_v56 = vadd.f32 %v8929_v42, %v5572_v48  ;;  %v8930_v38 = vpop.f32.mrb[92].mxu0 }
 0x766   : > { %v8931_v14 = vpop.f32.mrb[93].mxu0 }
 0x767   : > { %v8932_v10 = vadd.f32 %v8931_v14, %v8930_v38 }
 0x769   : > { %v5657_v25 = vadd.f32 %v8932_v10, %v5577_v16  ;;  %v8933_v7 = vpop.f32.mrb[94].mxu0 }
 0x76a   : > { %v8934_v58 = vpop.f32.mrb[95].mxu0 }
 0x76b   : > { %v8935_v47 = vadd.f32 %v8934_v58, %v8933_v7  ;;  %v8968_v55 = vpop.f32.mrb[82].mxu1 }
 0x76c   : > { %v8969_v41 = vpop.f32.mrb[83].mxu1 }
 0x76d   : > { %v5662_v36 = vadd.f32 %v8935_v47, %v5582_v60  ;;  %v8970_v4 = vadd.f32 %v8969_v41, %v8968_v55 }
 0x76f   : > { %v5732_v26 = vadd.f32 %v8970_v4, %v5652_v56  ;;  %v8971_v46 = vpop.f32.mrb[84].mxu1 }
 0x770   : > { %v8972_v31 = vpop.f32.mrb[85].mxu1 }
 0x771   : > { %v8973_v37 = vadd.f32 %v8972_v31, %v8971_v46  ;;  %v13332_v31 = vld [vmem:[#allocation163_spill] sm:$0xff] }
 0x773   : > { %v5737_v43 = vadd.f32 %v8973_v37, %v5657_v25  ;;  %v8974_v63 = vpop.f32.mrb[86].mxu1  ;;  %v13333_v37 = vld [vmem:[#allocation167_spill] sm:$0xff] }
 0x774   : > { %v8975_v39 = vpop.f32.mrb[87].mxu1 }
 0x775   : > { %v5745_v51 = vmax.f32 %v5732_v26, %v5737_v43  ;;  %v8976_v48 = vadd.f32 %v8975_v39, %v8974_v63  ;;  %v13335_v63 = vld [vmem:[#allocation168_spill] sm:$0xff]  ;;  %v13336_v39 = vld [vmem:[#allocation165_spill] sm:$0xff] }
 0x777   : > { %v5742_v20 = vadd.f32 %v8976_v48, %v5662_v36  ;;  %v13338_v48 = vld [vmem:[#allocation175_spill] sm:$0xff] }
 0x779   : > { %v5746_v42 = vmax.f32 %v5745_v51, %v5742_v20  ;;  %v13337_v51 = vld [vmem:[#allocation169_spill] sm:$0xff] }
 0x77b   : > { %v5747_v38 = vsub.f32 %v5732_v26, %v5746_v42  ;;  %v5750_v10 = vsub.f32 %v5737_v43, %v5746_v42  ;;  %v5753_v16 = vsub.f32 %v5742_v20, %v5746_v42  ;;  %v13330_v26 = vld [vmem:[#allocation162_spill] sm:$0xff]  ;;  %v13334_v43 = vld [vmem:[#allocation164_spill] sm:$0xff] }
 0x77c   : > { %v13339_v20 = vld [vmem:[#allocation170_spill] sm:$0xff]  ;;  %v13340_v42 = vld [vmem:[#allocation176_spill] sm:$0xff] }
 0x77d   : > { %v5748_v14 = vmul.f32 1.442695, %v5747_v38  ;;  %v5751_v58 = vmul.f32 1.442695, %v5750_v10  ;;  %v5754_v7 = vmul.f32 1.442695, %v5753_v16 }
 0x77e   : > { %v13341_v38 = vld [vmem:[#allocation171_spill] sm:$0xff]  ;;  %v13343_v16 = vld [vmem:[#allocation172_spill] sm:$0xff] }
 0x77f   : > { %10194 = vpow2.f32 %v5748_v14  ;;  %v13342_v10 = vld [vmem:[#allocation179_spill] sm:$0xff]  ;;  %v13344_v14 = vld [vmem:[#allocation180_spill] sm:$0xff] }
 0x780   : > { %10196 = vpow2.f32 %v5751_v58  ;;  %v13345_v58 = vld [vmem:[#allocation173_spill] sm:$0xff] }
 0x781   : > { %10198 = vpow2.f32 %v5754_v7  ;;  %v13346_v7 = vld [vmem:[#allocation183_spill] sm:$0xff] }
 0x789   : > { %v10195_v56 = vpop.eup %10194 }
 0x78a   : > { %v10197_v60 = vpop.eup %10196 }
 0x78b   : > { %v5756_v47 = vadd.f32 %v10197_v60, %v10195_v56  ;;  %v10199_v55 = vpop.eup %10198 }
 0x78d   : > { %v5757_v25 = vadd.f32 %v10199_v55, %v5756_v47  ;;  %v13349_v47 = vld [vmem:[#allocation177_spill] sm:$0xff] }
 0x78f   : > { %10200 = vrcp.f32 %v5757_v25  ;;  %v13351_v25 = vld [vmem:[#allocation178_spill] sm:$0xff] }
 0x799   : > { %v10201_v41 = vpop.eup %10200 }
 0x79a   : > { %v5760_v4 = vmul.f32 %v10201_v41, %v10195_v56  ;;  %v5761_v46 = vmul.f32 %v10201_v41, %v10197_v60  ;;  %v5762_v36 = vmul.f32 %v10201_v41, %v10199_v55  ;;  %v13347_v56 = vld [vmem:[#allocation174_spill] sm:$0xff]  ;;  %v13348_v60 = vld [vmem:[#allocation184_spill] sm:$0xff]  ;;  %v13350_v55 = vld [vmem:[#allocation187_spill] sm:$0xff] }
 0x79b   : > { %v13352_v41 = vld [vmem:[#allocation188_spill] sm:$0xff] }
 0x79c   : > { %8458 = vmatmul.mubr.msk.f32.vlgmr.msra.gmra.mrb[96].mxu0 %vm4300_vm6, %v5760_v4  ;;  %8461 = vmatmul.mubr.msk.f32.vlgmr.msra.gmra.mrb[88].mxu1 %vm4300_vm6, %v5760_v4 }
 0x79d   : > { %5842 = vmatprep.mubr.f32.mxu0 %v13186_v27  ;;  %5925 = vmatprep.mubr.f32.mxu1 %v13186_v27 }
 0x79e   : > { %9829 = vmatpush1.bf16.msra.mxu0 %v11787_v13  ;;  %9833 = vmatpush1.bf16.msra.mxu1 %v11751_v23 }
 0x79f   : > { %8977 = vmatprep.subr.bf16.mxu0 %v11790_v29  ;;  %8999 = vmatprep.subr.bf16.mxu1 %v13330_v26  ;;  %v13331_v29 = vld [vmem:[#allocation166_spill] sm:$0xff]  ;;  %v13356_v26 = vld [vmem:[#allocation191_spill] sm:$0xff] }
 0x7a0   : > { %8459 = vmatmul.mubr.msk.f32.gmra.mrb[98].mxu0 %vm4300_vm6, %v5761_v46  ;;  %8462 = vmatmul.mubr.msk.f32.gmra.mrb[90].mxu1 %vm4300_vm6, %v5761_v46 }
 0x7a1   : > { %5848 = vmatprep.mubr.f32.mxu0 %v13186_v27  ;;  %5931 = vmatprep.mubr.f32.mxu1 %v13186_v27 }
 0x7a4   : > { %8460 = vmatmul.mubr.msk.f32.gmra.mrb[100].mxu0 %vm4300_vm6, %v5762_v36  ;;  %8463 = vmatmul.mubr.msk.f32.gmra.mrb[92].mxu1 %vm4300_vm6, %v5762_v36 }
 0x7a5   : > { %6002 = vmatprep.mubr.f32.mxu0 %v13186_v27  ;;  %6085 = vmatprep.mubr.f32.mxu1 %v13186_v27 }
 0x7a8   : > { %8464 = vmatmul.mubr.msk.f32.vlgmr.msra.gmra.mrb[102].mxu0 %vm4300_vm6, %v5760_v4  ;;  %8467 = vmatmul.mubr.msk.f32.vlgmr.msra.gmra.mrb[94].mxu1 %vm4300_vm6, %v5760_v4  ;;  %v13353_v4 = vld [vmem:[#allocation181_spill] sm:$0xff] }
 0x7a9   : > { %6008 = vmatprep.mubr.f32.mxu0 %v13186_v27  ;;  %6091 = vmatprep.mubr.f32.mxu1 %v13186_v27 }
 0x7aa   : > { %8978 = vmatpush3.bf16.msra.mxu0 %v13331_v29  ;;  %9000 = vmatpush3.bf16.msra.mxu1 %v13332_v31  ;;  %v13357_v29 = vld [vmem:[#allocation185_spill] sm:$0xff]  ;;  %v13358_v31 = vld [vmem:[#allocation192_spill] sm:$0xff] }
 0x7ab   : > { %8979 = vmatprep.subr.bf16.mxu0 %v13333_v37  ;;  %9001 = vmatprep.subr.bf16.mxu1 %v13334_v43  ;;  %v13359_v37 = vld [vmem:[#allocation186_spill] sm:$0xff]  ;;  %v13360_v43 = vld [vmem:[#allocation193_spill] sm:$0xff] }
 0x7ac   : > { %8465 = vmatmul.mubr.msk.f32.gmra.mrb[104].mxu0 %vm4300_vm6, %v5761_v46  ;;  %8468 = vmatmul.mubr.msk.f32.gmra.mrb[96].mxu1 %vm4300_vm6, %v5761_v46  ;;  %v13354_v46 = vld [vmem:[#allocation190_spill] sm:$0xff] }
 0x7ad   : > { %6014 = vmatprep.mubr.f32.mxu0 %v13186_v27  ;;  %6097 = vmatprep.mubr.f32.mxu1 %v13186_v27 }
 0x7ae   : > { %8980 = vmatpush3.bf16.msra.mxu0 %v13335_v63  ;;  %9002 = vmatpush3.bf16.msra.mxu1 %v13336_v39  ;;  %v13361_v63 = vld [vmem:[#allocation189_spill] sm:$0xff]  ;;  %v13362_v39 = vld [vmem:[#allocation194_spill] sm:$0xff] }
 0x7af   : > { %8981 = vmatprep.subr.bf16.mxu0 %v13337_v51  ;;  %9003 = vmatprep.subr.bf16.mxu1 %v13338_v48 }
 0x7b0   : > { %8466 = vmatmul.mubr.msk.f32.gmra.mrb[106].mxu0 %vm4300_vm6, %v5762_v36  ;;  %8469 = vmatmul.mubr.msk.f32.gmra.mrb[98].mxu1 %vm4300_vm6, %v5762_v36  ;;  %v13355_v36 = vld [vmem:[#allocation182_spill] sm:$0xff] }
 0x7b2   : > { %8982 = vmatpush3.bf16.msra.mxu0 %v13339_v20  ;;  %9004 = vmatpush3.bf16.msra.mxu1 %v13340_v42 }
 0x7b3   : > { %8983 = vmatprep.subr.bf16.mxu0 %v13341_v38  ;;  %9005 = vmatprep.subr.bf16.mxu1 %v13342_v10 }
 0x7b6   : > { %8984 = vmatpush3.bf16.msra.mxu0 %v13343_v16  ;;  %9006 = vmatpush3.bf16.msra.mxu1 %v13344_v14 }
 0x7b7   : > { %8985 = vmatprep.subr.bf16.mxu0 %v13345_v58  ;;  %9007 = vmatprep.subr.bf16.mxu1 %v13346_v7 }
 0x7ba   : > { %8986 = vmatpush3.bf16.msra.mxu0 %v13347_v56  ;;  %9008 = vmatpush3.bf16.msra.mxu1 %v13348_v60 }
 0x7bb   : > { %8987 = vmatprep.subr.bf16.mxu0 %v13349_v47  ;;  %9009 = vmatprep.subr.bf16.mxu1 %v13350_v55  ;;  %v13363_v47 = vld [vmem:[#allocation79_spill] sm:$0xff] }
 0x7be   : > { %8988 = vmatpush3.bf16.msra.mxu0 %v13351_v25  ;;  %9010 = vmatpush3.bf16.msra.mxu1 %v13352_v41  ;;  %v13364_v41 = vld [vmem:[#allocation195_spill] sm:$0xff] }
 0x7bf   : > { %8989 = vmatprep.subr.bf16.mxu0 %v13353_v4  ;;  %9011 = vmatprep.subr.bf16.mxu1 %v13354_v46 }
 0x7c2   : > { %8990 = vmatpush3.bf16.msra.mxu0 %v13355_v36  ;;  %9012 = vmatpush3.bf16.msra.mxu1 %v13356_v26 }
 0x7c3   : > { %8991 = vmatprep.subr.bf16.mxu0 %v13357_v29  ;;  %9013 = vmatprep.subr.bf16.mxu1 %v13358_v31 }
 0x7c6   : > { %8992 = vmatpush3.bf16.msra.mxu0 %v13359_v37  ;;  %9014 = vmatpush3.bf16.msra.mxu1 %v13360_v43 }
 0x7c7   : > { %9021 = vmatprep.subr.bf16.mxu0 %v13361_v63  ;;  %9043 = vmatprep.subr.bf16.mxu1 %v13362_v39 }
 0x86f   : > { %v5838_v51 = vpop.f32.mrb[96].mxu0  ;;  %v5921_v48 = vpop.f32.mrb[88].mxu1 }
 0x870   : > { %v5840_v20 = vpop.f32.mrb[97].mxu0  ;;  %v5923_v42 = vpop.f32.mrb[89].mxu1  ;;  %v6104_v16 = vmul.f32 %v5838_v51, %v11935_v45  ;;  %v6106_v14 = vmul.f32 %v5921_v48, %v11994_v19 }
 0x871   : > { %v6105_v55 = vmul.f32 %v5840_v20, %v13363_v47  ;;  %v6107_v25 = vmul.f32 %v5923_v42, %v12005_v62 }
 0x873   : > { %v5844_v38 = vpop.f32.mrb[98].mxu0  ;;  %v5927_v10 = vpop.f32.mrb[90].mxu1 }
 0x874   : > { %v6112_v58 = vmul.f32 %v5844_v38, %v11938_v32  ;;  %v6114_v7 = vmul.f32 %v5927_v10, %v11997_v49  ;;  %v5846_v56 = vpop.f32.mrb[99].mxu0  ;;  %v5929_v60 = vpop.f32.mrb[91].mxu1  ;;  %v13365_v38 = vld [vmem:[#allocation198_spill] sm:$0xff] }
 0x875   : > { %v6113_v4 = vmul.f32 %v5846_v56, %v13364_v41  ;;  %v6115_v46 = vmul.f32 %v5929_v60, %v12008_v11 }
 0x876   : > { %v6120_v36 = vadd.f32 %v6112_v58, %v6104_v16  ;;  %v6122_v26 = vadd.f32 %v6114_v7, %v6106_v14 }
 0x877   : > { %v6121_v29 = vadd.f32 %v6113_v4, %v6105_v55  ;;  %v6123_v31 = vadd.f32 %v6115_v46, %v6107_v25  ;;  %v5850_v37 = vpop.f32.mrb[100].mxu0  ;;  %v5933_v43 = vpop.f32.mrb[92].mxu1 }
 0x878   : > { %v6128_v63 = vmul.f32 %v5850_v37, %v11955_v61  ;;  %v6130_v39 = vmul.f32 %v5933_v43, %v12011_v30  ;;  %v5852_v51 = vpop.f32.mrb[101].mxu0  ;;  %v5935_v48 = vpop.f32.mrb[93].mxu1  ;;  %v13366_v43 = vld [vmem:[#allocation196_spill] sm:$0xff] }
 0x879   : > { %v6129_v20 = vmul.f32 %v5852_v51, %v13365_v38  ;;  %v6131_v42 = vmul.f32 %v5935_v48, %v12016_v28 }
 0x87a   : > { %v6136_v10 = vadd.f32 %v6128_v63, %v6120_v36  ;;  %v6138_v56 = vadd.f32 %v6130_v39, %v6122_v26 }
 0x87b   : > { %v6137_v41 = vadd.f32 %v6129_v20, %v6121_v29  ;;  %v6139_v60 = vadd.f32 %v6131_v42, %v6123_v31  ;;  %v6004_v16 = vpop.f32.mrb[102].mxu0  ;;  %v6087_v14 = vpop.f32.mrb[94].mxu1  ;;  %v13367_v29 = vld [vmem:[#allocation197_spill] sm:$0xff]  ;;  %v13369_v42 = vld [vmem:[#allocation200_spill] sm:$0xff] }
 0x87c   : > { %v6006_v58 = vpop.f32.mrb[103].mxu0  ;;  %v6089_v7 = vpop.f32.mrb[95].mxu1  ;;  %v6144_v4 = vpack.c.bf16 %v6136_v10, %v6136_v10  ;;  %v6146_v46 = vpack.c.bf16 %v6138_v56, %v6138_v56  ;;  %v6108_v37 = vmul.f32 %v6004_v16, %v12041_v40  ;;  %v6110_v30 = vmul.f32 %v6087_v14, %v13366_v43 }
 0x87d   : > { %v6145_v55 = vpack.c.bf16 %v6137_v41, %v6137_v41  ;;  %v6147_v25 = vpack.c.bf16 %v6139_v60, %v6139_v60  ;;  %v6109_v36 = vmul.f32 %v6006_v58, %v12051_v21  ;;  %v13368_v41 = vld [vmem:[#allocation199_spill] sm:$0xff] }
 0x87e   : > { %v6111_v48 = vmul.f32 %v6089_v7, %v13368_v41 }
 0x87f   : > { %v6010_v61 = vpop.f32.mrb[104].mxu0  ;;  %v6093_v51 = vpop.f32.mrb[96].mxu1  ;;  %6184 = vmatprep.mubr.bf16.mxu0 %v6145_v55  ;;  %6224 = vmatprep.mubr.bf16.mxu1 %v6147_v25 }
 0x880   : > { %v6116_v26 = vmul.f32 %v6010_v61, %v12044_v57  ;;  %v6118_v31 = vmul.f32 %v6093_v51, %v13367_v29  ;;  %v6012_v63 = vpop.f32.mrb[105].mxu0  ;;  %v6095_v39 = vpop.f32.mrb[97].mxu1  ;;  %6185 = vmatmul.mubr.bf16.vlgmr.msra.gmra.mrb[108].mxu0 %v6144_v4  ;;  %6225 = vmatmul.mubr.bf16.vlgmr.msra.gmra.mrb[100].mxu1 %v6146_v46 }
 0x881   : > { %v6117_v20 = vmul.f32 %v6012_v63, %v12054_v3  ;;  %v6119_v10 = vmul.f32 %v6095_v39, %v13369_v42  ;;  %9022 = vmatpush3.bf16.msra.mxu0 %v11991_v53  ;;  %9044 = vmatpush3.bf16.msra.mxu1 %v12057_v22  ;;  %v13385_v63 = vld [vmem:[#allocation127_spill] sm:$0xff]  ;;  %v13386_v39 = vld [vmem:[#allocation44_spill] sm:$0xff] }
 0x882   : > { %v6124_v56 = vadd.f32 %v6116_v26, %v6108_v37  ;;  %v6126_v60 = vadd.f32 %v6118_v31, %v6110_v30  ;;  %9023 = vmatprep.subr.bf16.mxu0 %v12002_v59  ;;  %9045 = vmatprep.subr.bf16.mxu1 %v12062_v18  ;;  %v13382_v26 = vld [vmem:[#allocation41_spill] sm:$0xff]  ;;  %v13384_v31 = vld [vmem:[#allocation43_spill] sm:$0xff] }
 0x883   : > { %v6125_v61 = vadd.f32 %v6117_v20, %v6109_v36  ;;  %v6127_v16 = vadd.f32 %v6119_v10, %v6111_v48  ;;  %v6016_v14 = vpop.f32.mrb[106].mxu0  ;;  %v6099_v58 = vpop.f32.mrb[98].mxu1  ;;  %v13387_v48 = vld [vmem:[#allocation128_spill] sm:$0xff]  ;;  %v13388_v20 = vld [vmem:[#allocation45_spill] sm:$0xff]  ;;  %v13389_v10 = vld [vmem:[#allocation46_spill] sm:$0xff] }
 0x884   : > { %v6132_v7 = vmul.f32 %v6016_v14, %v12071_v50  ;;  %v6134_v55 = vmul.f32 %v6099_v58, %v11981_v34  ;;  %v6018_v25 = vpop.f32.mrb[107].mxu0  ;;  %v6101_v4 = vpop.f32.mrb[99].mxu1  ;;  %v13394_v14 = vld [vmem:[#allocation51_spill] sm:$0xff]  ;;  %v13395_v58 = vld [vmem:[#allocation52_spill] sm:$0xff] }
 0x885   : > { %v6133_v53 = vmul.f32 %v6018_v25, %v12078_v35  ;;  %v6135_v22 = vmul.f32 %v6101_v4, %v11986_v9  ;;  %9024 = vmatpush3.bf16.msra.mxu0 %v12022_v24  ;;  %9046 = vmatpush3.bf16.msra.mxu1 %v12082_v33  ;;  %v13370_v24 = vld [vmem:[#allocation203_spill] sm:$0xff]  ;;  %v13374_v33 = vld [vmem:[#allocation82_spill] sm:$0xff]  ;;  %v13399_v4 = vld [vmem:[#allocation56_spill] sm:$0xff] }
 0x886   : > { %v6140_v59 = vadd.f32 %v6132_v7, %v6124_v56  ;;  %v6142_v30 = vadd.f32 %v6134_v55, %v6126_v60  ;;  %9025 = vmatprep.subr.bf16.mxu0 %v12030_v15  ;;  %9047 = vmatprep.subr.bf16.mxu1 %v12087_v52  ;;  %v13371_v15 = vld [vmem:[#allocation77_spill] sm:$0xff]  ;;  %v13390_v56 = vld [vmem:[#allocation47_spill] sm:$0xff]  ;;  %v13391_v60 = vld [vmem:[#allocation48_spill] sm:$0xff] }
 0x887   : > { %v6141_v18 = vadd.f32 %v6133_v53, %v6125_v61  ;;  %v6143_v46 = vadd.f32 %v6135_v22, %v6127_v16  ;;  %v13376_v52 = vld [vmem:[#allocation201_spill] sm:$0xff]  ;;  %v13393_v16 = vld [vmem:[#allocation50_spill] sm:$0xff]  ;;  %v13398_v25 = vld [vmem:[#allocation55_spill] sm:$0xff] }
 0x888   : > { %v6150_v36 = vpack.c.bf16 %v6142_v30, %v6142_v30  ;;  %v13392_v61 = vld [vmem:[#allocation49_spill] sm:$0xff]  ;;  %v13397_v55 = vld [vmem:[#allocation54_spill] sm:$0xff]  ;;  %v13403_v30 = vld [vmem:[#allocation60_spill] sm:$0xff] }
 0x889   : > { %v6149_v37 = vpack.c.bf16 %v6141_v18, %v6141_v18  ;;  %v6151_v51 = vpack.c.bf16 %v6143_v46, %v6143_v46  ;;  %9026 = vmatpush3.bf16.msra.mxu0 %v12038_v44  ;;  %9048 = vmatpush3.bf16.msra.mxu1 %v12100_v17  ;;  %v13372_v44 = vld [vmem:[#allocation204_spill] sm:$0xff]  ;;  %v13378_v17 = vld [vmem:[#allocation202_spill] sm:$0xff]  ;;  %v13396_v7 = vld [vmem:[#allocation53_spill] sm:$0xff] }
 0x88a   : > { %9027 = vmatprep.subr.bf16.mxu0 %v12048_v6  ;;  %9049 = vmatprep.subr.bf16.mxu1 %v12104_v12  ;;  %v13373_v6 = vld [vmem:[#allocation80_spill] sm:$0xff]  ;;  %v13380_v12 = vld [vmem:[#allocation205_spill] sm:$0xff]  ;;  %v13401_v22 = vld [vmem:[#allocation58_spill] sm:$0xff] }
 0x88b   : > { %6264 = vmatprep.mubr.bf16.mxu0 %v6149_v37  ;;  %6304 = vmatprep.mubr.bf16.mxu1 %v6151_v51  ;;  %v13400_v53 = vld [vmem:[#allocation57_spill] sm:$0xff]  ;;  %v13405_v46 = vld [vmem:[#allocation62_spill] sm:$0xff]  ;;  %v13406_v37 = vld [vmem:[#allocation63_spill] sm:$0xff] }
 0x88c   : > { %v13404_v18 = vld [vmem:[#allocation61_spill] sm:$0xff]  ;;  %v13407_v51 = vld [vmem:[#allocation64_spill] sm:$0xff] }
 0x88d   : > { %9028 = vmatpush3.bf16.msra.mxu0 %v12068_v0  ;;  %9050 = vmatpush3.bf16.msra.mxu1 %v12116_v5  ;;  %v13375_v0 = vld [vmem:[#allocation206_spill] sm:$0xff]  ;;  %v13381_v5 = vld [vmem:[#allocation209_spill] sm:$0xff] }
 0x88e   : > { %9029 = vmatprep.subr.bf16.mxu0 %v12075_v54  ;;  %9051 = vmatprep.subr.bf16.mxu1 %v12120_v2  ;;  %v13377_v54 = vld [vmem:[#allocation207_spill] sm:$0xff]  ;;  %v6148_v2 = vpack.c.bf16 %v6140_v59, %v6140_v59 }
 0x88f   : > { %v13402_v59 = vld [vmem:[#allocation59_spill] sm:$0xff] }
 0x891   : > { %9030 = vmatpush3.bf16.msra.mxu0 %v12092_v8  ;;  %9052 = vmatpush3.bf16.msra.mxu1 %v13370_v24  ;;  %v13379_v8 = vld [vmem:[#allocation208_spill] sm:$0xff]  ;;  %v13408_v24 = vld [vmem:[#allocation65_spill] sm:$0xff] }
 0x892   : > { %9031 = vmatprep.subr.bf16.mxu0 %v13371_v15  ;;  %9053 = vmatprep.subr.bf16.mxu1 %v13372_v44  ;;  %v13409_v15 = vld [vmem:[#allocation66_spill] sm:$0xff]  ;;  %v13410_v44 = vld [vmem:[#allocation67_spill] sm:$0xff] }
 0x895   : > { %9032 = vmatpush3.bf16.msra.mxu0 %v13373_v6  ;;  %9054 = vmatpush3.bf16.msra.mxu1 %v12145_v1  ;;  %v13383_v1 = vld [vmem:[#allocation42_spill] sm:$0xff]  ;;  %v13411_v6 = vld [vmem:[#allocation68_spill] sm:$0xff] }
 0x896   : > { %9033 = vmatprep.subr.bf16.mxu0 %v13374_v33  ;;  %9055 = vmatprep.subr.bf16.mxu1 %v13375_v0  ;;  %v13412_v33 = vld [vmem:[#allocation69_spill] sm:$0xff]  ;;  %v13413_v0 = vld [vmem:[#allocation70_spill] sm:$0xff] }
 0x899   : > { %9034 = vmatpush3.bf16.msra.mxu0 %v13376_v52  ;;  %9056 = vmatpush3.bf16.msra.mxu1 %v13377_v54  ;;  %v13414_v52 = vld [vmem:[#allocation71_spill] sm:$0xff]  ;;  %v13415_v54 = vld [vmem:[#allocation72_spill] sm:$0xff] }
 0x89a   : > { %9035 = vmatprep.subr.bf16.mxu0 %v13378_v17  ;;  %9057 = vmatprep.subr.bf16.mxu1 %v13379_v8  ;;  %v13416_v17 = vld [vmem:[#allocation73_spill] sm:$0xff]  ;;  %v13417_v8 = vld [vmem:[#allocation74_spill] sm:$0xff] }
 0x89d   : > { %9036 = vmatpush3.bf16.msra.mxu0 %v13380_v12  ;;  %9058 = vmatpush3.bf16.msra.mxu1 %v13381_v5  ;;  %v13418_v12 = vld [vmem:[#allocation84_spill] sm:$0xff]  ;;  %v13419_v5 = vld [vmem:[#allocation87_spill] sm:$0xff] }
 0x89e   : > { %9835 = vmatprep.subr.bf16.mxu0 %v13382_v26  ;;  %9867 = vmatprep.subr.bf16.mxu1 %v13383_v1  ;;  %v13422_v26 = vld [vmem:[#allocation88_spill] sm:$0xff]  ;;  %v13423_v1 = vld [vmem:[#allocation91_spill] sm:$0xff] }
 0x8a0   : > { %6265 = vmatmul.mubr.bf16.vlgmr.msra.gmra.mrb[112].mxu0 %v6148_v2  ;;  %6305 = vmatmul.mubr.bf16.vlgmr.msra.gmra.mrb[104].mxu1 %v6150_v36  ;;  %v13420_v2 = vld [vmem:[#allocation129_spill] sm:$0xff]  ;;  %v13421_v36 = vld [vmem:[#allocation132_spill] sm:$0xff] }
 0x8a1   : > { %9837 = vmatpush3.bf16.msra.mxu0 %v13384_v31  ;;  %6408 = vmatprep.mubr.f32.mxu0 %v13385_v63  ;;  %v13424_v31 = vld [vmem:[#allocation92_spill] sm:$0xff]  ;;  %v13425_v63 = vld [vmem:[#allocation133_spill] sm:$0xff] }
 0x8a2   : > { %9869 = vmatpush3.bf16.msra.mxu1 %v13386_v39  ;;  %6488 = vmatprep.mubr.f32.mxu1 %v13387_v48  ;;  %v13426_v39 = vld [vmem:[#allocation94_spill] sm:$0xff] }
 0x8a3   : > { %9839 = vmatprep.subr.bf16.mxu0 %v13388_v20  ;;  %9871 = vmatprep.subr.bf16.mxu1 %v13389_v10  ;;  %v13427_v48 = vld [vmem:[#allocation134_spill] sm:$0xff]  ;;  %v13428_v20 = vld [vmem:[#allocation135_spill] sm:$0xff]  ;;  %v13429_v10 = vld [vmem:[#allocation136_spill] sm:$0xff] }
 0x8a5   : > { %9841 = vmatpush3.bf16.msra.mxu0 %v13390_v56  ;;  %v13430_v56 = vld [vmem:[#allocation95_spill] sm:$0xff] }
 0x8a6   : > { %9873 = vmatpush3.bf16.msra.mxu1 %v13391_v60  ;;  %9843 = vmatprep.subr.bf16.mxu0 %v13392_v61  ;;  %v13431_v60 = vld [vmem:[#allocation96_spill] sm:$0xff]  ;;  %v13432_v61 = vld [vmem:[#allocation97_spill] sm:$0xff] }
 0x8a7   : > { %9875 = vmatprep.subr.bf16.mxu1 %v13393_v16  ;;  %v13433_v16 = vld [vmem:[#allocation137_spill] sm:$0xff] }
 0x8a9   : > { %9845 = vmatpush3.bf16.msra.mxu0 %v13394_v14  ;;  %v13434_v14 = vld [vmem:[#allocation98_spill] sm:$0xff] }
 0x8aa   : > { %9877 = vmatpush3.bf16.msra.mxu1 %v13395_v58  ;;  %9847 = vmatprep.subr.bf16.mxu0 %v13396_v7  ;;  %v13435_v58 = vld [vmem:[#allocation85_spill] sm:$0xff]  ;;  %v13436_v7 = vld [vmem:[#allocation139_spill] sm:$0xff] }
 0x8ab   : > { %9879 = vmatprep.subr.bf16.mxu1 %v13397_v55  ;;  %v13437_v55 = vld [vmem:[#allocation99_spill] sm:$0xff] }
 0x8ad   : > { %9849 = vmatpush3.bf16.msra.mxu0 %v13398_v25  ;;  %v13438_v25 = vld [vmem:[#allocation140_spill] sm:$0xff] }
 0x8ae   : > { %9881 = vmatpush3.bf16.msra.mxu1 %v13399_v4  ;;  %9851 = vmatprep.subr.bf16.mxu0 %v13400_v53  ;;  %v13439_v4 = vld [vmem:[#allocation100_spill] sm:$0xff]  ;;  %v13440_v53 = vld [vmem:[#allocation105_spill] sm:$0xff] }
 0x8af   : > { %9883 = vmatprep.subr.bf16.mxu1 %v13401_v22  ;;  %v13441_v22 = vld [vmem:[#allocation106_spill] sm:$0xff] }
 0x8b1   : > { %9853 = vmatpush3.bf16.msra.mxu0 %v13402_v59  ;;  %v13442_v59 = vld [vmem:[#allocation107_spill] sm:$0xff] }
 0x8b2   : > { %9885 = vmatpush3.bf16.msra.mxu1 %v13403_v30  ;;  %9855 = vmatprep.subr.bf16.mxu0 %v13404_v18  ;;  %v13443_v30 = vld [vmem:[#allocation108_spill] sm:$0xff]  ;;  %v13444_v18 = vld [vmem:[#allocation109_spill] sm:$0xff] }
 0x8b3   : > { %9887 = vmatprep.subr.bf16.mxu1 %v13405_v46  ;;  %v13445_v46 = vld [vmem:[#allocation110_spill] sm:$0xff] }
 0x8b5   : > { %9857 = vmatpush3.bf16.msra.mxu0 %v13406_v37  ;;  %v13446_v37 = vld [vmem:[#allocation112_spill] sm:$0xff] }
 0x8b6   : > { %9889 = vmatpush3.bf16.msra.mxu1 %v13407_v51  ;;  %9859 = vmatprep.subr.bf16.mxu0 %v13408_v24  ;;  %v13447_v51 = vld [vmem:[#allocation113_spill] sm:$0xff]  ;;  %v13448_v24 = vld [vmem:[#allocation114_spill] sm:$0xff] }
 0x8b7   : > { %9891 = vmatprep.subr.bf16.mxu1 %v13409_v15  ;;  %v13449_v15 = vld [vmem:[#allocation115_spill] sm:$0xff] }
 0x8b9   : > { %9861 = vmatpush3.bf16.msra.mxu0 %v13410_v44  ;;  %v13450_v44 = vld [vmem:[#allocation116_spill] sm:$0xff] }
 0x8ba   : > { %9893 = vmatpush3.bf16.msra.mxu1 %v13411_v6  ;;  %9863 = vmatprep.subr.bf16.mxu0 %v13412_v33  ;;  %v13451_v6 = vld [vmem:[#allocation117_spill] sm:$0xff]  ;;  %v13452_v33 = vld [vmem:[#allocation118_spill] sm:$0xff] }
 0x8bb   : > { %9895 = vmatprep.subr.bf16.mxu1 %v13413_v0  ;;  %v13453_v0 = vld [vmem:[#allocation119_spill] sm:$0xff] }
 0x8bd   : > { %9865 = vmatpush3.bf16.msra.mxu0 %v13414_v52  ;;  %v13454_v52 = vld [vmem:[#allocation120_spill] sm:$0xff] }
 0x8be   : > { %9897 = vmatpush3.bf16.msra.mxu1 %v13415_v54  ;;  %9899 = vmatprep.subr.bf16.mxu0 %v13416_v17  ;;  %v13455_v54 = vld [vmem:[#allocation121_spill] sm:$0xff]  ;;  %v13456_v17 = vld [vmem:[#allocation122_spill] sm:$0xff] }
 0x8bf   : > { %9931 = vmatprep.subr.bf16.mxu1 %v13417_v8  ;;  %v13457_v8 = vld [vmem:[#allocation152_spill] sm:$0xff] }
 0x8c0   : > { %6409 = vmatmul.mubr.f32.vlgmr.msra.gmra.mrb[116].mxu0 %v13418_v12  ;;  %v13458_v12 = vld [vmem:[#allocation154_spill] sm:$0xff] }
 0x8c1   : > { %6489 = vmatmul.mubr.f32.vlgmr.msra.gmra.mrb[108].mxu1 %v13419_v5  ;;  %6413 = vmatprep.mubr.f32.mxu0 %v13420_v2  ;;  %v13459_v5 = vld [vmem:[#allocation155_spill] sm:$0xff]  ;;  %v13460_v2 = vld [vmem:[#allocation156_spill] sm:$0xff] }
 0x8c2   : > { %6493 = vmatprep.mubr.f32.mxu1 %v13421_v36  ;;  %9901 = vmatpush3.bf16.msra.mxu0 %v13422_v26  ;;  %v13461_v36 = vld [vmem:[#allocation158_spill] sm:$0xff] }
 0x8c3   : > { %9933 = vmatpush3.bf16.msra.mxu1 %v13423_v1  ;;  %9903 = vmatprep.subr.bf16.mxu0 %v13424_v31  ;;  %v13462_v26 = vld [vmem:[#allocation90_spill] sm:$0xff]  ;;  %v13463_v1 = vld [vmem:[#allocation93_spill] sm:$0xff] }
 0x8c4   : > { %6414 = vmatmul.mubr.f32.gmra.mrb[118].mxu0 %v13425_v63  ;;  %9935 = vmatprep.subr.bf16.mxu1 %v13426_v39  ;;  %v13464_v31 = vld [vmem:[#allocation141_spill] sm:$0xff]  ;;  %v13465_v63 = vld [vmem:[#allocation143_spill] sm:$0xff] }
 0x8c5   : > { %6494 = vmatmul.mubr.f32.gmra.mrb[110].mxu1 %v13427_v48  ;;  %6418 = vmatprep.mubr.f32.mxu0 %v13428_v20  ;;  %v13466_v39 = vld [vmem:[#allocation157_spill] sm:$0xff]  ;;  %v13467_v48 = vld [vmem:[#allocation159_spill] sm:$0xff] }
 0x8c6   : > { %6498 = vmatprep.mubr.f32.mxu1 %v13429_v10  ;;  %9905 = vmatpush3.bf16.msra.mxu0 %v13430_v56  ;;  %v13468_v20 = vld [vmem:[#allocation161_spill] sm:$0xff]  ;;  %v13469_v10 = vld [vmem:[#allocation147_spill] sm:$0xff]  ;;  %v13470_v56 = vld [vmem:[#allocation160_spill] sm:$0xff] }
 0x8c7   : > { %9937 = vmatpush3.bf16.msra.mxu1 %v13431_v60  ;;  %9907 = vmatprep.subr.bf16.mxu0 %v13432_v61  ;;  %v13471_v60 = vld [vmem:[#allocation148_spill] sm:$0xff]  ;;  %v13472_v61 = vld [vmem:[#allocation149_spill] sm:$0xff] }
 0x8c8   : > { %6419 = vmatmul.mubr.f32.gmra.mrb[120].mxu0 %v13433_v16  ;;  %9939 = vmatprep.subr.bf16.mxu1 %v13434_v14  ;;  %v13473_v16 = vld [vmem:[#allocation150_spill] sm:$0xff]  ;;  %v13474_v14 = vld [vmem:[#allocation151_spill] sm:$0xff] }
 0x8c9   : > { %6499 = vmatmul.mubr.f32.gmra.mrb[112].mxu1 %v13435_v58  ;;  %6568 = vmatprep.mubr.f32.mxu0 %v13436_v7  ;;  %v13475_v58 = vld [vmem:[#allocation153_spill] sm:$0xff] }
 0x8ca   : > { %9909 = vmatpush3.bf16.msra.mxu0 %v13437_v55  ;;  %6648 = vmatprep.mubr.f32.mxu1 %v13438_v25 }
 0x8cb   : > { %9941 = vmatpush3.bf16.msra.mxu1 %v13439_v4  ;;  %9911 = vmatprep.subr.bf16.mxu0 %v13440_v53 }
 0x8cc   : > { %9943 = vmatprep.subr.bf16.mxu1 %v13441_v22 }
 0x8ce   : > { %9913 = vmatpush3.bf16.msra.mxu0 %v13442_v59 }
 0x8cf   : > { %9945 = vmatpush3.bf16.msra.mxu1 %v13443_v30  ;;  %9915 = vmatprep.subr.bf16.mxu0 %v13444_v18 }
 0x8d0   : > { %9947 = vmatprep.subr.bf16.mxu1 %v13445_v46 }
 0x8d2   : > { %9917 = vmatpush3.bf16.msra.mxu0 %v13446_v37  ;;  %v13476_v37 = vld [vmem:[#allocation123_spill] sm:$0xff] }
 0x8d3   : > { %9949 = vmatpush3.bf16.msra.mxu1 %v13447_v51  ;;  %9919 = vmatprep.subr.bf16.mxu0 %v13448_v24 }
 0x8d4   : > { %9951 = vmatprep.subr.bf16.mxu1 %v13449_v15 }
 0x8d6   : > { %9921 = vmatpush3.bf16.msra.mxu0 %v13450_v44 }
 0x8d7   : > { %9953 = vmatpush3.bf16.msra.mxu1 %v13451_v6  ;;  %9923 = vmatprep.subr.bf16.mxu0 %v13452_v33 }
 0x8d8   : > { %9955 = vmatprep.subr.bf16.mxu1 %v13453_v0 }
 0x8da   : > { %9925 = vmatpush3.bf16.msra.mxu0 %v13454_v52 }
 0x8db   : > { %9957 = vmatpush3.bf16.msra.mxu1 %v13455_v54  ;;  %9927 = vmatprep.subr.bf16.mxu0 %v13456_v17 }
 0x8dc   : > { %9959 = vmatprep.subr.bf16.mxu1 %v13457_v8 }
 0x8de   : > { %9929 = vmatpush3.bf16.msra.mxu0 %v13458_v12 }
 0x8df   : > { %9961 = vmatpush3.bf16.msra.mxu1 %v13459_v5  ;;  %9963 = vmatprep.subr.bf16.mxu0 %v13460_v2  ;;  %v13477_v5 = vld [vmem:[#allocation83_spill] sm:$0xff] }
 0x8e0   : > { %9967 = vmatprep.subr.bf16.mxu1 %v13461_v36  ;;  %v7232_v2 = vmul.f32 0.7072136, %v13477_v5  ;;  %v10226_v36 = vld [vmem:[#allocation2] sm:$0xff] }
 0x8e1   : > { %6569 = vmatmul.mubr.f32.vlgmr.msra.gmra.mrb[122].mxu0 %v13462_v26  ;;  %v7235_v26 = vmul.f32 0.7072136, %v10226_v36 }
 0x8e2   : > { %6649 = vmatmul.mubr.f32.vlgmr.msra.gmra.mrb[114].mxu1 %v13463_v1  ;;  %6573 = vmatprep.mubr.f32.mxu0 %v13464_v31 }
 0x8e3   : > { %6653 = vmatprep.mubr.f32.mxu1 %v13465_v63  ;;  %9965 = vmatpush1.bf16.msra.mxu0 %v13466_v39  ;;  %v10227_v63 = vld [vmem:[#allocation2 + $0x8] sm:$0xff] }
 0x8e4   : > { %9969 = vmatpush1.bf16.msra.mxu1 %v13467_v48  ;;  %9971 = vmatprep.subr.bf16.mxu0 %v13468_v20  ;;  %v7236_v39 = vmul.f32 0.7072136, %v10227_v63  ;;  %v12480_v48 = vadd.f32 %v7235_v26, %v7232_v2 }
 0x8e5   : > { %6574 = vmatmul.mubr.f32.gmra.mrb[124].mxu0 %v13469_v10  ;;  %9975 = vmatprep.subr.bf16.mxu1 %v13470_v56 }
 0x8e6   : > { %6654 = vmatmul.mubr.f32.gmra.mrb[116].mxu1 %v13471_v60  ;;  %6578 = vmatprep.mubr.f32.mxu0 %v13472_v61  ;;  %v7241_v56 = vsel %vm2579_vm1, %v12480_v48, 0.0 }
 0x8e7   : > { %6658 = vmatprep.mubr.f32.mxu1 %v13473_v16 }
 0x8e9   : > { %6579 = vmatmul.mubr.f32.gmra.mrb[126].mxu0 %v13474_v14 }
 0x8ea   : > { %6659 = vmatmul.mubr.f32.gmra.mrb[118].mxu1 %v13475_v58  ;;  %6755 = vmatprep.mubr.f32.mxu0 %v13186_v27 }
 0x8eb   : > { %6838 = vmatprep.mubr.f32.mxu1 %v13186_v27 }
 0x953   : > { %v8993_v7 = vpop.f32.mrb[108].mxu0  ;;  %v9015_v55 = vpop.f32.mrb[100].mxu1 }
 0x954   : > { %v8994_v25 = vpop.f32.mrb[109].mxu0  ;;  %v9016_v4 = vpop.f32.mrb[101].mxu1 }
 0x955   : > { %v8995_v53 = vadd.f32 %v8994_v25, %v8993_v7  ;;  %v9017_v22 = vadd.f32 %v9016_v4, %v9015_v55  ;;  %v8996_v59 = vpop.f32.mrb[110].mxu0  ;;  %v9018_v30 = vpop.f32.mrb[102].mxu1 }
 0x956   : > { %v8997_v18 = vpop.f32.mrb[111].mxu0  ;;  %v9019_v46 = vpop.f32.mrb[103].mxu1 }
 0x957   : > { %v6187_v51 = vadd.f32 %v8995_v53, %v13476_v37 }
 0x959   : > { %v6227_v24 = vadd.f32 %v9017_v22, %v6187_v51 }
 0x973   : > { %v9037_v15 = vpop.f32.mrb[112].mxu0  ;;  %v9059_v44 = vpop.f32.mrb[104].mxu1 }
 0x974   : > { %v9038_v6 = vpop.f32.mrb[113].mxu0  ;;  %v9060_v33 = vpop.f32.mrb[105].mxu1 }
 0x975   : > { %v9039_v0 = vadd.f32 %v9038_v6, %v9037_v15  ;;  %v9061_v52 = vadd.f32 %v9060_v33, %v9059_v44  ;;  %v9040_v54 = vpop.f32.mrb[114].mxu0  ;;  %v9062_v17 = vpop.f32.mrb[106].mxu1 }
 0x976   : > { %v9041_v8 = vpop.f32.mrb[115].mxu0  ;;  %v9063_v12 = vpop.f32.mrb[107].mxu1 }
 0x977   : > { %v6267_v1 = vadd.f32 %v9039_v0, %v6227_v24 }
 0x979   : > { %v6307_v31 = vadd.f32 %v9061_v52, %v6267_v1 }
 0x97b   : > { %v7233_v20 = vmul.f32 0.7072136, %v6307_v31 }
 0x97d   : > { %v12482_v10 = vadd.f32 %v7236_v39, %v7233_v20 }
 0x97f   : > { %v7242_v60 = vsel %vm2579_vm1, %v12482_v10, 0.0 }
 0x980   : > { %v12488_v61 = vadd.f32 %v7242_v60, %v7241_v56 }
 0x993   : > { %v9097_v16 = vpop.f32.mrb[116].mxu0 }
 0x994   : > { %v9138_v14 = vpop.f32.mrb[108].mxu1  ;;  %v9098_v58 = vpop.f32.mrb[117].mxu0 }
 0x995   : > { %v9099_v7 = vadd.f32 %v9098_v58, %v9097_v16  ;;  %v9139_v55 = vpop.f32.mrb[109].mxu1 }
 0x996   : > { %v9140_v25 = vadd.f32 %v9139_v55, %v9138_v14 }
 0x997   : > { %v9100_v4 = vpop.f32.mrb[118].mxu0 }
 0x998   : > { %v6491_v53 = vadd.f32 %v9140_v25, %v9099_v7  ;;  %v9141_v22 = vpop.f32.mrb[110].mxu1  ;;  %v9101_v59 = vpop.f32.mrb[119].mxu0 }
 0x999   : > { %v9102_v30 = vadd.f32 %v9101_v59, %v9100_v4  ;;  %v9142_v18 = vpop.f32.mrb[111].mxu1 }
 0x99a   : > { %v9143_v46 = vadd.f32 %v9142_v18, %v9141_v22 }
 0x99b   : > { %v9103_v37 = vpop.f32.mrb[120].mxu0 }
 0x99c   : > { %v6496_v51 = vadd.f32 %v9143_v46, %v9102_v30  ;;  %v9144_v24 = vpop.f32.mrb[112].mxu1  ;;  %v9104_v15 = vpop.f32.mrb[121].mxu0 }
 0x99d   : > { %v9105_v44 = vadd.f32 %v9104_v15, %v9103_v37  ;;  %v9145_v6 = vpop.f32.mrb[113].mxu1 }
 0x99e   : > { %v9146_v33 = vadd.f32 %v9145_v6, %v9144_v24 }
 0x9a0   : > { %v6501_v0 = vadd.f32 %v9146_v33, %v9105_v44 }
 0x9b4   : > { %v9179_v52 = vpop.f32.mrb[122].mxu0 }
 0x9b5   : > { %v9220_v54 = vpop.f32.mrb[114].mxu1  ;;  %v9180_v17 = vpop.f32.mrb[123].mxu0 }
 0x9b6   : > { %v9181_v8 = vadd.f32 %v9180_v17, %v9179_v52  ;;  %v9221_v12 = vpop.f32.mrb[115].mxu1 }
 0x9b7   : > { %v9222_v5 = vadd.f32 %v9221_v12, %v9220_v54  ;;  %v10228_v12 = vld [vmem:[%s10618_s9 + $0x40] sm:$0xff]  }
 0x9b8   : > { %v6571_v2 = vadd.f32 %v9181_v8, %v6491_v53  ;;  %v9182_v36 = vpop.f32.mrb[124].mxu0 }
 0x9b9   : > { %v9223_v26 = vpop.f32.mrb[116].mxu1  ;;  %v9183_v1 = vpop.f32.mrb[125].mxu0 }
 0x9ba   : > { %v6651_v31 = vadd.f32 %v9222_v5, %v6571_v2  ;;  %v9184_v63 = vadd.f32 %v9183_v1, %v9182_v36  ;;  %v9224_v39 = vpop.f32.mrb[117].mxu1  ;;  %v10229_v5 = vld [vmem:[%s10618_s9 + $0xc0] sm:$0xff]   ;;  %v10232_v2 = vld [vmem:[%s10618_s9 + $0x48] sm:$0xff]  }
 0x9bb   : > { %v9225_v20 = vadd.f32 %v9224_v39, %v9223_v26  ;;  %v10233_v36 = vld [vmem:[%s10618_s9 + $0xc8] sm:$0xff]   ;;  %v10238_v39 = vld [vmem:[%s10618_s9 + $0x10] sm:$0xff]  }
 0x9bc   : > { %v6576_v56 = vadd.f32 %v9184_v63, %v6496_v51  ;;  %v9185_v60 = vpop.f32.mrb[126].mxu0  ;;  %v10234_v26 = vld [vmem:[%s10618_s9 + $0x8] sm:$0xff]   ;;  %v10237_v63 = vld [vmem:[%s10618_s9 + $0xd0] sm:$0xff]  }
 0x9bd   : > { %v9226_v16 = vpop.f32.mrb[118].mxu1  ;;  %v9186_v14 = vpop.f32.mrb[127].mxu0  ;;  %v10235_v1 = vld [vmem:[%s10618_s9 + $0x88] sm:$0xff]  }
 0x9be   : > { %v6656_v58 = vadd.f32 %v9225_v20, %v6576_v56  ;;  %v9187_v7 = vadd.f32 %v9186_v14, %v9185_v60  ;;  %v9227_v55 = vpop.f32.mrb[119].mxu1  ;;  %v10240_v20 = vld [vmem:[%s10618_s9 + $0x58] sm:$0xff]   ;;  %v10244_v14 = vld [vmem:[%s10618_s9 + $0x60] sm:$0xff]  }
 0x9bf   : > { %v9228_v25 = vadd.f32 %v9227_v55, %v9226_v16  ;;  %v10241_v56 = vld [vmem:[%s10618_s9 + $0xd8] sm:$0xff]   ;;  %v10247_v55 = vld [vmem:[%s10618_s9 + $0xa0] sm:$0xff]  }
 0x9c0   : > { %v6664_v4 = vmax.f32 %v6651_v31, %v6656_v58  ;;  %v6581_v22 = vadd.f32 %v9187_v7, %v6501_v0  ;;  %v10242_v60 = vld [vmem:[%s10618_s9 + $0x18] sm:$0xff]   ;;  %v10246_v7 = vld [vmem:[%s10618_s9 + $0x20] sm:$0xff]  }
 0x9c1   : > { %v10243_v16 = vld [vmem:[%s10618_s9 + $0x98] sm:$0xff]  }
 0x9c2   : > { %v6661_v59 = vadd.f32 %v9228_v25, %v6581_v22  ;;  %v10248_v25 = vld [vmem:[%s10618_s9 + $0x68] sm:$0xff]  }
 0x9c3   : > { %v10250_v22 = vld [vmem:[%s10618_s9 + $0x28] sm:$0xff]  }
 0x9c4   : > { %v6665_v30 = vmax.f32 %v6664_v4, %v6661_v59  ;;  %v10249_v4 = vld [vmem:[%s10618_s9 + $0xe8] sm:$0xff]  }
 0x9c6   : > { %v6666_v53 = vsub.f32 %v6651_v31, %v6665_v30  ;;  %v6669_v18 = vsub.f32 %v6656_v58, %v6665_v30  ;;  %v6672_v46 = vsub.f32 %v6661_v59, %v6665_v30  ;;  %v10236_v31 = vld [vmem:[%s10618_s9 + $0x50] sm:$0xff]   ;;  %v10245_v58 = vld [vmem:[%s10618_s9 + $0xe0] sm:$0xff]   ;;  %v10251_v59 = vld [vmem:[%s10618_s9 + $0xa8] sm:$0xff]  }
 0x9c7   : > { %v10252_v30 = vld [vmem:[%s10618_s9 + $0x70] sm:$0xff]  }
 0x9c8   : > { %v6667_v37 = vmul.f32 1.442695, %v6666_v53  ;;  %v6670_v24 = vmul.f32 1.442695, %v6669_v18  ;;  %v6673_v15 = vmul.f32 1.442695, %v6672_v46 }
 0x9c9   : > { %v10253_v53 = vld [vmem:[%s10618_s9 + $0xf0] sm:$0xff]  }
 0x9ca   : > { %10202 = vpow2.f32 %v6667_v37  ;;  %v10254_v18 = vld [vmem:[%s10618_s9 + $0x30] sm:$0xff]   ;;  %v10256_v37 = vld [vmem:[%s10618_s9 + $0x78] sm:$0xff]  }
 0x9cb   : > { %10204 = vpow2.f32 %v6670_v24  ;;  %v10255_v46 = vld [vmem:[%s10618_s9 + $0xb0] sm:$0xff]   ;;  %v10257_v24 = vld [vmem:[%s10618_s9 + $0xf8] sm:$0xff]  }
 0x9cc   : > { %10206 = vpow2.f32 %v6673_v15  ;;  %v10258_v15 = vld [vmem:[%s10618_s9 + $0x38] sm:$0xff]  }
 0x9d4   : > { %v10203_v51 = vpop.eup %10202 }
 0x9d5   : > { %v10205_v44 = vpop.eup %10204 }
 0x9d6   : > { %v6675_v6 = vadd.f32 %v10205_v44, %v10203_v51  ;;  %v10207_v33 = vpop.eup %10206 }
 0x9d8   : > { %v6676_v52 = vadd.f32 %v10207_v33, %v6675_v6  ;;  %v10261_v6 = vld [vmem:[%s10618_s9 + $0x1c0] sm:$0xff]  }
 0x9da   : > { %10208 = vrcp.f32 %v6676_v52 }
 0x9e4   : > { %v10209_v0 = vpop.eup %10208 }
 0x9e5   : > { %v6679_v54 = vmul.f32 %v10209_v0, %v10203_v51  ;;  %v6680_v17 = vmul.f32 %v10209_v0, %v10205_v44  ;;  %v6681_v8 = vmul.f32 %v10209_v0, %v10207_v33  ;;  %v10259_v51 = vld [vmem:[%s10618_s9 + $0xb8] sm:$0xff]   ;;  %v10260_v44 = vld [vmem:[%s10618_s9 + $0x140] sm:$0xff]  }
 0x9e7   : > { %8470 = vmatmul.mubr.msk.f32.vlgmr.msra.gmra.mrb[128].mxu0 %vm4300_vm6, %v6679_v54  ;;  %8473 = vmatmul.mubr.msk.f32.vlgmr.msra.gmra.mrb[120].mxu1 %vm4300_vm6, %v6679_v54 }
 0x9e8   : > { %6761 = vmatprep.mubr.f32.mxu0 %v13186_v27  ;;  %6844 = vmatprep.mubr.f32.mxu1 %v13186_v27 }
 0x9e9   : > { %9973 = vmatpush1.bf16.msra.mxu0 %v11787_v13  ;;  %9977 = vmatpush1.bf16.msra.mxu1 %v11751_v23  ;;  %v10230_v23 = vld [vmem:[%s10618_s9] sm:$0xff]  }
 0x9ea   : > { %9229 = vmatprep.subr.bf16.mxu0 %v10228_v12  ;;  %9251 = vmatprep.subr.bf16.mxu1 %v10229_v5  ;;  %v10231_v13 = vld [vmem:[%s10618_s9 + $0x80] sm:$0xff]  }
 0x9eb   : > { %8471 = vmatmul.mubr.msk.f32.gmra.mrb[130].mxu0 %vm4300_vm6, %v6680_v17  ;;  %8474 = vmatmul.mubr.msk.f32.gmra.mrb[122].mxu1 %vm4300_vm6, %v6680_v17 }
 0x9ec   : > { %6767 = vmatprep.mubr.f32.mxu0 %v13186_v27  ;;  %6850 = vmatprep.mubr.f32.mxu1 %v13186_v27 }
 0x9ef   : > { %8472 = vmatmul.mubr.msk.f32.gmra.mrb[132].mxu0 %vm4300_vm6, %v6681_v8  ;;  %8475 = vmatmul.mubr.msk.f32.gmra.mrb[124].mxu1 %vm4300_vm6, %v6681_v8 }
 0x9f0   : > { %6921 = vmatprep.mubr.f32.mxu0 %v13186_v27  ;;  %7004 = vmatprep.mubr.f32.mxu1 %v13186_v27 }
 0x9f3   : > { %8476 = vmatmul.mubr.msk.f32.vlgmr.msra.gmra.mrb[134].mxu0 %vm4300_vm6, %v6679_v54  ;;  %8479 = vmatmul.mubr.msk.f32.vlgmr.msra.gmra.mrb[126].mxu1 %vm4300_vm6, %v6679_v54 }
 0x9f4   : > { %6927 = vmatprep.mubr.f32.mxu0 %v13186_v27  ;;  %7010 = vmatprep.mubr.f32.mxu1 %v13186_v27 }
 0x9f5   : > { %9230 = vmatpush3.bf16.msra.mxu0 %v10230_v23  ;;  %9252 = vmatpush3.bf16.msra.mxu1 %v10231_v13 }
 0x9f6   : > { %9231 = vmatprep.subr.bf16.mxu0 %v10232_v2  ;;  %9253 = vmatprep.subr.bf16.mxu1 %v10233_v36 }
 0x9f7   : > { %8477 = vmatmul.mubr.msk.f32.gmra.mrb[136].mxu0 %vm4300_vm6, %v6680_v17  ;;  %8480 = vmatmul.mubr.msk.f32.gmra.mrb[128].mxu1 %vm4300_vm6, %v6680_v17 }
 0x9f8   : > { %6933 = vmatprep.mubr.f32.mxu0 %v13186_v27  ;;  %7016 = vmatprep.mubr.f32.mxu1 %v13186_v27  ;;  %v10239_v27 = vld [vmem:[%s10618_s9 + $0x90] sm:$0xff]  }
 0x9f9   : > { %9232 = vmatpush3.bf16.msra.mxu0 %v10234_v26  ;;  %9254 = vmatpush3.bf16.msra.mxu1 %v10235_v1 }
 0x9fa   : > { %9233 = vmatprep.subr.bf16.mxu0 %v10236_v31  ;;  %9255 = vmatprep.subr.bf16.mxu1 %v10237_v63  ;;  %v13478_v31 = vld [vmem:[#allocation195_spill] sm:$0xff] }
 0x9fb   : > { %8478 = vmatmul.mubr.msk.f32.gmra.mrb[138].mxu0 %vm4300_vm6, %v6681_v8  ;;  %8481 = vmatmul.mubr.msk.f32.gmra.mrb[130].mxu1 %vm4300_vm6, %v6681_v8 }
 0x9fd   : > { %9234 = vmatpush3.bf16.msra.mxu0 %v10238_v39  ;;  %9256 = vmatpush3.bf16.msra.mxu1 %v10239_v27 }
 0x9fe   : > { %9235 = vmatprep.subr.bf16.mxu0 %v10240_v20  ;;  %9257 = vmatprep.subr.bf16.mxu1 %v10241_v56 }
 0xa01   : > { %9236 = vmatpush3.bf16.msra.mxu0 %v10242_v60  ;;  %9258 = vmatpush3.bf16.msra.mxu1 %v10243_v16  ;;  %v13479_v16 = vld [vmem:[#allocation81_spill] sm:$0xff] }
 0xa02   : > { %9237 = vmatprep.subr.bf16.mxu0 %v10244_v14  ;;  %9259 = vmatprep.subr.bf16.mxu1 %v10245_v58  ;;  %v13480_v14 = vld [vmem:[#allocation75_spill] sm:$0xff] }
 0xa05   : > { %9238 = vmatpush3.bf16.msra.mxu0 %v10246_v7  ;;  %9260 = vmatpush3.bf16.msra.mxu1 %v10247_v55 }
 0xa06   : > { %9239 = vmatprep.subr.bf16.mxu0 %v10248_v25  ;;  %9261 = vmatprep.subr.bf16.mxu1 %v10249_v4 }
 0xa09   : > { %9240 = vmatpush3.bf16.msra.mxu0 %v10250_v22  ;;  %9262 = vmatpush3.bf16.msra.mxu1 %v10251_v59 }
 0xa0a   : > { %9241 = vmatprep.subr.bf16.mxu0 %v10252_v30  ;;  %9263 = vmatprep.subr.bf16.mxu1 %v10253_v53 }
 0xa0d   : > { %9242 = vmatpush3.bf16.msra.mxu0 %v10254_v18  ;;  %9264 = vmatpush3.bf16.msra.mxu1 %v10255_v46 }
 0xa0e   : > { %9243 = vmatprep.subr.bf16.mxu0 %v10256_v37  ;;  %9265 = vmatprep.subr.bf16.mxu1 %v10257_v24 }
 0xa11   : > { %9244 = vmatpush3.bf16.msra.mxu0 %v10258_v15  ;;  %9266 = vmatpush3.bf16.msra.mxu1 %v10259_v51 }
 0xa12   : > { %9273 = vmatprep.subr.bf16.mxu0 %v10260_v44  ;;  %9295 = vmatprep.subr.bf16.mxu1 %v10261_v6 }
 0xaba   : > { %v6757_v33 = vpop.f32.mrb[128].mxu0  ;;  %v6840_v52 = vpop.f32.mrb[120].mxu1 }
 0xabb   : > { %v6759_v0 = vpop.f32.mrb[129].mxu0  ;;  %v6842_v54 = vpop.f32.mrb[121].mxu1  ;;  %v7023_v12 = vmul.f32 %v6757_v33, %v11935_v45  ;;  %v7025_v5 = vmul.f32 %v6840_v52, %v11994_v19 }
 0xabc   : > { %v7024_v26 = vmul.f32 %v6759_v0, %v13363_v47  ;;  %v7026_v1 = vmul.f32 %v6842_v54, %v12005_v62 }
 0xabe   : > { %v6763_v17 = vpop.f32.mrb[130].mxu0  ;;  %v6846_v8 = vpop.f32.mrb[122].mxu1 }
 0xabf   : > { %v7031_v23 = vmul.f32 %v6763_v17, %v11938_v32  ;;  %v7033_v13 = vmul.f32 %v6846_v8, %v11997_v49  ;;  %v6765_v2 = vpop.f32.mrb[131].mxu0  ;;  %v6848_v36 = vpop.f32.mrb[123].mxu1  ;;  %v10262_v17 = vld [vmem:[%s10618_s9 + $0x100] sm:$0xff]  }
 0xac0   : > { %v7032_v63 = vmul.f32 %v6765_v2, %v13478_v31  ;;  %v7034_v39 = vmul.f32 %v6848_v36, %v12008_v11  ;;  %v10263_v8 = vld [vmem:[%s10618_s9 + $0x180] sm:$0xff]   ;;  %v10266_v31 = vld [vmem:[%s10618_s9 + $0x108] sm:$0xff]  }
 0xac1   : > { %v7039_v27 = vadd.f32 %v7031_v23, %v7023_v12  ;;  %v7041_v20 = vadd.f32 %v7033_v13, %v7025_v5  ;;  %v10264_v12 = vld [vmem:[%s10618_s9 + $0x148] sm:$0xff]  }
 0xac2   : > { %v7040_v56 = vadd.f32 %v7032_v63, %v7024_v26  ;;  %v7042_v45 = vadd.f32 %v7034_v39, %v7026_v1  ;;  %v6769_v60 = vpop.f32.mrb[132].mxu0  ;;  %v6852_v19 = vpop.f32.mrb[124].mxu1  ;;  %v10267_v63 = vld [vmem:[%s10618_s9 + $0x188] sm:$0xff]  }
 0xac3   : > { %v7047_v32 = vmul.f32 %v6769_v60, %v13479_v16  ;;  %v7049_v49 = vmul.f32 %v6852_v19, %v13480_v14  ;;  %v6771_v58 = vpop.f32.mrb[133].mxu0  ;;  %v6854_v7 = vpop.f32.mrb[125].mxu1  ;;  %v10271_v60 = vld [vmem:[%s10618_s9 + $0x190] sm:$0xff]   ;;  %v10272_v19 = vld [vmem:[%s10618_s9 + $0x158] sm:$0xff]  }
 0xac4   : > { %v7048_v47 = vmul.f32 %v6771_v58, %v13365_v38  ;;  %v7050_v62 = vmul.f32 %v6854_v7, %v12016_v28  ;;  %v10273_v16 = vld [vmem:[%s10618_s9 + $0x1d8] sm:$0xff]   ;;  %v10277_v58 = vld [vmem:[%s10618_s9 + $0x1e0] sm:$0xff]  }
 0xac5   : > { %v7055_v55 = vadd.f32 %v7047_v32, %v7039_v27  ;;  %v7057_v25 = vadd.f32 %v7049_v49, %v7041_v20  ;;  %v10268_v20 = vld [vmem:[%s10618_s9 + $0x150] sm:$0xff]   ;;  %v10274_v32 = vld [vmem:[%s10618_s9 + $0x118] sm:$0xff]   ;;  %v10276_v49 = vld [vmem:[%s10618_s9 + $0x160] sm:$0xff]  }
 0xac6   : > { %v7056_v4 = vadd.f32 %v7048_v47, %v7040_v56  ;;  %v7058_v11 = vadd.f32 %v7050_v62, %v7042_v45  ;;  %v6923_v22 = vpop.f32.mrb[134].mxu0  ;;  %v7006_v59 = vpop.f32.mrb[126].mxu1  ;;  %v10270_v45 = vld [vmem:[%s10618_s9 + $0x110] sm:$0xff]   ;;  %v10275_v14 = vld [vmem:[%s10618_s9 + $0x198] sm:$0xff]   ;;  %v10278_v7 = vld [vmem:[%s10618_s9 + $0x120] sm:$0xff]  }
 0xac7   : > { %v6925_v30 = vpop.f32.mrb[135].mxu0  ;;  %v7008_v53 = vpop.f32.mrb[127].mxu1  ;;  %v7063_v37 = vpack.c.bf16 %v7055_v55, %v7055_v55  ;;  %v7065_v24 = vpack.c.bf16 %v7057_v25, %v7057_v25  ;;  %v7027_v15 = vmul.f32 %v6923_v22, %v12041_v40  ;;  %v7029_v51 = vmul.f32 %v7006_v59, %v13366_v43  ;;  %v10279_v47 = vld [vmem:[%s10618_s9 + $0x1a0] sm:$0xff]   ;;  %v10280_v62 = vld [vmem:[%s10618_s9 + $0x168] sm:$0xff]   ;;  %v10285_v22 = vld [vmem:[%s10618_s9 + $0x1f0] sm:$0xff]  }
 0xac8   : > { %v7064_v18 = vpack.c.bf16 %v7056_v4, %v7056_v4  ;;  %v7066_v46 = vpack.c.bf16 %v7058_v11, %v7058_v11  ;;  %v7028_v44 = vmul.f32 %v6925_v30, %v12051_v21  ;;  %v7030_v40 = vmul.f32 %v7008_v53, %v13368_v41  ;;  %v10281_v55 = vld [vmem:[%s10618_s9 + $0x1e8] sm:$0xff]   ;;  %v10284_v11 = vld [vmem:[%s10618_s9 + $0x170] sm:$0xff]   ;;  %v10288_v53 = vld [vmem:[%s10618_s9 + $0x178] sm:$0xff]  }
 0xac9   : > { %v10282_v25 = vld [vmem:[%s10618_s9 + $0x128] sm:$0xff]   ;;  %v10286_v59 = vld [vmem:[%s10618_s9 + $0x130] sm:$0xff]  }
 0xaca   : > { %v6929_v38 = vpop.f32.mrb[136].mxu0  ;;  %v7012_v28 = vpop.f32.mrb[128].mxu1  ;;  %7103 = vmatprep.mubr.bf16.mxu0 %v7064_v18  ;;  %7143 = vmatprep.mubr.bf16.mxu1 %v7066_v46  ;;  %v10283_v4 = vld [vmem:[%s10618_s9 + $0x1a8] sm:$0xff]   ;;  %v10287_v30 = vld [vmem:[%s10618_s9 + $0x1b0] sm:$0xff]   ;;  %v10289_v18 = vld [vmem:[%s10618_s9 + $0x1f8] sm:$0xff]  }
 0xacb   : > { %v7035_v6 = vmul.f32 %v6929_v38, %v12044_v57  ;;  %v7037_v33 = vmul.f32 %v7012_v28, %v13367_v29  ;;  %v6931_v52 = vpop.f32.mrb[137].mxu0  ;;  %v7014_v0 = vpop.f32.mrb[129].mxu1  ;;  %7104 = vmatmul.mubr.bf16.vlgmr.msra.gmra.mrb[140].mxu0 %v7063_v37  ;;  %7144 = vmatmul.mubr.bf16.vlgmr.msra.gmra.mrb[132].mxu1 %v7065_v24  ;;  %v10265_v29 = vld [vmem:[%s10618_s9 + $0x1c8] sm:$0xff]   ;;  %v10290_v46 = vld [vmem:[%s10618_s9 + $0x138] sm:$0xff]  }
 0xacc   : > { %v7036_v43 = vmul.f32 %v6931_v52, %v12054_v3  ;;  %v7038_v54 = vmul.f32 %v7014_v0, %v13369_v42  ;;  %9274 = vmatpush3.bf16.msra.mxu0 %v10262_v17  ;;  %9296 = vmatpush3.bf16.msra.mxu1 %v10263_v8  ;;  %v10291_v37 = vld [vmem:[%s10618_s9 + $0x1b8] sm:$0xff]   ;;  %v10160_v38 = vld [vmem:[%s10626_s21 + $0x4] ss:$8 sps:$4 sm:$0xff]   ;;  %v10158_v28 = vld [vmem:[%s10626_s21] ss:$8 sps:$4 sm:$0xff]  }
 0xacd   : > { %v7043_v21 = vadd.f32 %v7035_v6, %v7027_v15  ;;  %v7045_v57 = vadd.f32 %v7037_v33, %v7029_v51  ;;  %9275 = vmatprep.subr.bf16.mxu0 %v10264_v12  ;;  %9297 = vmatprep.subr.bf16.mxu1 %v10265_v29  ;;  %v13481_v51 = vmov 0   ;;  %v10161_v6 = vld [vmem:[%s10626_s21 + $0x10] ss:$8 sps:$4 sm:$0xff]   ;;  %v10166_v33 = vld [vmem:[%s10626_s21 + $0x24] ss:$8 sps:$4 sm:$0xff]  }
 0xace   : > { %v7044_v5 = vadd.f32 %v7036_v43, %v7028_v44  ;;  %v7046_v23 = vadd.f32 %v7038_v54, %v7030_v40  ;;  %v6935_v41 = vpop.f32.mrb[138].mxu0  ;;  %v7018_v3 = vpop.f32.mrb[130].mxu1  ;;  %v10163_v44 = vld [vmem:[%s10626_s21 + $0x14] ss:$8 sps:$4 sm:$0xff]   ;;  %v10164_v52 = vld [vmem:[%s10626_s21 + $0x20] ss:$8 sps:$4 sm:$0xff]  }
 0xacf   : > { %v7051_v42 = vmul.f32 %v6935_v41, %v12071_v50  ;;  %v7053_v13 = vmul.f32 %v7018_v3, %v11981_v34  ;;  %v6937_v2 = vpop.f32.mrb[139].mxu0  ;;  %v7020_v36 = vpop.f32.mrb[131].mxu1  ;;  %v10269_v50 = vld [vmem:[%s10618_s9 + $0x1d0] sm:$0xff]   ;;  %v10292_v41 = vld [vmem:[%s10615_s15] ss:$0 sm:$0xff]  ;;  %s13482_s9 = scalar_lea.vmem %s10527_s14, %s10591_s0  ;;  %s13487_s15 = sld [smem:[#allocation35_spill]] }
 0xad0   : > { %v7052_v26 = vmul.f32 %v6937_v2, %v12078_v35  ;;  %v7054_v1 = vmul.f32 %v7020_v36, %v11986_v9  ;;  %9276 = vmatpush3.bf16.msra.mxu0 %v10266_v31  ;;  %9298 = vmatpush3.bf16.msra.mxu1 %v10267_v63  ;;  %v10167_v0 = vld [vmem:[%s10626_s21 + $0x30] ss:$8 sps:$4 sm:$0xff]   ;;  %v10169_v40 = vld [vmem:[%s10626_s21 + $0x34] ss:$8 sps:$4 sm:$0xff]   ;;  %s13483_s21 = scalar_lea.vmem %s10532_s30, %s10591_s0 }
 0xad1   : > { %v7059_v39 = vadd.f32 %v7051_v42, %v7043_v21  ;;  %v7061_v27 = vadd.f32 %v7053_v13, %v7045_v57  ;;  %9277 = vmatprep.subr.bf16.mxu0 %v10268_v20  ;;  %9299 = vmatprep.subr.bf16.mxu1 %v10269_v50 }
 0xad2   : > { %v7060_v34 = vadd.f32 %v7052_v26, %v7044_v5  ;;  %v7062_v35 = vadd.f32 %v7054_v1, %v7046_v23 }
 0xad3   : > { %v7067_v24 = vpack.c.bf16 %v7059_v39, %v7059_v39  ;;  %v7069_v15 = vpack.c.bf16 %v7061_v27, %v7061_v27 }
 0xad4   : > { %v7068_v56 = vpack.c.bf16 %v7060_v34, %v7060_v34  ;;  %v7070_v9 = vpack.c.bf16 %v7062_v35, %v7062_v35  ;;  %9278 = vmatpush3.bf16.msra.mxu0 %v10270_v45  ;;  %9300 = vmatpush3.bf16.msra.mxu1 %v10271_v60  ;;  %v10293_v35 = vld [vmem:[#allocation2 + $0x10] sm:$0xff] }
 0xad5   : > { %9279 = vmatprep.subr.bf16.mxu0 %v10272_v19  ;;  %9301 = vmatprep.subr.bf16.mxu1 %v10273_v16  ;;  %s13488_s22 = scalar_lea.vmem %s13487_s15, %s10591_s0 }
 0xad6   : > { %7183 = vmatprep.mubr.bf16.mxu0 %v7068_v56  ;;  %7223 = vmatprep.mubr.bf16.mxu1 %v7070_v9  ;;  %v7237_v56 = vmul.f32 0.7072136, %v10293_v35 }
 0xad8   : > { %9280 = vmatpush3.bf16.msra.mxu0 %v10274_v32  ;;  %9302 = vmatpush3.bf16.msra.mxu1 %v10275_v14 }
 0xad9   : > { %9281 = vmatprep.subr.bf16.mxu0 %v10276_v49  ;;  %9303 = vmatprep.subr.bf16.mxu1 %v10277_v58 }
 0xadc   : > { %9282 = vmatpush3.bf16.msra.mxu0 %v10278_v7  ;;  %9304 = vmatpush3.bf16.msra.mxu1 %v10279_v47 }
 0xadd   : > { %9283 = vmatprep.subr.bf16.mxu0 %v10280_v62  ;;  %9305 = vmatprep.subr.bf16.mxu1 %v10281_v55 }
 0xae0   : > { %9284 = vmatpush3.bf16.msra.mxu0 %v10282_v25  ;;  %9306 = vmatpush3.bf16.msra.mxu1 %v10283_v4 }
 0xae1   : > { %9285 = vmatprep.subr.bf16.mxu0 %v10284_v11  ;;  %9307 = vmatprep.subr.bf16.mxu1 %v10285_v22 }
 0xae4   : > { %9286 = vmatpush3.bf16.msra.mxu0 %v10286_v59  ;;  %9308 = vmatpush3.bf16.msra.mxu1 %v10287_v30 }
 0xae5   : > { %9287 = vmatprep.subr.bf16.mxu0 %v10288_v53  ;;  %9309 = vmatprep.subr.bf16.mxu1 %v10289_v18 }
 0xae8   : > { %9288 = vmatpush3.bf16.msra.mxu0 %v10290_v46  ;;  %9310 = vmatpush3.bf16.msra.mxu1 %v10291_v37 }
 0xae9   : > { %7365 = vmatprep.subr.bf16.mxu0 %v10160_v38 }
 0xaeb   : > { %7184 = vmatmul.mubr.bf16.vlgmr.msra.gmra.mrb[144].mxu0 %v7067_v24  ;;  %7224 = vmatmul.mubr.bf16.vlgmr.msra.gmra.mrb[136].mxu1 %v7069_v15 }
 0xaec   : > { %7397 = vmatprep.mubr.bf16.mxu0 %v13481_v51  ;;  %7366 = vmatpush1.bf16.msra.mxu0 %v10158_v28 }
 0xaed   : > { %7367 = vmatprep.subr.bf16.mxu0 %v10163_v44 }
 0xaf0   : > { %7368 = vmatpush1.bf16.msra.mxu0 %v10161_v6  ;;  %v8482_v6 = vld [vmem:[%s13482_s9] ss:$0 sm:$0xff] }
 0xaf1   : > { %7369 = vmatprep.subr.bf16.mxu0 %v10166_v33 }
 0xaf4   : > { %7370 = vmatpush1.bf16.msra.mxu0 %v10164_v52 }
 0xaf5   : > { %7371 = vmatprep.subr.bf16.mxu0 %v10169_v40  ;;  %v8483_v40 = vld [vmem:[%s13483_s21] ss:$0 sm:$0xff] }
 0xaf8   : > { %7372 = vmatpush1.bf16.msra.mxu0 %v10167_v0 }
 0xb9e   : > { %v9245_v43 = vpop.f32.mrb[140].mxu0  ;;  %v9267_v54 = vpop.f32.mrb[132].mxu1 }
 0xb9f   : > { %v9246_v17 = vpop.f32.mrb[141].mxu0  ;;  %v9268_v8 = vpop.f32.mrb[133].mxu1 }
 0xba0   : > { %v9247_v21 = vadd.f32 %v9246_v17, %v9245_v43  ;;  %v9269_v57 = vadd.f32 %v9268_v8, %v9267_v54  ;;  %v9248_v12 = vpop.f32.mrb[142].mxu0  ;;  %v9270_v29 = vpop.f32.mrb[134].mxu1 }
 0xba1   : > { %v9249_v5 = vpop.f32.mrb[143].mxu0  ;;  %v9271_v23 = vpop.f32.mrb[135].mxu1 }
 0xba2   : > { %v7106_v3 = vadd.f32 %v10292_v41, %v9247_v21  ;;  %v10170_v5 = vld [vmem:[%s10634_s2 + $0x40] sm:$0xff]   ;;  %v10172_v41 = vld [vmem:[%s10634_s2 + $0x48] sm:$0xff]  }
 0xba3   : > { %v10171_v23 = vld [vmem:[%s10634_s2] sm:$0xff]   ;;  %9317 = vmatprep.subr.bf16.mxu1 %v10170_v5 }
 0xba4   : > { %v7146_v42 = vadd.f32 %v9269_v57, %v7106_v3  ;;  %9318 = vmatpush3.bf16.msra.mxu1 %v10171_v23  ;;  %v10173_v3 = vld [vmem:[%s10634_s2 + $0x8] sm:$0xff]  }
 0xba5   : > { %9319 = vmatprep.subr.bf16.mxu1 %v10172_v41 }
 0xba8   : > { %9320 = vmatpush3.bf16.msra.mxu1 %v10173_v3 }
 0xbbe   : > { %v9289_v13 = vpop.f32.mrb[144].mxu0  ;;  %v9311_v2 = vpop.f32.mrb[136].mxu1 }
 0xbbf   : > { %v9290_v36 = vpop.f32.mrb[145].mxu0  ;;  %v9312_v26 = vpop.f32.mrb[137].mxu1 }
 0xbc0   : > { %v9291_v1 = vadd.f32 %v9290_v36, %v9289_v13  ;;  %v9313_v31 = vadd.f32 %v9312_v26, %v9311_v2  ;;  %v9292_v63 = vpop.f32.mrb[146].mxu0  ;;  %v9314_v39 = vpop.f32.mrb[138].mxu1  ;;  %v10176_v13 = vld [vmem:[%s10634_s2 + $0x58] sm:$0xff]   ;;  %v10178_v36 = vld [vmem:[%s10634_s2 + $0x60] sm:$0xff]  }
 0xbc1   : > { %v9293_v27 = vpop.f32.mrb[147].mxu0  ;;  %v9315_v20 = vpop.f32.mrb[139].mxu1  ;;  %v10177_v2 = vld [vmem:[%s10634_s2 + $0x18] sm:$0xff]   ;;  %v10179_v26 = vld [vmem:[%s10634_s2 + $0x20] sm:$0xff]   ;;  %v10182_v63 = vld [vmem:[%s10634_s2 + $0x70] sm:$0xff]  }
 0xbc2   : > { %v7186_v50 = vadd.f32 %v9291_v1, %v7146_v42  ;;  %v10175_v42 = vld [vmem:[%s10634_s2 + $0x10] sm:$0xff]   ;;  %v10180_v1 = vld [vmem:[%s10634_s2 + $0x68] sm:$0xff]   ;;  %v10184_v27 = vld [vmem:[%s10634_s2 + $0x78] sm:$0xff]  }
 0xbc3   : > { %v10183_v39 = vld [vmem:[%s10634_s2 + $0x30] sm:$0xff]   ;;  %v10185_v20 = vld [vmem:[%s10634_s2 + $0x38] sm:$0xff]  }
 0xbc4   : > { %v7226_v34 = vadd.f32 %v9313_v31, %v7186_v50  ;;  %v10181_v31 = vld [vmem:[%s10634_s2 + $0x28] sm:$0xff]   ;;  %v7307_v50 = vld [vmem:[%s10630_s24] sm:$0x3]  ;;  %s13486_s24 = scalar_lea.vmem %s10552_s17, %s10591_s0 }
 0xbc6   : > { %v7234_v9 = vmul.f32 0.7072136, %v7226_v34  ;;  %v13484_v34 = vld [vmem:[#allocation76_spill] sm:$0xff] }
 0xbc7   : > { %v7312_v35 = vrot.slane %v7307_v50, %v13484_v34 }
 0xbc8   : > { %v7240_v45 = vadd.f32 %v7237_v56, %v7234_v9  ;;  %v13485_v56 = vld [vmem:[#allocation78_spill] sm:$0xff] }
 0xbc9   : > { %v7316_v9 = vrot.slane %v7307_v50, %v13485_v56 }
 0xbca   : > { %v7244_v60 = vsel %vm2579_vm1, %v7240_v45, 0.0 }
 0xbcb   : > { %v7245_v19 = vadd.f32 %v7244_v60, %v12488_v61 }
 0xbcd   : > { %v7246_v16 = vrot.slane %v7245_v19, 4 }
 0xbcf   : > { %v7247_v32 = vadd.f32 %v7246_v16, %v7245_v19 }
 0xbd1   : > { %v7248_v14 = vrot.slane %v7247_v32, 2 }
 0xbd3   : > { %v7249_v49 = vadd.f32 %v7248_v14, %v7247_v32 }
 0xbd5   : > { %v7250_v58 = vrot.slane %v7249_v49, 1 }
 0xbd7   : > { %v7251_v7 = vadd.f32 %v7250_v58, %v7249_v49 }
 0xbd9   : > { %v7253_v47 = vmul.f32 0.041666668, %v7251_v7 }
 0xbdb   : > { %v7254_v62 = vsub.f32 %v12480_v48, %v7253_v47  ;;  %v7255_v55 = vsub.f32 %v12482_v10, %v7253_v47  ;;  %v7256_v25 = vsub.f32 %v7240_v45, %v7253_v47 }
 0xbdd   : > { %v7257_v4 = vmul.f32 %v7254_v62, %v7254_v62  ;;  %v7258_v11 = vmul.f32 %v7255_v55, %v7255_v55  ;;  %v7259_v22 = vmul.f32 %v7256_v25, %v7256_v25 }
 0xbdf   : > { %v7260_v59 = vsel %vm2579_vm1, %v7257_v4, 0.0  ;;  %v7261_v61 = vsel %vm2579_vm1, %v7258_v11, 0.0  ;;  %v7263_v53 = vsel %vm2579_vm1, %v7259_v22, 0.0 }
 0xbe0   : > { %v7262_v30 = vadd.f32 %v7261_v61, %v7260_v59 }
 0xbe2   : > { %v7264_v18 = vadd.f32 %v7263_v53, %v7262_v30 }
 0xbe4   : > { %v7265_v46 = vrot.slane %v7264_v18, 4 }
 0xbe6   : > { %v7266_v48 = vadd.f32 %v7265_v46, %v7264_v18 }
 0xbe8   : > { %v7267_v37 = vrot.slane %v7266_v48, 2 }
 0xbea   : > { %v7268_v10 = vadd.f32 %v7267_v37, %v7266_v48 }
 0xbec   : > { %v7269_v24 = vrot.slane %v7268_v10, 1 }
 0xbee   : > { %v7270_v15 = vadd.f32 %v7269_v24, %v7268_v10 }
 0xbf0   : > { %v7271_v38 = vmul.f32 0.041666668, %v7270_v15 }
 0xbf2   : > { %v7272_v28 = vadd.f32 1e-05, %v7271_v38 }
 0xbf4   : > { %10210 = vrsqrt.f32 %v7272_v28 }
 0xbfe   : > { %v10211_v44 = vpop.eup %10210 }
 0xbff   : > { %v7274_v33 = vmul.f32 %v10211_v44, %v7254_v62  ;;  %v7275_v52 = vmul.f32 %v10211_v44, %v7255_v55  ;;  %v7276_v0 = vmul.f32 %v10211_v44, %v7256_v25 }
 0xc01   : > { %v7284_v43 = vmul.f32 %v8482_v6, %v7274_v33  ;;  %v7285_v54 = vmul.f32 %v8482_v6, %v7275_v52  ;;  %v7286_v21 = vmul.f32 %v8482_v6, %v7276_v0 }
 0xc03   : > { %v12625_v17 = vadd.f32 %v8483_v40, %v7284_v43  ;;  %v12627_v8 = vadd.f32 %v8483_v40, %v7285_v54  ;;  %v12633_v12 = vadd.f32 %v8483_v40, %v7286_v21 }
 0xc05   : > { %v7297_v57 = vpack.c.bf16 %v12627_v8, %v12625_v17  ;;  %v7298_v29 = vpack.c.bf16 %v12633_v12, %v12633_v12 }
 0xc07   : > { %8492 = vmatmul.mubr.msk.bf16.vlgmr.msra.gmra.mrb[148].mxu0 %vm2579_vm1, %v7297_v57 }
 0xc08   : > { %7407 = vmatprep.mubr.bf16.mxu0 %v13481_v51  ;;  %v10174_v51 = vld [vmem:[%s10634_s2 + $0x50] sm:$0xff]   ;;  %s13489_s2 = scalar_lea.vmem %s10562_s8, %s10591_s0  ;;  %s13490_s0 = sld [smem:[#allocation36_spill]] (!%p8513_p5) }
 0xc09   : > { %9321 = vmatprep.subr.bf16.mxu1 %v10174_v51 }
 0xc0a   : > { %9322 = vmatpush3.bf16.msra.mxu1 %v10175_v42 }
 0xc0b   : > { %9323 = vmatprep.subr.bf16.mxu1 %v10176_v13 }
 0xc0e   : > { %9324 = vmatpush3.bf16.msra.mxu1 %v10177_v2 }
 0xc0f   : > { %8493 = vmatmul.mubr.msk.bf16.gmra.mrb[152].mxu0 %vm2579_vm1, %v7298_v29  ;;  %9325 = vmatprep.subr.bf16.mxu1 %v10178_v36 }
 0xc12   : > { %9326 = vmatpush3.bf16.msra.mxu1 %v10179_v26 }
 0xc13   : > { %9327 = vmatprep.subr.bf16.mxu1 %v10180_v1 }
 0xc16   : > { %9328 = vmatpush3.bf16.msra.mxu1 %v10181_v31 }
 0xc17   : > { %9329 = vmatprep.subr.bf16.mxu1 %v10182_v63 }
 0xc1a   : > { %9330 = vmatpush3.bf16.msra.mxu1 %v10183_v39 }
 0xc1b   : > { %9331 = vmatprep.subr.bf16.mxu1 %v10184_v27 }
 0xc1e   : > { %9332 = vmatpush3.bf16.msra.mxu1 %v10185_v20 }
 0xcda   : > { %v7399_v45 = vpop.f32.mrb[148].mxu0 }
 0xcdb   : > { %v7400_v60 = vadd.f32 %v7399_v45, %v7312_v35  ;;  %v7401_v19 = vpop.f32.mrb[149].mxu0 }
 0xcdc   : > { %v7402_v16 = vadd.f32 %v7401_v19, %v7316_v9  ;;  %v7403_v32 = vpop.f32.mrb[150].mxu0 }
 0xcdd   : > { %v7422_v14 = vmul.f32 %v7400_v60, %v7400_v60  ;;  %v7404_v49 = vadd.f32 %v7403_v32, %v7312_v35  ;;  %v7405_v58 = vpop.f32.mrb[151].mxu0  ;;  %v7416_v1 = vmul.f32 0.5, %v7400_v60 }
 0xcde   : > { %v7423_v7 = vmul.f32 %v7402_v16, %v7402_v16  ;;  %v7406_v47 = vadd.f32 %v7405_v58, %v7316_v9  ;;  %v7417_v39 = vmul.f32 0.5, %v7402_v16 }
 0xcdf   : > { %v7428_v62 = vmul.f32 %v7422_v14, %v7400_v60  ;;  %v7424_v55 = vmul.f32 %v7404_v49, %v7404_v49  ;;  %v7418_v31 = vmul.f32 0.5, %v7404_v49 }
 0xce0   : > { %v7429_v25 = vmul.f32 %v7423_v7, %v7402_v16  ;;  %v7425_v4 = vmul.f32 %v7406_v47, %v7406_v47  ;;  %v7419_v27 = vmul.f32 0.5, %v7406_v47 }
 0xce1   : > { %v7434_v11 = vmul.f32 0.044715, %v7428_v62  ;;  %v7430_v22 = vmul.f32 %v7424_v55, %v7404_v49 }
 0xce2   : > { %v7435_v59 = vmul.f32 0.044715, %v7429_v25  ;;  %v7431_v61 = vmul.f32 %v7425_v4, %v7406_v47  ;;  %v7409_v30 = vpop.f32.mrb[152].mxu0  ;;  %v8494_v25 = vld [vmem:[%s13486_s24] ss:$0 sm:$0xff] }
 0xce3   : > { %v7440_v53 = vadd.f32 %v7434_v11, %v7400_v60  ;;  %v7436_v18 = vmul.f32 0.044715, %v7430_v22  ;;  %v7410_v46 = vadd.f32 %v7409_v30, %v7312_v35  ;;  %v7411_v48 = vpop.f32.mrb[153].mxu0 }
 0xce4   : > { %v7441_v37 = vadd.f32 %v7435_v59, %v7402_v16  ;;  %v7437_v10 = vmul.f32 0.044715, %v7431_v61  ;;  %v7412_v24 = vadd.f32 %v7411_v48, %v7316_v9  ;;  %v7413_v15 = vpop.f32.mrb[154].mxu0 }
 0xce5   : > { %v7446_v38 = vmul.f32 0.7978846, %v7440_v53  ;;  %v7442_v28 = vadd.f32 %v7436_v18, %v7404_v49  ;;  %v7426_v44 = vmul.f32 %v7410_v46, %v7410_v46  ;;  %v7414_v6 = vpop.f32.mrb[155].mxu0  ;;  %v7420_v60 = vmul.f32 0.5, %v7410_v46 }
 0xce6   : > { %v7447_v33 = vmul.f32 0.7978846, %v7441_v37  ;;  %v7443_v52 = vadd.f32 %v7437_v10, %v7406_v47  ;;  %v7427_v0 = vmul.f32 %v7412_v24, %v7412_v24  ;;  %v7421_v58 = vmul.f32 0.5, %v7412_v24 }
 0xce7   : > { %10212 = vtanh.f32 %v7446_v38  ;;  %v7448_v40 = vmul.f32 0.7978846, %v7442_v28  ;;  %v7432_v43 = vmul.f32 %v7426_v44, %v7410_v46  ;;  %v7660_v18 = vmul.f32 0.7072136, %v12625_v17 }
 0xce8   : > { %10214 = vtanh.f32 %v7447_v33  ;;  %v7449_v54 = vmul.f32 0.7978846, %v7443_v52  ;;  %v7433_v21 = vmul.f32 %v7427_v0, %v7412_v24  ;;  %v7661_v10 = vmul.f32 0.7072136, %v12627_v8 }
 0xce9   : > { %10216 = vtanh.f32 %v7448_v40  ;;  %v7438_v57 = vmul.f32 0.044715, %v7432_v43  ;;  %v7662_v17 = vmul.f32 0.7072136, %v12633_v12 }
 0xcea   : > { %10218 = vtanh.f32 %v7449_v54  ;;  %v7439_v29 = vmul.f32 0.044715, %v7433_v21 }
 0xceb   : > { %v7444_v5 = vadd.f32 %v7438_v57, %v7410_v46 }
 0xcec   : > { %v7445_v23 = vadd.f32 %v7439_v29, %v7412_v24 }
 0xced   : > { %v7450_v41 = vmul.f32 0.7978846, %v7444_v5 }
 0xcee   : > { %v7451_v3 = vmul.f32 0.7978846, %v7445_v23 }
 0xcef   : > { %10220 = vtanh.f32 %v7450_v41 }
 0xcf0   : > { %10222 = vtanh.f32 %v7451_v3 }
 0xcf1   : > { %v10213_v51 = vpop.eup %10212 }
 0xcf2   : > { %v10215_v42 = vpop.eup %10214  ;;  %v7458_v13 = vadd.f32 1.0, %v10213_v51 }
 0xcf3   : > { %v10217_v2 = vpop.eup %10216  ;;  %v7459_v36 = vadd.f32 1.0, %v10215_v42 }
 0xcf4   : > { %v10219_v26 = vpop.eup %10218  ;;  %v7460_v63 = vadd.f32 1.0, %v10217_v2  ;;  %v7464_v50 = vmul.f32 %v7458_v13, %v7416_v1 }
 0xcf5   : > { %v7461_v20 = vadd.f32 1.0, %v10219_v26  ;;  %v7465_v35 = vmul.f32 %v7459_v36, %v7417_v39 }
 0xcf6   : > { %v7466_v34 = vmul.f32 %v7460_v63, %v7418_v31 }
 0xcf7   : > { %v7467_v56 = vmul.f32 %v7461_v20, %v7419_v27 }
 0xcf8   : > { %v7470_v9 = vpack.c.bf16 %v7466_v34, %v7464_v50 }
 0xcf9   : > { %v10221_v45 = vpop.eup %10220  ;;  %v7471_v19 = vpack.c.bf16 %v7467_v56, %v7465_v35 }
 0xcfa   : > { %v10223_v32 = vpop.eup %10222  ;;  %v7462_v14 = vadd.f32 1.0, %v10221_v45 }
 0xcfb   : > { %7641 = vmatprep.mubr.bf16.mxu1 %v7471_v19  ;;  %v7463_v7 = vadd.f32 1.0, %v10223_v32 }
 0xcfc   : > { %7642 = vmatmul.mubr.bf16.vlgmr.msra.gmra.mrb[140].mxu1 %v7470_v9  ;;  %v7468_v16 = vmul.f32 %v7462_v14, %v7420_v60  ;;  %v8511_v14 = vld [vmem:[%s13488_s22] ss:$0 sm:$0xff] }
 0xcfd   : > { %v7469_v49 = vmul.f32 %v7463_v7, %v7421_v58 }
 0xcfe   : > { %v7472_v62 = vpack.c.bf16 %v7468_v16, %v7468_v16 }
 0xcff   : > { %v7473_v47 = vpack.c.bf16 %v7469_v49, %v7469_v49  ;;  %v8512_v49 = vld [vmem:[%s13489_s2] ss:$0 sm:$0xff] }
 0xd01   : > { %7649 = vmatprep.mubr.bf16.mxu1 %v7473_v47 }
 0xd04   : > { %7650 = vmatmul.mubr.bf16.gmra.mrb[144].mxu1 %v7472_v62 }
 0xdcf   : > { %v9333_v55 = vpop.f32.mrb[140].mxu1 }
 0xdd0   : > { %v9334_v4 = vpop.f32.mrb[141].mxu1 }
 0xdd1   : > { %v9335_v11 = vadd.f32 %v9334_v4, %v9333_v55  ;;  %v9336_v22 = vpop.f32.mrb[142].mxu1 }
 0xdd2   : > { %v9337_v59 = vpop.f32.mrb[143].mxu1 }
 0xdd3   : > { %v7644_v61 = vadd.f32 %v9335_v11, %v8494_v25  ;;  %v9338_v30 = vadd.f32 %v9337_v59, %v9336_v22  ;;  %v7736_v11 = vld [vmem:[%s13490_s0 + $0x40] sm:$0xff] (!%p8513_p5)  ;;  %v7737_v22 = vld [vmem:[%s13490_s0 + $0x48] sm:$0xff] (!%p8513_p5)  ;;  %v7738_v59 = vld [vmem:[%s13490_s0 + $0x50] sm:$0xff] (!%p8513_p5) }
 0xdd5   : > { %v7657_v53 = vmul.f32 0.7072136, %v7644_v61  ;;  %v7647_v48 = vadd.f32 %v9338_v30, %v8494_v25  ;;  %v10356_v61 = vmov (!%p8513_p5), 0.0|0.0   ;;  %v9991_v30 = vpack.c.bf16 (!%p8513_p5), %v7737_v22, %v7736_v11 }
 0xdd6   : > { %9990 = vmatprep.subr.bf16.mxu0 (!%p8513_p5), %v10356_v61  ;;  %9978 = vmatprep.subr.bf16.mxu1 (!%p8513_p5), %v10356_v61 }
 0xdd7   : > { %v7663_v46 = vadd.f32 %v7660_v18, %v7657_v53  ;;  %v7658_v37 = vmul.f32 0.7072136, %v7647_v48  ;;  %v9339_v24 = vpop.f32.mrb[144].mxu1  ;;  %v7739_v53 = vld [vmem:[%s13490_s0 + $0x58] sm:$0xff] (!%p8513_p5)  ;;  %v7728_v18 = vld [vmem:[%s13490_s0] sm:$0xff] (!%p8513_p5)  ;;  %v10358_v48 = vmov (!%p8513_p5), 0.0   ;;  %9992 = vmatpush3.bf16.msra.mxu0 (!%p8513_p5), %v9991_v30 }
 0xdd8   : > { %v9340_v15 = vpop.f32.mrb[145].mxu1  ;;  %9485 = vmatprep.mubr.msk.f32.mxu0 (!%p8513_p5), %vm10357_vm7, %v10358_v48  ;;  %9466 = vmatprep.mubr.msk.f32.mxu1 (!%p8513_p5), %vm10357_vm7, %v10358_v48 }
 0xdd9   : > { %v7664_v38 = vadd.f32 %v7661_v10, %v7658_v37  ;;  %v9341_v28 = vadd.f32 %v9340_v15, %v9339_v24  ;;  %v9342_v44 = vpop.f32.mrb[146].mxu1  ;;  %v7666_v33 = vsel %vm2579_vm1, %v7663_v46, 0.0  ;;  %v7740_v37 = vld [vmem:[%s13490_s0 + $0x60] sm:$0xff] (!%p8513_p5)  ;;  %v7729_v10 = vld [vmem:[%s13490_s0 + $0x8] sm:$0xff] (!%p8513_p5)  ;;  %9993 = vmatprep.subr.bf16.mxu0 (!%p8513_p5), %v10356_v61 }
 0xdda   : > { %v9343_v6 = vpop.f32.mrb[147].mxu1  ;;  %v7741_v24 = vld [vmem:[%s13490_s0 + $0x68] sm:$0xff] (!%p8513_p5)  ;;  %v9979_v15 = vpack.c.bf16 (!%p8513_p5), %v7729_v10, %v7728_v18 }
 0xddb   : > { %v7667_v52 = vsel %vm2579_vm1, %v7664_v38, 0.0  ;;  %v7652_v0 = vadd.f32 %v9341_v28, %v8494_v25  ;;  %v7731_v28 = vld [vmem:[%s13490_s0 + $0x18] sm:$0xff] (!%p8513_p5)  ;;  %v9997_v6 = vpack.c.bf16 (!%p8513_p5), %v7741_v24, %v7740_v37 }
 0xddc   : > { %v7668_v40 = vadd.f32 %v7667_v52, %v7666_v33  ;;  %9980 = vmatpush3.bf16.msra.mxu1 (!%p8513_p5), %v9979_v15  ;;  %v7732_v33 = vld [vmem:[%s13490_s0 + $0x20] sm:$0xff] (!%p8513_p5)  ;;  %v7733_v52 = vld [vmem:[%s13490_s0 + $0x28] sm:$0xff] (!%p8513_p5) }
 0xddd   : > { %v7659_v43 = vmul.f32 0.7072136, %v7652_v0  ;;  %9981 = vmatprep.subr.bf16.mxu1 (!%p8513_p5), %v10356_v61  ;;  %v7742_v0 = vld [vmem:[%s13490_s0 + $0x70] sm:$0xff] (!%p8513_p5) }
 0xddf   : > { %v7665_v54 = vadd.f32 %v7662_v17, %v7659_v43  ;;  %v9985_v43 = vpack.c.bf16 (!%p8513_p5), %v7733_v52, %v7732_v33 }
 0xde1   : > { %v7669_v21 = vsel %vm2579_vm1, %v7665_v54, 0.0 }
 0xde2   : > { %v7670_v57 = vadd.f32 %v7669_v21, %v7668_v40  ;;  %v7743_v40 = vld [vmem:[%s13490_s0 + $0x78] sm:$0xff] (!%p8513_p5) }
 0xde3   : > { %v10000_v17 = vpack.c.bf16 (!%p8513_p5), %v7743_v40, %v7742_v0  ;;  %v7735_v21 = vld [vmem:[%s13490_s0 + $0x38] sm:$0xff] (!%p8513_p5) }
 0xde4   : > { %v7671_v8 = vrot.slane %v7670_v57, 4 }
 0xde6   : > { %v7672_v29 = vadd.f32 %v7671_v8, %v7670_v57  ;;  %v7744_v57 = vld [vmem:[%s13490_s0 + $0x80] sm:$0xff] (!%p8513_p5)  ;;  %v7745_v8 = vld [vmem:[%s13490_s0 + $0x88] sm:$0xff] (!%p8513_p5) }
 0xde8   : > { %v7673_v5 = vrot.slane %v7672_v29, 2 }
 0xdea   : > { %v7674_v23 = vadd.f32 %v7673_v5, %v7672_v29  ;;  %v10003_v5 = vpack.c.bf16 (!%p8513_p5), %v7745_v8, %v7744_v57 }
 0xdec   : > { %v7675_v41 = vrot.slane %v7674_v23, 1 }
 0xdee   : > { %v7676_v3 = vadd.f32 %v7675_v41, %v7674_v23  ;;  %v7746_v23 = vld [vmem:[%s13490_s0 + $0x90] sm:$0xff] (!%p8513_p5)  ;;  %v7747_v41 = vld [vmem:[%s13490_s0 + $0x98] sm:$0xff] (!%p8513_p5) }
 0xdf0   : > { %v7677_v51 = vmul.f32 0.041666668, %v7676_v3  ;;  %v10006_v3 = vpack.c.bf16 (!%p8513_p5), %v7747_v41, %v7746_v23 }
 0xdf2   : > { %v7678_v42 = vsub.f32 %v7663_v46, %v7677_v51  ;;  %v7679_v13 = vsub.f32 %v7664_v38, %v7677_v51  ;;  %v7680_v2 = vsub.f32 %v7665_v54, %v7677_v51  ;;  %v9994_v46 = vpack.c.bf16 (!%p8513_p5), %v7739_v53, %v7738_v59  ;;  %v7730_v38 = vld [vmem:[%s13490_s0 + $0x10] sm:$0xff] (!%p8513_p5)  ;;  %v7748_v51 = vld [vmem:[%s13490_s0 + $0xa0] sm:$0xff] (!%p8513_p5) }
 0xdf3   : > { %v9982_v44 = vpack.c.bf16 (!%p8513_p5), %v7731_v28, %v7730_v38  ;;  %v7734_v54 = vld [vmem:[%s13490_s0 + $0x30] sm:$0xff] (!%p8513_p5) }
 0xdf4   : > { %v7681_v36 = vmul.f32 %v7678_v42, %v7678_v42  ;;  %v7682_v26 = vmul.f32 %v7679_v13, %v7679_v13  ;;  %v7683_v1 = vmul.f32 %v7680_v2, %v7680_v2  ;;  %9995 = vmatpush3.bf16.msra.mxu0 (!%p8513_p5), %v9994_v46  ;;  %v9988_v29 = vpack.c.bf16 (!%p8513_p5), %v7735_v21, %v7734_v54 }
 0xdf5   : > { %9996 = vmatprep.subr.bf16.mxu0 (!%p8513_p5), %v10356_v61  ;;  %9983 = vmatpush3.bf16.msra.mxu1 (!%p8513_p5), %v9982_v44 }
 0xdf6   : > { %v7684_v12 = vsel %vm2579_vm1, %v7681_v36, 0.0  ;;  %v7685_v31 = vsel %vm2579_vm1, %v7682_v26, 0.0  ;;  %v7687_v39 = vsel %vm2579_vm1, %v7683_v1, 0.0  ;;  %9984 = vmatprep.subr.bf16.mxu1 (!%p8513_p5), %v10356_v61  ;;  %v7751_v36 = vld [vmem:[%s13490_s0 + $0xb8] sm:$0xff] (!%p8513_p5) }
 0xdf7   : > { %v7686_v63 = vadd.f32 %v7685_v31, %v7684_v12  ;;  %v8515_v31 = vld [vmem:[%s13491_s16] ss:$0 sm:$0xff] (!%p8513_p5) }
 0xdf8   : > { %9998 = vmatpush3.bf16.msra.mxu0 (!%p8513_p5), %v9997_v6 }
 0xdf9   : > { %v7688_v27 = vadd.f32 %v7687_v39, %v7686_v63  ;;  %9999 = vmatprep.subr.bf16.mxu0 (!%p8513_p5), %v10356_v61  ;;  %9986 = vmatpush3.bf16.msra.mxu1 (!%p8513_p5), %v9985_v43 }
 0xdfa   : > { %9987 = vmatprep.subr.bf16.mxu1 (!%p8513_p5), %v10356_v61 }
 0xdfb   : > { %v7689_v20 = vrot.slane %v7688_v27, 4 }
 0xdfc   : > { %10001 = vmatpush3.bf16.msra.mxu0 (!%p8513_p5), %v10000_v17 }
 0xdfd   : > { %v7690_v50 = vadd.f32 %v7689_v20, %v7688_v27  ;;  %10002 = vmatprep.subr.bf16.mxu0 (!%p8513_p5), %v10356_v61  ;;  %9989 = vmatpush3.bf16.msra.mxu1 (!%p8513_p5), %v9988_v29 }
 0xdff   : > { %v7691_v34 = vrot.slane %v7690_v50, 2 }
 0xe01   : > { %v7692_v35 = vadd.f32 %v7691_v34, %v7690_v50 }
 0xe03   : > { %v7693_v56 = vrot.slane %v7692_v35, 1 }
 0xe05   : > { %v7694_v9 = vadd.f32 %v7693_v56, %v7692_v35 }
 0xe07   : > { %v7695_v45 = vmul.f32 0.041666668, %v7694_v9 }
 0xe09   : > { %v7696_v19 = vadd.f32 1e-05, %v7695_v45 }
 0xe0b   : > { %10224 = vrsqrt.f32 %v7696_v19 }
 0xe15   : > { %v10225_v32 = vpop.eup %10224 }
 0xe16   : > { %v7698_v58 = vmul.f32 %v10225_v32, %v7678_v42  ;;  %v7699_v7 = vmul.f32 %v10225_v32, %v7679_v13  ;;  %v7700_v60 = vmul.f32 %v10225_v32, %v7680_v2  ;;  %v7749_v42 = vld [vmem:[%s13490_s0 + $0xa8] sm:$0xff] (!%p8513_p5)  ;;  %v7750_v2 = vld [vmem:[%s13490_s0 + $0xb0] sm:$0xff] (!%p8513_p5) }
 0xe17   : > { %7727 = sbr.rel (%p8513_p5) target bundleno = 3843 (0xf03), region = 196  ;;  %v10009_v13 = vpack.c.bf16 (!%p8513_p5), %v7749_v42, %v7748_v51  ;;  %v10012_v26 = vpack.c.bf16 (!%p8513_p5), %v7751_v36, %v7750_v2 }
 0xe18   : > { %v7708_v16 = vmul.f32 %v8511_v14, %v7698_v58  ;;  %v7709_v47 = vmul.f32 %v8511_v14, %v7699_v7  ;;  %v7710_v62 = vmul.f32 %v8511_v14, %v7700_v60 }
 0xe1a   : > { %v12675_v55 = vadd.f32 %v8512_v49, %v7708_v16  ;;  %v7719_v25 = vadd.f32 %v8512_v49, %v7709_v47  ;;  %v12677_v4 = vadd.f32 %v8512_v49, %v7710_v62 }
 0xe1c   : > { %7721 = vst.msk [vmem:[#allocation2] sm:$0xff] %vm2579_vm1, %v12675_v55  ;;  %7722 = vst.msk [vmem:[#allocation2 + $0x8] sm:$0xff] %vm2579_vm1, %v7719_v25  ;;  %9486 = vmatmul.mubr.msk.f32.vlgmr.msra.gmra.mrb[0].mxu0 (!%p8513_p5), %vm2579_vm1, %v7719_v25  ;;  %9467 = vmatmul.mubr.msk.f32.vlgmr.msra.gmra.mrb[0].mxu1 (!%p8513_p5), %vm2579_vm1, %v12675_v55 }
 0xe1d   : > { %7723 = vst.msk [vmem:[#allocation2 + $0x10] sm:$0xff] %vm2579_vm1, %v12677_v4  ;;  %10004 = vmatpush3.bf16.msra.mxu0 (!%p8513_p5), %v10003_v5  ;;  %9504 = vmatprep.mubr.msk.f32.mxu0 (!%p8513_p5), %vm10357_vm7, %v10358_v48 }
 0xe1e   : > { %10005 = vmatprep.subr.bf16.mxu0 %v10356_v61 }
 0xe21   : > { %10007 = vmatpush3.bf16.msra.mxu0 %v10006_v3 }
 0xe22   : > { %10008 = vmatprep.subr.bf16.mxu0 %v10356_v61 }
 0xe25   : > { %10010 = vmatpush3.bf16.msra.mxu0 %v10009_v13 }
 0xe26   : > { %10011 = vmatprep.subr.bf16.mxu0 %v10356_v61 }
 0xe29   : > { %10013 = vmatpush3.bf16.msra.mxu0 %v10012_v26 }
 0xe2c   : > { %9505 = vmatmul.mubr.msk.f32.vlgmr.msra.gmra.mrb[0].mxu0 %vm2579_vm1, %v12677_v4 }
 0xeef   : > { %v7822_v1 = vpop.f32.mrb[0].mxu1 }
 0xef0   : > { %v9468_v12 = vpop.f32.mrb[1].mxu1  ;;  %v7832_v63 = vadd.f32 %v8515_v31, %v7822_v1 }
 0xeff   : > { %v7976_v39 = vpop.f32.mrb[0].mxu0 }
 0xf00   : > { %v10017_v27 = vadd.f32 %v7976_v39, %v7832_v63  ;;  %v9506_v20 = vpop.f32.mrb[1].mxu0 }
 0xf02   : > { %7982 = vst.msk [vmem:[%s13492_s18] sm:$0xff] %vm7981_vm8, %v10017_v27 }
 0xf03 PF: > { %s13493_s1 = sld [smem:[#allocation39_spill]] }
 0xf09   : > { %s95_s15 = sadd.s32 1, %s13493_s1  }
 0xf0a   : > { %p92_p6 = scmp.ge.s32.totalorder %s95_s15, 6  }
 0xf0c   :  { %94 = sbr.rel (!%p92_p6) target bundleno = 84 (0x54), region = 309 }

</bundles_post_ra>
